<compile_context>
chip_gen: v7x
topology: tpu7x:2x2x1
jax: 0.10.0
libtpu: 0.0.40
codegen_flags: <defaults>
</compile_context>

<pallas_src>
import jax
import jax.numpy as jnp
from jax import lax
from jax.experimental import pallas as pl
from jax.experimental.pallas import tpu as pltpu


def _sigmoid(x):
    # exp on the EUP; approximate reciprocal also on the (otherwise idle) EUP slot
    # instead of a VPU divide.  Operands stay f32.
    return pl.reciprocal(1.0 + jnp.exp(-x), approx=True)


def _bilstm_layer_kernel(x_ref, wih_ref, whhf_ref, whhb_ref, b_ref, mask_ref,
                         y_ref, pf_scr, pb_scr, hf_scr, cf_scr, hb_scr, cb_scr):
    """Fused bidirectional LSTM layer over the whole padded sequence.

    x_ref:    (T*B, D_in) bf16   time-major inputs, flattened over (T, B)
    wih_ref:  (D_in, 8H)  bf16   [fwd i,f,g,o | bwd i,f,g,o] input->gate weights
    whhf_ref: (H, 4H)     bf16   fwd hidden->gate weights
    whhb_ref: (H, 4H)     bf16   bwd hidden->gate weights
    b_ref:    (1, 8H)     f32    (b_ih + b_hh) for both directions
    mask_ref: (T, B, 1)   f32    1.0 where t < len_b else 0.0
    y_ref:    (T, B, 2H)  f32    outputs; [:, :, :H] fwd, [:, :, H:] bwd
    """
    T = mask_ref.shape[0]
    B = mask_ref.shape[1]
    H = hf_scr.shape[1]

    # ---- Pre-pass: batched input projection for BOTH directions, one MXU matmul.
    proj = jnp.dot(x_ref[...], wih_ref[...],
                   preferred_element_type=jnp.float32) + b_ref[...]   # (T*B, 8H)
    pf_scr[...] = proj[:, : 4 * H]          # lane-aligned split at column 4H
    pb_scr[...] = proj[:, 4 * H:]

    hf_scr[...] = jnp.zeros_like(hf_scr)
    cf_scr[...] = jnp.zeros_like(cf_scr)
    hb_scr[...] = jnp.zeros_like(hb_scr)
    cb_scr[...] = jnp.zeros_like(cb_scr)

    def cell(gates, h, c, m):
        # NOTE: with H < 128 the gate slices are sub-lane (relayout ops); pick
        # H >= 128 at production sizes so they become free register views.
        i_g = _sigmoid(gates[:, 0 * H:1 * H])
        f_g = _sigmoid(gates[:, 1 * H:2 * H])
        g_g = jnp.tanh(gates[:, 2 * H:3 * H])
        o_g = _sigmoid(gates[:, 3 * H:4 * H])
        c_new = f_g * c + i_g * g_g
        h_new = o_g * jnp.tanh(c_new)
        valid = m > 0.5                       # (B, 1) bool, broadcasts over H
        h_upd = jnp.where(valid, h_new, h)    # freeze state past sequence end
        c_upd = jnp.where(valid, c_new, c)
        y_out = jnp.where(valid, h_new, 0.0)  # zero padded outputs
        return h_upd, c_upd, y_out

    def step(t, carry):
        tr = T - 1 - t
        row_f = pl.multiple_of(t * B, B)
        row_b = pl.multiple_of(tr * B, B)

        # ---- forward direction, time t
        gates_f = (pf_scr[pl.ds(row_f, B), :]
                   + jnp.dot(hf_scr[...].astype(jnp.bfloat16), whhf_ref[...],
                             preferred_element_type=jnp.float32))
        h_f, c_f, y_f = cell(gates_f, hf_scr[...], cf_scr[...], mask_ref[t])
        hf_scr[...] = h_f
        cf_scr[...] = c_f
        y_ref[t, :, 0:H] = y_f

        # ---- backward direction, time T-1-t (reversal via indexing, no flips)
        gates_b = (pb_scr[pl.ds(row_b, B), :]
                   + jnp.dot(hb_scr[...].astype(jnp.bfloat16), whhb_ref[...],
                             preferred_element_type=jnp.float32))
        h_b, c_b, y_b = cell(gates_b, hb_scr[...], cb_scr[...], mask_ref[tr])
        hb_scr[...] = h_b
        cb_scr[...] = c_b
        y_ref[tr, :, H:2 * H] = y_b
        return carry

    # Fully unrolled: small static T gives the scheduler cross-step visibility.
    lax.fori_loop(0, T, step, 0, unroll=True)


def _run_bilstm_layer(x_tbd, wih_cat, whh_f, whh_b, b_cat, mask_tb1):
    """One fused bidirectional LSTM layer. x_tbd: (T, B, D_in) -> (T, B, 2H)."""
    T, B, _ = x_tbd.shape
    H = whh_f.shape[0]
    x2d = x_tbd.reshape(T * B, -1).astype(jnp.bfloat16)   # flatten for the big matmul
    vmem = pl.BlockSpec(memory_space=pltpu.MemorySpace.VMEM)
    # TODO(synk): at production sizes (large T/B/H) add a time-blocked grid with
    # persistent h/c scratch (tiles sized for v7x's 64 MiB VMEM) and map the two
    # independent directions onto v7x's two TensorCores via a parallel grid axis.
    return pl.pallas_call(
        _bilstm_layer_kernel,
        out_shape=jax.ShapeDtypeStruct((T, B, 2 * H), jnp.float32),
        in_specs=[vmem] * 6,
        out_specs=vmem,
        scratch_shapes=[
            pltpu.VMEM((T * B, 4 * H), jnp.float32),   # fwd x-projection
            pltpu.VMEM((T * B, 4 * H), jnp.float32),   # bwd x-projection
            pltpu.VMEM((B, H), jnp.float32),           # h fwd
            pltpu.VMEM((B, H), jnp.float32),           # c fwd
            pltpu.VMEM((B, H), jnp.float32),           # h bwd
            pltpu.VMEM((B, H), jnp.float32),           # c bwd
        ],
    )(x2d, wih_cat, whh_f, whh_b, b_cat, mask_tb1)


def init_params(key, vocab_size, emb_dim, hidden_dim, num_layers):
    """Deterministic synthetic parameters matching nn.LSTM / classifier shapes."""
    keys = iter(jax.random.split(key, 3 + num_layers * 8))
    s = 1.0 / float(hidden_dim) ** 0.5
    params = {
        'embedding': jax.random.normal(next(keys), (vocab_size, emb_dim), jnp.float32),
        'w_cls': jax.random.uniform(next(keys), (2 * hidden_dim, 1), jnp.float32, -s, s),
        'b_cls': jax.random.uniform(next(keys), (1, 1), jnp.float32, -s, s),
        'layers': [],
    }
    for l in range(num_layers):
        d_in = emb_dim if l == 0 else 2 * hidden_dim
        layer = {}
        for dname in ('fwd', 'bwd'):
            w_ih = jax.random.uniform(next(keys), (d_in, 4 * hidden_dim), jnp.float32, -s, s)
            w_hh = jax.random.uniform(next(keys), (hidden_dim, 4 * hidden_dim), jnp.float32, -s, s)
            b_ih = jax.random.uniform(next(keys), (1, 4 * hidden_dim), jnp.float32, -s, s)
            b_hh = jax.random.uniform(next(keys), (1, 4 * hidden_dim), jnp.float32, -s, s)
            layer[dname] = (w_ih, w_hh, b_ih + b_hh)
        params['layers'].append(layer)
    return params


def bilstm_net_forward(params, token_ids, context_lens):
    """token_ids: (B, T) int32, context_lens: (B,) int32 -> (B, 1) float32."""
    B, T = token_ids.shape
    # Embedding lookup (fixed embedding) — glue, stays in plain JAX.
    emb = jnp.take(params['embedding'], token_ids, axis=0)          # (B, T, E)
    x = jnp.transpose(emb, (1, 0, 2)).astype(jnp.float32)           # (T, B, E) time-major
    mask = (jnp.arange(T)[:, None] < context_lens[None, :]
            ).astype(jnp.float32)[:, :, None]                       # (T, B, 1)

    layer_in = x
    for layer in params['layers']:
        wf_ih, wf_hh, bf = layer['fwd']
        wb_ih, wb_hh, bb = layer['bwd']
        # Combined weights: shared x-projection is (D_in, 8H); bf16 MXU operands.
        wih_cat = jnp.concatenate([wf_ih, wb_ih], axis=1).astype(jnp.bfloat16)
        b_cat = jnp.concatenate([bf, bb], axis=1)                    # f32 bias
        layer_in = _run_bilstm_layer(layer_in, wih_cat,
                                     wf_hh.astype(jnp.bfloat16),
                                     wb_hh.astype(jnp.bfloat16),
                                     b_cat, mask)                    # (T, B, 2H)

    # The PyTorch module sorts by length for pack_padded_sequence and un-sorts
    # with un_idx; the net permutation is identity on the result, so it's elided.
    # out[i] = output[i, context_lens[i] - 1, :]  (last valid timestep)
    feat = layer_in[context_lens - 1, jnp.arange(B), :]              # (B, 2H)
    # Classifier (Dropout -> Linear(2H, 1) -> Sigmoid); dropout identity in eval.
    # Kept in plain JAX per review: negligible compute with a 1-wide output.
    logits = feat @ params['w_cls'] + params['b_cls']
    return jax.nn.sigmoid(logits)                                    # (B, 1)


if __name__ == "__main__":
    key = jax.random.PRNGKey(0)
    B, T, VOCAB, EMB, HID, LAYERS = 2, 8, 50, 16, 32, 2

    k_params, k_tok = jax.random.split(key)
    params = init_params(k_params, VOCAB, EMB, HID, LAYERS)
    token_ids = jax.random.randint(k_tok, (B, T), 0, VOCAB, dtype=jnp.int32)
    context_lens = jnp.array([8, 5], dtype=jnp.int32)   # variable-length sequences

    out = jax.jit(bilstm_net_forward)(params, token_ids, context_lens)
    out = jax.block_until_ready(out)
    assert out.shape == (B, 1) and out.dtype == jnp.float32
    print("KERNEL_OK")
</pallas_src>

<mosaic_0001>
module attributes {stable_mosaic.version = 11 : i64} {
  func.func @_bilstm_layer_kernel(%arg0: memref<16x16xbf16, #tpu.memory_space<vmem>>, %arg1: memref<16x256xbf16, #tpu.memory_space<vmem>>, %arg2: memref<32x128xbf16, #tpu.memory_space<vmem>>, %arg3: memref<32x128xbf16, #tpu.memory_space<vmem>>, %arg4: memref<1x256xf32, #tpu.memory_space<vmem>>, %arg5: memref<8x2x1xf32, #tpu.memory_space<vmem>>, %arg6: memref<8x2x64xf32, #tpu.memory_space<vmem>>, %arg7: memref<16x128xf32, #tpu.memory_space<vmem>>, %arg8: memref<16x128xf32, #tpu.memory_space<vmem>>, %arg9: memref<2x32xf32, #tpu.memory_space<vmem>>, %arg10: memref<2x32xf32, #tpu.memory_space<vmem>>, %arg11: memref<2x32xf32, #tpu.memory_space<vmem>>, %arg12: memref<2x32xf32, #tpu.memory_space<vmem>>) attributes {dimension_semantics = [], scalar_prefetch = 0 : i64, scratch_operands = 6 : i64, tpu.core_type = #tpu.core_type<tc>} {
    %c0 = arith.constant 0 : index
    %c0_0 = arith.constant 0 : index
    %0 = vector.load %arg0[%c0, %c0_0] : memref<16x16xbf16, #tpu.memory_space<vmem>>, vector<16x16xbf16>
    %c0_1 = arith.constant 0 : index
    %c0_2 = arith.constant 0 : index
    %1 = vector.load %arg1[%c0_1, %c0_2] : memref<16x256xbf16, #tpu.memory_space<vmem>>, vector<16x256xbf16>
    %cst = arith.constant dense<0.000000e+00> : vector<16x256xf32>
    %2 = tpu.matmul %0, %1, %cst {dimension_numbers = #tpu.dot_dimension_numbers<[1], [0], [0], [1], [0, 0, 1, 1], [], []>} : vector<16x16xbf16>, vector<16x256xbf16>, vector<16x256xf32> -> vector<16x256xf32>
    %c0_3 = arith.constant 0 : index
    %c0_4 = arith.constant 0 : index
    %3 = vector.load %arg4[%c0_3, %c0_4] : memref<1x256xf32, #tpu.memory_space<vmem>>, vector<1x256xf32>
    %4 = vector.broadcast %3 : vector<1x256xf32> to vector<16x256xf32>
    %5 = arith.addf %2, %4 : vector<16x256xf32>
    %6 = vector.extract_strided_slice %5 {offsets = [0, 0], sizes = [16, 128], strides = [1, 1]} : vector<16x256xf32> to vector<16x128xf32>
    %c0_5 = arith.constant 0 : index
    %c0_6 = arith.constant 0 : index
    %7 = vector.load %arg7[%c0_5, %c0_6] : memref<16x128xf32, #tpu.memory_space<vmem>>, vector<16x128xf32>
    tpu.vector_store %arg7[%c0_5, %c0_6], %6 {strides = array<i32>} : memref<16x128xf32, #tpu.memory_space<vmem>>, vector<16x128xf32>,
    %8 = vector.extract_strided_slice %5 {offsets = [0, 128], sizes = [16, 128], strides = [1, 1]} : vector<16x256xf32> to vector<16x128xf32>
    %c0_7 = arith.constant 0 : index
    %c0_8 = arith.constant 0 : index
    %9 = vector.load %arg8[%c0_7, %c0_8] : memref<16x128xf32, #tpu.memory_space<vmem>>, vector<16x128xf32>
    tpu.vector_store %arg8[%c0_7, %c0_8], %8 {strides = array<i32>} : memref<16x128xf32, #tpu.memory_space<vmem>>, vector<16x128xf32>,
    %cst_9 = arith.constant 0.000000e+00 : f32
    %10 = vector.broadcast %cst_9 : f32 to vector<2x32xf32>
    %c0_10 = arith.constant 0 : index
    %c0_11 = arith.constant 0 : index
    %11 = vector.load %arg9[%c0_10, %c0_11] : memref<2x32xf32, #tpu.memory_space<vmem>>, vector<2x32xf32>
    tpu.vector_store %arg9[%c0_10, %c0_11], %10 {strides = array<i32>} : memref<2x32xf32, #tpu.memory_space<vmem>>, vector<2x32xf32>,
    %cst_12 = arith.constant 0.000000e+00 : f32
    %12 = vector.broadcast %cst_12 : f32 to vector<2x32xf32>
    %c0_13 = arith.constant 0 : index
    %c0_14 = arith.constant 0 : index
    %13 = vector.load %arg10[%c0_13, %c0_14] : memref<2x32xf32, #tpu.memory_space<vmem>>, vector<2x32xf32>
    tpu.vector_store %arg10[%c0_13, %c0_14], %12 {strides = array<i32>} : memref<2x32xf32, #tpu.memory_space<vmem>>, vector<2x32xf32>,
    %cst_15 = arith.constant 0.000000e+00 : f32
    %14 = vector.broadcast %cst_15 : f32 to vector<2x32xf32>
    %c0_16 = arith.constant 0 : index
    %c0_17 = arith.constant 0 : index
    %15 = vector.load %arg11[%c0_16, %c0_17] : memref<2x32xf32, #tpu.memory_space<vmem>>, vector<2x32xf32>
    tpu.vector_store %arg11[%c0_16, %c0_17], %14 {strides = array<i32>} : memref<2x32xf32, #tpu.memory_space<vmem>>, vector<2x32xf32>,
    %cst_18 = arith.constant 0.000000e+00 : f32
    %16 = vector.broadcast %cst_18 : f32 to vector<2x32xf32>
    %c0_19 = arith.constant 0 : index
    %c0_20 = arith.constant 0 : index
    %17 = vector.load %arg12[%c0_19, %c0_20] : memref<2x32xf32, #tpu.memory_space<vmem>>, vector<2x32xf32>
    tpu.vector_store %arg12[%c0_19, %c0_20], %16 {strides = array<i32>} : memref<2x32xf32, #tpu.memory_space<vmem>>, vector<2x32xf32>,
    %c0_i32 = arith.constant 0 : i32
    %c7_i32 = arith.constant 7 : i32
    %18 = arith.subi %c7_i32, %c0_i32 : i32
    %c2_i32 = arith.constant 2 : i32
    %19 = arith.muli %c0_i32, %c2_i32 : i32
    %20 = tpu.assume_multiple %19, 2 : i32
    %c2_i32_21 = arith.constant 2 : i32
    %21 = arith.muli %18, %c2_i32_21 : i32
    %22 = tpu.assume_multiple %21, 2 : i32
    %23 = arith.index_cast %20 : i32 to index
    %c0_22 = arith.constant 0 : index
    %24 = vector.load %arg7[%23, %c0_22] : memref<16x128xf32, #tpu.memory_space<vmem>>, vector<2x128xf32>
    %c0_23 = arith.constant 0 : index
    %c0_24 = arith.constant 0 : index
    %25 = vector.load %arg9[%c0_23, %c0_24] : memref<2x32xf32, #tpu.memory_space<vmem>>, vector<2x32xf32>
    %26 = arith.truncf %25 : vector<2x32xf32> to vector<2x32xbf16>
    %c0_25 = arith.constant 0 : index
    %c0_26 = arith.constant 0 : index
    %27 = vector.load %arg2[%c0_25, %c0_26] : memref<32x128xbf16, #tpu.memory_space<vmem>>, vector<32x128xbf16>
    %cst_27 = arith.constant dense<0.000000e+00> : vector<2x128xf32>
    %28 = tpu.matmul %26, %27, %cst_27 {dimension_numbers = #tpu.dot_dimension_numbers<[1], [0], [0], [1], [0, 0, 1, 1], [], []>} : vector<2x32xbf16>, vector<32x128xbf16>, vector<2x128xf32> -> vector<2x128xf32>
    %29 = arith.addf %24, %28 : vector<2x128xf32>
    %c0_28 = arith.constant 0 : index
    %c0_29 = arith.constant 0 : index
    %30 = vector.load %arg9[%c0_28, %c0_29] : memref<2x32xf32, #tpu.memory_space<vmem>>, vector<2x32xf32>
    %c0_30 = arith.constant 0 : index
    %c0_31 = arith.constant 0 : index
    %31 = vector.load %arg10[%c0_30, %c0_31] : memref<2x32xf32, #tpu.memory_space<vmem>>, vector<2x32xf32>
    %32 = arith.index_cast %c0_i32 : i32 to index
    %c0_32 = arith.constant 0 : index
    %c0_33 = arith.constant 0 : index
    %33 = vector.load %arg5[%32, %c0_32, %c0_33] : memref<8x2x1xf32, #tpu.memory_space<vmem>>, vector<1x2x1xf32>
    %34 = vector.shape_cast %33 : vector<1x2x1xf32> to vector<2x1xf32>
    %35 = vector.extract_strided_slice %29 {offsets = [0, 0], sizes = [2, 32], strides = [1, 1]} : vector<2x128xf32> to vector<2x32xf32>
    %cst_34 = arith.constant 0.000000e+00 : f32
    %36 = vector.broadcast %cst_34 : f32 to vector<2x32xf32>
    %37 = arith.subf %36, %35 : vector<2x32xf32>
    %38 = math.exp %37 : vector<2x32xf32>
    %cst_35 = arith.constant 1.000000e+00 : f32
    %39 = vector.broadcast %cst_35 : f32 to vector<2x32xf32>
    %40 = arith.addf %39, %38 : vector<2x32xf32>
    %41 = tpu.reciprocal %40 {approx = true} : vector<2x32xf32> -> vector<2x32xf32>
    %42 = vector.extract_strided_slice %29 {offsets = [0, 32], sizes = [2, 32], strides = [1, 1]} : vector<2x128xf32> to vector<2x32xf32>
    %cst_36 = arith.constant 0.000000e+00 : f32
    %43 = vector.broadcast %cst_36 : f32 to vector<2x32xf32>
    %44 = arith.subf %43, %42 : vector<2x32xf32>
    %45 = math.exp %44 : vector<2x32xf32>
    %cst_37 = arith.constant 1.000000e+00 : f32
    %46 = vector.broadcast %cst_37 : f32 to vector<2x32xf32>
    %47 = arith.addf %46, %45 : vector<2x32xf32>
    %48 = tpu.reciprocal %47 {approx = true} : vector<2x32xf32> -> vector<2x32xf32>
    %49 = vector.extract_strided_slice %29 {offsets = [0, 64], sizes = [2, 32], strides = [1, 1]} : vector<2x128xf32> to vector<2x32xf32>
    %50 = math.tanh %49 : vector<2x32xf32>
    %51 = vector.extract_strided_slice %29 {offsets = [0, 96], sizes = [2, 32], strides = [1, 1]} : vector<2x128xf32> to vector<2x32xf32>
    %cst_38 = arith.constant 0.000000e+00 : f32
    %52 = vector.broadcast %cst_38 : f32 to vector<2x32xf32>
    %53 = arith.subf %52, %51 : vector<2x32xf32>
    %54 = math.exp %53 : vector<2x32xf32>
    %cst_39 = arith.constant 1.000000e+00 : f32
    %55 = vector.broadcast %cst_39 : f32 to vector<2x32xf32>
    %56 = arith.addf %55, %54 : vector<2x32xf32>
    %57 = tpu.reciprocal %56 {approx = true} : vector<2x32xf32> -> vector<2x32xf32>
    %58 = arith.mulf %48, %31 : vector<2x32xf32>
    %59 = arith.mulf %41, %50 : vector<2x32xf32>
    %60 = arith.addf %58, %59 : vector<2x32xf32>
    %61 = math.tanh %60 : vector<2x32xf32>
    %62 = arith.mulf %57, %61 : vector<2x32xf32>
    %cst_40 = arith.constant 5.000000e-01 : f32
    %63 = vector.broadcast %cst_40 : f32 to vector<2x1xf32>
    %64 = arith.cmpf ogt, %34, %63 : vector<2x1xf32>
    %65 = vector.shape_cast %64 : vector<2x1xi1> to vector<2x1xi1>
    %66 = vector.broadcast %65 : vector<2x1xi1> to vector<2x32xi1>
    %67 = arith.select %66, %62, %30 : vector<2x32xi1>, vector<2x32xf32>
    %68 = vector.shape_cast %64 : vector<2x1xi1> to vector<2x1xi1>
    %69 = vector.broadcast %68 : vector<2x1xi1> to vector<2x32xi1>
    %70 = arith.select %69, %60, %31 : vector<2x32xi1>, vector<2x32xf32>
    %cst_41 = arith.constant 0.000000e+00 : f32
    %71 = vector.shape_cast %64 : vector<2x1xi1> to vector<2x1xi1>
    %72 = vector.broadcast %71 : vector<2x1xi1> to vector<2x32xi1>
    %73 = vector.broadcast %cst_41 : f32 to vector<2x32xf32>
    %74 = arith.select %72, %62, %73 : vector<2x32xi1>, vector<2x32xf32>
    %c0_42 = arith.constant 0 : index
    %c0_43 = arith.constant 0 : index
    %75 = vector.load %arg9[%c0_42, %c0_43] : memref<2x32xf32, #tpu.memory_space<vmem>>, vector<2x32xf32>
    tpu.vector_store %arg9[%c0_42, %c0_43], %67 {strides = array<i32>} : memref<2x32xf32, #tpu.memory_space<vmem>>, vector<2x32xf32>,
    %c0_44 = arith.constant 0 : index
    %c0_45 = arith.constant 0 : index
    %76 = vector.load %arg10[%c0_44, %c0_45] : memref<2x32xf32, #tpu.memory_space<vmem>>, vector<2x32xf32>
    tpu.vector_store %arg10[%c0_44, %c0_45], %70 {strides = array<i32>} : memref<2x32xf32, #tpu.memory_space<vmem>>, vector<2x32xf32>,
    %77 = arith.index_cast %c0_i32 : i32 to index
    %c0_46 = arith.constant 0 : index
    %c0_47 = arith.constant 0 : index
    %78 = vector.load %arg6[%77, %c0_46, %c0_47] : memref<8x2x64xf32, #tpu.memory_space<vmem>>, vector<1x2x32xf32>
    %79 = vector.shape_cast %78 : vector<1x2x32xf32> to vector<2x32xf32>
    %80 = vector.shape_cast %74 : vector<2x32xf32> to vector<1x2x32xf32>
    tpu.vector_store %arg6[%77, %c0_46, %c0_47], %80 {strides = array<i32>} : memref<8x2x64xf32, #tpu.memory_space<vmem>>, vector<1x2x32xf32>,
    %81 = arith.index_cast %22 : i32 to index
    %c0_48 = arith.constant 0 : index
    %82 = vector.load %arg8[%81, %c0_48] : memref<16x128xf32, #tpu.memory_space<vmem>>, vector<2x128xf32>
    %c0_49 = arith.constant 0 : index
    %c0_50 = arith.constant 0 : index
    %83 = vector.load %arg11[%c0_49, %c0_50] : memref<2x32xf32, #tpu.memory_space<vmem>>, vector<2x32xf32>
    %84 = arith.truncf %83 : vector<2x32xf32> to vector<2x32xbf16>
    %c0_51 = arith.constant 0 : index
    %c0_52 = arith.constant 0 : index
    %85 = vector.load %arg3[%c0_51, %c0_52] : memref<32x128xbf16, #tpu.memory_space<vmem>>, vector<32x128xbf16>
    %cst_53 = arith.constant dense<0.000000e+00> : vector<2x128xf32>
    %86 = tpu.matmul %84, %85, %cst_53 {dimension_numbers = #tpu.dot_dimension_numbers<[1], [0], [0], [1], [0, 0, 1, 1], [], []>} : vector<2x32xbf16>, vector<32x128xbf16>, vector<2x128xf32> -> vector<2x128xf32>
    %87 = arith.addf %82, %86 : vector<2x128xf32>
    %c0_54 = arith.constant 0 : index
    %c0_55 = arith.constant 0 : index
    %88 = vector.load %arg11[%c0_54, %c0_55] : memref<2x32xf32, #tpu.memory_space<vmem>>, vector<2x32xf32>
    %c0_56 = arith.constant 0 : index
    %c0_57 = arith.constant 0 : index
    %89 = vector.load %arg12[%c0_56, %c0_57] : memref<2x32xf32, #tpu.memory_space<vmem>>, vector<2x32xf32>
    %90 = arith.index_cast %18 : i32 to index
    %c0_58 = arith.constant 0 : index
    %c0_59 = arith.constant 0 : index
    %91 = vector.load %arg5[%90, %c0_58, %c0_59] : memref<8x2x1xf32, #tpu.memory_space<vmem>>, vector<1x2x1xf32>
    %92 = vector.shape_cast %91 : vector<1x2x1xf32> to vector<2x1xf32>
    %93 = vector.extract_strided_slice %87 {offsets = [0, 0], sizes = [2, 32], strides = [1, 1]} : vector<2x128xf32> to vector<2x32xf32>
    %cst_60 = arith.constant 0.000000e+00 : f32
    %94 = vector.broadcast %cst_60 : f32 to vector<2x32xf32>
    %95 = arith.subf %94, %93 : vector<2x32xf32>
    %96 = math.exp %95 : vector<2x32xf32>
    %cst_61 = arith.constant 1.000000e+00 : f32
    %97 = vector.broadcast %cst_61 : f32 to vector<2x32xf32>
    %98 = arith.addf %97, %96 : vector<2x32xf32>
    %99 = tpu.reciprocal %98 {approx = true} : vector<2x32xf32> -> vector<2x32xf32>
    %100 = vector.extract_strided_slice %87 {offsets = [0, 32], sizes = [2, 32], strides = [1, 1]} : vector<2x128xf32> to vector<2x32xf32>
    %cst_62 = arith.constant 0.000000e+00 : f32
    %101 = vector.broadcast %cst_62 : f32 to vector<2x32xf32>
    %102 = arith.subf %101, %100 : vector<2x32xf32>
    %103 = math.exp %102 : vector<2x32xf32>
    %cst_63 = arith.constant 1.000000e+00 : f32
    %104 = vector.broadcast %cst_63 : f32 to vector<2x32xf32>
    %105 = arith.addf %104, %103 : vector<2x32xf32>
    %106 = tpu.reciprocal %105 {approx = true} : vector<2x32xf32> -> vector<2x32xf32>
    %107 = vector.extract_strided_slice %87 {offsets = [0, 64], sizes = [2, 32], strides = [1, 1]} : vector<2x128xf32> to vector<2x32xf32>
    %108 = math.tanh %107 : vector<2x32xf32>
    %109 = vector.extract_strided_slice %87 {offsets = [0, 96], sizes = [2, 32], strides = [1, 1]} : vector<2x128xf32> to vector<2x32xf32>
    %cst_64 = arith.constant 0.000000e+00 : f32
    %110 = vector.broadcast %cst_64 : f32 to vector<2x32xf32>
    %111 = arith.subf %110, %109 : vector<2x32xf32>
    %112 = math.exp %111 : vector<2x32xf32>
    %cst_65 = arith.constant 1.000000e+00 : f32
    %113 = vector.broadcast %cst_65 : f32 to vector<2x32xf32>
    %114 = arith.addf %113, %112 : vector<2x32xf32>
    %115 = tpu.reciprocal %114 {approx = true} : vector<2x32xf32> -> vector<2x32xf32>
    %116 = arith.mulf %106, %89 : vector<2x32xf32>
    %117 = arith.mulf %99, %108 : vector<2x32xf32>
    %118 = arith.addf %116, %117 : vector<2x32xf32>
    %119 = math.tanh %118 : vector<2x32xf32>
    %120 = arith.mulf %115, %119 : vector<2x32xf32>
    %cst_66 = arith.constant 5.000000e-01 : f32
    %121 = vector.broadcast %cst_66 : f32 to vector<2x1xf32>
    %122 = arith.cmpf ogt, %92, %121 : vector<2x1xf32>
    %123 = vector.shape_cast %122 : vector<2x1xi1> to vector<2x1xi1>
    %124 = vector.broadcast %123 : vector<2x1xi1> to vector<2x32xi1>
    %125 = arith.select %124, %120, %88 : vector<2x32xi1>, vector<2x32xf32>
    %126 = vector.shape_cast %122 : vector<2x1xi1> to vector<2x1xi1>
    %127 = vector.broadcast %126 : vector<2x1xi1> to vector<2x32xi1>
    %128 = arith.select %127, %118, %89 : vector<2x32xi1>, vector<2x32xf32>
    %cst_67 = arith.constant 0.000000e+00 : f32
    %129 = vector.shape_cast %122 : vector<2x1xi1> to vector<2x1xi1>
    %130 = vector.broadcast %129 : vector<2x1xi1> to vector<2x32xi1>
    %131 = vector.broadcast %cst_67 : f32 to vector<2x32xf32>
    %132 = arith.select %130, %120, %131 : vector<2x32xi1>, vector<2x32xf32>
    %c0_68 = arith.constant 0 : index
    %c0_69 = arith.constant 0 : index
    %133 = vector.load %arg11[%c0_68, %c0_69] : memref<2x32xf32, #tpu.memory_space<vmem>>, vector<2x32xf32>
    tpu.vector_store %arg11[%c0_68, %c0_69], %125 {strides = array<i32>} : memref<2x32xf32, #tpu.memory_space<vmem>>, vector<2x32xf32>,
    %c0_70 = arith.constant 0 : index
    %c0_71 = arith.constant 0 : index
    %134 = vector.load %arg12[%c0_70, %c0_71] : memref<2x32xf32, #tpu.memory_space<vmem>>, vector<2x32xf32>
    tpu.vector_store %arg12[%c0_70, %c0_71], %128 {strides = array<i32>} : memref<2x32xf32, #tpu.memory_space<vmem>>, vector<2x32xf32>,
    %135 = arith.index_cast %18 : i32 to index
    %c0_72 = arith.constant 0 : index
    %c32 = arith.constant 32 : index
    %136 = vector.load %arg6[%135, %c0_72, %c32] : memref<8x2x64xf32, #tpu.memory_space<vmem>>, vector<1x2x32xf32>
    %137 = vector.shape_cast %136 : vector<1x2x32xf32> to vector<2x32xf32>
    %138 = vector.shape_cast %132 : vector<2x32xf32> to vector<1x2x32xf32>
    tpu.vector_store %arg6[%135, %c0_72, %c32], %138 {strides = array<i32>} : memref<8x2x64xf32, #tpu.memory_space<vmem>>, vector<1x2x32xf32>,
    %c1_i32 = arith.constant 1 : i32
    %c7_i32_73 = arith.constant 7 : i32
    %139 = arith.subi %c7_i32_73, %c1_i32 : i32
    %c2_i32_74 = arith.constant 2 : i32
    %140 = arith.muli %c1_i32, %c2_i32_74 : i32
    %141 = tpu.assume_multiple %140, 2 : i32
    %c2_i32_75 = arith.constant 2 : i32
    %142 = arith.muli %139, %c2_i32_75 : i32
    %143 = tpu.assume_multiple %142, 2 : i32
    %144 = arith.index_cast %141 : i32 to index
    %c0_76 = arith.constant 0 : index
    %145 = vector.load %arg7[%144, %c0_76] : memref<16x128xf32, #tpu.memory_space<vmem>>, vector<2x128xf32>
    %c0_77 = arith.constant 0 : index
    %c0_78 = arith.constant 0 : index
    %146 = vector.load %arg9[%c0_77, %c0_78] : memref<2x32xf32, #tpu.memory_space<vmem>>, vector<2x32xf32>
    %147 = arith.truncf %146 : vector<2x32xf32> to vector<2x32xbf16>
    %c0_79 = arith.constant 0 : index
    %c0_80 = arith.constant 0 : index
    %148 = vector.load %arg2[%c0_79, %c0_80] : memref<32x128xbf16, #tpu.memory_space<vmem>>, vector<32x128xbf16>
    %cst_81 = arith.constant dense<0.000000e+00> : vector<2x128xf32>
    %149 = tpu.matmul %147, %148, %cst_81 {dimension_numbers = #tpu.dot_dimension_numbers<[1], [0], [0], [1], [0, 0, 1, 1], [], []>} : vector<2x32xbf16>, vector<32x128xbf16>, vector<2x128xf32> -> vector<2x128xf32>
    %150 = arith.addf %145, %149 : vector<2x128xf32>
    %c0_82 = arith.constant 0 : index
    %c0_83 = arith.constant 0 : index
    %151 = vector.load %arg9[%c0_82, %c0_83] : memref<2x32xf32, #tpu.memory_space<vmem>>, vector<2x32xf32>
    %c0_84 = arith.constant 0 : index
    %c0_85 = arith.constant 0 : index
    %152 = vector.load %arg10[%c0_84, %c0_85] : memref<2x32xf32, #tpu.memory_space<vmem>>, vector<2x32xf32>
    %153 = arith.index_cast %c1_i32 : i32 to index
    %c0_86 = arith.constant 0 : index
    %c0_87 = arith.constant 0 : index
    %154 = vector.load %arg5[%153, %c0_86, %c0_87] : memref<8x2x1xf32, #tpu.memory_space<vmem>>, vector<1x2x1xf32>
    %155 = vector.shape_cast %154 : vector<1x2x1xf32> to vector<2x1xf32>
    %156 = vector.extract_strided_slice %150 {offsets = [0, 0], sizes = [2, 32], strides = [1, 1]} : vector<2x128xf32> to vector<2x32xf32>
    %cst_88 = arith.constant 0.000000e+00 : f32
    %157 = vector.broadcast %cst_88 : f32 to vector<2x32xf32>
    %158 = arith.subf %157, %156 : vector<2x32xf32>
    %159 = math.exp %158 : vector<2x32xf32>
    %cst_89 = arith.constant 1.000000e+00 : f32
    %160 = vector.broadcast %cst_89 : f32 to vector<2x32xf32>
    %161 = arith.addf %160, %159 : vector<2x32xf32>
    %162 = tpu.reciprocal %161 {approx = true} : vector<2x32xf32> -> vector<2x32xf32>
    %163 = vector.extract_strided_slice %150 {offsets = [0, 32], sizes = [2, 32], strides = [1, 1]} : vector<2x128xf32> to vector<2x32xf32>
    %cst_90 = arith.constant 0.000000e+00 : f32
    %164 = vector.broadcast %cst_90 : f32 to vector<2x32xf32>
    %165 = arith.subf %164, %163 : vector<2x32xf32>
    %166 = math.exp %165 : vector<2x32xf32>
    %cst_91 = arith.constant 1.000000e+00 : f32
    %167 = vector.broadcast %cst_91 : f32 to vector<2x32xf32>
    %168 = arith.addf %167, %166 : vector<2x32xf32>
    %169 = tpu.reciprocal %168 {approx = true} : vector<2x32xf32> -> vector<2x32xf32>
    %170 = vector.extract_strided_slice %150 {offsets = [0, 64], sizes = [2, 32], strides = [1, 1]} : vector<2x128xf32> to vector<2x32xf32>
    %171 = math.tanh %170 : vector<2x32xf32>
    %172 = vector.extract_strided_slice %150 {offsets = [0, 96], sizes = [2, 32], strides = [1, 1]} : vector<2x128xf32> to vector<2x32xf32>
    %cst_92 = arith.constant 0.000000e+00 : f32
    %173 = vector.broadcast %cst_92 : f32 to vector<2x32xf32>
    %174 = arith.subf %173, %172 : vector<2x32xf32>
    %175 = math.exp %174 : vector<2x32xf32>
    %cst_93 = arith.constant 1.000000e+00 : f32
    %176 = vector.broadcast %cst_93 : f32 to vector<2x32xf32>
    %177 = arith.addf %176, %175 : vector<2x32xf32>
    %178 = tpu.reciprocal %177 {approx = true} : vector<2x32xf32> -> vector<2x32xf32>
    %179 = arith.mulf %169, %152 : vector<2x32xf32>
    %180 = arith.mulf %162, %171 : vector<2x32xf32>
    %181 = arith.addf %179, %180 : vector<2x32xf32>
    %182 = math.tanh %181 : vector<2x32xf32>
    %183 = arith.mulf %178, %182 : vector<2x32xf32>
    %cst_94 = arith.constant 5.000000e-01 : f32
    %184 = vector.broadcast %cst_94 : f32 to vector<2x1xf32>
    %185 = arith.cmpf ogt, %155, %184 : vector<2x1xf32>
    %186 = vector.shape_cast %185 : vector<2x1xi1> to vector<2x1xi1>
    %187 = vector.broadcast %186 : vector<2x1xi1> to vector<2x32xi1>
    %188 = arith.select %187, %183, %151 : vector<2x32xi1>, vector<2x32xf32>
    %189 = vector.shape_cast %185 : vector<2x1xi1> to vector<2x1xi1>
    %190 = vector.broadcast %189 : vector<2x1xi1> to vector<2x32xi1>
    %191 = arith.select %190, %181, %152 : vector<2x32xi1>, vector<2x32xf32>
    %cst_95 = arith.constant 0.000000e+00 : f32
    %192 = vector.shape_cast %185 : vector<2x1xi1> to vector<2x1xi1>
    %193 = vector.broadcast %192 : vector<2x1xi1> to vector<2x32xi1>
    %194 = vector.broadcast %cst_95 : f32 to vector<2x32xf32>
    %195 = arith.select %193, %183, %194 : vector<2x32xi1>, vector<2x32xf32>
    %c0_96 = arith.constant 0 : index
    %c0_97 = arith.constant 0 : index
    %196 = vector.load %arg9[%c0_96, %c0_97] : memref<2x32xf32, #tpu.memory_space<vmem>>, vector<2x32xf32>
    tpu.vector_store %arg9[%c0_96, %c0_97], %188 {strides = array<i32>} : memref<2x32xf32, #tpu.memory_space<vmem>>, vector<2x32xf32>,
    %c0_98 = arith.constant 0 : index
    %c0_99 = arith.constant 0 : index
    %197 = vector.load %arg10[%c0_98, %c0_99] : memref<2x32xf32, #tpu.memory_space<vmem>>, vector<2x32xf32>
    tpu.vector_store %arg10[%c0_98, %c0_99], %191 {strides = array<i32>} : memref<2x32xf32, #tpu.memory_space<vmem>>, vector<2x32xf32>,
    %198 = arith.index_cast %c1_i32 : i32 to index
    %c0_100 = arith.constant 0 : index
    %c0_101 = arith.constant 0 : index
    %199 = vector.load %arg6[%198, %c0_100, %c0_101] : memref<8x2x64xf32, #tpu.memory_space<vmem>>, vector<1x2x32xf32>
    %200 = vector.shape_cast %199 : vector<1x2x32xf32> to vector<2x32xf32>
    %201 = vector.shape_cast %195 : vector<2x32xf32> to vector<1x2x32xf32>
    tpu.vector_store %arg6[%198, %c0_100, %c0_101], %201 {strides = array<i32>} : memref<8x2x64xf32, #tpu.memory_space<vmem>>, vector<1x2x32xf32>,
    %202 = arith.index_cast %143 : i32 to index
    %c0_102 = arith.constant 0 : index
    %203 = vector.load %arg8[%202, %c0_102] : memref<16x128xf32, #tpu.memory_space<vmem>>, vector<2x128xf32>
    %c0_103 = arith.constant 0 : index
    %c0_104 = arith.constant 0 : index
    %204 = vector.load %arg11[%c0_103, %c0_104] : memref<2x32xf32, #tpu.memory_space<vmem>>, vector<2x32xf32>
    %205 = arith.truncf %204 : vector<2x32xf32> to vector<2x32xbf16>
    %c0_105 = arith.constant 0 : index
    %c0_106 = arith.constant 0 : index
    %206 = vector.load %arg3[%c0_105, %c0_106] : memref<32x128xbf16, #tpu.memory_space<vmem>>, vector<32x128xbf16>
    %cst_107 = arith.constant dense<0.000000e+00> : vector<2x128xf32>
    %207 = tpu.matmul %205, %206, %cst_107 {dimension_numbers = #tpu.dot_dimension_numbers<[1], [0], [0], [1], [0, 0, 1, 1], [], []>} : vector<2x32xbf16>, vector<32x128xbf16>, vector<2x128xf32> -> vector<2x128xf32>
    %208 = arith.addf %203, %207 : vector<2x128xf32>
    %c0_108 = arith.constant 0 : index
    %c0_109 = arith.constant 0 : index
    %209 = vector.load %arg11[%c0_108, %c0_109] : memref<2x32xf32, #tpu.memory_space<vmem>>, vector<2x32xf32>
    %c0_110 = arith.constant 0 : index
    %c0_111 = arith.constant 0 : index
    %210 = vector.load %arg12[%c0_110, %c0_111] : memref<2x32xf32, #tpu.memory_space<vmem>>, vector<2x32xf32>
    %211 = arith.index_cast %139 : i32 to index
    %c0_112 = arith.constant 0 : index
    %c0_113 = arith.constant 0 : index
    %212 = vector.load %arg5[%211, %c0_112, %c0_113] : memref<8x2x1xf32, #tpu.memory_space<vmem>>, vector<1x2x1xf32>
    %213 = vector.shape_cast %212 : vector<1x2x1xf32> to vector<2x1xf32>
    %214 = vector.extract_strided_slice %208 {offsets = [0, 0], sizes = [2, 32], strides = [1, 1]} : vector<2x128xf32> to vector<2x32xf32>
    %cst_114 = arith.constant 0.000000e+00 : f32
    %215 = vector.broadcast %cst_114 : f32 to vector<2x32xf32>
    %216 = arith.subf %215, %214 : vector<2x32xf32>
    %217 = math.exp %216 : vector<2x32xf32>
    %cst_115 = arith.constant 1.000000e+00 : f32
    %218 = vector.broadcast %cst_115 : f32 to vector<2x32xf32>
    %219 = arith.addf %218, %217 : vector<2x32xf32>
    %220 = tpu.reciprocal %219 {approx = true} : vector<2x32xf32> -> vector<2x32xf32>
    %221 = vector.extract_strided_slice %208 {offsets = [0, 32], sizes = [2, 32], strides = [1, 1]} : vector<2x128xf32> to vector<2x32xf32>
    %cst_116 = arith.constant 0.000000e+00 : f32
    %222 = vector.broadcast %cst_116 : f32 to vector<2x32xf32>
    %223 = arith.subf %222, %221 : vector<2x32xf32>
    %224 = math.exp %223 : vector<2x32xf32>
    %cst_117 = arith.constant 1.000000e+00 : f32
    %225 = vector.broadcast %cst_117 : f32 to vector<2x32xf32>
    %226 = arith.addf %225, %224 : vector<2x32xf32>
    %227 = tpu.reciprocal %226 {approx = true} : vector<2x32xf32> -> vector<2x32xf32>
    %228 = vector.extract_strided_slice %208 {offsets = [0, 64], sizes = [2, 32], strides = [1, 1]} : vector<2x128xf32> to vector<2x32xf32>
    %229 = math.tanh %228 : vector<2x32xf32>
    %230 = vector.extract_strided_slice %208 {offsets = [0, 96], sizes = [2, 32], strides = [1, 1]} : vector<2x128xf32> to vector<2x32xf32>
    %cst_118 = arith.constant 0.000000e+00 : f32
    %231 = vector.broadcast %cst_118 : f32 to vector<2x32xf32>
    %232 = arith.subf %231, %230 : vector<2x32xf32>
    %233 = math.exp %232 : vector<2x32xf32>
    %cst_119 = arith.constant 1.000000e+00 : f32
    %234 = vector.broadcast %cst_119 : f32 to vector<2x32xf32>
    %235 = arith.addf %234, %233 : vector<2x32xf32>
    %236 = tpu.reciprocal %235 {approx = true} : vector<2x32xf32> -> vector<2x32xf32>
    %237 = arith.mulf %227, %210 : vector<2x32xf32>
    %238 = arith.mulf %220, %229 : vector<2x32xf32>
    %239 = arith.addf %237, %238 : vector<2x32xf32>
    %240 = math.tanh %239 : vector<2x32xf32>
    %241 = arith.mulf %236, %240 : vector<2x32xf32>
    %cst_120 = arith.constant 5.000000e-01 : f32
    %242 = vector.broadcast %cst_120 : f32 to vector<2x1xf32>
    %243 = arith.cmpf ogt, %213, %242 : vector<2x1xf32>
    %244 = vector.shape_cast %243 : vector<2x1xi1> to vector<2x1xi1>
    %245 = vector.broadcast %244 : vector<2x1xi1> to vector<2x32xi1>
    %246 = arith.select %245, %241, %209 : vector<2x32xi1>, vector<2x32xf32>
    %247 = vector.shape_cast %243 : vector<2x1xi1> to vector<2x1xi1>
    %248 = vector.broadcast %247 : vector<2x1xi1> to vector<2x32xi1>
    %249 = arith.select %248, %239, %210 : vector<2x32xi1>, vector<2x32xf32>
    %cst_121 = arith.constant 0.000000e+00 : f32
    %250 = vector.shape_cast %243 : vector<2x1xi1> to vector<2x1xi1>
    %251 = vector.broadcast %250 : vector<2x1xi1> to vector<2x32xi1>
    %252 = vector.broadcast %cst_121 : f32 to vector<2x32xf32>
    %253 = arith.select %251, %241, %252 : vector<2x32xi1>, vector<2x32xf32>
    %c0_122 = arith.constant 0 : index
    %c0_123 = arith.constant 0 : index
    %254 = vector.load %arg11[%c0_122, %c0_123] : memref<2x32xf32, #tpu.memory_space<vmem>>, vector<2x32xf32>
    tpu.vector_store %arg11[%c0_122, %c0_123], %246 {strides = array<i32>} : memref<2x32xf32, #tpu.memory_space<vmem>>, vector<2x32xf32>,
    %c0_124 = arith.constant 0 : index
    %c0_125 = arith.constant 0 : index
    %255 = vector.load %arg12[%c0_124, %c0_125] : memref<2x32xf32, #tpu.memory_space<vmem>>, vector<2x32xf32>
    tpu.vector_store %arg12[%c0_124, %c0_125], %249 {strides = array<i32>} : memref<2x32xf32, #tpu.memory_space<vmem>>, vector<2x32xf32>,
    %256 = arith.index_cast %139 : i32 to index
    %c0_126 = arith.constant 0 : index
    %c32_127 = arith.constant 32 : index
    %257 = vector.load %arg6[%256, %c0_126, %c32_127] : memref<8x2x64xf32, #tpu.memory_space<vmem>>, vector<1x2x32xf32>
    %258 = vector.shape_cast %257 : vector<1x2x32xf32> to vector<2x32xf32>
    %259 = vector.shape_cast %253 : vector<2x32xf32> to vector<1x2x32xf32>
    tpu.vector_store %arg6[%256, %c0_126, %c32_127], %259 {strides = array<i32>} : memref<8x2x64xf32, #tpu.memory_space<vmem>>, vector<1x2x32xf32>,
    %c2_i32_128 = arith.constant 2 : i32
    %c7_i32_129 = arith.constant 7 : i32
    %260 = arith.subi %c7_i32_129, %c2_i32_128 : i32
    %c2_i32_130 = arith.constant 2 : i32
    %261 = arith.muli %c2_i32_128, %c2_i32_130 : i32
    %262 = tpu.assume_multiple %261, 2 : i32
    %c2_i32_131 = arith.constant 2 : i32
    %263 = arith.muli %260, %c2_i32_131 : i32
    %264 = tpu.assume_multiple %263, 2 : i32
    %265 = arith.index_cast %262 : i32 to index
    %c0_132 = arith.constant 0 : index
    %266 = vector.load %arg7[%265, %c0_132] : memref<16x128xf32, #tpu.memory_space<vmem>>, vector<2x128xf32>
    %c0_133 = arith.constant 0 : index
    %c0_134 = arith.constant 0 : index
    %267 = vector.load %arg9[%c0_133, %c0_134] : memref<2x32xf32, #tpu.memory_space<vmem>>, vector<2x32xf32>
    %268 = arith.truncf %267 : vector<2x32xf32> to vector<2x32xbf16>
    %c0_135 = arith.constant 0 : index
    %c0_136 = arith.constant 0 : index
    %269 = vector.load %arg2[%c0_135, %c0_136] : memref<32x128xbf16, #tpu.memory_space<vmem>>, vector<32x128xbf16>
    %cst_137 = arith.constant dense<0.000000e+00> : vector<2x128xf32>
    %270 = tpu.matmul %268, %269, %cst_137 {dimension_numbers = #tpu.dot_dimension_numbers<[1], [0], [0], [1], [0, 0, 1, 1], [], []>} : vector<2x32xbf16>, vector<32x128xbf16>, vector<2x128xf32> -> vector<2x128xf32>
    %271 = arith.addf %266, %270 : vector<2x128xf32>
    %c0_138 = arith.constant 0 : index
    %c0_139 = arith.constant 0 : index
    %272 = vector.load %arg9[%c0_138, %c0_139] : memref<2x32xf32, #tpu.memory_space<vmem>>, vector<2x32xf32>
    %c0_140 = arith.constant 0 : index
    %c0_141 = arith.constant 0 : index
    %273 = vector.load %arg10[%c0_140, %c0_141] : memref<2x32xf32, #tpu.memory_space<vmem>>, vector<2x32xf32>
    %274 = arith.index_cast %c2_i32_128 : i32 to index
    %c0_142 = arith.constant 0 : index
    %c0_143 = arith.constant 0 : index
    %275 = vector.load %arg5[%274, %c0_142, %c0_143] : memref<8x2x1xf32, #tpu.memory_space<vmem>>, vector<1x2x1xf32>
    %276 = vector.shape_cast %275 : vector<1x2x1xf32> to vector<2x1xf32>
    %277 = vector.extract_strided_slice %271 {offsets = [0, 0], sizes = [2, 32], strides = [1, 1]} : vector<2x128xf32> to vector<2x32xf32>
    %cst_144 = arith.constant 0.000000e+00 : f32
    %278 = vector.broadcast %cst_144 : f32 to vector<2x32xf32>
    %279 = arith.subf %278, %277 : vector<2x32xf32>
    %280 = math.exp %279 : vector<2x32xf32>
    %cst_145 = arith.constant 1.000000e+00 : f32
    %281 = vector.broadcast %cst_145 : f32 to vector<2x32xf32>
    %282 = arith.addf %281, %280 : vector<2x32xf32>
    %283 = tpu.reciprocal %282 {approx = true} : vector<2x32xf32> -> vector<2x32xf32>
    %284 = vector.extract_strided_slice %271 {offsets = [0, 32], sizes = [2, 32], strides = [1, 1]} : vector<2x128xf32> to vector<2x32xf32>
    %cst_146 = arith.constant 0.000000e+00 : f32
    %285 = vector.broadcast %cst_146 : f32 to vector<2x32xf32>
    %286 = arith.subf %285, %284 : vector<2x32xf32>
    %287 = math.exp %286 : vector<2x32xf32>
    %cst_147 = arith.constant 1.000000e+00 : f32
    %288 = vector.broadcast %cst_147 : f32 to vector<2x32xf32>
    %289 = arith.addf %288, %287 : vector<2x32xf32>
    %290 = tpu.reciprocal %289 {approx = true} : vector<2x32xf32> -> vector<2x32xf32>
    %291 = vector.extract_strided_slice %271 {offsets = [0, 64], sizes = [2, 32], strides = [1, 1]} : vector<2x128xf32> to vector<2x32xf32>
    %292 = math.tanh %291 : vector<2x32xf32>
    %293 = vector.extract_strided_slice %271 {offsets = [0, 96], sizes = [2, 32], strides = [1, 1]} : vector<2x128xf32> to vector<2x32xf32>
    %cst_148 = arith.constant 0.000000e+00 : f32
    %294 = vector.broadcast %cst_148 : f32 to vector<2x32xf32>
    %295 = arith.subf %294, %293 : vector<2x32xf32>
    %296 = math.exp %295 : vector<2x32xf32>
    %cst_149 = arith.constant 1.000000e+00 : f32
    %297 = vector.broadcast %cst_149 : f32 to vector<2x32xf32>
    %298 = arith.addf %297, %296 : vector<2x32xf32>
    %299 = tpu.reciprocal %298 {approx = true} : vector<2x32xf32> -> vector<2x32xf32>
    %300 = arith.mulf %290, %273 : vector<2x32xf32>
    %301 = arith.mulf %283, %292 : vector<2x32xf32>
    %302 = arith.addf %300, %301 : vector<2x32xf32>
    %303 = math.tanh %302 : vector<2x32xf32>
    %304 = arith.mulf %299, %303 : vector<2x32xf32>
    %cst_150 = arith.constant 5.000000e-01 : f32
    %305 = vector.broadcast %cst_150 : f32 to vector<2x1xf32>
    %306 = arith.cmpf ogt, %276, %305 : vector<2x1xf32>
    %307 = vector.shape_cast %306 : vector<2x1xi1> to vector<2x1xi1>
    %308 = vector.broadcast %307 : vector<2x1xi1> to vector<2x32xi1>
    %309 = arith.select %308, %304, %272 : vector<2x32xi1>, vector<2x32xf32>
    %310 = vector.shape_cast %306 : vector<2x1xi1> to vector<2x1xi1>
    %311 = vector.broadcast %310 : vector<2x1xi1> to vector<2x32xi1>
    %312 = arith.select %311, %302, %273 : vector<2x32xi1>, vector<2x32xf32>
    %cst_151 = arith.constant 0.000000e+00 : f32
    %313 = vector.shape_cast %306 : vector<2x1xi1> to vector<2x1xi1>
    %314 = vector.broadcast %313 : vector<2x1xi1> to vector<2x32xi1>
    %315 = vector.broadcast %cst_151 : f32 to vector<2x32xf32>
    %316 = arith.select %314, %304, %315 : vector<2x32xi1>, vector<2x32xf32>
    %c0_152 = arith.constant 0 : index
    %c0_153 = arith.constant 0 : index
    %317 = vector.load %arg9[%c0_152, %c0_153] : memref<2x32xf32, #tpu.memory_space<vmem>>, vector<2x32xf32>
    tpu.vector_store %arg9[%c0_152, %c0_153], %309 {strides = array<i32>} : memref<2x32xf32, #tpu.memory_space<vmem>>, vector<2x32xf32>,
    %c0_154 = arith.constant 0 : index
    %c0_155 = arith.constant 0 : index
    %318 = vector.load %arg10[%c0_154, %c0_155] : memref<2x32xf32, #tpu.memory_space<vmem>>, vector<2x32xf32>
    tpu.vector_store %arg10[%c0_154, %c0_155], %312 {strides = array<i32>} : memref<2x32xf32, #tpu.memory_space<vmem>>, vector<2x32xf32>,
    %319 = arith.index_cast %c2_i32_128 : i32 to index
    %c0_156 = arith.constant 0 : index
    %c0_157 = arith.constant 0 : index
    %320 = vector.load %arg6[%319, %c0_156, %c0_157] : memref<8x2x64xf32, #tpu.memory_space<vmem>>, vector<1x2x32xf32>
    %321 = vector.shape_cast %320 : vector<1x2x32xf32> to vector<2x32xf32>
    %322 = vector.shape_cast %316 : vector<2x32xf32> to vector<1x2x32xf32>
    tpu.vector_store %arg6[%319, %c0_156, %c0_157], %322 {strides = array<i32>} : memref<8x2x64xf32, #tpu.memory_space<vmem>>, vector<1x2x32xf32>,
    %323 = arith.index_cast %264 : i32 to index
    %c0_158 = arith.constant 0 : index
    %324 = vector.load %arg8[%323, %c0_158] : memref<16x128xf32, #tpu.memory_space<vmem>>, vector<2x128xf32>
    %c0_159 = arith.constant 0 : index
    %c0_160 = arith.constant 0 : index
    %325 = vector.load %arg11[%c0_159, %c0_160] : memref<2x32xf32, #tpu.memory_space<vmem>>, vector<2x32xf32>
    %326 = arith.truncf %325 : vector<2x32xf32> to vector<2x32xbf16>
    %c0_161 = arith.constant 0 : index
    %c0_162 = arith.constant 0 : index
    %327 = vector.load %arg3[%c0_161, %c0_162] : memref<32x128xbf16, #tpu.memory_space<vmem>>, vector<32x128xbf16>
    %cst_163 = arith.constant dense<0.000000e+00> : vector<2x128xf32>
    %328 = tpu.matmul %326, %327, %cst_163 {dimension_numbers = #tpu.dot_dimension_numbers<[1], [0], [0], [1], [0, 0, 1, 1], [], []>} : vector<2x32xbf16>, vector<32x128xbf16>, vector<2x128xf32> -> vector<2x128xf32>
    %329 = arith.addf %324, %328 : vector<2x128xf32>
    %c0_164 = arith.constant 0 : index
    %c0_165 = arith.constant 0 : index
    %330 = vector.load %arg11[%c0_164, %c0_165] : memref<2x32xf32, #tpu.memory_space<vmem>>, vector<2x32xf32>
    %c0_166 = arith.constant 0 : index
    %c0_167 = arith.constant 0 : index
    %331 = vector.load %arg12[%c0_166, %c0_167] : memref<2x32xf32, #tpu.memory_space<vmem>>, vector<2x32xf32>
    %332 = arith.index_cast %260 : i32 to index
    %c0_168 = arith.constant 0 : index
    %c0_169 = arith.constant 0 : index
    %333 = vector.load %arg5[%332, %c0_168, %c0_169] : memref<8x2x1xf32, #tpu.memory_space<vmem>>, vector<1x2x1xf32>
    %334 = vector.shape_cast %333 : vector<1x2x1xf32> to vector<2x1xf32>
    %335 = vector.extract_strided_slice %329 {offsets = [0, 0], sizes = [2, 32], strides = [1, 1]} : vector<2x128xf32> to vector<2x32xf32>
    %cst_170 = arith.constant 0.000000e+00 : f32
    %336 = vector.broadcast %cst_170 : f32 to vector<2x32xf32>
    %337 = arith.subf %336, %335 : vector<2x32xf32>
    %338 = math.exp %337 : vector<2x32xf32>
    %cst_171 = arith.constant 1.000000e+00 : f32
    %339 = vector.broadcast %cst_171 : f32 to vector<2x32xf32>
    %340 = arith.addf %339, %338 : vector<2x32xf32>
    %341 = tpu.reciprocal %340 {approx = true} : vector<2x32xf32> -> vector<2x32xf32>
    %342 = vector.extract_strided_slice %329 {offsets = [0, 32], sizes = [2, 32], strides = [1, 1]} : vector<2x128xf32> to vector<2x32xf32>
    %cst_172 = arith.constant 0.000000e+00 : f32
    %343 = vector.broadcast %cst_172 : f32 to vector<2x32xf32>
    %344 = arith.subf %343, %342 : vector<2x32xf32>
    %345 = math.exp %344 : vector<2x32xf32>
    %cst_173 = arith.constant 1.000000e+00 : f32
    %346 = vector.broadcast %cst_173 : f32 to vector<2x32xf32>
    %347 = arith.addf %346, %345 : vector<2x32xf32>
    %348 = tpu.reciprocal %347 {approx = true} : vector<2x32xf32> -> vector<2x32xf32>
    %349 = vector.extract_strided_slice %329 {offsets = [0, 64], sizes = [2, 32], strides = [1, 1]} : vector<2x128xf32> to vector<2x32xf32>
    %350 = math.tanh %349 : vector<2x32xf32>
    %351 = vector.extract_strided_slice %329 {offsets = [0, 96], sizes = [2, 32], strides = [1, 1]} : vector<2x128xf32> to vector<2x32xf32>
    %cst_174 = arith.constant 0.000000e+00 : f32
    %352 = vector.broadcast %cst_174 : f32 to vector<2x32xf32>
    %353 = arith.subf %352, %351 : vector<2x32xf32>
    %354 = math.exp %353 : vector<2x32xf32>
    %cst_175 = arith.constant 1.000000e+00 : f32
    %355 = vector.broadcast %cst_175 : f32 to vector<2x32xf32>
    %356 = arith.addf %355, %354 : vector<2x32xf32>
    %357 = tpu.reciprocal %356 {approx = true} : vector<2x32xf32> -> vector<2x32xf32>
    %358 = arith.mulf %348, %331 : vector<2x32xf32>
    %359 = arith.mulf %341, %350 : vector<2x32xf32>
    %360 = arith.addf %358, %359 : vector<2x32xf32>
    %361 = math.tanh %360 : vector<2x32xf32>
    %362 = arith.mulf %357, %361 : vector<2x32xf32>
    %cst_176 = arith.constant 5.000000e-01 : f32
    %363 = vector.broadcast %cst_176 : f32 to vector<2x1xf32>
    %364 = arith.cmpf ogt, %334, %363 : vector<2x1xf32>
    %365 = vector.shape_cast %364 : vector<2x1xi1> to vector<2x1xi1>
    %366 = vector.broadcast %365 : vector<2x1xi1> to vector<2x32xi1>
    %367 = arith.select %366, %362, %330 : vector<2x32xi1>, vector<2x32xf32>
    %368 = vector.shape_cast %364 : vector<2x1xi1> to vector<2x1xi1>
    %369 = vector.broadcast %368 : vector<2x1xi1> to vector<2x32xi1>
    %370 = arith.select %369, %360, %331 : vector<2x32xi1>, vector<2x32xf32>
    %cst_177 = arith.constant 0.000000e+00 : f32
    %371 = vector.shape_cast %364 : vector<2x1xi1> to vector<2x1xi1>
    %372 = vector.broadcast %371 : vector<2x1xi1> to vector<2x32xi1>
    %373 = vector.broadcast %cst_177 : f32 to vector<2x32xf32>
    %374 = arith.select %372, %362, %373 : vector<2x32xi1>, vector<2x32xf32>
    %c0_178 = arith.constant 0 : index
    %c0_179 = arith.constant 0 : index
    %375 = vector.load %arg11[%c0_178, %c0_179] : memref<2x32xf32, #tpu.memory_space<vmem>>, vector<2x32xf32>
    tpu.vector_store %arg11[%c0_178, %c0_179], %367 {strides = array<i32>} : memref<2x32xf32, #tpu.memory_space<vmem>>, vector<2x32xf32>,
    %c0_180 = arith.constant 0 : index
    %c0_181 = arith.constant 0 : index
    %376 = vector.load %arg12[%c0_180, %c0_181] : memref<2x32xf32, #tpu.memory_space<vmem>>, vector<2x32xf32>
    tpu.vector_store %arg12[%c0_180, %c0_181], %370 {strides = array<i32>} : memref<2x32xf32, #tpu.memory_space<vmem>>, vector<2x32xf32>,
    %377 = arith.index_cast %260 : i32 to index
    %c0_182 = arith.constant 0 : index
    %c32_183 = arith.constant 32 : index
    %378 = vector.load %arg6[%377, %c0_182, %c32_183] : memref<8x2x64xf32, #tpu.memory_space<vmem>>, vector<1x2x32xf32>
    %379 = vector.shape_cast %378 : vector<1x2x32xf32> to vector<2x32xf32>
    %380 = vector.shape_cast %374 : vector<2x32xf32> to vector<1x2x32xf32>
    tpu.vector_store %arg6[%377, %c0_182, %c32_183], %380 {strides = array<i32>} : memref<8x2x64xf32, #tpu.memory_space<vmem>>, vector<1x2x32xf32>,
    %c3_i32 = arith.constant 3 : i32
    %c7_i32_184 = arith.constant 7 : i32
    %381 = arith.subi %c7_i32_184, %c3_i32 : i32
    %c2_i32_185 = arith.constant 2 : i32
    %382 = arith.muli %c3_i32, %c2_i32_185 : i32
    %383 = tpu.assume_multiple %382, 2 : i32
    %c2_i32_186 = arith.constant 2 : i32
    %384 = arith.muli %381, %c2_i32_186 : i32
    %385 = tpu.assume_multiple %384, 2 : i32
    %386 = arith.index_cast %383 : i32 to index
    %c0_187 = arith.constant 0 : index
    %387 = vector.load %arg7[%386, %c0_187] : memref<16x128xf32, #tpu.memory_space<vmem>>, vector<2x128xf32>
    %c0_188 = arith.constant 0 : index
    %c0_189 = arith.constant 0 : index
    %388 = vector.load %arg9[%c0_188, %c0_189] : memref<2x32xf32, #tpu.memory_space<vmem>>, vector<2x32xf32>
    %389 = arith.truncf %388 : vector<2x32xf32> to vector<2x32xbf16>
    %c0_190 = arith.constant 0 : index
    %c0_191 = arith.constant 0 : index
    %390 = vector.load %arg2[%c0_190, %c0_191] : memref<32x128xbf16, #tpu.memory_space<vmem>>, vector<32x128xbf16>
    %cst_192 = arith.constant dense<0.000000e+00> : vector<2x128xf32>
    %391 = tpu.matmul %389, %390, %cst_192 {dimension_numbers = #tpu.dot_dimension_numbers<[1], [0], [0], [1], [0, 0, 1, 1], [], []>} : vector<2x32xbf16>, vector<32x128xbf16>, vector<2x128xf32> -> vector<2x128xf32>
    %392 = arith.addf %387, %391 : vector<2x128xf32>
    %c0_193 = arith.constant 0 : index
    %c0_194 = arith.constant 0 : index
    %393 = vector.load %arg9[%c0_193, %c0_194] : memref<2x32xf32, #tpu.memory_space<vmem>>, vector<2x32xf32>
    %c0_195 = arith.constant 0 : index
    %c0_196 = arith.constant 0 : index
    %394 = vector.load %arg10[%c0_195, %c0_196] : memref<2x32xf32, #tpu.memory_space<vmem>>, vector<2x32xf32>
    %395 = arith.index_cast %c3_i32 : i32 to index
    %c0_197 = arith.constant 0 : index
    %c0_198 = arith.constant 0 : index
    %396 = vector.load %arg5[%395, %c0_197, %c0_198] : memref<8x2x1xf32, #tpu.memory_space<vmem>>, vector<1x2x1xf32>
    %397 = vector.shape_cast %396 : vector<1x2x1xf32> to vector<2x1xf32>
    %398 = vector.extract_strided_slice %392 {offsets = [0, 0], sizes = [2, 32], strides = [1, 1]} : vector<2x128xf32> to vector<2x32xf32>
    %cst_199 = arith.constant 0.000000e+00 : f32
    %399 = vector.broadcast %cst_199 : f32 to vector<2x32xf32>
    %400 = arith.subf %399, %398 : vector<2x32xf32>
    %401 = math.exp %400 : vector<2x32xf32>
    %cst_200 = arith.constant 1.000000e+00 : f32
    %402 = vector.broadcast %cst_200 : f32 to vector<2x32xf32>
    %403 = arith.addf %402, %401 : vector<2x32xf32>
    %404 = tpu.reciprocal %403 {approx = true} : vector<2x32xf32> -> vector<2x32xf32>
    %405 = vector.extract_strided_slice %392 {offsets = [0, 32], sizes = [2, 32], strides = [1, 1]} : vector<2x128xf32> to vector<2x32xf32>
    %cst_201 = arith.constant 0.000000e+00 : f32
    %406 = vector.broadcast %cst_201 : f32 to vector<2x32xf32>
    %407 = arith.subf %406, %405 : vector<2x32xf32>
    %408 = math.exp %407 : vector<2x32xf32>
    %cst_202 = arith.constant 1.000000e+00 : f32
    %409 = vector.broadcast %cst_202 : f32 to vector<2x32xf32>
    %410 = arith.addf %409, %408 : vector<2x32xf32>
    %411 = tpu.reciprocal %410 {approx = true} : vector<2x32xf32> -> vector<2x32xf32>
    %412 = vector.extract_strided_slice %392 {offsets = [0, 64], sizes = [2, 32], strides = [1, 1]} : vector<2x128xf32> to vector<2x32xf32>
    %413 = math.tanh %412 : vector<2x32xf32>
    %414 = vector.extract_strided_slice %392 {offsets = [0, 96], sizes = [2, 32], strides = [1, 1]} : vector<2x128xf32> to vector<2x32xf32>
    %cst_203 = arith.constant 0.000000e+00 : f32
    %415 = vector.broadcast %cst_203 : f32 to vector<2x32xf32>
    %416 = arith.subf %415, %414 : vector<2x32xf32>
    %417 = math.exp %416 : vector<2x32xf32>
    %cst_204 = arith.constant 1.000000e+00 : f32
    %418 = vector.broadcast %cst_204 : f32 to vector<2x32xf32>
    %419 = arith.addf %418, %417 : vector<2x32xf32>
    %420 = tpu.reciprocal %419 {approx = true} : vector<2x32xf32> -> vector<2x32xf32>
    %421 = arith.mulf %411, %394 : vector<2x32xf32>
    %422 = arith.mulf %404, %413 : vector<2x32xf32>
    %423 = arith.addf %421, %422 : vector<2x32xf32>
    %424 = math.tanh %423 : vector<2x32xf32>
    %425 = arith.mulf %420, %424 : vector<2x32xf32>
    %cst_205 = arith.constant 5.000000e-01 : f32
    %426 = vector.broadcast %cst_205 : f32 to vector<2x1xf32>
    %427 = arith.cmpf ogt, %397, %426 : vector<2x1xf32>
    %428 = vector.shape_cast %427 : vector<2x1xi1> to vector<2x1xi1>
    %429 = vector.broadcast %428 : vector<2x1xi1> to vector<2x32xi1>
    %430 = arith.select %429, %425, %393 : vector<2x32xi1>, vector<2x32xf32>
    %431 = vector.shape_cast %427 : vector<2x1xi1> to vector<2x1xi1>
    %432 = vector.broadcast %431 : vector<2x1xi1> to vector<2x32xi1>
    %433 = arith.select %432, %423, %394 : vector<2x32xi1>, vector<2x32xf32>
    %cst_206 = arith.constant 0.000000e+00 : f32
    %434 = vector.shape_cast %427 : vector<2x1xi1> to vector<2x1xi1>
    %435 = vector.broadcast %434 : vector<2x1xi1> to vector<2x32xi1>
    %436 = vector.broadcast %cst_206 : f32 to vector<2x32xf32>
    %437 = arith.select %435, %425, %436 : vector<2x32xi1>, vector<2x32xf32>
    %c0_207 = arith.constant 0 : index
    %c0_208 = arith.constant 0 : index
    %438 = vector.load %arg9[%c0_207, %c0_208] : memref<2x32xf32, #tpu.memory_space<vmem>>, vector<2x32xf32>
    tpu.vector_store %arg9[%c0_207, %c0_208], %430 {strides = array<i32>} : memref<2x32xf32, #tpu.memory_space<vmem>>, vector<2x32xf32>,
    %c0_209 = arith.constant 0 : index
    %c0_210 = arith.constant 0 : index
    %439 = vector.load %arg10[%c0_209, %c0_210] : memref<2x32xf32, #tpu.memory_space<vmem>>, vector<2x32xf32>
    tpu.vector_store %arg10[%c0_209, %c0_210], %433 {strides = array<i32>} : memref<2x32xf32, #tpu.memory_space<vmem>>, vector<2x32xf32>,
    %440 = arith.index_cast %c3_i32 : i32 to index
    %c0_211 = arith.constant 0 : index
    %c0_212 = arith.constant 0 : index
    %441 = vector.load %arg6[%440, %c0_211, %c0_212] : memref<8x2x64xf32, #tpu.memory_space<vmem>>, vector<1x2x32xf32>
    %442 = vector.shape_cast %441 : vector<1x2x32xf32> to vector<2x32xf32>
    %443 = vector.shape_cast %437 : vector<2x32xf32> to vector<1x2x32xf32>
    tpu.vector_store %arg6[%440, %c0_211, %c0_212], %443 {strides = array<i32>} : memref<8x2x64xf32, #tpu.memory_space<vmem>>, vector<1x2x32xf32>,
    %444 = arith.index_cast %385 : i32 to index
    %c0_213 = arith.constant 0 : index
    %445 = vector.load %arg8[%444, %c0_213] : memref<16x128xf32, #tpu.memory_space<vmem>>, vector<2x128xf32>
    %c0_214 = arith.constant 0 : index
    %c0_215 = arith.constant 0 : index
    %446 = vector.load %arg11[%c0_214, %c0_215] : memref<2x32xf32, #tpu.memory_space<vmem>>, vector<2x32xf32>
    %447 = arith.truncf %446 : vector<2x32xf32> to vector<2x32xbf16>
    %c0_216 = arith.constant 0 : index
    %c0_217 = arith.constant 0 : index
    %448 = vector.load %arg3[%c0_216, %c0_217] : memref<32x128xbf16, #tpu.memory_space<vmem>>, vector<32x128xbf16>
    %cst_218 = arith.constant dense<0.000000e+00> : vector<2x128xf32>
    %449 = tpu.matmul %447, %448, %cst_218 {dimension_numbers = #tpu.dot_dimension_numbers<[1], [0], [0], [1], [0, 0, 1, 1], [], []>} : vector<2x32xbf16>, vector<32x128xbf16>, vector<2x128xf32> -> vector<2x128xf32>
    %450 = arith.addf %445, %449 : vector<2x128xf32>
    %c0_219 = arith.constant 0 : index
    %c0_220 = arith.constant 0 : index
    %451 = vector.load %arg11[%c0_219, %c0_220] : memref<2x32xf32, #tpu.memory_space<vmem>>, vector<2x32xf32>
    %c0_221 = arith.constant 0 : index
    %c0_222 = arith.constant 0 : index
    %452 = vector.load %arg12[%c0_221, %c0_222] : memref<2x32xf32, #tpu.memory_space<vmem>>, vector<2x32xf32>
    %453 = arith.index_cast %381 : i32 to index
    %c0_223 = arith.constant 0 : index
    %c0_224 = arith.constant 0 : index
    %454 = vector.load %arg5[%453, %c0_223, %c0_224] : memref<8x2x1xf32, #tpu.memory_space<vmem>>, vector<1x2x1xf32>
    %455 = vector.shape_cast %454 : vector<1x2x1xf32> to vector<2x1xf32>
    %456 = vector.extract_strided_slice %450 {offsets = [0, 0], sizes = [2, 32], strides = [1, 1]} : vector<2x128xf32> to vector<2x32xf32>
    %cst_225 = arith.constant 0.000000e+00 : f32
    %457 = vector.broadcast %cst_225 : f32 to vector<2x32xf32>
    %458 = arith.subf %457, %456 : vector<2x32xf32>
    %459 = math.exp %458 : vector<2x32xf32>
    %cst_226 = arith.constant 1.000000e+00 : f32
    %460 = vector.broadcast %cst_226 : f32 to vector<2x32xf32>
    %461 = arith.addf %460, %459 : vector<2x32xf32>
    %462 = tpu.reciprocal %461 {approx = true} : vector<2x32xf32> -> vector<2x32xf32>
    %463 = vector.extract_strided_slice %450 {offsets = [0, 32], sizes = [2, 32], strides = [1, 1]} : vector<2x128xf32> to vector<2x32xf32>
    %cst_227 = arith.constant 0.000000e+00 : f32
    %464 = vector.broadcast %cst_227 : f32 to vector<2x32xf32>
    %465 = arith.subf %464, %463 : vector<2x32xf32>
    %466 = math.exp %465 : vector<2x32xf32>
    %cst_228 = arith.constant 1.000000e+00 : f32
    %467 = vector.broadcast %cst_228 : f32 to vector<2x32xf32>
    %468 = arith.addf %467, %466 : vector<2x32xf32>
    %469 = tpu.reciprocal %468 {approx = true} : vector<2x32xf32> -> vector<2x32xf32>
    %470 = vector.extract_strided_slice %450 {offsets = [0, 64], sizes = [2, 32], strides = [1, 1]} : vector<2x128xf32> to vector<2x32xf32>
    %471 = math.tanh %470 : vector<2x32xf32>
    %472 = vector.extract_strided_slice %450 {offsets = [0, 96], sizes = [2, 32], strides = [1, 1]} : vector<2x128xf32> to vector<2x32xf32>
    %cst_229 = arith.constant 0.000000e+00 : f32
    %473 = vector.broadcast %cst_229 : f32 to vector<2x32xf32>
    %474 = arith.subf %473, %472 : vector<2x32xf32>
    %475 = math.exp %474 : vector<2x32xf32>
    %cst_230 = arith.constant 1.000000e+00 : f32
    %476 = vector.broadcast %cst_230 : f32 to vector<2x32xf32>
    %477 = arith.addf %476, %475 : vector<2x32xf32>
    %478 = tpu.reciprocal %477 {approx = true} : vector<2x32xf32> -> vector<2x32xf32>
    %479 = arith.mulf %469, %452 : vector<2x32xf32>
    %480 = arith.mulf %462, %471 : vector<2x32xf32>
    %481 = arith.addf %479, %480 : vector<2x32xf32>
    %482 = math.tanh %481 : vector<2x32xf32>
    %483 = arith.mulf %478, %482 : vector<2x32xf32>
    %cst_231 = arith.constant 5.000000e-01 : f32
    %484 = vector.broadcast %cst_231 : f32 to vector<2x1xf32>
    %485 = arith.cmpf ogt, %455, %484 : vector<2x1xf32>
    %486 = vector.shape_cast %485 : vector<2x1xi1> to vector<2x1xi1>
    %487 = vector.broadcast %486 : vector<2x1xi1> to vector<2x32xi1>
    %488 = arith.select %487, %483, %451 : vector<2x32xi1>, vector<2x32xf32>
    %489 = vector.shape_cast %485 : vector<2x1xi1> to vector<2x1xi1>
    %490 = vector.broadcast %489 : vector<2x1xi1> to vector<2x32xi1>
    %491 = arith.select %490, %481, %452 : vector<2x32xi1>, vector<2x32xf32>
    %cst_232 = arith.constant 0.000000e+00 : f32
    %492 = vector.shape_cast %485 : vector<2x1xi1> to vector<2x1xi1>
    %493 = vector.broadcast %492 : vector<2x1xi1> to vector<2x32xi1>
    %494 = vector.broadcast %cst_232 : f32 to vector<2x32xf32>
    %495 = arith.select %493, %483, %494 : vector<2x32xi1>, vector<2x32xf32>
    %c0_233 = arith.constant 0 : index
    %c0_234 = arith.constant 0 : index
    %496 = vector.load %arg11[%c0_233, %c0_234] : memref<2x32xf32, #tpu.memory_space<vmem>>, vector<2x32xf32>
    tpu.vector_store %arg11[%c0_233, %c0_234], %488 {strides = array<i32>} : memref<2x32xf32, #tpu.memory_space<vmem>>, vector<2x32xf32>,
    %c0_235 = arith.constant 0 : index
    %c0_236 = arith.constant 0 : index
    %497 = vector.load %arg12[%c0_235, %c0_236] : memref<2x32xf32, #tpu.memory_space<vmem>>, vector<2x32xf32>
    tpu.vector_store %arg12[%c0_235, %c0_236], %491 {strides = array<i32>} : memref<2x32xf32, #tpu.memory_space<vmem>>, vector<2x32xf32>,
    %498 = arith.index_cast %381 : i32 to index
    %c0_237 = arith.constant 0 : index
    %c32_238 = arith.constant 32 : index
    %499 = vector.load %arg6[%498, %c0_237, %c32_238] : memref<8x2x64xf32, #tpu.memory_space<vmem>>, vector<1x2x32xf32>
    %500 = vector.shape_cast %499 : vector<1x2x32xf32> to vector<2x32xf32>
    %501 = vector.shape_cast %495 : vector<2x32xf32> to vector<1x2x32xf32>
    tpu.vector_store %arg6[%498, %c0_237, %c32_238], %501 {strides = array<i32>} : memref<8x2x64xf32, #tpu.memory_space<vmem>>, vector<1x2x32xf32>,
    %c4_i32 = arith.constant 4 : i32
    %c7_i32_239 = arith.constant 7 : i32
    %502 = arith.subi %c7_i32_239, %c4_i32 : i32
    %c2_i32_240 = arith.constant 2 : i32
    %503 = arith.muli %c4_i32, %c2_i32_240 : i32
    %504 = tpu.assume_multiple %503, 2 : i32
    %c2_i32_241 = arith.constant 2 : i32
    %505 = arith.muli %502, %c2_i32_241 : i32
    %506 = tpu.assume_multiple %505, 2 : i32
    %507 = arith.index_cast %504 : i32 to index
    %c0_242 = arith.constant 0 : index
    %508 = vector.load %arg7[%507, %c0_242] : memref<16x128xf32, #tpu.memory_space<vmem>>, vector<2x128xf32>
    %c0_243 = arith.constant 0 : index
    %c0_244 = arith.constant 0 : index
    %509 = vector.load %arg9[%c0_243, %c0_244] : memref<2x32xf32, #tpu.memory_space<vmem>>, vector<2x32xf32>
    %510 = arith.truncf %509 : vector<2x32xf32> to vector<2x32xbf16>
    %c0_245 = arith.constant 0 : index
    %c0_246 = arith.constant 0 : index
    %511 = vector.load %arg2[%c0_245, %c0_246] : memref<32x128xbf16, #tpu.memory_space<vmem>>, vector<32x128xbf16>
    %cst_247 = arith.constant dense<0.000000e+00> : vector<2x128xf32>
    %512 = tpu.matmul %510, %511, %cst_247 {dimension_numbers = #tpu.dot_dimension_numbers<[1], [0], [0], [1], [0, 0, 1, 1], [], []>} : vector<2x32xbf16>, vector<32x128xbf16>, vector<2x128xf32> -> vector<2x128xf32>
    %513 = arith.addf %508, %512 : vector<2x128xf32>
    %c0_248 = arith.constant 0 : index
    %c0_249 = arith.constant 0 : index
    %514 = vector.load %arg9[%c0_248, %c0_249] : memref<2x32xf32, #tpu.memory_space<vmem>>, vector<2x32xf32>
    %c0_250 = arith.constant 0 : index
    %c0_251 = arith.constant 0 : index
    %515 = vector.load %arg10[%c0_250, %c0_251] : memref<2x32xf32, #tpu.memory_space<vmem>>, vector<2x32xf32>
    %516 = arith.index_cast %c4_i32 : i32 to index
    %c0_252 = arith.constant 0 : index
    %c0_253 = arith.constant 0 : index
    %517 = vector.load %arg5[%516, %c0_252, %c0_253] : memref<8x2x1xf32, #tpu.memory_space<vmem>>, vector<1x2x1xf32>
    %518 = vector.shape_cast %517 : vector<1x2x1xf32> to vector<2x1xf32>
    %519 = vector.extract_strided_slice %513 {offsets = [0, 0], sizes = [2, 32], strides = [1, 1]} : vector<2x128xf32> to vector<2x32xf32>
    %cst_254 = arith.constant 0.000000e+00 : f32
    %520 = vector.broadcast %cst_254 : f32 to vector<2x32xf32>
    %521 = arith.subf %520, %519 : vector<2x32xf32>
    %522 = math.exp %521 : vector<2x32xf32>
    %cst_255 = arith.constant 1.000000e+00 : f32
    %523 = vector.broadcast %cst_255 : f32 to vector<2x32xf32>
    %524 = arith.addf %523, %522 : vector<2x32xf32>
    %525 = tpu.reciprocal %524 {approx = true} : vector<2x32xf32> -> vector<2x32xf32>
    %526 = vector.extract_strided_slice %513 {offsets = [0, 32], sizes = [2, 32], strides = [1, 1]} : vector<2x128xf32> to vector<2x32xf32>
    %cst_256 = arith.constant 0.000000e+00 : f32
    %527 = vector.broadcast %cst_256 : f32 to vector<2x32xf32>
    %528 = arith.subf %527, %526 : vector<2x32xf32>
    %529 = math.exp %528 : vector<2x32xf32>
    %cst_257 = arith.constant 1.000000e+00 : f32
    %530 = vector.broadcast %cst_257 : f32 to vector<2x32xf32>
    %531 = arith.addf %530, %529 : vector<2x32xf32>
    %532 = tpu.reciprocal %531 {approx = true} : vector<2x32xf32> -> vector<2x32xf32>
    %533 = vector.extract_strided_slice %513 {offsets = [0, 64], sizes = [2, 32], strides = [1, 1]} : vector<2x128xf32> to vector<2x32xf32>
    %534 = math.tanh %533 : vector<2x32xf32>
    %535 = vector.extract_strided_slice %513 {offsets = [0, 96], sizes = [2, 32], strides = [1, 1]} : vector<2x128xf32> to vector<2x32xf32>
    %cst_258 = arith.constant 0.000000e+00 : f32
    %536 = vector.broadcast %cst_258 : f32 to vector<2x32xf32>
    %537 = arith.subf %536, %535 : vector<2x32xf32>
    %538 = math.exp %537 : vector<2x32xf32>
    %cst_259 = arith.constant 1.000000e+00 : f32
    %539 = vector.broadcast %cst_259 : f32 to vector<2x32xf32>
    %540 = arith.addf %539, %538 : vector<2x32xf32>
    %541 = tpu.reciprocal %540 {approx = true} : vector<2x32xf32> -> vector<2x32xf32>
    %542 = arith.mulf %532, %515 : vector<2x32xf32>
    %543 = arith.mulf %525, %534 : vector<2x32xf32>
    %544 = arith.addf %542, %543 : vector<2x32xf32>
    %545 = math.tanh %544 : vector<2x32xf32>
    %546 = arith.mulf %541, %545 : vector<2x32xf32>
    %cst_260 = arith.constant 5.000000e-01 : f32
    %547 = vector.broadcast %cst_260 : f32 to vector<2x1xf32>
    %548 = arith.cmpf ogt, %518, %547 : vector<2x1xf32>
    %549 = vector.shape_cast %548 : vector<2x1xi1> to vector<2x1xi1>
    %550 = vector.broadcast %549 : vector<2x1xi1> to vector<2x32xi1>
    %551 = arith.select %550, %546, %514 : vector<2x32xi1>, vector<2x32xf32>
    %552 = vector.shape_cast %548 : vector<2x1xi1> to vector<2x1xi1>
    %553 = vector.broadcast %552 : vector<2x1xi1> to vector<2x32xi1>
    %554 = arith.select %553, %544, %515 : vector<2x32xi1>, vector<2x32xf32>
    %cst_261 = arith.constant 0.000000e+00 : f32
    %555 = vector.shape_cast %548 : vector<2x1xi1> to vector<2x1xi1>
    %556 = vector.broadcast %555 : vector<2x1xi1> to vector<2x32xi1>
    %557 = vector.broadcast %cst_261 : f32 to vector<2x32xf32>
    %558 = arith.select %556, %546, %557 : vector<2x32xi1>, vector<2x32xf32>
    %c0_262 = arith.constant 0 : index
    %c0_263 = arith.constant 0 : index
    %559 = vector.load %arg9[%c0_262, %c0_263] : memref<2x32xf32, #tpu.memory_space<vmem>>, vector<2x32xf32>
    tpu.vector_store %arg9[%c0_262, %c0_263], %551 {strides = array<i32>} : memref<2x32xf32, #tpu.memory_space<vmem>>, vector<2x32xf32>,
    %c0_264 = arith.constant 0 : index
    %c0_265 = arith.constant 0 : index
    %560 = vector.load %arg10[%c0_264, %c0_265] : memref<2x32xf32, #tpu.memory_space<vmem>>, vector<2x32xf32>
    tpu.vector_store %arg10[%c0_264, %c0_265], %554 {strides = array<i32>} : memref<2x32xf32, #tpu.memory_space<vmem>>, vector<2x32xf32>,
    %561 = arith.index_cast %c4_i32 : i32 to index
    %c0_266 = arith.constant 0 : index
    %c0_267 = arith.constant 0 : index
    %562 = vector.load %arg6[%561, %c0_266, %c0_267] : memref<8x2x64xf32, #tpu.memory_space<vmem>>, vector<1x2x32xf32>
    %563 = vector.shape_cast %562 : vector<1x2x32xf32> to vector<2x32xf32>
    %564 = vector.shape_cast %558 : vector<2x32xf32> to vector<1x2x32xf32>
    tpu.vector_store %arg6[%561, %c0_266, %c0_267], %564 {strides = array<i32>} : memref<8x2x64xf32, #tpu.memory_space<vmem>>, vector<1x2x32xf32>,
    %565 = arith.index_cast %506 : i32 to index
    %c0_268 = arith.constant 0 : index
    %566 = vector.load %arg8[%565, %c0_268] : memref<16x128xf32, #tpu.memory_space<vmem>>, vector<2x128xf32>
    %c0_269 = arith.constant 0 : index
    %c0_270 = arith.constant 0 : index
    %567 = vector.load %arg11[%c0_269, %c0_270] : memref<2x32xf32, #tpu.memory_space<vmem>>, vector<2x32xf32>
    %568 = arith.truncf %567 : vector<2x32xf32> to vector<2x32xbf16>
    %c0_271 = arith.constant 0 : index
    %c0_272 = arith.constant 0 : index
    %569 = vector.load %arg3[%c0_271, %c0_272] : memref<32x128xbf16, #tpu.memory_space<vmem>>, vector<32x128xbf16>
    %cst_273 = arith.constant dense<0.000000e+00> : vector<2x128xf32>
    %570 = tpu.matmul %568, %569, %cst_273 {dimension_numbers = #tpu.dot_dimension_numbers<[1], [0], [0], [1], [0, 0, 1, 1], [], []>} : vector<2x32xbf16>, vector<32x128xbf16>, vector<2x128xf32> -> vector<2x128xf32>
    %571 = arith.addf %566, %570 : vector<2x128xf32>
    %c0_274 = arith.constant 0 : index
    %c0_275 = arith.constant 0 : index
    %572 = vector.load %arg11[%c0_274, %c0_275] : memref<2x32xf32, #tpu.memory_space<vmem>>, vector<2x32xf32>
    %c0_276 = arith.constant 0 : index
    %c0_277 = arith.constant 0 : index
    %573 = vector.load %arg12[%c0_276, %c0_277] : memref<2x32xf32, #tpu.memory_space<vmem>>, vector<2x32xf32>
    %574 = arith.index_cast %502 : i32 to index
    %c0_278 = arith.constant 0 : index
    %c0_279 = arith.constant 0 : index
    %575 = vector.load %arg5[%574, %c0_278, %c0_279] : memref<8x2x1xf32, #tpu.memory_space<vmem>>, vector<1x2x1xf32>
    %576 = vector.shape_cast %575 : vector<1x2x1xf32> to vector<2x1xf32>
    %577 = vector.extract_strided_slice %571 {offsets = [0, 0], sizes = [2, 32], strides = [1, 1]} : vector<2x128xf32> to vector<2x32xf32>
    %cst_280 = arith.constant 0.000000e+00 : f32
    %578 = vector.broadcast %cst_280 : f32 to vector<2x32xf32>
    %579 = arith.subf %578, %577 : vector<2x32xf32>
    %580 = math.exp %579 : vector<2x32xf32>
    %cst_281 = arith.constant 1.000000e+00 : f32
    %581 = vector.broadcast %cst_281 : f32 to vector<2x32xf32>
    %582 = arith.addf %581, %580 : vector<2x32xf32>
    %583 = tpu.reciprocal %582 {approx = true} : vector<2x32xf32> -> vector<2x32xf32>
    %584 = vector.extract_strided_slice %571 {offsets = [0, 32], sizes = [2, 32], strides = [1, 1]} : vector<2x128xf32> to vector<2x32xf32>
    %cst_282 = arith.constant 0.000000e+00 : f32
    %585 = vector.broadcast %cst_282 : f32 to vector<2x32xf32>
    %586 = arith.subf %585, %584 : vector<2x32xf32>
    %587 = math.exp %586 : vector<2x32xf32>
    %cst_283 = arith.constant 1.000000e+00 : f32
    %588 = vector.broadcast %cst_283 : f32 to vector<2x32xf32>
    %589 = arith.addf %588, %587 : vector<2x32xf32>
    %590 = tpu.reciprocal %589 {approx = true} : vector<2x32xf32> -> vector<2x32xf32>
    %591 = vector.extract_strided_slice %571 {offsets = [0, 64], sizes = [2, 32], strides = [1, 1]} : vector<2x128xf32> to vector<2x32xf32>
    %592 = math.tanh %591 : vector<2x32xf32>
    %593 = vector.extract_strided_slice %571 {offsets = [0, 96], sizes = [2, 32], strides = [1, 1]} : vector<2x128xf32> to vector<2x32xf32>
    %cst_284 = arith.constant 0.000000e+00 : f32
    %594 = vector.broadcast %cst_284 : f32 to vector<2x32xf32>
    %595 = arith.subf %594, %593 : vector<2x32xf32>
    %596 = math.exp %595 : vector<2x32xf32>
    %cst_285 = arith.constant 1.000000e+00 : f32
    %597 = vector.broadcast %cst_285 : f32 to vector<2x32xf32>
    %598 = arith.addf %597, %596 : vector<2x32xf32>
    %599 = tpu.reciprocal %598 {approx = true} : vector<2x32xf32> -> vector<2x32xf32>
    %600 = arith.mulf %590, %573 : vector<2x32xf32>
    %601 = arith.mulf %583, %592 : vector<2x32xf32>
    %602 = arith.addf %600, %601 : vector<2x32xf32>
    %603 = math.tanh %602 : vector<2x32xf32>
    %604 = arith.mulf %599, %603 : vector<2x32xf32>
    %cst_286 = arith.constant 5.000000e-01 : f32
    %605 = vector.broadcast %cst_286 : f32 to vector<2x1xf32>
    %606 = arith.cmpf ogt, %576, %605 : vector<2x1xf32>
    %607 = vector.shape_cast %606 : vector<2x1xi1> to vector<2x1xi1>
    %608 = vector.broadcast %607 : vector<2x1xi1> to vector<2x32xi1>
    %609 = arith.select %608, %604, %572 : vector<2x32xi1>, vector<2x32xf32>
    %610 = vector.shape_cast %606 : vector<2x1xi1> to vector<2x1xi1>
    %611 = vector.broadcast %610 : vector<2x1xi1> to vector<2x32xi1>
    %612 = arith.select %611, %602, %573 : vector<2x32xi1>, vector<2x32xf32>
    %cst_287 = arith.constant 0.000000e+00 : f32
    %613 = vector.shape_cast %606 : vector<2x1xi1> to vector<2x1xi1>
    %614 = vector.broadcast %613 : vector<2x1xi1> to vector<2x32xi1>
    %615 = vector.broadcast %cst_287 : f32 to vector<2x32xf32>
    %616 = arith.select %614, %604, %615 : vector<2x32xi1>, vector<2x32xf32>
    %c0_288 = arith.constant 0 : index
    %c0_289 = arith.constant 0 : index
    %617 = vector.load %arg11[%c0_288, %c0_289] : memref<2x32xf32, #tpu.memory_space<vmem>>, vector<2x32xf32>
    tpu.vector_store %arg11[%c0_288, %c0_289], %609 {strides = array<i32>} : memref<2x32xf32, #tpu.memory_space<vmem>>, vector<2x32xf32>,
    %c0_290 = arith.constant 0 : index
    %c0_291 = arith.constant 0 : index
    %618 = vector.load %arg12[%c0_290, %c0_291] : memref<2x32xf32, #tpu.memory_space<vmem>>, vector<2x32xf32>
    tpu.vector_store %arg12[%c0_290, %c0_291], %612 {strides = array<i32>} : memref<2x32xf32, #tpu.memory_space<vmem>>, vector<2x32xf32>,
    %619 = arith.index_cast %502 : i32 to index
    %c0_292 = arith.constant 0 : index
    %c32_293 = arith.constant 32 : index
    %620 = vector.load %arg6[%619, %c0_292, %c32_293] : memref<8x2x64xf32, #tpu.memory_space<vmem>>, vector<1x2x32xf32>
    %621 = vector.shape_cast %620 : vector<1x2x32xf32> to vector<2x32xf32>
    %622 = vector.shape_cast %616 : vector<2x32xf32> to vector<1x2x32xf32>
    tpu.vector_store %arg6[%619, %c0_292, %c32_293], %622 {strides = array<i32>} : memref<8x2x64xf32, #tpu.memory_space<vmem>>, vector<1x2x32xf32>,
    %c5_i32 = arith.constant 5 : i32
    %c7_i32_294 = arith.constant 7 : i32
    %623 = arith.subi %c7_i32_294, %c5_i32 : i32
    %c2_i32_295 = arith.constant 2 : i32
    %624 = arith.muli %c5_i32, %c2_i32_295 : i32
    %625 = tpu.assume_multiple %624, 2 : i32
    %c2_i32_296 = arith.constant 2 : i32
    %626 = arith.muli %623, %c2_i32_296 : i32
    %627 = tpu.assume_multiple %626, 2 : i32
    %628 = arith.index_cast %625 : i32 to index
    %c0_297 = arith.constant 0 : index
    %629 = vector.load %arg7[%628, %c0_297] : memref<16x128xf32, #tpu.memory_space<vmem>>, vector<2x128xf32>
    %c0_298 = arith.constant 0 : index
    %c0_299 = arith.constant 0 : index
    %630 = vector.load %arg9[%c0_298, %c0_299] : memref<2x32xf32, #tpu.memory_space<vmem>>, vector<2x32xf32>
    %631 = arith.truncf %630 : vector<2x32xf32> to vector<2x32xbf16>
    %c0_300 = arith.constant 0 : index
    %c0_301 = arith.constant 0 : index
    %632 = vector.load %arg2[%c0_300, %c0_301] : memref<32x128xbf16, #tpu.memory_space<vmem>>, vector<32x128xbf16>
    %cst_302 = arith.constant dense<0.000000e+00> : vector<2x128xf32>
    %633 = tpu.matmul %631, %632, %cst_302 {dimension_numbers = #tpu.dot_dimension_numbers<[1], [0], [0], [1], [0, 0, 1, 1], [], []>} : vector<2x32xbf16>, vector<32x128xbf16>, vector<2x128xf32> -> vector<2x128xf32>
    %634 = arith.addf %629, %633 : vector<2x128xf32>
    %c0_303 = arith.constant 0 : index
    %c0_304 = arith.constant 0 : index
    %635 = vector.load %arg9[%c0_303, %c0_304] : memref<2x32xf32, #tpu.memory_space<vmem>>, vector<2x32xf32>
    %c0_305 = arith.constant 0 : index
    %c0_306 = arith.constant 0 : index
    %636 = vector.load %arg10[%c0_305, %c0_306] : memref<2x32xf32, #tpu.memory_space<vmem>>, vector<2x32xf32>
    %637 = arith.index_cast %c5_i32 : i32 to index
    %c0_307 = arith.constant 0 : index
    %c0_308 = arith.constant 0 : index
    %638 = vector.load %arg5[%637, %c0_307, %c0_308] : memref<8x2x1xf32, #tpu.memory_space<vmem>>, vector<1x2x1xf32>
    %639 = vector.shape_cast %638 : vector<1x2x1xf32> to vector<2x1xf32>
    %640 = vector.extract_strided_slice %634 {offsets = [0, 0], sizes = [2, 32], strides = [1, 1]} : vector<2x128xf32> to vector<2x32xf32>
    %cst_309 = arith.constant 0.000000e+00 : f32
    %641 = vector.broadcast %cst_309 : f32 to vector<2x32xf32>
    %642 = arith.subf %641, %640 : vector<2x32xf32>
    %643 = math.exp %642 : vector<2x32xf32>
    %cst_310 = arith.constant 1.000000e+00 : f32
    %644 = vector.broadcast %cst_310 : f32 to vector<2x32xf32>
    %645 = arith.addf %644, %643 : vector<2x32xf32>
    %646 = tpu.reciprocal %645 {approx = true} : vector<2x32xf32> -> vector<2x32xf32>
    %647 = vector.extract_strided_slice %634 {offsets = [0, 32], sizes = [2, 32], strides = [1, 1]} : vector<2x128xf32> to vector<2x32xf32>
    %cst_311 = arith.constant 0.000000e+00 : f32
    %648 = vector.broadcast %cst_311 : f32 to vector<2x32xf32>
    %649 = arith.subf %648, %647 : vector<2x32xf32>
    %650 = math.exp %649 : vector<2x32xf32>
    %cst_312 = arith.constant 1.000000e+00 : f32
    %651 = vector.broadcast %cst_312 : f32 to vector<2x32xf32>
    %652 = arith.addf %651, %650 : vector<2x32xf32>
    %653 = tpu.reciprocal %652 {approx = true} : vector<2x32xf32> -> vector<2x32xf32>
    %654 = vector.extract_strided_slice %634 {offsets = [0, 64], sizes = [2, 32], strides = [1, 1]} : vector<2x128xf32> to vector<2x32xf32>
    %655 = math.tanh %654 : vector<2x32xf32>
    %656 = vector.extract_strided_slice %634 {offsets = [0, 96], sizes = [2, 32], strides = [1, 1]} : vector<2x128xf32> to vector<2x32xf32>
    %cst_313 = arith.constant 0.000000e+00 : f32
    %657 = vector.broadcast %cst_313 : f32 to vector<2x32xf32>
    %658 = arith.subf %657, %656 : vector<2x32xf32>
    %659 = math.exp %658 : vector<2x32xf32>
    %cst_314 = arith.constant 1.000000e+00 : f32
    %660 = vector.broadcast %cst_314 : f32 to vector<2x32xf32>
    %661 = arith.addf %660, %659 : vector<2x32xf32>
    %662 = tpu.reciprocal %661 {approx = true} : vector<2x32xf32> -> vector<2x32xf32>
    %663 = arith.mulf %653, %636 : vector<2x32xf32>
    %664 = arith.mulf %646, %655 : vector<2x32xf32>
    %665 = arith.addf %663, %664 : vector<2x32xf32>
    %666 = math.tanh %665 : vector<2x32xf32>
    %667 = arith.mulf %662, %666 : vector<2x32xf32>
    %cst_315 = arith.constant 5.000000e-01 : f32
    %668 = vector.broadcast %cst_315 : f32 to vector<2x1xf32>
    %669 = arith.cmpf ogt, %639, %668 : vector<2x1xf32>
    %670 = vector.shape_cast %669 : vector<2x1xi1> to vector<2x1xi1>
    %671 = vector.broadcast %670 : vector<2x1xi1> to vector<2x32xi1>
    %672 = arith.select %671, %667, %635 : vector<2x32xi1>, vector<2x32xf32>
    %673 = vector.shape_cast %669 : vector<2x1xi1> to vector<2x1xi1>
    %674 = vector.broadcast %673 : vector<2x1xi1> to vector<2x32xi1>
    %675 = arith.select %674, %665, %636 : vector<2x32xi1>, vector<2x32xf32>
    %cst_316 = arith.constant 0.000000e+00 : f32
    %676 = vector.shape_cast %669 : vector<2x1xi1> to vector<2x1xi1>
    %677 = vector.broadcast %676 : vector<2x1xi1> to vector<2x32xi1>
    %678 = vector.broadcast %cst_316 : f32 to vector<2x32xf32>
    %679 = arith.select %677, %667, %678 : vector<2x32xi1>, vector<2x32xf32>
    %c0_317 = arith.constant 0 : index
    %c0_318 = arith.constant 0 : index
    %680 = vector.load %arg9[%c0_317, %c0_318] : memref<2x32xf32, #tpu.memory_space<vmem>>, vector<2x32xf32>
    tpu.vector_store %arg9[%c0_317, %c0_318], %672 {strides = array<i32>} : memref<2x32xf32, #tpu.memory_space<vmem>>, vector<2x32xf32>,
    %c0_319 = arith.constant 0 : index
    %c0_320 = arith.constant 0 : index
    %681 = vector.load %arg10[%c0_319, %c0_320] : memref<2x32xf32, #tpu.memory_space<vmem>>, vector<2x32xf32>
    tpu.vector_store %arg10[%c0_319, %c0_320], %675 {strides = array<i32>} : memref<2x32xf32, #tpu.memory_space<vmem>>, vector<2x32xf32>,
    %682 = arith.index_cast %c5_i32 : i32 to index
    %c0_321 = arith.constant 0 : index
    %c0_322 = arith.constant 0 : index
    %683 = vector.load %arg6[%682, %c0_321, %c0_322] : memref<8x2x64xf32, #tpu.memory_space<vmem>>, vector<1x2x32xf32>
    %684 = vector.shape_cast %683 : vector<1x2x32xf32> to vector<2x32xf32>
    %685 = vector.shape_cast %679 : vector<2x32xf32> to vector<1x2x32xf32>
    tpu.vector_store %arg6[%682, %c0_321, %c0_322], %685 {strides = array<i32>} : memref<8x2x64xf32, #tpu.memory_space<vmem>>, vector<1x2x32xf32>,
    %686 = arith.index_cast %627 : i32 to index
    %c0_323 = arith.constant 0 : index
    %687 = vector.load %arg8[%686, %c0_323] : memref<16x128xf32, #tpu.memory_space<vmem>>, vector<2x128xf32>
    %c0_324 = arith.constant 0 : index
    %c0_325 = arith.constant 0 : index
    %688 = vector.load %arg11[%c0_324, %c0_325] : memref<2x32xf32, #tpu.memory_space<vmem>>, vector<2x32xf32>
    %689 = arith.truncf %688 : vector<2x32xf32> to vector<2x32xbf16>
    %c0_326 = arith.constant 0 : index
    %c0_327 = arith.constant 0 : index
    %690 = vector.load %arg3[%c0_326, %c0_327] : memref<32x128xbf16, #tpu.memory_space<vmem>>, vector<32x128xbf16>
    %cst_328 = arith.constant dense<0.000000e+00> : vector<2x128xf32>
    %691 = tpu.matmul %689, %690, %cst_328 {dimension_numbers = #tpu.dot_dimension_numbers<[1], [0], [0], [1], [0, 0, 1, 1], [], []>} : vector<2x32xbf16>, vector<32x128xbf16>, vector<2x128xf32> -> vector<2x128xf32>
    %692 = arith.addf %687, %691 : vector<2x128xf32>
    %c0_329 = arith.constant 0 : index
    %c0_330 = arith.constant 0 : index
    %693 = vector.load %arg11[%c0_329, %c0_330] : memref<2x32xf32, #tpu.memory_space<vmem>>, vector<2x32xf32>
    %c0_331 = arith.constant 0 : index
    %c0_332 = arith.constant 0 : index
    %694 = vector.load %arg12[%c0_331, %c0_332] : memref<2x32xf32, #tpu.memory_space<vmem>>, vector<2x32xf32>
    %695 = arith.index_cast %623 : i32 to index
    %c0_333 = arith.constant 0 : index
    %c0_334 = arith.constant 0 : index
    %696 = vector.load %arg5[%695, %c0_333, %c0_334] : memref<8x2x1xf32, #tpu.memory_space<vmem>>, vector<1x2x1xf32>
    %697 = vector.shape_cast %696 : vector<1x2x1xf32> to vector<2x1xf32>
    %698 = vector.extract_strided_slice %692 {offsets = [0, 0], sizes = [2, 32], strides = [1, 1]} : vector<2x128xf32> to vector<2x32xf32>
    %cst_335 = arith.constant 0.000000e+00 : f32
    %699 = vector.broadcast %cst_335 : f32 to vector<2x32xf32>
    %700 = arith.subf %699, %698 : vector<2x32xf32>
    %701 = math.exp %700 : vector<2x32xf32>
    %cst_336 = arith.constant 1.000000e+00 : f32
    %702 = vector.broadcast %cst_336 : f32 to vector<2x32xf32>
    %703 = arith.addf %702, %701 : vector<2x32xf32>
    %704 = tpu.reciprocal %703 {approx = true} : vector<2x32xf32> -> vector<2x32xf32>
    %705 = vector.extract_strided_slice %692 {offsets = [0, 32], sizes = [2, 32], strides = [1, 1]} : vector<2x128xf32> to vector<2x32xf32>
    %cst_337 = arith.constant 0.000000e+00 : f32
    %706 = vector.broadcast %cst_337 : f32 to vector<2x32xf32>
    %707 = arith.subf %706, %705 : vector<2x32xf32>
    %708 = math.exp %707 : vector<2x32xf32>
    %cst_338 = arith.constant 1.000000e+00 : f32
    %709 = vector.broadcast %cst_338 : f32 to vector<2x32xf32>
    %710 = arith.addf %709, %708 : vector<2x32xf32>
    %711 = tpu.reciprocal %710 {approx = true} : vector<2x32xf32> -> vector<2x32xf32>
    %712 = vector.extract_strided_slice %692 {offsets = [0, 64], sizes = [2, 32], strides = [1, 1]} : vector<2x128xf32> to vector<2x32xf32>
    %713 = math.tanh %712 : vector<2x32xf32>
    %714 = vector.extract_strided_slice %692 {offsets = [0, 96], sizes = [2, 32], strides = [1, 1]} : vector<2x128xf32> to vector<2x32xf32>
    %cst_339 = arith.constant 0.000000e+00 : f32
    %715 = vector.broadcast %cst_339 : f32 to vector<2x32xf32>
    %716 = arith.subf %715, %714 : vector<2x32xf32>
    %717 = math.exp %716 : vector<2x32xf32>
    %cst_340 = arith.constant 1.000000e+00 : f32
    %718 = vector.broadcast %cst_340 : f32 to vector<2x32xf32>
    %719 = arith.addf %718, %717 : vector<2x32xf32>
    %720 = tpu.reciprocal %719 {approx = true} : vector<2x32xf32> -> vector<2x32xf32>
    %721 = arith.mulf %711, %694 : vector<2x32xf32>
    %722 = arith.mulf %704, %713 : vector<2x32xf32>
    %723 = arith.addf %721, %722 : vector<2x32xf32>
    %724 = math.tanh %723 : vector<2x32xf32>
    %725 = arith.mulf %720, %724 : vector<2x32xf32>
    %cst_341 = arith.constant 5.000000e-01 : f32
    %726 = vector.broadcast %cst_341 : f32 to vector<2x1xf32>
    %727 = arith.cmpf ogt, %697, %726 : vector<2x1xf32>
    %728 = vector.shape_cast %727 : vector<2x1xi1> to vector<2x1xi1>
    %729 = vector.broadcast %728 : vector<2x1xi1> to vector<2x32xi1>
    %730 = arith.select %729, %725, %693 : vector<2x32xi1>, vector<2x32xf32>
    %731 = vector.shape_cast %727 : vector<2x1xi1> to vector<2x1xi1>
    %732 = vector.broadcast %731 : vector<2x1xi1> to vector<2x32xi1>
    %733 = arith.select %732, %723, %694 : vector<2x32xi1>, vector<2x32xf32>
    %cst_342 = arith.constant 0.000000e+00 : f32
    %734 = vector.shape_cast %727 : vector<2x1xi1> to vector<2x1xi1>
    %735 = vector.broadcast %734 : vector<2x1xi1> to vector<2x32xi1>
    %736 = vector.broadcast %cst_342 : f32 to vector<2x32xf32>
    %737 = arith.select %735, %725, %736 : vector<2x32xi1>, vector<2x32xf32>
    %c0_343 = arith.constant 0 : index
    %c0_344 = arith.constant 0 : index
    %738 = vector.load %arg11[%c0_343, %c0_344] : memref<2x32xf32, #tpu.memory_space<vmem>>, vector<2x32xf32>
    tpu.vector_store %arg11[%c0_343, %c0_344], %730 {strides = array<i32>} : memref<2x32xf32, #tpu.memory_space<vmem>>, vector<2x32xf32>,
    %c0_345 = arith.constant 0 : index
    %c0_346 = arith.constant 0 : index
    %739 = vector.load %arg12[%c0_345, %c0_346] : memref<2x32xf32, #tpu.memory_space<vmem>>, vector<2x32xf32>
    tpu.vector_store %arg12[%c0_345, %c0_346], %733 {strides = array<i32>} : memref<2x32xf32, #tpu.memory_space<vmem>>, vector<2x32xf32>,
    %740 = arith.index_cast %623 : i32 to index
    %c0_347 = arith.constant 0 : index
    %c32_348 = arith.constant 32 : index
    %741 = vector.load %arg6[%740, %c0_347, %c32_348] : memref<8x2x64xf32, #tpu.memory_space<vmem>>, vector<1x2x32xf32>
    %742 = vector.shape_cast %741 : vector<1x2x32xf32> to vector<2x32xf32>
    %743 = vector.shape_cast %737 : vector<2x32xf32> to vector<1x2x32xf32>
    tpu.vector_store %arg6[%740, %c0_347, %c32_348], %743 {strides = array<i32>} : memref<8x2x64xf32, #tpu.memory_space<vmem>>, vector<1x2x32xf32>,
    %c6_i32 = arith.constant 6 : i32
    %c7_i32_349 = arith.constant 7 : i32
    %744 = arith.subi %c7_i32_349, %c6_i32 : i32
    %c2_i32_350 = arith.constant 2 : i32
    %745 = arith.muli %c6_i32, %c2_i32_350 : i32
    %746 = tpu.assume_multiple %745, 2 : i32
    %c2_i32_351 = arith.constant 2 : i32
    %747 = arith.muli %744, %c2_i32_351 : i32
    %748 = tpu.assume_multiple %747, 2 : i32
    %749 = arith.index_cast %746 : i32 to index
    %c0_352 = arith.constant 0 : index
    %750 = vector.load %arg7[%749, %c0_352] : memref<16x128xf32, #tpu.memory_space<vmem>>, vector<2x128xf32>
    %c0_353 = arith.constant 0 : index
    %c0_354 = arith.constant 0 : index
    %751 = vector.load %arg9[%c0_353, %c0_354] : memref<2x32xf32, #tpu.memory_space<vmem>>, vector<2x32xf32>
    %752 = arith.truncf %751 : vector<2x32xf32> to vector<2x32xbf16>
    %c0_355 = arith.constant 0 : index
    %c0_356 = arith.constant 0 : index
    %753 = vector.load %arg2[%c0_355, %c0_356] : memref<32x128xbf16, #tpu.memory_space<vmem>>, vector<32x128xbf16>
    %cst_357 = arith.constant dense<0.000000e+00> : vector<2x128xf32>
    %754 = tpu.matmul %752, %753, %cst_357 {dimension_numbers = #tpu.dot_dimension_numbers<[1], [0], [0], [1], [0, 0, 1, 1], [], []>} : vector<2x32xbf16>, vector<32x128xbf16>, vector<2x128xf32> -> vector<2x128xf32>
    %755 = arith.addf %750, %754 : vector<2x128xf32>
    %c0_358 = arith.constant 0 : index
    %c0_359 = arith.constant 0 : index
    %756 = vector.load %arg9[%c0_358, %c0_359] : memref<2x32xf32, #tpu.memory_space<vmem>>, vector<2x32xf32>
    %c0_360 = arith.constant 0 : index
    %c0_361 = arith.constant 0 : index
    %757 = vector.load %arg10[%c0_360, %c0_361] : memref<2x32xf32, #tpu.memory_space<vmem>>, vector<2x32xf32>
    %758 = arith.index_cast %c6_i32 : i32 to index
    %c0_362 = arith.constant 0 : index
    %c0_363 = arith.constant 0 : index
    %759 = vector.load %arg5[%758, %c0_362, %c0_363] : memref<8x2x1xf32, #tpu.memory_space<vmem>>, vector<1x2x1xf32>
    %760 = vector.shape_cast %759 : vector<1x2x1xf32> to vector<2x1xf32>
    %761 = vector.extract_strided_slice %755 {offsets = [0, 0], sizes = [2, 32], strides = [1, 1]} : vector<2x128xf32> to vector<2x32xf32>
    %cst_364 = arith.constant 0.000000e+00 : f32
    %762 = vector.broadcast %cst_364 : f32 to vector<2x32xf32>
    %763 = arith.subf %762, %761 : vector<2x32xf32>
    %764 = math.exp %763 : vector<2x32xf32>
    %cst_365 = arith.constant 1.000000e+00 : f32
    %765 = vector.broadcast %cst_365 : f32 to vector<2x32xf32>
    %766 = arith.addf %765, %764 : vector<2x32xf32>
    %767 = tpu.reciprocal %766 {approx = true} : vector<2x32xf32> -> vector<2x32xf32>
    %768 = vector.extract_strided_slice %755 {offsets = [0, 32], sizes = [2, 32], strides = [1, 1]} : vector<2x128xf32> to vector<2x32xf32>
    %cst_366 = arith.constant 0.000000e+00 : f32
    %769 = vector.broadcast %cst_366 : f32 to vector<2x32xf32>
    %770 = arith.subf %769, %768 : vector<2x32xf32>
    %771 = math.exp %770 : vector<2x32xf32>
    %cst_367 = arith.constant 1.000000e+00 : f32
    %772 = vector.broadcast %cst_367 : f32 to vector<2x32xf32>
    %773 = arith.addf %772, %771 : vector<2x32xf32>
    %774 = tpu.reciprocal %773 {approx = true} : vector<2x32xf32> -> vector<2x32xf32>
    %775 = vector.extract_strided_slice %755 {offsets = [0, 64], sizes = [2, 32], strides = [1, 1]} : vector<2x128xf32> to vector<2x32xf32>
    %776 = math.tanh %775 : vector<2x32xf32>
    %777 = vector.extract_strided_slice %755 {offsets = [0, 96], sizes = [2, 32], strides = [1, 1]} : vector<2x128xf32> to vector<2x32xf32>
    %cst_368 = arith.constant 0.000000e+00 : f32
    %778 = vector.broadcast %cst_368 : f32 to vector<2x32xf32>
    %779 = arith.subf %778, %777 : vector<2x32xf32>
    %780 = math.exp %779 : vector<2x32xf32>
    %cst_369 = arith.constant 1.000000e+00 : f32
    %781 = vector.broadcast %cst_369 : f32 to vector<2x32xf32>
    %782 = arith.addf %781, %780 : vector<2x32xf32>
    %783 = tpu.reciprocal %782 {approx = true} : vector<2x32xf32> -> vector<2x32xf32>
    %784 = arith.mulf %774, %757 : vector<2x32xf32>
    %785 = arith.mulf %767, %776 : vector<2x32xf32>
    %786 = arith.addf %784, %785 : vector<2x32xf32>
    %787 = math.tanh %786 : vector<2x32xf32>
    %788 = arith.mulf %783, %787 : vector<2x32xf32>
    %cst_370 = arith.constant 5.000000e-01 : f32
    %789 = vector.broadcast %cst_370 : f32 to vector<2x1xf32>
    %790 = arith.cmpf ogt, %760, %789 : vector<2x1xf32>
    %791 = vector.shape_cast %790 : vector<2x1xi1> to vector<2x1xi1>
    %792 = vector.broadcast %791 : vector<2x1xi1> to vector<2x32xi1>
    %793 = arith.select %792, %788, %756 : vector<2x32xi1>, vector<2x32xf32>
    %794 = vector.shape_cast %790 : vector<2x1xi1> to vector<2x1xi1>
    %795 = vector.broadcast %794 : vector<2x1xi1> to vector<2x32xi1>
    %796 = arith.select %795, %786, %757 : vector<2x32xi1>, vector<2x32xf32>
    %cst_371 = arith.constant 0.000000e+00 : f32
    %797 = vector.shape_cast %790 : vector<2x1xi1> to vector<2x1xi1>
    %798 = vector.broadcast %797 : vector<2x1xi1> to vector<2x32xi1>
    %799 = vector.broadcast %cst_371 : f32 to vector<2x32xf32>
    %800 = arith.select %798, %788, %799 : vector<2x32xi1>, vector<2x32xf32>
    %c0_372 = arith.constant 0 : index
    %c0_373 = arith.constant 0 : index
    %801 = vector.load %arg9[%c0_372, %c0_373] : memref<2x32xf32, #tpu.memory_space<vmem>>, vector<2x32xf32>
    tpu.vector_store %arg9[%c0_372, %c0_373], %793 {strides = array<i32>} : memref<2x32xf32, #tpu.memory_space<vmem>>, vector<2x32xf32>,
    %c0_374 = arith.constant 0 : index
    %c0_375 = arith.constant 0 : index
    %802 = vector.load %arg10[%c0_374, %c0_375] : memref<2x32xf32, #tpu.memory_space<vmem>>, vector<2x32xf32>
    tpu.vector_store %arg10[%c0_374, %c0_375], %796 {strides = array<i32>} : memref<2x32xf32, #tpu.memory_space<vmem>>, vector<2x32xf32>,
    %803 = arith.index_cast %c6_i32 : i32 to index
    %c0_376 = arith.constant 0 : index
    %c0_377 = arith.constant 0 : index
    %804 = vector.load %arg6[%803, %c0_376, %c0_377] : memref<8x2x64xf32, #tpu.memory_space<vmem>>, vector<1x2x32xf32>
    %805 = vector.shape_cast %804 : vector<1x2x32xf32> to vector<2x32xf32>
    %806 = vector.shape_cast %800 : vector<2x32xf32> to vector<1x2x32xf32>
    tpu.vector_store %arg6[%803, %c0_376, %c0_377], %806 {strides = array<i32>} : memref<8x2x64xf32, #tpu.memory_space<vmem>>, vector<1x2x32xf32>,
    %807 = arith.index_cast %748 : i32 to index
    %c0_378 = arith.constant 0 : index
    %808 = vector.load %arg8[%807, %c0_378] : memref<16x128xf32, #tpu.memory_space<vmem>>, vector<2x128xf32>
    %c0_379 = arith.constant 0 : index
    %c0_380 = arith.constant 0 : index
    %809 = vector.load %arg11[%c0_379, %c0_380] : memref<2x32xf32, #tpu.memory_space<vmem>>, vector<2x32xf32>
    %810 = arith.truncf %809 : vector<2x32xf32> to vector<2x32xbf16>
    %c0_381 = arith.constant 0 : index
    %c0_382 = arith.constant 0 : index
    %811 = vector.load %arg3[%c0_381, %c0_382] : memref<32x128xbf16, #tpu.memory_space<vmem>>, vector<32x128xbf16>
    %cst_383 = arith.constant dense<0.000000e+00> : vector<2x128xf32>
    %812 = tpu.matmul %810, %811, %cst_383 {dimension_numbers = #tpu.dot_dimension_numbers<[1], [0], [0], [1], [0, 0, 1, 1], [], []>} : vector<2x32xbf16>, vector<32x128xbf16>, vector<2x128xf32> -> vector<2x128xf32>
    %813 = arith.addf %808, %812 : vector<2x128xf32>
    %c0_384 = arith.constant 0 : index
    %c0_385 = arith.constant 0 : index
    %814 = vector.load %arg11[%c0_384, %c0_385] : memref<2x32xf32, #tpu.memory_space<vmem>>, vector<2x32xf32>
    %c0_386 = arith.constant 0 : index
    %c0_387 = arith.constant 0 : index
    %815 = vector.load %arg12[%c0_386, %c0_387] : memref<2x32xf32, #tpu.memory_space<vmem>>, vector<2x32xf32>
    %816 = arith.index_cast %744 : i32 to index
    %c0_388 = arith.constant 0 : index
    %c0_389 = arith.constant 0 : index
    %817 = vector.load %arg5[%816, %c0_388, %c0_389] : memref<8x2x1xf32, #tpu.memory_space<vmem>>, vector<1x2x1xf32>
    %818 = vector.shape_cast %817 : vector<1x2x1xf32> to vector<2x1xf32>
    %819 = vector.extract_strided_slice %813 {offsets = [0, 0], sizes = [2, 32], strides = [1, 1]} : vector<2x128xf32> to vector<2x32xf32>
    %cst_390 = arith.constant 0.000000e+00 : f32
    %820 = vector.broadcast %cst_390 : f32 to vector<2x32xf32>
    %821 = arith.subf %820, %819 : vector<2x32xf32>
    %822 = math.exp %821 : vector<2x32xf32>
    %cst_391 = arith.constant 1.000000e+00 : f32
    %823 = vector.broadcast %cst_391 : f32 to vector<2x32xf32>
    %824 = arith.addf %823, %822 : vector<2x32xf32>
    %825 = tpu.reciprocal %824 {approx = true} : vector<2x32xf32> -> vector<2x32xf32>
    %826 = vector.extract_strided_slice %813 {offsets = [0, 32], sizes = [2, 32], strides = [1, 1]} : vector<2x128xf32> to vector<2x32xf32>
    %cst_392 = arith.constant 0.000000e+00 : f32
    %827 = vector.broadcast %cst_392 : f32 to vector<2x32xf32>
    %828 = arith.subf %827, %826 : vector<2x32xf32>
    %829 = math.exp %828 : vector<2x32xf32>
    %cst_393 = arith.constant 1.000000e+00 : f32
    %830 = vector.broadcast %cst_393 : f32 to vector<2x32xf32>
    %831 = arith.addf %830, %829 : vector<2x32xf32>
    %832 = tpu.reciprocal %831 {approx = true} : vector<2x32xf32> -> vector<2x32xf32>
    %833 = vector.extract_strided_slice %813 {offsets = [0, 64], sizes = [2, 32], strides = [1, 1]} : vector<2x128xf32> to vector<2x32xf32>
    %834 = math.tanh %833 : vector<2x32xf32>
    %835 = vector.extract_strided_slice %813 {offsets = [0, 96], sizes = [2, 32], strides = [1, 1]} : vector<2x128xf32> to vector<2x32xf32>
    %cst_394 = arith.constant 0.000000e+00 : f32
    %836 = vector.broadcast %cst_394 : f32 to vector<2x32xf32>
    %837 = arith.subf %836, %835 : vector<2x32xf32>
    %838 = math.exp %837 : vector<2x32xf32>
    %cst_395 = arith.constant 1.000000e+00 : f32
    %839 = vector.broadcast %cst_395 : f32 to vector<2x32xf32>
    %840 = arith.addf %839, %838 : vector<2x32xf32>
    %841 = tpu.reciprocal %840 {approx = true} : vector<2x32xf32> -> vector<2x32xf32>
    %842 = arith.mulf %832, %815 : vector<2x32xf32>
    %843 = arith.mulf %825, %834 : vector<2x32xf32>
    %844 = arith.addf %842, %843 : vector<2x32xf32>
    %845 = math.tanh %844 : vector<2x32xf32>
    %846 = arith.mulf %841, %845 : vector<2x32xf32>
    %cst_396 = arith.constant 5.000000e-01 : f32
    %847 = vector.broadcast %cst_396 : f32 to vector<2x1xf32>
    %848 = arith.cmpf ogt, %818, %847 : vector<2x1xf32>
    %849 = vector.shape_cast %848 : vector<2x1xi1> to vector<2x1xi1>
    %850 = vector.broadcast %849 : vector<2x1xi1> to vector<2x32xi1>
    %851 = arith.select %850, %846, %814 : vector<2x32xi1>, vector<2x32xf32>
    %852 = vector.shape_cast %848 : vector<2x1xi1> to vector<2x1xi1>
    %853 = vector.broadcast %852 : vector<2x1xi1> to vector<2x32xi1>
    %854 = arith.select %853, %844, %815 : vector<2x32xi1>, vector<2x32xf32>
    %cst_397 = arith.constant 0.000000e+00 : f32
    %855 = vector.shape_cast %848 : vector<2x1xi1> to vector<2x1xi1>
    %856 = vector.broadcast %855 : vector<2x1xi1> to vector<2x32xi1>
    %857 = vector.broadcast %cst_397 : f32 to vector<2x32xf32>
    %858 = arith.select %856, %846, %857 : vector<2x32xi1>, vector<2x32xf32>
    %c0_398 = arith.constant 0 : index
    %c0_399 = arith.constant 0 : index
    %859 = vector.load %arg11[%c0_398, %c0_399] : memref<2x32xf32, #tpu.memory_space<vmem>>, vector<2x32xf32>
    tpu.vector_store %arg11[%c0_398, %c0_399], %851 {strides = array<i32>} : memref<2x32xf32, #tpu.memory_space<vmem>>, vector<2x32xf32>,
    %c0_400 = arith.constant 0 : index
    %c0_401 = arith.constant 0 : index
    %860 = vector.load %arg12[%c0_400, %c0_401] : memref<2x32xf32, #tpu.memory_space<vmem>>, vector<2x32xf32>
    tpu.vector_store %arg12[%c0_400, %c0_401], %854 {strides = array<i32>} : memref<2x32xf32, #tpu.memory_space<vmem>>, vector<2x32xf32>,
    %861 = arith.index_cast %744 : i32 to index
    %c0_402 = arith.constant 0 : index
    %c32_403 = arith.constant 32 : index
    %862 = vector.load %arg6[%861, %c0_402, %c32_403] : memref<8x2x64xf32, #tpu.memory_space<vmem>>, vector<1x2x32xf32>
    %863 = vector.shape_cast %862 : vector<1x2x32xf32> to vector<2x32xf32>
    %864 = vector.shape_cast %858 : vector<2x32xf32> to vector<1x2x32xf32>
    tpu.vector_store %arg6[%861, %c0_402, %c32_403], %864 {strides = array<i32>} : memref<8x2x64xf32, #tpu.memory_space<vmem>>, vector<1x2x32xf32>,
    %c7_i32_404 = arith.constant 7 : i32
    %c7_i32_405 = arith.constant 7 : i32
    %865 = arith.subi %c7_i32_405, %c7_i32_404 : i32
    %c2_i32_406 = arith.constant 2 : i32
    %866 = arith.muli %c7_i32_404, %c2_i32_406 : i32
    %867 = tpu.assume_multiple %866, 2 : i32
    %c2_i32_407 = arith.constant 2 : i32
    %868 = arith.muli %865, %c2_i32_407 : i32
    %869 = tpu.assume_multiple %868, 2 : i32
    %870 = arith.index_cast %867 : i32 to index
    %c0_408 = arith.constant 0 : index
    %871 = vector.load %arg7[%870, %c0_408] : memref<16x128xf32, #tpu.memory_space<vmem>>, vector<2x128xf32>
    %c0_409 = arith.constant 0 : index
    %c0_410 = arith.constant 0 : index
    %872 = vector.load %arg9[%c0_409, %c0_410] : memref<2x32xf32, #tpu.memory_space<vmem>>, vector<2x32xf32>
    %873 = arith.truncf %872 : vector<2x32xf32> to vector<2x32xbf16>
    %c0_411 = arith.constant 0 : index
    %c0_412 = arith.constant 0 : index
    %874 = vector.load %arg2[%c0_411, %c0_412] : memref<32x128xbf16, #tpu.memory_space<vmem>>, vector<32x128xbf16>
    %cst_413 = arith.constant dense<0.000000e+00> : vector<2x128xf32>
    %875 = tpu.matmul %873, %874, %cst_413 {dimension_numbers = #tpu.dot_dimension_numbers<[1], [0], [0], [1], [0, 0, 1, 1], [], []>} : vector<2x32xbf16>, vector<32x128xbf16>, vector<2x128xf32> -> vector<2x128xf32>
    %876 = arith.addf %871, %875 : vector<2x128xf32>
    %c0_414 = arith.constant 0 : index
    %c0_415 = arith.constant 0 : index
    %877 = vector.load %arg9[%c0_414, %c0_415] : memref<2x32xf32, #tpu.memory_space<vmem>>, vector<2x32xf32>
    %c0_416 = arith.constant 0 : index
    %c0_417 = arith.constant 0 : index
    %878 = vector.load %arg10[%c0_416, %c0_417] : memref<2x32xf32, #tpu.memory_space<vmem>>, vector<2x32xf32>
    %879 = arith.index_cast %c7_i32_404 : i32 to index
    %c0_418 = arith.constant 0 : index
    %c0_419 = arith.constant 0 : index
    %880 = vector.load %arg5[%879, %c0_418, %c0_419] : memref<8x2x1xf32, #tpu.memory_space<vmem>>, vector<1x2x1xf32>
    %881 = vector.shape_cast %880 : vector<1x2x1xf32> to vector<2x1xf32>
    %882 = vector.extract_strided_slice %876 {offsets = [0, 0], sizes = [2, 32], strides = [1, 1]} : vector<2x128xf32> to vector<2x32xf32>
    %cst_420 = arith.constant 0.000000e+00 : f32
    %883 = vector.broadcast %cst_420 : f32 to vector<2x32xf32>
    %884 = arith.subf %883, %882 : vector<2x32xf32>
    %885 = math.exp %884 : vector<2x32xf32>
    %cst_421 = arith.constant 1.000000e+00 : f32
    %886 = vector.broadcast %cst_421 : f32 to vector<2x32xf32>
    %887 = arith.addf %886, %885 : vector<2x32xf32>
    %888 = tpu.reciprocal %887 {approx = true} : vector<2x32xf32> -> vector<2x32xf32>
    %889 = vector.extract_strided_slice %876 {offsets = [0, 32], sizes = [2, 32], strides = [1, 1]} : vector<2x128xf32> to vector<2x32xf32>
    %cst_422 = arith.constant 0.000000e+00 : f32
    %890 = vector.broadcast %cst_422 : f32 to vector<2x32xf32>
    %891 = arith.subf %890, %889 : vector<2x32xf32>
    %892 = math.exp %891 : vector<2x32xf32>
    %cst_423 = arith.constant 1.000000e+00 : f32
    %893 = vector.broadcast %cst_423 : f32 to vector<2x32xf32>
    %894 = arith.addf %893, %892 : vector<2x32xf32>
    %895 = tpu.reciprocal %894 {approx = true} : vector<2x32xf32> -> vector<2x32xf32>
    %896 = vector.extract_strided_slice %876 {offsets = [0, 64], sizes = [2, 32], strides = [1, 1]} : vector<2x128xf32> to vector<2x32xf32>
    %897 = math.tanh %896 : vector<2x32xf32>
    %898 = vector.extract_strided_slice %876 {offsets = [0, 96], sizes = [2, 32], strides = [1, 1]} : vector<2x128xf32> to vector<2x32xf32>
    %cst_424 = arith.constant 0.000000e+00 : f32
    %899 = vector.broadcast %cst_424 : f32 to vector<2x32xf32>
    %900 = arith.subf %899, %898 : vector<2x32xf32>
    %901 = math.exp %900 : vector<2x32xf32>
    %cst_425 = arith.constant 1.000000e+00 : f32
    %902 = vector.broadcast %cst_425 : f32 to vector<2x32xf32>
    %903 = arith.addf %902, %901 : vector<2x32xf32>
    %904 = tpu.reciprocal %903 {approx = true} : vector<2x32xf32> -> vector<2x32xf32>
    %905 = arith.mulf %895, %878 : vector<2x32xf32>
    %906 = arith.mulf %888, %897 : vector<2x32xf32>
    %907 = arith.addf %905, %906 : vector<2x32xf32>
    %908 = math.tanh %907 : vector<2x32xf32>
    %909 = arith.mulf %904, %908 : vector<2x32xf32>
    %cst_426 = arith.constant 5.000000e-01 : f32
    %910 = vector.broadcast %cst_426 : f32 to vector<2x1xf32>
    %911 = arith.cmpf ogt, %881, %910 : vector<2x1xf32>
    %912 = vector.shape_cast %911 : vector<2x1xi1> to vector<2x1xi1>
    %913 = vector.broadcast %912 : vector<2x1xi1> to vector<2x32xi1>
    %914 = arith.select %913, %909, %877 : vector<2x32xi1>, vector<2x32xf32>
    %915 = vector.shape_cast %911 : vector<2x1xi1> to vector<2x1xi1>
    %916 = vector.broadcast %915 : vector<2x1xi1> to vector<2x32xi1>
    %917 = arith.select %916, %907, %878 : vector<2x32xi1>, vector<2x32xf32>
    %cst_427 = arith.constant 0.000000e+00 : f32
    %918 = vector.shape_cast %911 : vector<2x1xi1> to vector<2x1xi1>
    %919 = vector.broadcast %918 : vector<2x1xi1> to vector<2x32xi1>
    %920 = vector.broadcast %cst_427 : f32 to vector<2x32xf32>
    %921 = arith.select %919, %909, %920 : vector<2x32xi1>, vector<2x32xf32>
    %c0_428 = arith.constant 0 : index
    %c0_429 = arith.constant 0 : index
    %922 = vector.load %arg9[%c0_428, %c0_429] : memref<2x32xf32, #tpu.memory_space<vmem>>, vector<2x32xf32>
    tpu.vector_store %arg9[%c0_428, %c0_429], %914 {strides = array<i32>} : memref<2x32xf32, #tpu.memory_space<vmem>>, vector<2x32xf32>,
    %c0_430 = arith.constant 0 : index
    %c0_431 = arith.constant 0 : index
    %923 = vector.load %arg10[%c0_430, %c0_431] : memref<2x32xf32, #tpu.memory_space<vmem>>, vector<2x32xf32>
    tpu.vector_store %arg10[%c0_430, %c0_431], %917 {strides = array<i32>} : memref<2x32xf32, #tpu.memory_space<vmem>>, vector<2x32xf32>,
    %924 = arith.index_cast %c7_i32_404 : i32 to index
    %c0_432 = arith.constant 0 : index
    %c0_433 = arith.constant 0 : index
    %925 = vector.load %arg6[%924, %c0_432, %c0_433] : memref<8x2x64xf32, #tpu.memory_space<vmem>>, vector<1x2x32xf32>
    %926 = vector.shape_cast %925 : vector<1x2x32xf32> to vector<2x32xf32>
    %927 = vector.shape_cast %921 : vector<2x32xf32> to vector<1x2x32xf32>
    tpu.vector_store %arg6[%924, %c0_432, %c0_433], %927 {strides = array<i32>} : memref<8x2x64xf32, #tpu.memory_space<vmem>>, vector<1x2x32xf32>,
    %928 = arith.index_cast %869 : i32 to index
    %c0_434 = arith.constant 0 : index
    %929 = vector.load %arg8[%928, %c0_434] : memref<16x128xf32, #tpu.memory_space<vmem>>, vector<2x128xf32>
    %c0_435 = arith.constant 0 : index
    %c0_436 = arith.constant 0 : index
    %930 = vector.load %arg11[%c0_435, %c0_436] : memref<2x32xf32, #tpu.memory_space<vmem>>, vector<2x32xf32>
    %931 = arith.truncf %930 : vector<2x32xf32> to vector<2x32xbf16>
    %c0_437 = arith.constant 0 : index
    %c0_438 = arith.constant 0 : index
    %932 = vector.load %arg3[%c0_437, %c0_438] : memref<32x128xbf16, #tpu.memory_space<vmem>>, vector<32x128xbf16>
    %cst_439 = arith.constant dense<0.000000e+00> : vector<2x128xf32>
    %933 = tpu.matmul %931, %932, %cst_439 {dimension_numbers = #tpu.dot_dimension_numbers<[1], [0], [0], [1], [0, 0, 1, 1], [], []>} : vector<2x32xbf16>, vector<32x128xbf16>, vector<2x128xf32> -> vector<2x128xf32>
    %934 = arith.addf %929, %933 : vector<2x128xf32>
    %c0_440 = arith.constant 0 : index
    %c0_441 = arith.constant 0 : index
    %935 = vector.load %arg11[%c0_440, %c0_441] : memref<2x32xf32, #tpu.memory_space<vmem>>, vector<2x32xf32>
    %c0_442 = arith.constant 0 : index
    %c0_443 = arith.constant 0 : index
    %936 = vector.load %arg12[%c0_442, %c0_443] : memref<2x32xf32, #tpu.memory_space<vmem>>, vector<2x32xf32>
    %937 = arith.index_cast %865 : i32 to index
    %c0_444 = arith.constant 0 : index
    %c0_445 = arith.constant 0 : index
    %938 = vector.load %arg5[%937, %c0_444, %c0_445] : memref<8x2x1xf32, #tpu.memory_space<vmem>>, vector<1x2x1xf32>
    %939 = vector.shape_cast %938 : vector<1x2x1xf32> to vector<2x1xf32>
    %940 = vector.extract_strided_slice %934 {offsets = [0, 0], sizes = [2, 32], strides = [1, 1]} : vector<2x128xf32> to vector<2x32xf32>
    %cst_446 = arith.constant 0.000000e+00 : f32
    %941 = vector.broadcast %cst_446 : f32 to vector<2x32xf32>
    %942 = arith.subf %941, %940 : vector<2x32xf32>
    %943 = math.exp %942 : vector<2x32xf32>
    %cst_447 = arith.constant 1.000000e+00 : f32
    %944 = vector.broadcast %cst_447 : f32 to vector<2x32xf32>
    %945 = arith.addf %944, %943 : vector<2x32xf32>
    %946 = tpu.reciprocal %945 {approx = true} : vector<2x32xf32> -> vector<2x32xf32>
    %947 = vector.extract_strided_slice %934 {offsets = [0, 32], sizes = [2, 32], strides = [1, 1]} : vector<2x128xf32> to vector<2x32xf32>
    %cst_448 = arith.constant 0.000000e+00 : f32
    %948 = vector.broadcast %cst_448 : f32 to vector<2x32xf32>
    %949 = arith.subf %948, %947 : vector<2x32xf32>
    %950 = math.exp %949 : vector<2x32xf32>
    %cst_449 = arith.constant 1.000000e+00 : f32
    %951 = vector.broadcast %cst_449 : f32 to vector<2x32xf32>
    %952 = arith.addf %951, %950 : vector<2x32xf32>
    %953 = tpu.reciprocal %952 {approx = true} : vector<2x32xf32> -> vector<2x32xf32>
    %954 = vector.extract_strided_slice %934 {offsets = [0, 64], sizes = [2, 32], strides = [1, 1]} : vector<2x128xf32> to vector<2x32xf32>
    %955 = math.tanh %954 : vector<2x32xf32>
    %956 = vector.extract_strided_slice %934 {offsets = [0, 96], sizes = [2, 32], strides = [1, 1]} : vector<2x128xf32> to vector<2x32xf32>
    %cst_450 = arith.constant 0.000000e+00 : f32
    %957 = vector.broadcast %cst_450 : f32 to vector<2x32xf32>
    %958 = arith.subf %957, %956 : vector<2x32xf32>
    %959 = math.exp %958 : vector<2x32xf32>
    %cst_451 = arith.constant 1.000000e+00 : f32
    %960 = vector.broadcast %cst_451 : f32 to vector<2x32xf32>
    %961 = arith.addf %960, %959 : vector<2x32xf32>
    %962 = tpu.reciprocal %961 {approx = true} : vector<2x32xf32> -> vector<2x32xf32>
    %963 = arith.mulf %953, %936 : vector<2x32xf32>
    %964 = arith.mulf %946, %955 : vector<2x32xf32>
    %965 = arith.addf %963, %964 : vector<2x32xf32>
    %966 = math.tanh %965 : vector<2x32xf32>
    %967 = arith.mulf %962, %966 : vector<2x32xf32>
    %cst_452 = arith.constant 5.000000e-01 : f32
    %968 = vector.broadcast %cst_452 : f32 to vector<2x1xf32>
    %969 = arith.cmpf ogt, %939, %968 : vector<2x1xf32>
    %970 = vector.shape_cast %969 : vector<2x1xi1> to vector<2x1xi1>
    %971 = vector.broadcast %970 : vector<2x1xi1> to vector<2x32xi1>
    %972 = arith.select %971, %967, %935 : vector<2x32xi1>, vector<2x32xf32>
    %973 = vector.shape_cast %969 : vector<2x1xi1> to vector<2x1xi1>
    %974 = vector.broadcast %973 : vector<2x1xi1> to vector<2x32xi1>
    %975 = arith.select %974, %965, %936 : vector<2x32xi1>, vector<2x32xf32>
    %cst_453 = arith.constant 0.000000e+00 : f32
    %976 = vector.shape_cast %969 : vector<2x1xi1> to vector<2x1xi1>
    %977 = vector.broadcast %976 : vector<2x1xi1> to vector<2x32xi1>
    %978 = vector.broadcast %cst_453 : f32 to vector<2x32xf32>
    %979 = arith.select %977, %967, %978 : vector<2x32xi1>, vector<2x32xf32>
    %c0_454 = arith.constant 0 : index
    %c0_455 = arith.constant 0 : index
    %980 = vector.load %arg11[%c0_454, %c0_455] : memref<2x32xf32, #tpu.memory_space<vmem>>, vector<2x32xf32>
    tpu.vector_store %arg11[%c0_454, %c0_455], %972 {strides = array<i32>} : memref<2x32xf32, #tpu.memory_space<vmem>>, vector<2x32xf32>,
    %c0_456 = arith.constant 0 : index
    %c0_457 = arith.constant 0 : index
    %981 = vector.load %arg12[%c0_456, %c0_457] : memref<2x32xf32, #tpu.memory_space<vmem>>, vector<2x32xf32>
    tpu.vector_store %arg12[%c0_456, %c0_457], %975 {strides = array<i32>} : memref<2x32xf32, #tpu.memory_space<vmem>>, vector<2x32xf32>,
    %982 = arith.index_cast %865 : i32 to index
    %c0_458 = arith.constant 0 : index
    %c32_459 = arith.constant 32 : index
    %983 = vector.load %arg6[%982, %c0_458, %c32_459] : memref<8x2x64xf32, #tpu.memory_space<vmem>>, vector<1x2x32xf32>
    %984 = vector.shape_cast %983 : vector<1x2x32xf32> to vector<2x32xf32>
    %985 = vector.shape_cast %979 : vector<2x32xf32> to vector<1x2x32xf32>
    tpu.vector_store %arg6[%982, %c0_458, %c32_459], %985 {strides = array<i32>} : memref<8x2x64xf32, #tpu.memory_space<vmem>>, vector<1x2x32xf32>,
    %c8_i32 = arith.constant 8 : i32
    return
  }
}

module attributes {stable_mosaic.version = 11 : i64} {
  func.func @_bilstm_layer_kernel(%arg0: memref<16x64xbf16, #tpu.memory_space<vmem>>, %arg1: memref<64x256xbf16, #tpu.memory_space<vmem>>, %arg2: memref<32x128xbf16, #tpu.memory_space<vmem>>, %arg3: memref<32x128xbf16, #tpu.memory_space<vmem>>, %arg4: memref<1x256xf32, #tpu.memory_space<vmem>>, %arg5: memref<8x2x1xf32, #tpu.memory_space<vmem>>, %arg6: memref<8x2x64xf32, #tpu.memory_space<vmem>>, %arg7: memref<16x128xf32, #tpu.memory_space<vmem>>, %arg8: memref<16x128xf32, #tpu.memory_space<vmem>>, %arg9: memref<2x32xf32, #tpu.memory_space<vmem>>, %arg10: memref<2x32xf32, #tpu.memory_space<vmem>>, %arg11: memref<2x32xf32, #tpu.memory_space<vmem>>, %arg12: memref<2x32xf32, #tpu.memory_space<vmem>>) attributes {dimension_semantics = [], scalar_prefetch = 0 : i64, scratch_operands = 6 : i64, tpu.core_type = #tpu.core_type<tc>} {
    %c0 = arith.constant 0 : index
    %c0_0 = arith.constant 0 : index
    %0 = vector.load %arg0[%c0, %c0_0] : memref<16x64xbf16, #tpu.memory_space<vmem>>, vector<16x64xbf16>
    %c0_1 = arith.constant 0 : index
    %c0_2 = arith.constant 0 : index
    %1 = vector.load %arg1[%c0_1, %c0_2] : memref<64x256xbf16, #tpu.memory_space<vmem>>, vector<64x256xbf16>
    %cst = arith.constant dense<0.000000e+00> : vector<16x256xf32>
    %2 = tpu.matmul %0, %1, %cst {dimension_numbers = #tpu.dot_dimension_numbers<[1], [0], [0], [1], [0, 0, 1, 1], [], []>} : vector<16x64xbf16>, vector<64x256xbf16>, vector<16x256xf32> -> vector<16x256xf32>
    %c0_3 = arith.constant 0 : index
    %c0_4 = arith.constant 0 : index
    %3 = vector.load %arg4[%c0_3, %c0_4] : memref<1x256xf32, #tpu.memory_space<vmem>>, vector<1x256xf32>
    %4 = vector.broadcast %3 : vector<1x256xf32> to vector<16x256xf32>
    %5 = arith.addf %2, %4 : vector<16x256xf32>
    %6 = vector.extract_strided_slice %5 {offsets = [0, 0], sizes = [16, 128], strides = [1, 1]} : vector<16x256xf32> to vector<16x128xf32>
    %c0_5 = arith.constant 0 : index
    %c0_6 = arith.constant 0 : index
    %7 = vector.load %arg7[%c0_5, %c0_6] : memref<16x128xf32, #tpu.memory_space<vmem>>, vector<16x128xf32>
    tpu.vector_store %arg7[%c0_5, %c0_6], %6 {strides = array<i32>} : memref<16x128xf32, #tpu.memory_space<vmem>>, vector<16x128xf32>,
    %8 = vector.extract_strided_slice %5 {offsets = [0, 128], sizes = [16, 128], strides = [1, 1]} : vector<16x256xf32> to vector<16x128xf32>
    %c0_7 = arith.constant 0 : index
    %c0_8 = arith.constant 0 : index
    %9 = vector.load %arg8[%c0_7, %c0_8] : memref<16x128xf32, #tpu.memory_space<vmem>>, vector<16x128xf32>
    tpu.vector_store %arg8[%c0_7, %c0_8], %8 {strides = array<i32>} : memref<16x128xf32, #tpu.memory_space<vmem>>, vector<16x128xf32>,
    %cst_9 = arith.constant 0.000000e+00 : f32
    %10 = vector.broadcast %cst_9 : f32 to vector<2x32xf32>
    %c0_10 = arith.constant 0 : index
    %c0_11 = arith.constant 0 : index
    %11 = vector.load %arg9[%c0_10, %c0_11] : memref<2x32xf32, #tpu.memory_space<vmem>>, vector<2x32xf32>
    tpu.vector_store %arg9[%c0_10, %c0_11], %10 {strides = array<i32>} : memref<2x32xf32, #tpu.memory_space<vmem>>, vector<2x32xf32>,
    %cst_12 = arith.constant 0.000000e+00 : f32
    %12 = vector.broadcast %cst_12 : f32 to vector<2x32xf32>
    %c0_13 = arith.constant 0 : index
    %c0_14 = arith.constant 0 : index
    %13 = vector.load %arg10[%c0_13, %c0_14] : memref<2x32xf32, #tpu.memory_space<vmem>>, vector<2x32xf32>
    tpu.vector_store %arg10[%c0_13, %c0_14], %12 {strides = array<i32>} : memref<2x32xf32, #tpu.memory_space<vmem>>, vector<2x32xf32>,
    %cst_15 = arith.constant 0.000000e+00 : f32
    %14 = vector.broadcast %cst_15 : f32 to vector<2x32xf32>
    %c0_16 = arith.constant 0 : index
    %c0_17 = arith.constant 0 : index
    %15 = vector.load %arg11[%c0_16, %c0_17] : memref<2x32xf32, #tpu.memory_space<vmem>>, vector<2x32xf32>
    tpu.vector_store %arg11[%c0_16, %c0_17], %14 {strides = array<i32>} : memref<2x32xf32, #tpu.memory_space<vmem>>, vector<2x32xf32>,
    %cst_18 = arith.constant 0.000000e+00 : f32
    %16 = vector.broadcast %cst_18 : f32 to vector<2x32xf32>
    %c0_19 = arith.constant 0 : index
    %c0_20 = arith.constant 0 : index
    %17 = vector.load %arg12[%c0_19, %c0_20] : memref<2x32xf32, #tpu.memory_space<vmem>>, vector<2x32xf32>
    tpu.vector_store %arg12[%c0_19, %c0_20], %16 {strides = array<i32>} : memref<2x32xf32, #tpu.memory_space<vmem>>, vector<2x32xf32>,
    %c0_i32 = arith.constant 0 : i32
    %c7_i32 = arith.constant 7 : i32
    %18 = arith.subi %c7_i32, %c0_i32 : i32
    %c2_i32 = arith.constant 2 : i32
    %19 = arith.muli %c0_i32, %c2_i32 : i32
    %20 = tpu.assume_multiple %19, 2 : i32
    %c2_i32_21 = arith.constant 2 : i32
    %21 = arith.muli %18, %c2_i32_21 : i32
    %22 = tpu.assume_multiple %21, 2 : i32
    %23 = arith.index_cast %20 : i32 to index
    %c0_22 = arith.constant 0 : index
    %24 = vector.load %arg7[%23, %c0_22] : memref<16x128xf32, #tpu.memory_space<vmem>>, vector<2x128xf32>
    %c0_23 = arith.constant 0 : index
    %c0_24 = arith.constant 0 : index
    %25 = vector.load %arg9[%c0_23, %c0_24] : memref<2x32xf32, #tpu.memory_space<vmem>>, vector<2x32xf32>
    %26 = arith.truncf %25 : vector<2x32xf32> to vector<2x32xbf16>
    %c0_25 = arith.constant 0 : index
    %c0_26 = arith.constant 0 : index
    %27 = vector.load %arg2[%c0_25, %c0_26] : memref<32x128xbf16, #tpu.memory_space<vmem>>, vector<32x128xbf16>
    %cst_27 = arith.constant dense<0.000000e+00> : vector<2x128xf32>
    %28 = tpu.matmul %26, %27, %cst_27 {dimension_numbers = #tpu.dot_dimension_numbers<[1], [0], [0], [1], [0, 0, 1, 1], [], []>} : vector<2x32xbf16>, vector<32x128xbf16>, vector<2x128xf32> -> vector<2x128xf32>
    %29 = arith.addf %24, %28 : vector<2x128xf32>
    %c0_28 = arith.constant 0 : index
    %c0_29 = arith.constant 0 : index
    %30 = vector.load %arg9[%c0_28, %c0_29] : memref<2x32xf32, #tpu.memory_space<vmem>>, vector<2x32xf32>
    %c0_30 = arith.constant 0 : index
    %c0_31 = arith.constant 0 : index
    %31 = vector.load %arg10[%c0_30, %c0_31] : memref<2x32xf32, #tpu.memory_space<vmem>>, vector<2x32xf32>
    %32 = arith.index_cast %c0_i32 : i32 to index
    %c0_32 = arith.constant 0 : index
    %c0_33 = arith.constant 0 : index
    %33 = vector.load %arg5[%32, %c0_32, %c0_33] : memref<8x2x1xf32, #tpu.memory_space<vmem>>, vector<1x2x1xf32>
    %34 = vector.shape_cast %33 : vector<1x2x1xf32> to vector<2x1xf32>
    %35 = vector.extract_strided_slice %29 {offsets = [0, 0], sizes = [2, 32], strides = [1, 1]} : vector<2x128xf32> to vector<2x32xf32>
    %cst_34 = arith.constant 0.000000e+00 : f32
    %36 = vector.broadcast %cst_34 : f32 to vector<2x32xf32>
    %37 = arith.subf %36, %35 : vector<2x32xf32>
    %38 = math.exp %37 : vector<2x32xf32>
    %cst_35 = arith.constant 1.000000e+00 : f32
    %39 = vector.broadcast %cst_35 : f32 to vector<2x32xf32>
    %40 = arith.addf %39, %38 : vector<2x32xf32>
    %41 = tpu.reciprocal %40 {approx = true} : vector<2x32xf32> -> vector<2x32xf32>
    %42 = vector.extract_strided_slice %29 {offsets = [0, 32], sizes = [2, 32], strides = [1, 1]} : vector<2x128xf32> to vector<2x32xf32>
    %cst_36 = arith.constant 0.000000e+00 : f32
    %43 = vector.broadcast %cst_36 : f32 to vector<2x32xf32>
    %44 = arith.subf %43, %42 : vector<2x32xf32>
    %45 = math.exp %44 : vector<2x32xf32>
    %cst_37 = arith.constant 1.000000e+00 : f32
    %46 = vector.broadcast %cst_37 : f32 to vector<2x32xf32>
    %47 = arith.addf %46, %45 : vector<2x32xf32>
    %48 = tpu.reciprocal %47 {approx = true} : vector<2x32xf32> -> vector<2x32xf32>
    %49 = vector.extract_strided_slice %29 {offsets = [0, 64], sizes = [2, 32], strides = [1, 1]} : vector<2x128xf32> to vector<2x32xf32>
    %50 = math.tanh %49 : vector<2x32xf32>
    %51 = vector.extract_strided_slice %29 {offsets = [0, 96], sizes = [2, 32], strides = [1, 1]} : vector<2x128xf32> to vector<2x32xf32>
    %cst_38 = arith.constant 0.000000e+00 : f32
    %52 = vector.broadcast %cst_38 : f32 to vector<2x32xf32>
    %53 = arith.subf %52, %51 : vector<2x32xf32>
    %54 = math.exp %53 : vector<2x32xf32>
    %cst_39 = arith.constant 1.000000e+00 : f32
    %55 = vector.broadcast %cst_39 : f32 to vector<2x32xf32>
    %56 = arith.addf %55, %54 : vector<2x32xf32>
    %57 = tpu.reciprocal %56 {approx = true} : vector<2x32xf32> -> vector<2x32xf32>
    %58 = arith.mulf %48, %31 : vector<2x32xf32>
    %59 = arith.mulf %41, %50 : vector<2x32xf32>
    %60 = arith.addf %58, %59 : vector<2x32xf32>
    %61 = math.tanh %60 : vector<2x32xf32>
    %62 = arith.mulf %57, %61 : vector<2x32xf32>
    %cst_40 = arith.constant 5.000000e-01 : f32
    %63 = vector.broadcast %cst_40 : f32 to vector<2x1xf32>
    %64 = arith.cmpf ogt, %34, %63 : vector<2x1xf32>
    %65 = vector.shape_cast %64 : vector<2x1xi1> to vector<2x1xi1>
    %66 = vector.broadcast %65 : vector<2x1xi1> to vector<2x32xi1>
    %67 = arith.select %66, %62, %30 : vector<2x32xi1>, vector<2x32xf32>
    %68 = vector.shape_cast %64 : vector<2x1xi1> to vector<2x1xi1>
    %69 = vector.broadcast %68 : vector<2x1xi1> to vector<2x32xi1>
    %70 = arith.select %69, %60, %31 : vector<2x32xi1>, vector<2x32xf32>
    %cst_41 = arith.constant 0.000000e+00 : f32
    %71 = vector.shape_cast %64 : vector<2x1xi1> to vector<2x1xi1>
    %72 = vector.broadcast %71 : vector<2x1xi1> to vector<2x32xi1>
    %73 = vector.broadcast %cst_41 : f32 to vector<2x32xf32>
    %74 = arith.select %72, %62, %73 : vector<2x32xi1>, vector<2x32xf32>
    %c0_42 = arith.constant 0 : index
    %c0_43 = arith.constant 0 : index
    %75 = vector.load %arg9[%c0_42, %c0_43] : memref<2x32xf32, #tpu.memory_space<vmem>>, vector<2x32xf32>
    tpu.vector_store %arg9[%c0_42, %c0_43], %67 {strides = array<i32>} : memref<2x32xf32, #tpu.memory_space<vmem>>, vector<2x32xf32>,
    %c0_44 = arith.constant 0 : index
    %c0_45 = arith.constant 0 : index
    %76 = vector.load %arg10[%c0_44, %c0_45] : memref<2x32xf32, #tpu.memory_space<vmem>>, vector<2x32xf32>
    tpu.vector_store %arg10[%c0_44, %c0_45], %70 {strides = array<i32>} : memref<2x32xf32, #tpu.memory_space<vmem>>, vector<2x32xf32>,
    %77 = arith.index_cast %c0_i32 : i32 to index
    %c0_46 = arith.constant 0 : index
    %c0_47 = arith.constant 0 : index
    %78 = vector.load %arg6[%77, %c0_46, %c0_47] : memref<8x2x64xf32, #tpu.memory_space<vmem>>, vector<1x2x32xf32>
    %79 = vector.shape_cast %78 : vector<1x2x32xf32> to vector<2x32xf32>
    %80 = vector.shape_cast %74 : vector<2x32xf32> to vector<1x2x32xf32>
    tpu.vector_store %arg6[%77, %c0_46, %c0_47], %80 {strides = array<i32>} : memref<8x2x64xf32, #tpu.memory_space<vmem>>, vector<1x2x32xf32>,
    %81 = arith.index_cast %22 : i32 to index
    %c0_48 = arith.constant 0 : index
    %82 = vector.load %arg8[%81, %c0_48] : memref<16x128xf32, #tpu.memory_space<vmem>>, vector<2x128xf32>
    %c0_49 = arith.constant 0 : index
    %c0_50 = arith.constant 0 : index
    %83 = vector.load %arg11[%c0_49, %c0_50] : memref<2x32xf32, #tpu.memory_space<vmem>>, vector<2x32xf32>
    %84 = arith.truncf %83 : vector<2x32xf32> to vector<2x32xbf16>
    %c0_51 = arith.constant 0 : index
    %c0_52 = arith.constant 0 : index
    %85 = vector.load %arg3[%c0_51, %c0_52] : memref<32x128xbf16, #tpu.memory_space<vmem>>, vector<32x128xbf16>
    %cst_53 = arith.constant dense<0.000000e+00> : vector<2x128xf32>
    %86 = tpu.matmul %84, %85, %cst_53 {dimension_numbers = #tpu.dot_dimension_numbers<[1], [0], [0], [1], [0, 0, 1, 1], [], []>} : vector<2x32xbf16>, vector<32x128xbf16>, vector<2x128xf32> -> vector<2x128xf32>
    %87 = arith.addf %82, %86 : vector<2x128xf32>
    %c0_54 = arith.constant 0 : index
    %c0_55 = arith.constant 0 : index
    %88 = vector.load %arg11[%c0_54, %c0_55] : memref<2x32xf32, #tpu.memory_space<vmem>>, vector<2x32xf32>
    %c0_56 = arith.constant 0 : index
    %c0_57 = arith.constant 0 : index
    %89 = vector.load %arg12[%c0_56, %c0_57] : memref<2x32xf32, #tpu.memory_space<vmem>>, vector<2x32xf32>
    %90 = arith.index_cast %18 : i32 to index
    %c0_58 = arith.constant 0 : index
    %c0_59 = arith.constant 0 : index
    %91 = vector.load %arg5[%90, %c0_58, %c0_59] : memref<8x2x1xf32, #tpu.memory_space<vmem>>, vector<1x2x1xf32>
    %92 = vector.shape_cast %91 : vector<1x2x1xf32> to vector<2x1xf32>
    %93 = vector.extract_strided_slice %87 {offsets = [0, 0], sizes = [2, 32], strides = [1, 1]} : vector<2x128xf32> to vector<2x32xf32>
    %cst_60 = arith.constant 0.000000e+00 : f32
    %94 = vector.broadcast %cst_60 : f32 to vector<2x32xf32>
    %95 = arith.subf %94, %93 : vector<2x32xf32>
    %96 = math.exp %95 : vector<2x32xf32>
    %cst_61 = arith.constant 1.000000e+00 : f32
    %97 = vector.broadcast %cst_61 : f32 to vector<2x32xf32>
    %98 = arith.addf %97, %96 : vector<2x32xf32>
    %99 = tpu.reciprocal %98 {approx = true} : vector<2x32xf32> -> vector<2x32xf32>
    %100 = vector.extract_strided_slice %87 {offsets = [0, 32], sizes = [2, 32], strides = [1, 1]} : vector<2x128xf32> to vector<2x32xf32>
    %cst_62 = arith.constant 0.000000e+00 : f32
    %101 = vector.broadcast %cst_62 : f32 to vector<2x32xf32>
    %102 = arith.subf %101, %100 : vector<2x32xf32>
    %103 = math.exp %102 : vector<2x32xf32>
    %cst_63 = arith.constant 1.000000e+00 : f32
    %104 = vector.broadcast %cst_63 : f32 to vector<2x32xf32>
    %105 = arith.addf %104, %103 : vector<2x32xf32>
    %106 = tpu.reciprocal %105 {approx = true} : vector<2x32xf32> -> vector<2x32xf32>
    %107 = vector.extract_strided_slice %87 {offsets = [0, 64], sizes = [2, 32], strides = [1, 1]} : vector<2x128xf32> to vector<2x32xf32>
    %108 = math.tanh %107 : vector<2x32xf32>
    %109 = vector.extract_strided_slice %87 {offsets = [0, 96], sizes = [2, 32], strides = [1, 1]} : vector<2x128xf32> to vector<2x32xf32>
    %cst_64 = arith.constant 0.000000e+00 : f32
    %110 = vector.broadcast %cst_64 : f32 to vector<2x32xf32>
    %111 = arith.subf %110, %109 : vector<2x32xf32>
    %112 = math.exp %111 : vector<2x32xf32>
    %cst_65 = arith.constant 1.000000e+00 : f32
    %113 = vector.broadcast %cst_65 : f32 to vector<2x32xf32>
    %114 = arith.addf %113, %112 : vector<2x32xf32>
    %115 = tpu.reciprocal %114 {approx = true} : vector<2x32xf32> -> vector<2x32xf32>
    %116 = arith.mulf %106, %89 : vector<2x32xf32>
    %117 = arith.mulf %99, %108 : vector<2x32xf32>
    %118 = arith.addf %116, %117 : vector<2x32xf32>
    %119 = math.tanh %118 : vector<2x32xf32>
    %120 = arith.mulf %115, %119 : vector<2x32xf32>
    %cst_66 = arith.constant 5.000000e-01 : f32
    %121 = vector.broadcast %cst_66 : f32 to vector<2x1xf32>
    %122 = arith.cmpf ogt, %92, %121 : vector<2x1xf32>
    %123 = vector.shape_cast %122 : vector<2x1xi1> to vector<2x1xi1>
    %124 = vector.broadcast %123 : vector<2x1xi1> to vector<2x32xi1>
    %125 = arith.select %124, %120, %88 : vector<2x32xi1>, vector<2x32xf32>
    %126 = vector.shape_cast %122 : vector<2x1xi1> to vector<2x1xi1>
    %127 = vector.broadcast %126 : vector<2x1xi1> to vector<2x32xi1>
    %128 = arith.select %127, %118, %89 : vector<2x32xi1>, vector<2x32xf32>
    %cst_67 = arith.constant 0.000000e+00 : f32
    %129 = vector.shape_cast %122 : vector<2x1xi1> to vector<2x1xi1>
    %130 = vector.broadcast %129 : vector<2x1xi1> to vector<2x32xi1>
    %131 = vector.broadcast %cst_67 : f32 to vector<2x32xf32>
    %132 = arith.select %130, %120, %131 : vector<2x32xi1>, vector<2x32xf32>
    %c0_68 = arith.constant 0 : index
    %c0_69 = arith.constant 0 : index
    %133 = vector.load %arg11[%c0_68, %c0_69] : memref<2x32xf32, #tpu.memory_space<vmem>>, vector<2x32xf32>
    tpu.vector_store %arg11[%c0_68, %c0_69], %125 {strides = array<i32>} : memref<2x32xf32, #tpu.memory_space<vmem>>, vector<2x32xf32>,
    %c0_70 = arith.constant 0 : index
    %c0_71 = arith.constant 0 : index
    %134 = vector.load %arg12[%c0_70, %c0_71] : memref<2x32xf32, #tpu.memory_space<vmem>>, vector<2x32xf32>
    tpu.vector_store %arg12[%c0_70, %c0_71], %128 {strides = array<i32>} : memref<2x32xf32, #tpu.memory_space<vmem>>, vector<2x32xf32>,
    %135 = arith.index_cast %18 : i32 to index
    %c0_72 = arith.constant 0 : index
    %c32 = arith.constant 32 : index
    %136 = vector.load %arg6[%135, %c0_72, %c32] : memref<8x2x64xf32, #tpu.memory_space<vmem>>, vector<1x2x32xf32>
    %137 = vector.shape_cast %136 : vector<1x2x32xf32> to vector<2x32xf32>
    %138 = vector.shape_cast %132 : vector<2x32xf32> to vector<1x2x32xf32>
    tpu.vector_store %arg6[%135, %c0_72, %c32], %138 {strides = array<i32>} : memref<8x2x64xf32, #tpu.memory_space<vmem>>, vector<1x2x32xf32>,
    %c1_i32 = arith.constant 1 : i32
    %c7_i32_73 = arith.constant 7 : i32
    %139 = arith.subi %c7_i32_73, %c1_i32 : i32
    %c2_i32_74 = arith.constant 2 : i32
    %140 = arith.muli %c1_i32, %c2_i32_74 : i32
    %141 = tpu.assume_multiple %140, 2 : i32
    %c2_i32_75 = arith.constant 2 : i32
    %142 = arith.muli %139, %c2_i32_75 : i32
    %143 = tpu.assume_multiple %142, 2 : i32
    %144 = arith.index_cast %141 : i32 to index
    %c0_76 = arith.constant 0 : index
    %145 = vector.load %arg7[%144, %c0_76] : memref<16x128xf32, #tpu.memory_space<vmem>>, vector<2x128xf32>
    %c0_77 = arith.constant 0 : index
    %c0_78 = arith.constant 0 : index
    %146 = vector.load %arg9[%c0_77, %c0_78] : memref<2x32xf32, #tpu.memory_space<vmem>>, vector<2x32xf32>
    %147 = arith.truncf %146 : vector<2x32xf32> to vector<2x32xbf16>
    %c0_79 = arith.constant 0 : index
    %c0_80 = arith.constant 0 : index
    %148 = vector.load %arg2[%c0_79, %c0_80] : memref<32x128xbf16, #tpu.memory_space<vmem>>, vector<32x128xbf16>
    %cst_81 = arith.constant dense<0.000000e+00> : vector<2x128xf32>
    %149 = tpu.matmul %147, %148, %cst_81 {dimension_numbers = #tpu.dot_dimension_numbers<[1], [0], [0], [1], [0, 0, 1, 1], [], []>} : vector<2x32xbf16>, vector<32x128xbf16>, vector<2x128xf32> -> vector<2x128xf32>
    %150 = arith.addf %145, %149 : vector<2x128xf32>
    %c0_82 = arith.constant 0 : index
    %c0_83 = arith.constant 0 : index
    %151 = vector.load %arg9[%c0_82, %c0_83] : memref<2x32xf32, #tpu.memory_space<vmem>>, vector<2x32xf32>
    %c0_84 = arith.constant 0 : index
    %c0_85 = arith.constant 0 : index
    %152 = vector.load %arg10[%c0_84, %c0_85] : memref<2x32xf32, #tpu.memory_space<vmem>>, vector<2x32xf32>
    %153 = arith.index_cast %c1_i32 : i32 to index
    %c0_86 = arith.constant 0 : index
    %c0_87 = arith.constant 0 : index
    %154 = vector.load %arg5[%153, %c0_86, %c0_87] : memref<8x2x1xf32, #tpu.memory_space<vmem>>, vector<1x2x1xf32>
    %155 = vector.shape_cast %154 : vector<1x2x1xf32> to vector<2x1xf32>
    %156 = vector.extract_strided_slice %150 {offsets = [0, 0], sizes = [2, 32], strides = [1, 1]} : vector<2x128xf32> to vector<2x32xf32>
    %cst_88 = arith.constant 0.000000e+00 : f32
    %157 = vector.broadcast %cst_88 : f32 to vector<2x32xf32>
    %158 = arith.subf %157, %156 : vector<2x32xf32>
    %159 = math.exp %158 : vector<2x32xf32>
    %cst_89 = arith.constant 1.000000e+00 : f32
    %160 = vector.broadcast %cst_89 : f32 to vector<2x32xf32>
    %161 = arith.addf %160, %159 : vector<2x32xf32>
    %162 = tpu.reciprocal %161 {approx = true} : vector<2x32xf32> -> vector<2x32xf32>
    %163 = vector.extract_strided_slice %150 {offsets = [0, 32], sizes = [2, 32], strides = [1, 1]} : vector<2x128xf32> to vector<2x32xf32>
    %cst_90 = arith.constant 0.000000e+00 : f32
    %164 = vector.broadcast %cst_90 : f32 to vector<2x32xf32>
    %165 = arith.subf %164, %163 : vector<2x32xf32>
    %166 = math.exp %165 : vector<2x32xf32>
    %cst_91 = arith.constant 1.000000e+00 : f32
    %167 = vector.broadcast %cst_91 : f32 to vector<2x32xf32>
    %168 = arith.addf %167, %166 : vector<2x32xf32>
    %169 = tpu.reciprocal %168 {approx = true} : vector<2x32xf32> -> vector<2x32xf32>
    %170 = vector.extract_strided_slice %150 {offsets = [0, 64], sizes = [2, 32], strides = [1, 1]} : vector<2x128xf32> to vector<2x32xf32>
    %171 = math.tanh %170 : vector<2x32xf32>
    %172 = vector.extract_strided_slice %150 {offsets = [0, 96], sizes = [2, 32], strides = [1, 1]} : vector<2x128xf32> to vector<2x32xf32>
    %cst_92 = arith.constant 0.000000e+00 : f32
    %173 = vector.broadcast %cst_92 : f32 to vector<2x32xf32>
    %174 = arith.subf %173, %172 : vector<2x32xf32>
    %175 = math.exp %174 : vector<2x32xf32>
    %cst_93 = arith.constant 1.000000e+00 : f32
    %176 = vector.broadcast %cst_93 : f32 to vector<2x32xf32>
    %177 = arith.addf %176, %175 : vector<2x32xf32>
    %178 = tpu.reciprocal %177 {approx = true} : vector<2x32xf32> -> vector<2x32xf32>
    %179 = arith.mulf %169, %152 : vector<2x32xf32>
    %180 = arith.mulf %162, %171 : vector<2x32xf32>
    %181 = arith.addf %179, %180 : vector<2x32xf32>
    %182 = math.tanh %181 : vector<2x32xf32>
    %183 = arith.mulf %178, %182 : vector<2x32xf32>
    %cst_94 = arith.constant 5.000000e-01 : f32
    %184 = vector.broadcast %cst_94 : f32 to vector<2x1xf32>
    %185 = arith.cmpf ogt, %155, %184 : vector<2x1xf32>
    %186 = vector.shape_cast %185 : vector<2x1xi1> to vector<2x1xi1>
    %187 = vector.broadcast %186 : vector<2x1xi1> to vector<2x32xi1>
    %188 = arith.select %187, %183, %151 : vector<2x32xi1>, vector<2x32xf32>
    %189 = vector.shape_cast %185 : vector<2x1xi1> to vector<2x1xi1>
    %190 = vector.broadcast %189 : vector<2x1xi1> to vector<2x32xi1>
    %191 = arith.select %190, %181, %152 : vector<2x32xi1>, vector<2x32xf32>
    %cst_95 = arith.constant 0.000000e+00 : f32
    %192 = vector.shape_cast %185 : vector<2x1xi1> to vector<2x1xi1>
    %193 = vector.broadcast %192 : vector<2x1xi1> to vector<2x32xi1>
    %194 = vector.broadcast %cst_95 : f32 to vector<2x32xf32>
    %195 = arith.select %193, %183, %194 : vector<2x32xi1>, vector<2x32xf32>
    %c0_96 = arith.constant 0 : index
    %c0_97 = arith.constant 0 : index
    %196 = vector.load %arg9[%c0_96, %c0_97] : memref<2x32xf32, #tpu.memory_space<vmem>>, vector<2x32xf32>
    tpu.vector_store %arg9[%c0_96, %c0_97], %188 {strides = array<i32>} : memref<2x32xf32, #tpu.memory_space<vmem>>, vector<2x32xf32>,
    %c0_98 = arith.constant 0 : index
    %c0_99 = arith.constant 0 : index
    %197 = vector.load %arg10[%c0_98, %c0_99] : memref<2x32xf32, #tpu.memory_space<vmem>>, vector<2x32xf32>
    tpu.vector_store %arg10[%c0_98, %c0_99], %191 {strides = array<i32>} : memref<2x32xf32, #tpu.memory_space<vmem>>, vector<2x32xf32>,
    %198 = arith.index_cast %c1_i32 : i32 to index
    %c0_100 = arith.constant 0 : index
    %c0_101 = arith.constant 0 : index
    %199 = vector.load %arg6[%198, %c0_100, %c0_101] : memref<8x2x64xf32, #tpu.memory_space<vmem>>, vector<1x2x32xf32>
    %200 = vector.shape_cast %199 : vector<1x2x32xf32> to vector<2x32xf32>
    %201 = vector.shape_cast %195 : vector<2x32xf32> to vector<1x2x32xf32>
    tpu.vector_store %arg6[%198, %c0_100, %c0_101], %201 {strides = array<i32>} : memref<8x2x64xf32, #tpu.memory_space<vmem>>, vector<1x2x32xf32>,
    %202 = arith.index_cast %143 : i32 to index
    %c0_102 = arith.constant 0 : index
    %203 = vector.load %arg8[%202, %c0_102] : memref<16x128xf32, #tpu.memory_space<vmem>>, vector<2x128xf32>
    %c0_103 = arith.constant 0 : index
    %c0_104 = arith.constant 0 : index
    %204 = vector.load %arg11[%c0_103, %c0_104] : memref<2x32xf32, #tpu.memory_space<vmem>>, vector<2x32xf32>
    %205 = arith.truncf %204 : vector<2x32xf32> to vector<2x32xbf16>
    %c0_105 = arith.constant 0 : index
    %c0_106 = arith.constant 0 : index
    %206 = vector.load %arg3[%c0_105, %c0_106] : memref<32x128xbf16, #tpu.memory_space<vmem>>, vector<32x128xbf16>
    %cst_107 = arith.constant dense<0.000000e+00> : vector<2x128xf32>
    %207 = tpu.matmul %205, %206, %cst_107 {dimension_numbers = #tpu.dot_dimension_numbers<[1], [0], [0], [1], [0, 0, 1, 1], [], []>} : vector<2x32xbf16>, vector<32x128xbf16>, vector<2x128xf32> -> vector<2x128xf32>
    %208 = arith.addf %203, %207 : vector<2x128xf32>
    %c0_108 = arith.constant 0 : index
    %c0_109 = arith.constant 0 : index
    %209 = vector.load %arg11[%c0_108, %c0_109] : memref<2x32xf32, #tpu.memory_space<vmem>>, vector<2x32xf32>
    %c0_110 = arith.constant 0 : index
    %c0_111 = arith.constant 0 : index
    %210 = vector.load %arg12[%c0_110, %c0_111] : memref<2x32xf32, #tpu.memory_space<vmem>>, vector<2x32xf32>
    %211 = arith.index_cast %139 : i32 to index
    %c0_112 = arith.constant 0 : index
    %c0_113 = arith.constant 0 : index
    %212 = vector.load %arg5[%211, %c0_112, %c0_113] : memref<8x2x1xf32, #tpu.memory_space<vmem>>, vector<1x2x1xf32>
    %213 = vector.shape_cast %212 : vector<1x2x1xf32> to vector<2x1xf32>
    %214 = vector.extract_strided_slice %208 {offsets = [0, 0], sizes = [2, 32], strides = [1, 1]} : vector<2x128xf32> to vector<2x32xf32>
    %cst_114 = arith.constant 0.000000e+00 : f32
    %215 = vector.broadcast %cst_114 : f32 to vector<2x32xf32>
    %216 = arith.subf %215, %214 : vector<2x32xf32>
    %217 = math.exp %216 : vector<2x32xf32>
    %cst_115 = arith.constant 1.000000e+00 : f32
    %218 = vector.broadcast %cst_115 : f32 to vector<2x32xf32>
    %219 = arith.addf %218, %217 : vector<2x32xf32>
    %220 = tpu.reciprocal %219 {approx = true} : vector<2x32xf32> -> vector<2x32xf32>
    %221 = vector.extract_strided_slice %208 {offsets = [0, 32], sizes = [2, 32], strides = [1, 1]} : vector<2x128xf32> to vector<2x32xf32>
    %cst_116 = arith.constant 0.000000e+00 : f32
    %222 = vector.broadcast %cst_116 : f32 to vector<2x32xf32>
    %223 = arith.subf %222, %221 : vector<2x32xf32>
    %224 = math.exp %223 : vector<2x32xf32>
    %cst_117 = arith.constant 1.000000e+00 : f32
    %225 = vector.broadcast %cst_117 : f32 to vector<2x32xf32>
    %226 = arith.addf %225, %224 : vector<2x32xf32>
    %227 = tpu.reciprocal %226 {approx = true} : vector<2x32xf32> -> vector<2x32xf32>
    %228 = vector.extract_strided_slice %208 {offsets = [0, 64], sizes = [2, 32], strides = [1, 1]} : vector<2x128xf32> to vector<2x32xf32>
    %229 = math.tanh %228 : vector<2x32xf32>
    %230 = vector.extract_strided_slice %208 {offsets = [0, 96], sizes = [2, 32], strides = [1, 1]} : vector<2x128xf32> to vector<2x32xf32>
    %cst_118 = arith.constant 0.000000e+00 : f32
    %231 = vector.broadcast %cst_118 : f32 to vector<2x32xf32>
    %232 = arith.subf %231, %230 : vector<2x32xf32>
    %233 = math.exp %232 : vector<2x32xf32>
    %cst_119 = arith.constant 1.000000e+00 : f32
    %234 = vector.broadcast %cst_119 : f32 to vector<2x32xf32>
    %235 = arith.addf %234, %233 : vector<2x32xf32>
    %236 = tpu.reciprocal %235 {approx = true} : vector<2x32xf32> -> vector<2x32xf32>
    %237 = arith.mulf %227, %210 : vector<2x32xf32>
    %238 = arith.mulf %220, %229 : vector<2x32xf32>
    %239 = arith.addf %237, %238 : vector<2x32xf32>
    %240 = math.tanh %239 : vector<2x32xf32>
    %241 = arith.mulf %236, %240 : vector<2x32xf32>
    %cst_120 = arith.constant 5.000000e-01 : f32
    %242 = vector.broadcast %cst_120 : f32 to vector<2x1xf32>
    %243 = arith.cmpf ogt, %213, %242 : vector<2x1xf32>
    %244 = vector.shape_cast %243 : vector<2x1xi1> to vector<2x1xi1>
    %245 = vector.broadcast %244 : vector<2x1xi1> to vector<2x32xi1>
    %246 = arith.select %245, %241, %209 : vector<2x32xi1>, vector<2x32xf32>
    %247 = vector.shape_cast %243 : vector<2x1xi1> to vector<2x1xi1>
    %248 = vector.broadcast %247 : vector<2x1xi1> to vector<2x32xi1>
    %249 = arith.select %248, %239, %210 : vector<2x32xi1>, vector<2x32xf32>
    %cst_121 = arith.constant 0.000000e+00 : f32
    %250 = vector.shape_cast %243 : vector<2x1xi1> to vector<2x1xi1>
    %251 = vector.broadcast %250 : vector<2x1xi1> to vector<2x32xi1>
    %252 = vector.broadcast %cst_121 : f32 to vector<2x32xf32>
    %253 = arith.select %251, %241, %252 : vector<2x32xi1>, vector<2x32xf32>
    %c0_122 = arith.constant 0 : index
    %c0_123 = arith.constant 0 : index
    %254 = vector.load %arg11[%c0_122, %c0_123] : memref<2x32xf32, #tpu.memory_space<vmem>>, vector<2x32xf32>
    tpu.vector_store %arg11[%c0_122, %c0_123], %246 {strides = array<i32>} : memref<2x32xf32, #tpu.memory_space<vmem>>, vector<2x32xf32>,
    %c0_124 = arith.constant 0 : index
    %c0_125 = arith.constant 0 : index
    %255 = vector.load %arg12[%c0_124, %c0_125] : memref<2x32xf32, #tpu.memory_space<vmem>>, vector<2x32xf32>
    tpu.vector_store %arg12[%c0_124, %c0_125], %249 {strides = array<i32>} : memref<2x32xf32, #tpu.memory_space<vmem>>, vector<2x32xf32>,
    %256 = arith.index_cast %139 : i32 to index
    %c0_126 = arith.constant 0 : index
    %c32_127 = arith.constant 32 : index
    %257 = vector.load %arg6[%256, %c0_126, %c32_127] : memref<8x2x64xf32, #tpu.memory_space<vmem>>, vector<1x2x32xf32>
    %258 = vector.shape_cast %257 : vector<1x2x32xf32> to vector<2x32xf32>
    %259 = vector.shape_cast %253 : vector<2x32xf32> to vector<1x2x32xf32>
    tpu.vector_store %arg6[%256, %c0_126, %c32_127], %259 {strides = array<i32>} : memref<8x2x64xf32, #tpu.memory_space<vmem>>, vector<1x2x32xf32>,
    %c2_i32_128 = arith.constant 2 : i32
    %c7_i32_129 = arith.constant 7 : i32
    %260 = arith.subi %c7_i32_129, %c2_i32_128 : i32
    %c2_i32_130 = arith.constant 2 : i32
    %261 = arith.muli %c2_i32_128, %c2_i32_130 : i32
    %262 = tpu.assume_multiple %261, 2 : i32
    %c2_i32_131 = arith.constant 2 : i32
    %263 = arith.muli %260, %c2_i32_131 : i32
    %264 = tpu.assume_multiple %263, 2 : i32
    %265 = arith.index_cast %262 : i32 to index
    %c0_132 = arith.constant 0 : index
    %266 = vector.load %arg7[%265, %c0_132] : memref<16x128xf32, #tpu.memory_space<vmem>>, vector<2x128xf32>
    %c0_133 = arith.constant 0 : index
    %c0_134 = arith.constant 0 : index
    %267 = vector.load %arg9[%c0_133, %c0_134] : memref<2x32xf32, #tpu.memory_space<vmem>>, vector<2x32xf32>
    %268 = arith.truncf %267 : vector<2x32xf32> to vector<2x32xbf16>
    %c0_135 = arith.constant 0 : index
    %c0_136 = arith.constant 0 : index
    %269 = vector.load %arg2[%c0_135, %c0_136] : memref<32x128xbf16, #tpu.memory_space<vmem>>, vector<32x128xbf16>
    %cst_137 = arith.constant dense<0.000000e+00> : vector<2x128xf32>
    %270 = tpu.matmul %268, %269, %cst_137 {dimension_numbers = #tpu.dot_dimension_numbers<[1], [0], [0], [1], [0, 0, 1, 1], [], []>} : vector<2x32xbf16>, vector<32x128xbf16>, vector<2x128xf32> -> vector<2x128xf32>
    %271 = arith.addf %266, %270 : vector<2x128xf32>
    %c0_138 = arith.constant 0 : index
    %c0_139 = arith.constant 0 : index
    %272 = vector.load %arg9[%c0_138, %c0_139] : memref<2x32xf32, #tpu.memory_space<vmem>>, vector<2x32xf32>
    %c0_140 = arith.constant 0 : index
    %c0_141 = arith.constant 0 : index
    %273 = vector.load %arg10[%c0_140, %c0_141] : memref<2x32xf32, #tpu.memory_space<vmem>>, vector<2x32xf32>
    %274 = arith.index_cast %c2_i32_128 : i32 to index
    %c0_142 = arith.constant 0 : index
    %c0_143 = arith.constant 0 : index
    %275 = vector.load %arg5[%274, %c0_142, %c0_143] : memref<8x2x1xf32, #tpu.memory_space<vmem>>, vector<1x2x1xf32>
    %276 = vector.shape_cast %275 : vector<1x2x1xf32> to vector<2x1xf32>
    %277 = vector.extract_strided_slice %271 {offsets = [0, 0], sizes = [2, 32], strides = [1, 1]} : vector<2x128xf32> to vector<2x32xf32>
    %cst_144 = arith.constant 0.000000e+00 : f32
    %278 = vector.broadcast %cst_144 : f32 to vector<2x32xf32>
    %279 = arith.subf %278, %277 : vector<2x32xf32>
    %280 = math.exp %279 : vector<2x32xf32>
    %cst_145 = arith.constant 1.000000e+00 : f32
    %281 = vector.broadcast %cst_145 : f32 to vector<2x32xf32>
    %282 = arith.addf %281, %280 : vector<2x32xf32>
    %283 = tpu.reciprocal %282 {approx = true} : vector<2x32xf32> -> vector<2x32xf32>
    %284 = vector.extract_strided_slice %271 {offsets = [0, 32], sizes = [2, 32], strides = [1, 1]} : vector<2x128xf32> to vector<2x32xf32>
    %cst_146 = arith.constant 0.000000e+00 : f32
    %285 = vector.broadcast %cst_146 : f32 to vector<2x32xf32>
    %286 = arith.subf %285, %284 : vector<2x32xf32>
    %287 = math.exp %286 : vector<2x32xf32>
    %cst_147 = arith.constant 1.000000e+00 : f32
    %288 = vector.broadcast %cst_147 : f32 to vector<2x32xf32>
    %289 = arith.addf %288, %287 : vector<2x32xf32>
    %290 = tpu.reciprocal %289 {approx = true} : vector<2x32xf32> -> vector<2x32xf32>
    %291 = vector.extract_strided_slice %271 {offsets = [0, 64], sizes = [2, 32], strides = [1, 1]} : vector<2x128xf32> to vector<2x32xf32>
    %292 = math.tanh %291 : vector<2x32xf32>
    %293 = vector.extract_strided_slice %271 {offsets = [0, 96], sizes = [2, 32], strides = [1, 1]} : vector<2x128xf32> to vector<2x32xf32>
    %cst_148 = arith.constant 0.000000e+00 : f32
    %294 = vector.broadcast %cst_148 : f32 to vector<2x32xf32>
    %295 = arith.subf %294, %293 : vector<2x32xf32>
    %296 = math.exp %295 : vector<2x32xf32>
    %cst_149 = arith.constant 1.000000e+00 : f32
    %297 = vector.broadcast %cst_149 : f32 to vector<2x32xf32>
    %298 = arith.addf %297, %296 : vector<2x32xf32>
    %299 = tpu.reciprocal %298 {approx = true} : vector<2x32xf32> -> vector<2x32xf32>
    %300 = arith.mulf %290, %273 : vector<2x32xf32>
    %301 = arith.mulf %283, %292 : vector<2x32xf32>
    %302 = arith.addf %300, %301 : vector<2x32xf32>
    %303 = math.tanh %302 : vector<2x32xf32>
    %304 = arith.mulf %299, %303 : vector<2x32xf32>
    %cst_150 = arith.constant 5.000000e-01 : f32
    %305 = vector.broadcast %cst_150 : f32 to vector<2x1xf32>
    %306 = arith.cmpf ogt, %276, %305 : vector<2x1xf32>
    %307 = vector.shape_cast %306 : vector<2x1xi1> to vector<2x1xi1>
    %308 = vector.broadcast %307 : vector<2x1xi1> to vector<2x32xi1>
    %309 = arith.select %308, %304, %272 : vector<2x32xi1>, vector<2x32xf32>
    %310 = vector.shape_cast %306 : vector<2x1xi1> to vector<2x1xi1>
    %311 = vector.broadcast %310 : vector<2x1xi1> to vector<2x32xi1>
    %312 = arith.select %311, %302, %273 : vector<2x32xi1>, vector<2x32xf32>
    %cst_151 = arith.constant 0.000000e+00 : f32
    %313 = vector.shape_cast %306 : vector<2x1xi1> to vector<2x1xi1>
    %314 = vector.broadcast %313 : vector<2x1xi1> to vector<2x32xi1>
    %315 = vector.broadcast %cst_151 : f32 to vector<2x32xf32>
    %316 = arith.select %314, %304, %315 : vector<2x32xi1>, vector<2x32xf32>
    %c0_152 = arith.constant 0 : index
    %c0_153 = arith.constant 0 : index
    %317 = vector.load %arg9[%c0_152, %c0_153] : memref<2x32xf32, #tpu.memory_space<vmem>>, vector<2x32xf32>
    tpu.vector_store %arg9[%c0_152, %c0_153], %309 {strides = array<i32>} : memref<2x32xf32, #tpu.memory_space<vmem>>, vector<2x32xf32>,
    %c0_154 = arith.constant 0 : index
    %c0_155 = arith.constant 0 : index
    %318 = vector.load %arg10[%c0_154, %c0_155] : memref<2x32xf32, #tpu.memory_space<vmem>>, vector<2x32xf32>
    tpu.vector_store %arg10[%c0_154, %c0_155], %312 {strides = array<i32>} : memref<2x32xf32, #tpu.memory_space<vmem>>, vector<2x32xf32>,
    %319 = arith.index_cast %c2_i32_128 : i32 to index
    %c0_156 = arith.constant 0 : index
    %c0_157 = arith.constant 0 : index
    %320 = vector.load %arg6[%319, %c0_156, %c0_157] : memref<8x2x64xf32, #tpu.memory_space<vmem>>, vector<1x2x32xf32>
    %321 = vector.shape_cast %320 : vector<1x2x32xf32> to vector<2x32xf32>
    %322 = vector.shape_cast %316 : vector<2x32xf32> to vector<1x2x32xf32>
    tpu.vector_store %arg6[%319, %c0_156, %c0_157], %322 {strides = array<i32>} : memref<8x2x64xf32, #tpu.memory_space<vmem>>, vector<1x2x32xf32>,
    %323 = arith.index_cast %264 : i32 to index
    %c0_158 = arith.constant 0 : index
    %324 = vector.load %arg8[%323, %c0_158] : memref<16x128xf32, #tpu.memory_space<vmem>>, vector<2x128xf32>
    %c0_159 = arith.constant 0 : index
    %c0_160 = arith.constant 0 : index
    %325 = vector.load %arg11[%c0_159, %c0_160] : memref<2x32xf32, #tpu.memory_space<vmem>>, vector<2x32xf32>
    %326 = arith.truncf %325 : vector<2x32xf32> to vector<2x32xbf16>
    %c0_161 = arith.constant 0 : index
    %c0_162 = arith.constant 0 : index
    %327 = vector.load %arg3[%c0_161, %c0_162] : memref<32x128xbf16, #tpu.memory_space<vmem>>, vector<32x128xbf16>
    %cst_163 = arith.constant dense<0.000000e+00> : vector<2x128xf32>
    %328 = tpu.matmul %326, %327, %cst_163 {dimension_numbers = #tpu.dot_dimension_numbers<[1], [0], [0], [1], [0, 0, 1, 1], [], []>} : vector<2x32xbf16>, vector<32x128xbf16>, vector<2x128xf32> -> vector<2x128xf32>
    %329 = arith.addf %324, %328 : vector<2x128xf32>
    %c0_164 = arith.constant 0 : index
    %c0_165 = arith.constant 0 : index
    %330 = vector.load %arg11[%c0_164, %c0_165] : memref<2x32xf32, #tpu.memory_space<vmem>>, vector<2x32xf32>
    %c0_166 = arith.constant 0 : index
    %c0_167 = arith.constant 0 : index
    %331 = vector.load %arg12[%c0_166, %c0_167] : memref<2x32xf32, #tpu.memory_space<vmem>>, vector<2x32xf32>
    %332 = arith.index_cast %260 : i32 to index
    %c0_168 = arith.constant 0 : index
    %c0_169 = arith.constant 0 : index
    %333 = vector.load %arg5[%332, %c0_168, %c0_169] : memref<8x2x1xf32, #tpu.memory_space<vmem>>, vector<1x2x1xf32>
    %334 = vector.shape_cast %333 : vector<1x2x1xf32> to vector<2x1xf32>
    %335 = vector.extract_strided_slice %329 {offsets = [0, 0], sizes = [2, 32], strides = [1, 1]} : vector<2x128xf32> to vector<2x32xf32>
    %cst_170 = arith.constant 0.000000e+00 : f32
    %336 = vector.broadcast %cst_170 : f32 to vector<2x32xf32>
    %337 = arith.subf %336, %335 : vector<2x32xf32>
    %338 = math.exp %337 : vector<2x32xf32>
    %cst_171 = arith.constant 1.000000e+00 : f32
    %339 = vector.broadcast %cst_171 : f32 to vector<2x32xf32>
    %340 = arith.addf %339, %338 : vector<2x32xf32>
    %341 = tpu.reciprocal %340 {approx = true} : vector<2x32xf32> -> vector<2x32xf32>
    %342 = vector.extract_strided_slice %329 {offsets = [0, 32], sizes = [2, 32], strides = [1, 1]} : vector<2x128xf32> to vector<2x32xf32>
    %cst_172 = arith.constant 0.000000e+00 : f32
    %343 = vector.broadcast %cst_172 : f32 to vector<2x32xf32>
    %344 = arith.subf %343, %342 : vector<2x32xf32>
    %345 = math.exp %344 : vector<2x32xf32>
    %cst_173 = arith.constant 1.000000e+00 : f32
    %346 = vector.broadcast %cst_173 : f32 to vector<2x32xf32>
    %347 = arith.addf %346, %345 : vector<2x32xf32>
    %348 = tpu.reciprocal %347 {approx = true} : vector<2x32xf32> -> vector<2x32xf32>
    %349 = vector.extract_strided_slice %329 {offsets = [0, 64], sizes = [2, 32], strides = [1, 1]} : vector<2x128xf32> to vector<2x32xf32>
    %350 = math.tanh %349 : vector<2x32xf32>
    %351 = vector.extract_strided_slice %329 {offsets = [0, 96], sizes = [2, 32], strides = [1, 1]} : vector<2x128xf32> to vector<2x32xf32>
    %cst_174 = arith.constant 0.000000e+00 : f32
    %352 = vector.broadcast %cst_174 : f32 to vector<2x32xf32>
    %353 = arith.subf %352, %351 : vector<2x32xf32>
    %354 = math.exp %353 : vector<2x32xf32>
    %cst_175 = arith.constant 1.000000e+00 : f32
    %355 = vector.broadcast %cst_175 : f32 to vector<2x32xf32>
    %356 = arith.addf %355, %354 : vector<2x32xf32>
    %357 = tpu.reciprocal %356 {approx = true} : vector<2x32xf32> -> vector<2x32xf32>
    %358 = arith.mulf %348, %331 : vector<2x32xf32>
    %359 = arith.mulf %341, %350 : vector<2x32xf32>
    %360 = arith.addf %358, %359 : vector<2x32xf32>
    %361 = math.tanh %360 : vector<2x32xf32>
    %362 = arith.mulf %357, %361 : vector<2x32xf32>
    %cst_176 = arith.constant 5.000000e-01 : f32
    %363 = vector.broadcast %cst_176 : f32 to vector<2x1xf32>
    %364 = arith.cmpf ogt, %334, %363 : vector<2x1xf32>
    %365 = vector.shape_cast %364 : vector<2x1xi1> to vector<2x1xi1>
    %366 = vector.broadcast %365 : vector<2x1xi1> to vector<2x32xi1>
    %367 = arith.select %366, %362, %330 : vector<2x32xi1>, vector<2x32xf32>
    %368 = vector.shape_cast %364 : vector<2x1xi1> to vector<2x1xi1>
    %369 = vector.broadcast %368 : vector<2x1xi1> to vector<2x32xi1>
    %370 = arith.select %369, %360, %331 : vector<2x32xi1>, vector<2x32xf32>
    %cst_177 = arith.constant 0.000000e+00 : f32
    %371 = vector.shape_cast %364 : vector<2x1xi1> to vector<2x1xi1>
    %372 = vector.broadcast %371 : vector<2x1xi1> to vector<2x32xi1>
    %373 = vector.broadcast %cst_177 : f32 to vector<2x32xf32>
    %374 = arith.select %372, %362, %373 : vector<2x32xi1>, vector<2x32xf32>
    %c0_178 = arith.constant 0 : index
    %c0_179 = arith.constant 0 : index
    %375 = vector.load %arg11[%c0_178, %c0_179] : memref<2x32xf32, #tpu.memory_space<vmem>>, vector<2x32xf32>
    tpu.vector_store %arg11[%c0_178, %c0_179], %367 {strides = array<i32>} : memref<2x32xf32, #tpu.memory_space<vmem>>, vector<2x32xf32>,
    %c0_180 = arith.constant 0 : index
    %c0_181 = arith.constant 0 : index
    %376 = vector.load %arg12[%c0_180, %c0_181] : memref<2x32xf32, #tpu.memory_space<vmem>>, vector<2x32xf32>
    tpu.vector_store %arg12[%c0_180, %c0_181], %370 {strides = array<i32>} : memref<2x32xf32, #tpu.memory_space<vmem>>, vector<2x32xf32>,
    %377 = arith.index_cast %260 : i32 to index
    %c0_182 = arith.constant 0 : index
    %c32_183 = arith.constant 32 : index
    %378 = vector.load %arg6[%377, %c0_182, %c32_183] : memref<8x2x64xf32, #tpu.memory_space<vmem>>, vector<1x2x32xf32>
    %379 = vector.shape_cast %378 : vector<1x2x32xf32> to vector<2x32xf32>
    %380 = vector.shape_cast %374 : vector<2x32xf32> to vector<1x2x32xf32>
    tpu.vector_store %arg6[%377, %c0_182, %c32_183], %380 {strides = array<i32>} : memref<8x2x64xf32, #tpu.memory_space<vmem>>, vector<1x2x32xf32>,
    %c3_i32 = arith.constant 3 : i32
    %c7_i32_184 = arith.constant 7 : i32
    %381 = arith.subi %c7_i32_184, %c3_i32 : i32
    %c2_i32_185 = arith.constant 2 : i32
    %382 = arith.muli %c3_i32, %c2_i32_185 : i32
    %383 = tpu.assume_multiple %382, 2 : i32
    %c2_i32_186 = arith.constant 2 : i32
    %384 = arith.muli %381, %c2_i32_186 : i32
    %385 = tpu.assume_multiple %384, 2 : i32
    %386 = arith.index_cast %383 : i32 to index
    %c0_187 = arith.constant 0 : index
    %387 = vector.load %arg7[%386, %c0_187] : memref<16x128xf32, #tpu.memory_space<vmem>>, vector<2x128xf32>
    %c0_188 = arith.constant 0 : index
    %c0_189 = arith.constant 0 : index
    %388 = vector.load %arg9[%c0_188, %c0_189] : memref<2x32xf32, #tpu.memory_space<vmem>>, vector<2x32xf32>
    %389 = arith.truncf %388 : vector<2x32xf32> to vector<2x32xbf16>
    %c0_190 = arith.constant 0 : index
    %c0_191 = arith.constant 0 : index
    %390 = vector.load %arg2[%c0_190, %c0_191] : memref<32x128xbf16, #tpu.memory_space<vmem>>, vector<32x128xbf16>
    %cst_192 = arith.constant dense<0.000000e+00> : vector<2x128xf32>
    %391 = tpu.matmul %389, %390, %cst_192 {dimension_numbers = #tpu.dot_dimension_numbers<[1], [0], [0], [1], [0, 0, 1, 1], [], []>} : vector<2x32xbf16>, vector<32x128xbf16>, vector<2x128xf32> -> vector<2x128xf32>
    %392 = arith.addf %387, %391 : vector<2x128xf32>
    %c0_193 = arith.constant 0 : index
    %c0_194 = arith.constant 0 : index
    %393 = vector.load %arg9[%c0_193, %c0_194] : memref<2x32xf32, #tpu.memory_space<vmem>>, vector<2x32xf32>
    %c0_195 = arith.constant 0 : index
    %c0_196 = arith.constant 0 : index
    %394 = vector.load %arg10[%c0_195, %c0_196] : memref<2x32xf32, #tpu.memory_space<vmem>>, vector<2x32xf32>
    %395 = arith.index_cast %c3_i32 : i32 to index
    %c0_197 = arith.constant 0 : index
    %c0_198 = arith.constant 0 : index
    %396 = vector.load %arg5[%395, %c0_197, %c0_198] : memref<8x2x1xf32, #tpu.memory_space<vmem>>, vector<1x2x1xf32>
    %397 = vector.shape_cast %396 : vector<1x2x1xf32> to vector<2x1xf32>
    %398 = vector.extract_strided_slice %392 {offsets = [0, 0], sizes = [2, 32], strides = [1, 1]} : vector<2x128xf32> to vector<2x32xf32>
    %cst_199 = arith.constant 0.000000e+00 : f32
    %399 = vector.broadcast %cst_199 : f32 to vector<2x32xf32>
    %400 = arith.subf %399, %398 : vector<2x32xf32>
    %401 = math.exp %400 : vector<2x32xf32>
    %cst_200 = arith.constant 1.000000e+00 : f32
    %402 = vector.broadcast %cst_200 : f32 to vector<2x32xf32>
    %403 = arith.addf %402, %401 : vector<2x32xf32>
    %404 = tpu.reciprocal %403 {approx = true} : vector<2x32xf32> -> vector<2x32xf32>
    %405 = vector.extract_strided_slice %392 {offsets = [0, 32], sizes = [2, 32], strides = [1, 1]} : vector<2x128xf32> to vector<2x32xf32>
    %cst_201 = arith.constant 0.000000e+00 : f32
    %406 = vector.broadcast %cst_201 : f32 to vector<2x32xf32>
    %407 = arith.subf %406, %405 : vector<2x32xf32>
    %408 = math.exp %407 : vector<2x32xf32>
    %cst_202 = arith.constant 1.000000e+00 : f32
    %409 = vector.broadcast %cst_202 : f32 to vector<2x32xf32>
    %410 = arith.addf %409, %408 : vector<2x32xf32>
    %411 = tpu.reciprocal %410 {approx = true} : vector<2x32xf32> -> vector<2x32xf32>
    %412 = vector.extract_strided_slice %392 {offsets = [0, 64], sizes = [2, 32], strides = [1, 1]} : vector<2x128xf32> to vector<2x32xf32>
    %413 = math.tanh %412 : vector<2x32xf32>
    %414 = vector.extract_strided_slice %392 {offsets = [0, 96], sizes = [2, 32], strides = [1, 1]} : vector<2x128xf32> to vector<2x32xf32>
    %cst_203 = arith.constant 0.000000e+00 : f32
    %415 = vector.broadcast %cst_203 : f32 to vector<2x32xf32>
    %416 = arith.subf %415, %414 : vector<2x32xf32>
    %417 = math.exp %416 : vector<2x32xf32>
    %cst_204 = arith.constant 1.000000e+00 : f32
    %418 = vector.broadcast %cst_204 : f32 to vector<2x32xf32>
    %419 = arith.addf %418, %417 : vector<2x32xf32>
    %420 = tpu.reciprocal %419 {approx = true} : vector<2x32xf32> -> vector<2x32xf32>
    %421 = arith.mulf %411, %394 : vector<2x32xf32>
    %422 = arith.mulf %404, %413 : vector<2x32xf32>
    %423 = arith.addf %421, %422 : vector<2x32xf32>
    %424 = math.tanh %423 : vector<2x32xf32>
    %425 = arith.mulf %420, %424 : vector<2x32xf32>
    %cst_205 = arith.constant 5.000000e-01 : f32
    %426 = vector.broadcast %cst_205 : f32 to vector<2x1xf32>
    %427 = arith.cmpf ogt, %397, %426 : vector<2x1xf32>
    %428 = vector.shape_cast %427 : vector<2x1xi1> to vector<2x1xi1>
    %429 = vector.broadcast %428 : vector<2x1xi1> to vector<2x32xi1>
    %430 = arith.select %429, %425, %393 : vector<2x32xi1>, vector<2x32xf32>
    %431 = vector.shape_cast %427 : vector<2x1xi1> to vector<2x1xi1>
    %432 = vector.broadcast %431 : vector<2x1xi1> to vector<2x32xi1>
    %433 = arith.select %432, %423, %394 : vector<2x32xi1>, vector<2x32xf32>
    %cst_206 = arith.constant 0.000000e+00 : f32
    %434 = vector.shape_cast %427 : vector<2x1xi1> to vector<2x1xi1>
    %435 = vector.broadcast %434 : vector<2x1xi1> to vector<2x32xi1>
    %436 = vector.broadcast %cst_206 : f32 to vector<2x32xf32>
    %437 = arith.select %435, %425, %436 : vector<2x32xi1>, vector<2x32xf32>
    %c0_207 = arith.constant 0 : index
    %c0_208 = arith.constant 0 : index
    %438 = vector.load %arg9[%c0_207, %c0_208] : memref<2x32xf32, #tpu.memory_space<vmem>>, vector<2x32xf32>
    tpu.vector_store %arg9[%c0_207, %c0_208], %430 {strides = array<i32>} : memref<2x32xf32, #tpu.memory_space<vmem>>, vector<2x32xf32>,
    %c0_209 = arith.constant 0 : index
    %c0_210 = arith.constant 0 : index
    %439 = vector.load %arg10[%c0_209, %c0_210] : memref<2x32xf32, #tpu.memory_space<vmem>>, vector<2x32xf32>
    tpu.vector_store %arg10[%c0_209, %c0_210], %433 {strides = array<i32>} : memref<2x32xf32, #tpu.memory_space<vmem>>, vector<2x32xf32>,
    %440 = arith.index_cast %c3_i32 : i32 to index
    %c0_211 = arith.constant 0 : index
    %c0_212 = arith.constant 0 : index
    %441 = vector.load %arg6[%440, %c0_211, %c0_212] : memref<8x2x64xf32, #tpu.memory_space<vmem>>, vector<1x2x32xf32>
    %442 = vector.shape_cast %441 : vector<1x2x32xf32> to vector<2x32xf32>
    %443 = vector.shape_cast %437 : vector<2x32xf32> to vector<1x2x32xf32>
    tpu.vector_store %arg6[%440, %c0_211, %c0_212], %443 {strides = array<i32>} : memref<8x2x64xf32, #tpu.memory_space<vmem>>, vector<1x2x32xf32>,
    %444 = arith.index_cast %385 : i32 to index
    %c0_213 = arith.constant 0 : index
    %445 = vector.load %arg8[%444, %c0_213] : memref<16x128xf32, #tpu.memory_space<vmem>>, vector<2x128xf32>
    %c0_214 = arith.constant 0 : index
    %c0_215 = arith.constant 0 : index
    %446 = vector.load %arg11[%c0_214, %c0_215] : memref<2x32xf32, #tpu.memory_space<vmem>>, vector<2x32xf32>
    %447 = arith.truncf %446 : vector<2x32xf32> to vector<2x32xbf16>
    %c0_216 = arith.constant 0 : index
    %c0_217 = arith.constant 0 : index
    %448 = vector.load %arg3[%c0_216, %c0_217] : memref<32x128xbf16, #tpu.memory_space<vmem>>, vector<32x128xbf16>
    %cst_218 = arith.constant dense<0.000000e+00> : vector<2x128xf32>
    %449 = tpu.matmul %447, %448, %cst_218 {dimension_numbers = #tpu.dot_dimension_numbers<[1], [0], [0], [1], [0, 0, 1, 1], [], []>} : vector<2x32xbf16>, vector<32x128xbf16>, vector<2x128xf32> -> vector<2x128xf32>
    %450 = arith.addf %445, %449 : vector<2x128xf32>
    %c0_219 = arith.constant 0 : index
    %c0_220 = arith.constant 0 : index
    %451 = vector.load %arg11[%c0_219, %c0_220] : memref<2x32xf32, #tpu.memory_space<vmem>>, vector<2x32xf32>
    %c0_221 = arith.constant 0 : index
    %c0_222 = arith.constant 0 : index
    %452 = vector.load %arg12[%c0_221, %c0_222] : memref<2x32xf32, #tpu.memory_space<vmem>>, vector<2x32xf32>
    %453 = arith.index_cast %381 : i32 to index
    %c0_223 = arith.constant 0 : index
    %c0_224 = arith.constant 0 : index
    %454 = vector.load %arg5[%453, %c0_223, %c0_224] : memref<8x2x1xf32, #tpu.memory_space<vmem>>, vector<1x2x1xf32>
    %455 = vector.shape_cast %454 : vector<1x2x1xf32> to vector<2x1xf32>
    %456 = vector.extract_strided_slice %450 {offsets = [0, 0], sizes = [2, 32], strides = [1, 1]} : vector<2x128xf32> to vector<2x32xf32>
    %cst_225 = arith.constant 0.000000e+00 : f32
    %457 = vector.broadcast %cst_225 : f32 to vector<2x32xf32>
    %458 = arith.subf %457, %456 : vector<2x32xf32>
    %459 = math.exp %458 : vector<2x32xf32>
    %cst_226 = arith.constant 1.000000e+00 : f32
    %460 = vector.broadcast %cst_226 : f32 to vector<2x32xf32>
    %461 = arith.addf %460, %459 : vector<2x32xf32>
    %462 = tpu.reciprocal %461 {approx = true} : vector<2x32xf32> -> vector<2x32xf32>
    %463 = vector.extract_strided_slice %450 {offsets = [0, 32], sizes = [2, 32], strides = [1, 1]} : vector<2x128xf32> to vector<2x32xf32>
    %cst_227 = arith.constant 0.000000e+00 : f32
    %464 = vector.broadcast %cst_227 : f32 to vector<2x32xf32>
    %465 = arith.subf %464, %463 : vector<2x32xf32>
    %466 = math.exp %465 : vector<2x32xf32>
    %cst_228 = arith.constant 1.000000e+00 : f32
    %467 = vector.broadcast %cst_228 : f32 to vector<2x32xf32>
    %468 = arith.addf %467, %466 : vector<2x32xf32>
    %469 = tpu.reciprocal %468 {approx = true} : vector<2x32xf32> -> vector<2x32xf32>
    %470 = vector.extract_strided_slice %450 {offsets = [0, 64], sizes = [2, 32], strides = [1, 1]} : vector<2x128xf32> to vector<2x32xf32>
    %471 = math.tanh %470 : vector<2x32xf32>
    %472 = vector.extract_strided_slice %450 {offsets = [0, 96], sizes = [2, 32], strides = [1, 1]} : vector<2x128xf32> to vector<2x32xf32>
    %cst_229 = arith.constant 0.000000e+00 : f32
    %473 = vector.broadcast %cst_229 : f32 to vector<2x32xf32>
    %474 = arith.subf %473, %472 : vector<2x32xf32>
    %475 = math.exp %474 : vector<2x32xf32>
    %cst_230 = arith.constant 1.000000e+00 : f32
    %476 = vector.broadcast %cst_230 : f32 to vector<2x32xf32>
    %477 = arith.addf %476, %475 : vector<2x32xf32>
    %478 = tpu.reciprocal %477 {approx = true} : vector<2x32xf32> -> vector<2x32xf32>
    %479 = arith.mulf %469, %452 : vector<2x32xf32>
    %480 = arith.mulf %462, %471 : vector<2x32xf32>
    %481 = arith.addf %479, %480 : vector<2x32xf32>
    %482 = math.tanh %481 : vector<2x32xf32>
    %483 = arith.mulf %478, %482 : vector<2x32xf32>
    %cst_231 = arith.constant 5.000000e-01 : f32
    %484 = vector.broadcast %cst_231 : f32 to vector<2x1xf32>
    %485 = arith.cmpf ogt, %455, %484 : vector<2x1xf32>
    %486 = vector.shape_cast %485 : vector<2x1xi1> to vector<2x1xi1>
    %487 = vector.broadcast %486 : vector<2x1xi1> to vector<2x32xi1>
    %488 = arith.select %487, %483, %451 : vector<2x32xi1>, vector<2x32xf32>
    %489 = vector.shape_cast %485 : vector<2x1xi1> to vector<2x1xi1>
    %490 = vector.broadcast %489 : vector<2x1xi1> to vector<2x32xi1>
    %491 = arith.select %490, %481, %452 : vector<2x32xi1>, vector<2x32xf32>
    %cst_232 = arith.constant 0.000000e+00 : f32
    %492 = vector.shape_cast %485 : vector<2x1xi1> to vector<2x1xi1>
    %493 = vector.broadcast %492 : vector<2x1xi1> to vector<2x32xi1>
    %494 = vector.broadcast %cst_232 : f32 to vector<2x32xf32>
    %495 = arith.select %493, %483, %494 : vector<2x32xi1>, vector<2x32xf32>
    %c0_233 = arith.constant 0 : index
    %c0_234 = arith.constant 0 : index
    %496 = vector.load %arg11[%c0_233, %c0_234] : memref<2x32xf32, #tpu.memory_space<vmem>>, vector<2x32xf32>
    tpu.vector_store %arg11[%c0_233, %c0_234], %488 {strides = array<i32>} : memref<2x32xf32, #tpu.memory_space<vmem>>, vector<2x32xf32>,
    %c0_235 = arith.constant 0 : index
    %c0_236 = arith.constant 0 : index
    %497 = vector.load %arg12[%c0_235, %c0_236] : memref<2x32xf32, #tpu.memory_space<vmem>>, vector<2x32xf32>
    tpu.vector_store %arg12[%c0_235, %c0_236], %491 {strides = array<i32>} : memref<2x32xf32, #tpu.memory_space<vmem>>, vector<2x32xf32>,
    %498 = arith.index_cast %381 : i32 to index
    %c0_237 = arith.constant 0 : index
    %c32_238 = arith.constant 32 : index
    %499 = vector.load %arg6[%498, %c0_237, %c32_238] : memref<8x2x64xf32, #tpu.memory_space<vmem>>, vector<1x2x32xf32>
    %500 = vector.shape_cast %499 : vector<1x2x32xf32> to vector<2x32xf32>
    %501 = vector.shape_cast %495 : vector<2x32xf32> to vector<1x2x32xf32>
    tpu.vector_store %arg6[%498, %c0_237, %c32_238], %501 {strides = array<i32>} : memref<8x2x64xf32, #tpu.memory_space<vmem>>, vector<1x2x32xf32>,
    %c4_i32 = arith.constant 4 : i32
    %c7_i32_239 = arith.constant 7 : i32
    %502 = arith.subi %c7_i32_239, %c4_i32 : i32
    %c2_i32_240 = arith.constant 2 : i32
    %503 = arith.muli %c4_i32, %c2_i32_240 : i32
    %504 = tpu.assume_multiple %503, 2 : i32
    %c2_i32_241 = arith.constant 2 : i32
    %505 = arith.muli %502, %c2_i32_241 : i32
    %506 = tpu.assume_multiple %505, 2 : i32
    %507 = arith.index_cast %504 : i32 to index
    %c0_242 = arith.constant 0 : index
    %508 = vector.load %arg7[%507, %c0_242] : memref<16x128xf32, #tpu.memory_space<vmem>>, vector<2x128xf32>
    %c0_243 = arith.constant 0 : index
    %c0_244 = arith.constant 0 : index
    %509 = vector.load %arg9[%c0_243, %c0_244] : memref<2x32xf32, #tpu.memory_space<vmem>>, vector<2x32xf32>
    %510 = arith.truncf %509 : vector<2x32xf32> to vector<2x32xbf16>
    %c0_245 = arith.constant 0 : index
    %c0_246 = arith.constant 0 : index
    %511 = vector.load %arg2[%c0_245, %c0_246] : memref<32x128xbf16, #tpu.memory_space<vmem>>, vector<32x128xbf16>
    %cst_247 = arith.constant dense<0.000000e+00> : vector<2x128xf32>
    %512 = tpu.matmul %510, %511, %cst_247 {dimension_numbers = #tpu.dot_dimension_numbers<[1], [0], [0], [1], [0, 0, 1, 1], [], []>} : vector<2x32xbf16>, vector<32x128xbf16>, vector<2x128xf32> -> vector<2x128xf32>
    %513 = arith.addf %508, %512 : vector<2x128xf32>
    %c0_248 = arith.constant 0 : index
    %c0_249 = arith.constant 0 : index
    %514 = vector.load %arg9[%c0_248, %c0_249] : memref<2x32xf32, #tpu.memory_space<vmem>>, vector<2x32xf32>
    %c0_250 = arith.constant 0 : index
    %c0_251 = arith.constant 0 : index
    %515 = vector.load %arg10[%c0_250, %c0_251] : memref<2x32xf32, #tpu.memory_space<vmem>>, vector<2x32xf32>
    %516 = arith.index_cast %c4_i32 : i32 to index
    %c0_252 = arith.constant 0 : index
    %c0_253 = arith.constant 0 : index
    %517 = vector.load %arg5[%516, %c0_252, %c0_253] : memref<8x2x1xf32, #tpu.memory_space<vmem>>, vector<1x2x1xf32>
    %518 = vector.shape_cast %517 : vector<1x2x1xf32> to vector<2x1xf32>
    %519 = vector.extract_strided_slice %513 {offsets = [0, 0], sizes = [2, 32], strides = [1, 1]} : vector<2x128xf32> to vector<2x32xf32>
    %cst_254 = arith.constant 0.000000e+00 : f32
    %520 = vector.broadcast %cst_254 : f32 to vector<2x32xf32>
    %521 = arith.subf %520, %519 : vector<2x32xf32>
    %522 = math.exp %521 : vector<2x32xf32>
    %cst_255 = arith.constant 1.000000e+00 : f32
    %523 = vector.broadcast %cst_255 : f32 to vector<2x32xf32>
    %524 = arith.addf %523, %522 : vector<2x32xf32>
    %525 = tpu.reciprocal %524 {approx = true} : vector<2x32xf32> -> vector<2x32xf32>
    %526 = vector.extract_strided_slice %513 {offsets = [0, 32], sizes = [2, 32], strides = [1, 1]} : vector<2x128xf32> to vector<2x32xf32>
    %cst_256 = arith.constant 0.000000e+00 : f32
    %527 = vector.broadcast %cst_256 : f32 to vector<2x32xf32>
    %528 = arith.subf %527, %526 : vector<2x32xf32>
    %529 = math.exp %528 : vector<2x32xf32>
    %cst_257 = arith.constant 1.000000e+00 : f32
    %530 = vector.broadcast %cst_257 : f32 to vector<2x32xf32>
    %531 = arith.addf %530, %529 : vector<2x32xf32>
    %532 = tpu.reciprocal %531 {approx = true} : vector<2x32xf32> -> vector<2x32xf32>
    %533 = vector.extract_strided_slice %513 {offsets = [0, 64], sizes = [2, 32], strides = [1, 1]} : vector<2x128xf32> to vector<2x32xf32>
    %534 = math.tanh %533 : vector<2x32xf32>
    %535 = vector.extract_strided_slice %513 {offsets = [0, 96], sizes = [2, 32], strides = [1, 1]} : vector<2x128xf32> to vector<2x32xf32>
    %cst_258 = arith.constant 0.000000e+00 : f32
    %536 = vector.broadcast %cst_258 : f32 to vector<2x32xf32>
    %537 = arith.subf %536, %535 : vector<2x32xf32>
    %538 = math.exp %537 : vector<2x32xf32>
    %cst_259 = arith.constant 1.000000e+00 : f32
    %539 = vector.broadcast %cst_259 : f32 to vector<2x32xf32>
    %540 = arith.addf %539, %538 : vector<2x32xf32>
    %541 = tpu.reciprocal %540 {approx = true} : vector<2x32xf32> -> vector<2x32xf32>
    %542 = arith.mulf %532, %515 : vector<2x32xf32>
    %543 = arith.mulf %525, %534 : vector<2x32xf32>
    %544 = arith.addf %542, %543 : vector<2x32xf32>
    %545 = math.tanh %544 : vector<2x32xf32>
    %546 = arith.mulf %541, %545 : vector<2x32xf32>
    %cst_260 = arith.constant 5.000000e-01 : f32
    %547 = vector.broadcast %cst_260 : f32 to vector<2x1xf32>
    %548 = arith.cmpf ogt, %518, %547 : vector<2x1xf32>
    %549 = vector.shape_cast %548 : vector<2x1xi1> to vector<2x1xi1>
    %550 = vector.broadcast %549 : vector<2x1xi1> to vector<2x32xi1>
    %551 = arith.select %550, %546, %514 : vector<2x32xi1>, vector<2x32xf32>
    %552 = vector.shape_cast %548 : vector<2x1xi1> to vector<2x1xi1>
    %553 = vector.broadcast %552 : vector<2x1xi1> to vector<2x32xi1>
    %554 = arith.select %553, %544, %515 : vector<2x32xi1>, vector<2x32xf32>
    %cst_261 = arith.constant 0.000000e+00 : f32
    %555 = vector.shape_cast %548 : vector<2x1xi1> to vector<2x1xi1>
    %556 = vector.broadcast %555 : vector<2x1xi1> to vector<2x32xi1>
    %557 = vector.broadcast %cst_261 : f32 to vector<2x32xf32>
    %558 = arith.select %556, %546, %557 : vector<2x32xi1>, vector<2x32xf32>
    %c0_262 = arith.constant 0 : index
    %c0_263 = arith.constant 0 : index
    %559 = vector.load %arg9[%c0_262, %c0_263] : memref<2x32xf32, #tpu.memory_space<vmem>>, vector<2x32xf32>
    tpu.vector_store %arg9[%c0_262, %c0_263], %551 {strides = array<i32>} : memref<2x32xf32, #tpu.memory_space<vmem>>, vector<2x32xf32>,
    %c0_264 = arith.constant 0 : index
    %c0_265 = arith.constant 0 : index
    %560 = vector.load %arg10[%c0_264, %c0_265] : memref<2x32xf32, #tpu.memory_space<vmem>>, vector<2x32xf32>
    tpu.vector_store %arg10[%c0_264, %c0_265], %554 {strides = array<i32>} : memref<2x32xf32, #tpu.memory_space<vmem>>, vector<2x32xf32>,
    %561 = arith.index_cast %c4_i32 : i32 to index
    %c0_266 = arith.constant 0 : index
    %c0_267 = arith.constant 0 : index
    %562 = vector.load %arg6[%561, %c0_266, %c0_267] : memref<8x2x64xf32, #tpu.memory_space<vmem>>, vector<1x2x32xf32>
    %563 = vector.shape_cast %562 : vector<1x2x32xf32> to vector<2x32xf32>
    %564 = vector.shape_cast %558 : vector<2x32xf32> to vector<1x2x32xf32>
    tpu.vector_store %arg6[%561, %c0_266, %c0_267], %564 {strides = array<i32>} : memref<8x2x64xf32, #tpu.memory_space<vmem>>, vector<1x2x32xf32>,
    %565 = arith.index_cast %506 : i32 to index
    %c0_268 = arith.constant 0 : index
    %566 = vector.load %arg8[%565, %c0_268] : memref<16x128xf32, #tpu.memory_space<vmem>>, vector<2x128xf32>
    %c0_269 = arith.constant 0 : index
    %c0_270 = arith.constant 0 : index
    %567 = vector.load %arg11[%c0_269, %c0_270] : memref<2x32xf32, #tpu.memory_space<vmem>>, vector<2x32xf32>
    %568 = arith.truncf %567 : vector<2x32xf32> to vector<2x32xbf16>
    %c0_271 = arith.constant 0 : index
    %c0_272 = arith.constant 0 : index
    %569 = vector.load %arg3[%c0_271, %c0_272] : memref<32x128xbf16, #tpu.memory_space<vmem>>, vector<32x128xbf16>
    %cst_273 = arith.constant dense<0.000000e+00> : vector<2x128xf32>
    %570 = tpu.matmul %568, %569, %cst_273 {dimension_numbers = #tpu.dot_dimension_numbers<[1], [0], [0], [1], [0, 0, 1, 1], [], []>} : vector<2x32xbf16>, vector<32x128xbf16>, vector<2x128xf32> -> vector<2x128xf32>
    %571 = arith.addf %566, %570 : vector<2x128xf32>
    %c0_274 = arith.constant 0 : index
    %c0_275 = arith.constant 0 : index
    %572 = vector.load %arg11[%c0_274, %c0_275] : memref<2x32xf32, #tpu.memory_space<vmem>>, vector<2x32xf32>
    %c0_276 = arith.constant 0 : index
    %c0_277 = arith.constant 0 : index
    %573 = vector.load %arg12[%c0_276, %c0_277] : memref<2x32xf32, #tpu.memory_space<vmem>>, vector<2x32xf32>
    %574 = arith.index_cast %502 : i32 to index
    %c0_278 = arith.constant 0 : index
    %c0_279 = arith.constant 0 : index
    %575 = vector.load %arg5[%574, %c0_278, %c0_279] : memref<8x2x1xf32, #tpu.memory_space<vmem>>, vector<1x2x1xf32>
    %576 = vector.shape_cast %575 : vector<1x2x1xf32> to vector<2x1xf32>
    %577 = vector.extract_strided_slice %571 {offsets = [0, 0], sizes = [2, 32], strides = [1, 1]} : vector<2x128xf32> to vector<2x32xf32>
    %cst_280 = arith.constant 0.000000e+00 : f32
    %578 = vector.broadcast %cst_280 : f32 to vector<2x32xf32>
    %579 = arith.subf %578, %577 : vector<2x32xf32>
    %580 = math.exp %579 : vector<2x32xf32>
    %cst_281 = arith.constant 1.000000e+00 : f32
    %581 = vector.broadcast %cst_281 : f32 to vector<2x32xf32>
    %582 = arith.addf %581, %580 : vector<2x32xf32>
    %583 = tpu.reciprocal %582 {approx = true} : vector<2x32xf32> -> vector<2x32xf32>
    %584 = vector.extract_strided_slice %571 {offsets = [0, 32], sizes = [2, 32], strides = [1, 1]} : vector<2x128xf32> to vector<2x32xf32>
    %cst_282 = arith.constant 0.000000e+00 : f32
    %585 = vector.broadcast %cst_282 : f32 to vector<2x32xf32>
    %586 = arith.subf %585, %584 : vector<2x32xf32>
    %587 = math.exp %586 : vector<2x32xf32>
    %cst_283 = arith.constant 1.000000e+00 : f32
    %588 = vector.broadcast %cst_283 : f32 to vector<2x32xf32>
    %589 = arith.addf %588, %587 : vector<2x32xf32>
    %590 = tpu.reciprocal %589 {approx = true} : vector<2x32xf32> -> vector<2x32xf32>
    %591 = vector.extract_strided_slice %571 {offsets = [0, 64], sizes = [2, 32], strides = [1, 1]} : vector<2x128xf32> to vector<2x32xf32>
    %592 = math.tanh %591 : vector<2x32xf32>
    %593 = vector.extract_strided_slice %571 {offsets = [0, 96], sizes = [2, 32], strides = [1, 1]} : vector<2x128xf32> to vector<2x32xf32>
    %cst_284 = arith.constant 0.000000e+00 : f32
    %594 = vector.broadcast %cst_284 : f32 to vector<2x32xf32>
    %595 = arith.subf %594, %593 : vector<2x32xf32>
    %596 = math.exp %595 : vector<2x32xf32>
    %cst_285 = arith.constant 1.000000e+00 : f32
    %597 = vector.broadcast %cst_285 : f32 to vector<2x32xf32>
    %598 = arith.addf %597, %596 : vector<2x32xf32>
    %599 = tpu.reciprocal %598 {approx = true} : vector<2x32xf32> -> vector<2x32xf32>
    %600 = arith.mulf %590, %573 : vector<2x32xf32>
    %601 = arith.mulf %583, %592 : vector<2x32xf32>
    %602 = arith.addf %600, %601 : vector<2x32xf32>
    %603 = math.tanh %602 : vector<2x32xf32>
    %604 = arith.mulf %599, %603 : vector<2x32xf32>
    %cst_286 = arith.constant 5.000000e-01 : f32
    %605 = vector.broadcast %cst_286 : f32 to vector<2x1xf32>
    %606 = arith.cmpf ogt, %576, %605 : vector<2x1xf32>
    %607 = vector.shape_cast %606 : vector<2x1xi1> to vector<2x1xi1>
    %608 = vector.broadcast %607 : vector<2x1xi1> to vector<2x32xi1>
    %609 = arith.select %608, %604, %572 : vector<2x32xi1>, vector<2x32xf32>
    %610 = vector.shape_cast %606 : vector<2x1xi1> to vector<2x1xi1>
    %611 = vector.broadcast %610 : vector<2x1xi1> to vector<2x32xi1>
    %612 = arith.select %611, %602, %573 : vector<2x32xi1>, vector<2x32xf32>
    %cst_287 = arith.constant 0.000000e+00 : f32
    %613 = vector.shape_cast %606 : vector<2x1xi1> to vector<2x1xi1>
    %614 = vector.broadcast %613 : vector<2x1xi1> to vector<2x32xi1>
    %615 = vector.broadcast %cst_287 : f32 to vector<2x32xf32>
    %616 = arith.select %614, %604, %615 : vector<2x32xi1>, vector<2x32xf32>
    %c0_288 = arith.constant 0 : index
    %c0_289 = arith.constant 0 : index
    %617 = vector.load %arg11[%c0_288, %c0_289] : memref<2x32xf32, #tpu.memory_space<vmem>>, vector<2x32xf32>
    tpu.vector_store %arg11[%c0_288, %c0_289], %609 {strides = array<i32>} : memref<2x32xf32, #tpu.memory_space<vmem>>, vector<2x32xf32>,
    %c0_290 = arith.constant 0 : index
    %c0_291 = arith.constant 0 : index
    %618 = vector.load %arg12[%c0_290, %c0_291] : memref<2x32xf32, #tpu.memory_space<vmem>>, vector<2x32xf32>
    tpu.vector_store %arg12[%c0_290, %c0_291], %612 {strides = array<i32>} : memref<2x32xf32, #tpu.memory_space<vmem>>, vector<2x32xf32>,
    %619 = arith.index_cast %502 : i32 to index
    %c0_292 = arith.constant 0 : index
    %c32_293 = arith.constant 32 : index
    %620 = vector.load %arg6[%619, %c0_292, %c32_293] : memref<8x2x64xf32, #tpu.memory_space<vmem>>, vector<1x2x32xf32>
    %621 = vector.shape_cast %620 : vector<1x2x32xf32> to vector<2x32xf32>
    %622 = vector.shape_cast %616 : vector<2x32xf32> to vector<1x2x32xf32>
    tpu.vector_store %arg6[%619, %c0_292, %c32_293], %622 {strides = array<i32>} : memref<8x2x64xf32, #tpu.memory_space<vmem>>, vector<1x2x32xf32>,
    %c5_i32 = arith.constant 5 : i32
    %c7_i32_294 = arith.constant 7 : i32
    %623 = arith.subi %c7_i32_294, %c5_i32 : i32
    %c2_i32_295 = arith.constant 2 : i32
    %624 = arith.muli %c5_i32, %c2_i32_295 : i32
    %625 = tpu.assume_multiple %624, 2 : i32
    %c2_i32_296 = arith.constant 2 : i32
    %626 = arith.muli %623, %c2_i32_296 : i32
    %627 = tpu.assume_multiple %626, 2 : i32
    %628 = arith.index_cast %625 : i32 to index
    %c0_297 = arith.constant 0 : index
    %629 = vector.load %arg7[%628, %c0_297] : memref<16x128xf32, #tpu.memory_space<vmem>>, vector<2x128xf32>
    %c0_298 = arith.constant 0 : index
    %c0_299 = arith.constant 0 : index
    %630 = vector.load %arg9[%c0_298, %c0_299] : memref<2x32xf32, #tpu.memory_space<vmem>>, vector<2x32xf32>
    %631 = arith.truncf %630 : vector<2x32xf32> to vector<2x32xbf16>
    %c0_300 = arith.constant 0 : index
    %c0_301 = arith.constant 0 : index
    %632 = vector.load %arg2[%c0_300, %c0_301] : memref<32x128xbf16, #tpu.memory_space<vmem>>, vector<32x128xbf16>
    %cst_302 = arith.constant dense<0.000000e+00> : vector<2x128xf32>
    %633 = tpu.matmul %631, %632, %cst_302 {dimension_numbers = #tpu.dot_dimension_numbers<[1], [0], [0], [1], [0, 0, 1, 1], [], []>} : vector<2x32xbf16>, vector<32x128xbf16>, vector<2x128xf32> -> vector<2x128xf32>
    %634 = arith.addf %629, %633 : vector<2x128xf32>
    %c0_303 = arith.constant 0 : index
    %c0_304 = arith.constant 0 : index
    %635 = vector.load %arg9[%c0_303, %c0_304] : memref<2x32xf32, #tpu.memory_space<vmem>>, vector<2x32xf32>
    %c0_305 = arith.constant 0 : index
    %c0_306 = arith.constant 0 : index
    %636 = vector.load %arg10[%c0_305, %c0_306] : memref<2x32xf32, #tpu.memory_space<vmem>>, vector<2x32xf32>
    %637 = arith.index_cast %c5_i32 : i32 to index
    %c0_307 = arith.constant 0 : index
    %c0_308 = arith.constant 0 : index
    %638 = vector.load %arg5[%637, %c0_307, %c0_308] : memref<8x2x1xf32, #tpu.memory_space<vmem>>, vector<1x2x1xf32>
    %639 = vector.shape_cast %638 : vector<1x2x1xf32> to vector<2x1xf32>
    %640 = vector.extract_strided_slice %634 {offsets = [0, 0], sizes = [2, 32], strides = [1, 1]} : vector<2x128xf32> to vector<2x32xf32>
    %cst_309 = arith.constant 0.000000e+00 : f32
    %641 = vector.broadcast %cst_309 : f32 to vector<2x32xf32>
    %642 = arith.subf %641, %640 : vector<2x32xf32>
    %643 = math.exp %642 : vector<2x32xf32>
    %cst_310 = arith.constant 1.000000e+00 : f32
    %644 = vector.broadcast %cst_310 : f32 to vector<2x32xf32>
    %645 = arith.addf %644, %643 : vector<2x32xf32>
    %646 = tpu.reciprocal %645 {approx = true} : vector<2x32xf32> -> vector<2x32xf32>
    %647 = vector.extract_strided_slice %634 {offsets = [0, 32], sizes = [2, 32], strides = [1, 1]} : vector<2x128xf32> to vector<2x32xf32>
    %cst_311 = arith.constant 0.000000e+00 : f32
    %648 = vector.broadcast %cst_311 : f32 to vector<2x32xf32>
    %649 = arith.subf %648, %647 : vector<2x32xf32>
    %650 = math.exp %649 : vector<2x32xf32>
    %cst_312 = arith.constant 1.000000e+00 : f32
    %651 = vector.broadcast %cst_312 : f32 to vector<2x32xf32>
    %652 = arith.addf %651, %650 : vector<2x32xf32>
    %653 = tpu.reciprocal %652 {approx = true} : vector<2x32xf32> -> vector<2x32xf32>
    %654 = vector.extract_strided_slice %634 {offsets = [0, 64], sizes = [2, 32], strides = [1, 1]} : vector<2x128xf32> to vector<2x32xf32>
    %655 = math.tanh %654 : vector<2x32xf32>
    %656 = vector.extract_strided_slice %634 {offsets = [0, 96], sizes = [2, 32], strides = [1, 1]} : vector<2x128xf32> to vector<2x32xf32>
    %cst_313 = arith.constant 0.000000e+00 : f32
    %657 = vector.broadcast %cst_313 : f32 to vector<2x32xf32>
    %658 = arith.subf %657, %656 : vector<2x32xf32>
    %659 = math.exp %658 : vector<2x32xf32>
    %cst_314 = arith.constant 1.000000e+00 : f32
    %660 = vector.broadcast %cst_314 : f32 to vector<2x32xf32>
    %661 = arith.addf %660, %659 : vector<2x32xf32>
    %662 = tpu.reciprocal %661 {approx = true} : vector<2x32xf32> -> vector<2x32xf32>
    %663 = arith.mulf %653, %636 : vector<2x32xf32>
    %664 = arith.mulf %646, %655 : vector<2x32xf32>
    %665 = arith.addf %663, %664 : vector<2x32xf32>
    %666 = math.tanh %665 : vector<2x32xf32>
    %667 = arith.mulf %662, %666 : vector<2x32xf32>
    %cst_315 = arith.constant 5.000000e-01 : f32
    %668 = vector.broadcast %cst_315 : f32 to vector<2x1xf32>
    %669 = arith.cmpf ogt, %639, %668 : vector<2x1xf32>
    %670 = vector.shape_cast %669 : vector<2x1xi1> to vector<2x1xi1>
    %671 = vector.broadcast %670 : vector<2x1xi1> to vector<2x32xi1>
    %672 = arith.select %671, %667, %635 : vector<2x32xi1>, vector<2x32xf32>
    %673 = vector.shape_cast %669 : vector<2x1xi1> to vector<2x1xi1>
    %674 = vector.broadcast %673 : vector<2x1xi1> to vector<2x32xi1>
    %675 = arith.select %674, %665, %636 : vector<2x32xi1>, vector<2x32xf32>
    %cst_316 = arith.constant 0.000000e+00 : f32
    %676 = vector.shape_cast %669 : vector<2x1xi1> to vector<2x1xi1>
    %677 = vector.broadcast %676 : vector<2x1xi1> to vector<2x32xi1>
    %678 = vector.broadcast %cst_316 : f32 to vector<2x32xf32>
    %679 = arith.select %677, %667, %678 : vector<2x32xi1>, vector<2x32xf32>
    %c0_317 = arith.constant 0 : index
    %c0_318 = arith.constant 0 : index
    %680 = vector.load %arg9[%c0_317, %c0_318] : memref<2x32xf32, #tpu.memory_space<vmem>>, vector<2x32xf32>
    tpu.vector_store %arg9[%c0_317, %c0_318], %672 {strides = array<i32>} : memref<2x32xf32, #tpu.memory_space<vmem>>, vector<2x32xf32>,
    %c0_319 = arith.constant 0 : index
    %c0_320 = arith.constant 0 : index
    %681 = vector.load %arg10[%c0_319, %c0_320] : memref<2x32xf32, #tpu.memory_space<vmem>>, vector<2x32xf32>
    tpu.vector_store %arg10[%c0_319, %c0_320], %675 {strides = array<i32>} : memref<2x32xf32, #tpu.memory_space<vmem>>, vector<2x32xf32>,
    %682 = arith.index_cast %c5_i32 : i32 to index
    %c0_321 = arith.constant 0 : index
    %c0_322 = arith.constant 0 : index
    %683 = vector.load %arg6[%682, %c0_321, %c0_322] : memref<8x2x64xf32, #tpu.memory_space<vmem>>, vector<1x2x32xf32>
    %684 = vector.shape_cast %683 : vector<1x2x32xf32> to vector<2x32xf32>
    %685 = vector.shape_cast %679 : vector<2x32xf32> to vector<1x2x32xf32>
    tpu.vector_store %arg6[%682, %c0_321, %c0_322], %685 {strides = array<i32>} : memref<8x2x64xf32, #tpu.memory_space<vmem>>, vector<1x2x32xf32>,
    %686 = arith.index_cast %627 : i32 to index
    %c0_323 = arith.constant 0 : index
    %687 = vector.load %arg8[%686, %c0_323] : memref<16x128xf32, #tpu.memory_space<vmem>>, vector<2x128xf32>
    %c0_324 = arith.constant 0 : index
    %c0_325 = arith.constant 0 : index
    %688 = vector.load %arg11[%c0_324, %c0_325] : memref<2x32xf32, #tpu.memory_space<vmem>>, vector<2x32xf32>
    %689 = arith.truncf %688 : vector<2x32xf32> to vector<2x32xbf16>
    %c0_326 = arith.constant 0 : index
    %c0_327 = arith.constant 0 : index
    %690 = vector.load %arg3[%c0_326, %c0_327] : memref<32x128xbf16, #tpu.memory_space<vmem>>, vector<32x128xbf16>
    %cst_328 = arith.constant dense<0.000000e+00> : vector<2x128xf32>
    %691 = tpu.matmul %689, %690, %cst_328 {dimension_numbers = #tpu.dot_dimension_numbers<[1], [0], [0], [1], [0, 0, 1, 1], [], []>} : vector<2x32xbf16>, vector<32x128xbf16>, vector<2x128xf32> -> vector<2x128xf32>
    %692 = arith.addf %687, %691 : vector<2x128xf32>
    %c0_329 = arith.constant 0 : index
    %c0_330 = arith.constant 0 : index
    %693 = vector.load %arg11[%c0_329, %c0_330] : memref<2x32xf32, #tpu.memory_space<vmem>>, vector<2x32xf32>
    %c0_331 = arith.constant 0 : index
    %c0_332 = arith.constant 0 : index
    %694 = vector.load %arg12[%c0_331, %c0_332] : memref<2x32xf32, #tpu.memory_space<vmem>>, vector<2x32xf32>
    %695 = arith.index_cast %623 : i32 to index
    %c0_333 = arith.constant 0 : index
    %c0_334 = arith.constant 0 : index
    %696 = vector.load %arg5[%695, %c0_333, %c0_334] : memref<8x2x1xf32, #tpu.memory_space<vmem>>, vector<1x2x1xf32>
    %697 = vector.shape_cast %696 : vector<1x2x1xf32> to vector<2x1xf32>
    %698 = vector.extract_strided_slice %692 {offsets = [0, 0], sizes = [2, 32], strides = [1, 1]} : vector<2x128xf32> to vector<2x32xf32>
    %cst_335 = arith.constant 0.000000e+00 : f32
    %699 = vector.broadcast %cst_335 : f32 to vector<2x32xf32>
    %700 = arith.subf %699, %698 : vector<2x32xf32>
    %701 = math.exp %700 : vector<2x32xf32>
    %cst_336 = arith.constant 1.000000e+00 : f32
    %702 = vector.broadcast %cst_336 : f32 to vector<2x32xf32>
    %703 = arith.addf %702, %701 : vector<2x32xf32>
    %704 = tpu.reciprocal %703 {approx = true} : vector<2x32xf32> -> vector<2x32xf32>
    %705 = vector.extract_strided_slice %692 {offsets = [0, 32], sizes = [2, 32], strides = [1, 1]} : vector<2x128xf32> to vector<2x32xf32>
    %cst_337 = arith.constant 0.000000e+00 : f32
    %706 = vector.broadcast %cst_337 : f32 to vector<2x32xf32>
    %707 = arith.subf %706, %705 : vector<2x32xf32>
    %708 = math.exp %707 : vector<2x32xf32>
    %cst_338 = arith.constant 1.000000e+00 : f32
    %709 = vector.broadcast %cst_338 : f32 to vector<2x32xf32>
    %710 = arith.addf %709, %708 : vector<2x32xf32>
    %711 = tpu.reciprocal %710 {approx = true} : vector<2x32xf32> -> vector<2x32xf32>
    %712 = vector.extract_strided_slice %692 {offsets = [0, 64], sizes = [2, 32], strides = [1, 1]} : vector<2x128xf32> to vector<2x32xf32>
    %713 = math.tanh %712 : vector<2x32xf32>
    %714 = vector.extract_strided_slice %692 {offsets = [0, 96], sizes = [2, 32], strides = [1, 1]} : vector<2x128xf32> to vector<2x32xf32>
    %cst_339 = arith.constant 0.000000e+00 : f32
    %715 = vector.broadcast %cst_339 : f32 to vector<2x32xf32>
    %716 = arith.subf %715, %714 : vector<2x32xf32>
    %717 = math.exp %716 : vector<2x32xf32>
    %cst_340 = arith.constant 1.000000e+00 : f32
    %718 = vector.broadcast %cst_340 : f32 to vector<2x32xf32>
    %719 = arith.addf %718, %717 : vector<2x32xf32>
    %720 = tpu.reciprocal %719 {approx = true} : vector<2x32xf32> -> vector<2x32xf32>
    %721 = arith.mulf %711, %694 : vector<2x32xf32>
    %722 = arith.mulf %704, %713 : vector<2x32xf32>
    %723 = arith.addf %721, %722 : vector<2x32xf32>
    %724 = math.tanh %723 : vector<2x32xf32>
    %725 = arith.mulf %720, %724 : vector<2x32xf32>
    %cst_341 = arith.constant 5.000000e-01 : f32
    %726 = vector.broadcast %cst_341 : f32 to vector<2x1xf32>
    %727 = arith.cmpf ogt, %697, %726 : vector<2x1xf32>
    %728 = vector.shape_cast %727 : vector<2x1xi1> to vector<2x1xi1>
    %729 = vector.broadcast %728 : vector<2x1xi1> to vector<2x32xi1>
    %730 = arith.select %729, %725, %693 : vector<2x32xi1>, vector<2x32xf32>
    %731 = vector.shape_cast %727 : vector<2x1xi1> to vector<2x1xi1>
    %732 = vector.broadcast %731 : vector<2x1xi1> to vector<2x32xi1>
    %733 = arith.select %732, %723, %694 : vector<2x32xi1>, vector<2x32xf32>
    %cst_342 = arith.constant 0.000000e+00 : f32
    %734 = vector.shape_cast %727 : vector<2x1xi1> to vector<2x1xi1>
    %735 = vector.broadcast %734 : vector<2x1xi1> to vector<2x32xi1>
    %736 = vector.broadcast %cst_342 : f32 to vector<2x32xf32>
    %737 = arith.select %735, %725, %736 : vector<2x32xi1>, vector<2x32xf32>
    %c0_343 = arith.constant 0 : index
    %c0_344 = arith.constant 0 : index
    %738 = vector.load %arg11[%c0_343, %c0_344] : memref<2x32xf32, #tpu.memory_space<vmem>>, vector<2x32xf32>
    tpu.vector_store %arg11[%c0_343, %c0_344], %730 {strides = array<i32>} : memref<2x32xf32, #tpu.memory_space<vmem>>, vector<2x32xf32>,
    %c0_345 = arith.constant 0 : index
    %c0_346 = arith.constant 0 : index
    %739 = vector.load %arg12[%c0_345, %c0_346] : memref<2x32xf32, #tpu.memory_space<vmem>>, vector<2x32xf32>
    tpu.vector_store %arg12[%c0_345, %c0_346], %733 {strides = array<i32>} : memref<2x32xf32, #tpu.memory_space<vmem>>, vector<2x32xf32>,
    %740 = arith.index_cast %623 : i32 to index
    %c0_347 = arith.constant 0 : index
    %c32_348 = arith.constant 32 : index
    %741 = vector.load %arg6[%740, %c0_347, %c32_348] : memref<8x2x64xf32, #tpu.memory_space<vmem>>, vector<1x2x32xf32>
    %742 = vector.shape_cast %741 : vector<1x2x32xf32> to vector<2x32xf32>
    %743 = vector.shape_cast %737 : vector<2x32xf32> to vector<1x2x32xf32>
    tpu.vector_store %arg6[%740, %c0_347, %c32_348], %743 {strides = array<i32>} : memref<8x2x64xf32, #tpu.memory_space<vmem>>, vector<1x2x32xf32>,
    %c6_i32 = arith.constant 6 : i32
    %c7_i32_349 = arith.constant 7 : i32
    %744 = arith.subi %c7_i32_349, %c6_i32 : i32
    %c2_i32_350 = arith.constant 2 : i32
    %745 = arith.muli %c6_i32, %c2_i32_350 : i32
    %746 = tpu.assume_multiple %745, 2 : i32
    %c2_i32_351 = arith.constant 2 : i32
    %747 = arith.muli %744, %c2_i32_351 : i32
    %748 = tpu.assume_multiple %747, 2 : i32
    %749 = arith.index_cast %746 : i32 to index
    %c0_352 = arith.constant 0 : index
    %750 = vector.load %arg7[%749, %c0_352] : memref<16x128xf32, #tpu.memory_space<vmem>>, vector<2x128xf32>
    %c0_353 = arith.constant 0 : index
    %c0_354 = arith.constant 0 : index
    %751 = vector.load %arg9[%c0_353, %c0_354] : memref<2x32xf32, #tpu.memory_space<vmem>>, vector<2x32xf32>
    %752 = arith.truncf %751 : vector<2x32xf32> to vector<2x32xbf16>
    %c0_355 = arith.constant 0 : index
    %c0_356 = arith.constant 0 : index
    %753 = vector.load %arg2[%c0_355, %c0_356] : memref<32x128xbf16, #tpu.memory_space<vmem>>, vector<32x128xbf16>
    %cst_357 = arith.constant dense<0.000000e+00> : vector<2x128xf32>
    %754 = tpu.matmul %752, %753, %cst_357 {dimension_numbers = #tpu.dot_dimension_numbers<[1], [0], [0], [1], [0, 0, 1, 1], [], []>} : vector<2x32xbf16>, vector<32x128xbf16>, vector<2x128xf32> -> vector<2x128xf32>
    %755 = arith.addf %750, %754 : vector<2x128xf32>
    %c0_358 = arith.constant 0 : index
    %c0_359 = arith.constant 0 : index
    %756 = vector.load %arg9[%c0_358, %c0_359] : memref<2x32xf32, #tpu.memory_space<vmem>>, vector<2x32xf32>
    %c0_360 = arith.constant 0 : index
    %c0_361 = arith.constant 0 : index
    %757 = vector.load %arg10[%c0_360, %c0_361] : memref<2x32xf32, #tpu.memory_space<vmem>>, vector<2x32xf32>
    %758 = arith.index_cast %c6_i32 : i32 to index
    %c0_362 = arith.constant 0 : index
    %c0_363 = arith.constant 0 : index
    %759 = vector.load %arg5[%758, %c0_362, %c0_363] : memref<8x2x1xf32, #tpu.memory_space<vmem>>, vector<1x2x1xf32>
    %760 = vector.shape_cast %759 : vector<1x2x1xf32> to vector<2x1xf32>
    %761 = vector.extract_strided_slice %755 {offsets = [0, 0], sizes = [2, 32], strides = [1, 1]} : vector<2x128xf32> to vector<2x32xf32>
    %cst_364 = arith.constant 0.000000e+00 : f32
    %762 = vector.broadcast %cst_364 : f32 to vector<2x32xf32>
    %763 = arith.subf %762, %761 : vector<2x32xf32>
    %764 = math.exp %763 : vector<2x32xf32>
    %cst_365 = arith.constant 1.000000e+00 : f32
    %765 = vector.broadcast %cst_365 : f32 to vector<2x32xf32>
    %766 = arith.addf %765, %764 : vector<2x32xf32>
    %767 = tpu.reciprocal %766 {approx = true} : vector<2x32xf32> -> vector<2x32xf32>
    %768 = vector.extract_strided_slice %755 {offsets = [0, 32], sizes = [2, 32], strides = [1, 1]} : vector<2x128xf32> to vector<2x32xf32>
    %cst_366 = arith.constant 0.000000e+00 : f32
    %769 = vector.broadcast %cst_366 : f32 to vector<2x32xf32>
    %770 = arith.subf %769, %768 : vector<2x32xf32>
    %771 = math.exp %770 : vector<2x32xf32>
    %cst_367 = arith.constant 1.000000e+00 : f32
    %772 = vector.broadcast %cst_367 : f32 to vector<2x32xf32>
    %773 = arith.addf %772, %771 : vector<2x32xf32>
    %774 = tpu.reciprocal %773 {approx = true} : vector<2x32xf32> -> vector<2x32xf32>
    %775 = vector.extract_strided_slice %755 {offsets = [0, 64], sizes = [2, 32], strides = [1, 1]} : vector<2x128xf32> to vector<2x32xf32>
    %776 = math.tanh %775 : vector<2x32xf32>
    %777 = vector.extract_strided_slice %755 {offsets = [0, 96], sizes = [2, 32], strides = [1, 1]} : vector<2x128xf32> to vector<2x32xf32>
    %cst_368 = arith.constant 0.000000e+00 : f32
    %778 = vector.broadcast %cst_368 : f32 to vector<2x32xf32>
    %779 = arith.subf %778, %777 : vector<2x32xf32>
    %780 = math.exp %779 : vector<2x32xf32>
    %cst_369 = arith.constant 1.000000e+00 : f32
    %781 = vector.broadcast %cst_369 : f32 to vector<2x32xf32>
    %782 = arith.addf %781, %780 : vector<2x32xf32>
    %783 = tpu.reciprocal %782 {approx = true} : vector<2x32xf32> -> vector<2x32xf32>
    %784 = arith.mulf %774, %757 : vector<2x32xf32>
    %785 = arith.mulf %767, %776 : vector<2x32xf32>
    %786 = arith.addf %784, %785 : vector<2x32xf32>
    %787 = math.tanh %786 : vector<2x32xf32>
    %788 = arith.mulf %783, %787 : vector<2x32xf32>
    %cst_370 = arith.constant 5.000000e-01 : f32
    %789 = vector.broadcast %cst_370 : f32 to vector<2x1xf32>
    %790 = arith.cmpf ogt, %760, %789 : vector<2x1xf32>
    %791 = vector.shape_cast %790 : vector<2x1xi1> to vector<2x1xi1>
    %792 = vector.broadcast %791 : vector<2x1xi1> to vector<2x32xi1>
    %793 = arith.select %792, %788, %756 : vector<2x32xi1>, vector<2x32xf32>
    %794 = vector.shape_cast %790 : vector<2x1xi1> to vector<2x1xi1>
    %795 = vector.broadcast %794 : vector<2x1xi1> to vector<2x32xi1>
    %796 = arith.select %795, %786, %757 : vector<2x32xi1>, vector<2x32xf32>
    %cst_371 = arith.constant 0.000000e+00 : f32
    %797 = vector.shape_cast %790 : vector<2x1xi1> to vector<2x1xi1>
    %798 = vector.broadcast %797 : vector<2x1xi1> to vector<2x32xi1>
    %799 = vector.broadcast %cst_371 : f32 to vector<2x32xf32>
    %800 = arith.select %798, %788, %799 : vector<2x32xi1>, vector<2x32xf32>
    %c0_372 = arith.constant 0 : index
    %c0_373 = arith.constant 0 : index
    %801 = vector.load %arg9[%c0_372, %c0_373] : memref<2x32xf32, #tpu.memory_space<vmem>>, vector<2x32xf32>
    tpu.vector_store %arg9[%c0_372, %c0_373], %793 {strides = array<i32>} : memref<2x32xf32, #tpu.memory_space<vmem>>, vector<2x32xf32>,
    %c0_374 = arith.constant 0 : index
    %c0_375 = arith.constant 0 : index
    %802 = vector.load %arg10[%c0_374, %c0_375] : memref<2x32xf32, #tpu.memory_space<vmem>>, vector<2x32xf32>
    tpu.vector_store %arg10[%c0_374, %c0_375], %796 {strides = array<i32>} : memref<2x32xf32, #tpu.memory_space<vmem>>, vector<2x32xf32>,
    %803 = arith.index_cast %c6_i32 : i32 to index
    %c0_376 = arith.constant 0 : index
    %c0_377 = arith.constant 0 : index
    %804 = vector.load %arg6[%803, %c0_376, %c0_377] : memref<8x2x64xf32, #tpu.memory_space<vmem>>, vector<1x2x32xf32>
    %805 = vector.shape_cast %804 : vector<1x2x32xf32> to vector<2x32xf32>
    %806 = vector.shape_cast %800 : vector<2x32xf32> to vector<1x2x32xf32>
    tpu.vector_store %arg6[%803, %c0_376, %c0_377], %806 {strides = array<i32>} : memref<8x2x64xf32, #tpu.memory_space<vmem>>, vector<1x2x32xf32>,
    %807 = arith.index_cast %748 : i32 to index
    %c0_378 = arith.constant 0 : index
    %808 = vector.load %arg8[%807, %c0_378] : memref<16x128xf32, #tpu.memory_space<vmem>>, vector<2x128xf32>
    %c0_379 = arith.constant 0 : index
    %c0_380 = arith.constant 0 : index
    %809 = vector.load %arg11[%c0_379, %c0_380] : memref<2x32xf32, #tpu.memory_space<vmem>>, vector<2x32xf32>
    %810 = arith.truncf %809 : vector<2x32xf32> to vector<2x32xbf16>
    %c0_381 = arith.constant 0 : index
    %c0_382 = arith.constant 0 : index
    %811 = vector.load %arg3[%c0_381, %c0_382] : memref<32x128xbf16, #tpu.memory_space<vmem>>, vector<32x128xbf16>
    %cst_383 = arith.constant dense<0.000000e+00> : vector<2x128xf32>
    %812 = tpu.matmul %810, %811, %cst_383 {dimension_numbers = #tpu.dot_dimension_numbers<[1], [0], [0], [1], [0, 0, 1, 1], [], []>} : vector<2x32xbf16>, vector<32x128xbf16>, vector<2x128xf32> -> vector<2x128xf32>
    %813 = arith.addf %808, %812 : vector<2x128xf32>
    %c0_384 = arith.constant 0 : index
    %c0_385 = arith.constant 0 : index
    %814 = vector.load %arg11[%c0_384, %c0_385] : memref<2x32xf32, #tpu.memory_space<vmem>>, vector<2x32xf32>
    %c0_386 = arith.constant 0 : index
    %c0_387 = arith.constant 0 : index
    %815 = vector.load %arg12[%c0_386, %c0_387] : memref<2x32xf32, #tpu.memory_space<vmem>>, vector<2x32xf32>
    %816 = arith.index_cast %744 : i32 to index
    %c0_388 = arith.constant 0 : index
    %c0_389 = arith.constant 0 : index
    %817 = vector.load %arg5[%816, %c0_388, %c0_389] : memref<8x2x1xf32, #tpu.memory_space<vmem>>, vector<1x2x1xf32>
    %818 = vector.shape_cast %817 : vector<1x2x1xf32> to vector<2x1xf32>
    %819 = vector.extract_strided_slice %813 {offsets = [0, 0], sizes = [2, 32], strides = [1, 1]} : vector<2x128xf32> to vector<2x32xf32>
    %cst_390 = arith.constant 0.000000e+00 : f32
    %820 = vector.broadcast %cst_390 : f32 to vector<2x32xf32>
    %821 = arith.subf %820, %819 : vector<2x32xf32>
    %822 = math.exp %821 : vector<2x32xf32>
    %cst_391 = arith.constant 1.000000e+00 : f32
    %823 = vector.broadcast %cst_391 : f32 to vector<2x32xf32>
    %824 = arith.addf %823, %822 : vector<2x32xf32>
    %825 = tpu.reciprocal %824 {approx = true} : vector<2x32xf32> -> vector<2x32xf32>
    %826 = vector.extract_strided_slice %813 {offsets = [0, 32], sizes = [2, 32], strides = [1, 1]} : vector<2x128xf32> to vector<2x32xf32>
    %cst_392 = arith.constant 0.000000e+00 : f32
    %827 = vector.broadcast %cst_392 : f32 to vector<2x32xf32>
    %828 = arith.subf %827, %826 : vector<2x32xf32>
    %829 = math.exp %828 : vector<2x32xf32>
    %cst_393 = arith.constant 1.000000e+00 : f32
    %830 = vector.broadcast %cst_393 : f32 to vector<2x32xf32>
    %831 = arith.addf %830, %829 : vector<2x32xf32>
    %832 = tpu.reciprocal %831 {approx = true} : vector<2x32xf32> -> vector<2x32xf32>
    %833 = vector.extract_strided_slice %813 {offsets = [0, 64], sizes = [2, 32], strides = [1, 1]} : vector<2x128xf32> to vector<2x32xf32>
    %834 = math.tanh %833 : vector<2x32xf32>
    %835 = vector.extract_strided_slice %813 {offsets = [0, 96], sizes = [2, 32], strides = [1, 1]} : vector<2x128xf32> to vector<2x32xf32>
    %cst_394 = arith.constant 0.000000e+00 : f32
    %836 = vector.broadcast %cst_394 : f32 to vector<2x32xf32>
    %837 = arith.subf %836, %835 : vector<2x32xf32>
    %838 = math.exp %837 : vector<2x32xf32>
    %cst_395 = arith.constant 1.000000e+00 : f32
    %839 = vector.broadcast %cst_395 : f32 to vector<2x32xf32>
    %840 = arith.addf %839, %838 : vector<2x32xf32>
    %841 = tpu.reciprocal %840 {approx = true} : vector<2x32xf32> -> vector<2x32xf32>
    %842 = arith.mulf %832, %815 : vector<2x32xf32>
    %843 = arith.mulf %825, %834 : vector<2x32xf32>
    %844 = arith.addf %842, %843 : vector<2x32xf32>
    %845 = math.tanh %844 : vector<2x32xf32>
    %846 = arith.mulf %841, %845 : vector<2x32xf32>
    %cst_396 = arith.constant 5.000000e-01 : f32
    %847 = vector.broadcast %cst_396 : f32 to vector<2x1xf32>
    %848 = arith.cmpf ogt, %818, %847 : vector<2x1xf32>
    %849 = vector.shape_cast %848 : vector<2x1xi1> to vector<2x1xi1>
    %850 = vector.broadcast %849 : vector<2x1xi1> to vector<2x32xi1>
    %851 = arith.select %850, %846, %814 : vector<2x32xi1>, vector<2x32xf32>
    %852 = vector.shape_cast %848 : vector<2x1xi1> to vector<2x1xi1>
    %853 = vector.broadcast %852 : vector<2x1xi1> to vector<2x32xi1>
    %854 = arith.select %853, %844, %815 : vector<2x32xi1>, vector<2x32xf32>
    %cst_397 = arith.constant 0.000000e+00 : f32
    %855 = vector.shape_cast %848 : vector<2x1xi1> to vector<2x1xi1>
    %856 = vector.broadcast %855 : vector<2x1xi1> to vector<2x32xi1>
    %857 = vector.broadcast %cst_397 : f32 to vector<2x32xf32>
    %858 = arith.select %856, %846, %857 : vector<2x32xi1>, vector<2x32xf32>
    %c0_398 = arith.constant 0 : index
    %c0_399 = arith.constant 0 : index
    %859 = vector.load %arg11[%c0_398, %c0_399] : memref<2x32xf32, #tpu.memory_space<vmem>>, vector<2x32xf32>
    tpu.vector_store %arg11[%c0_398, %c0_399], %851 {strides = array<i32>} : memref<2x32xf32, #tpu.memory_space<vmem>>, vector<2x32xf32>,
    %c0_400 = arith.constant 0 : index
    %c0_401 = arith.constant 0 : index
    %860 = vector.load %arg12[%c0_400, %c0_401] : memref<2x32xf32, #tpu.memory_space<vmem>>, vector<2x32xf32>
    tpu.vector_store %arg12[%c0_400, %c0_401], %854 {strides = array<i32>} : memref<2x32xf32, #tpu.memory_space<vmem>>, vector<2x32xf32>,
    %861 = arith.index_cast %744 : i32 to index
    %c0_402 = arith.constant 0 : index
    %c32_403 = arith.constant 32 : index
    %862 = vector.load %arg6[%861, %c0_402, %c32_403] : memref<8x2x64xf32, #tpu.memory_space<vmem>>, vector<1x2x32xf32>
    %863 = vector.shape_cast %862 : vector<1x2x32xf32> to vector<2x32xf32>
    %864 = vector.shape_cast %858 : vector<2x32xf32> to vector<1x2x32xf32>
    tpu.vector_store %arg6[%861, %c0_402, %c32_403], %864 {strides = array<i32>} : memref<8x2x64xf32, #tpu.memory_space<vmem>>, vector<1x2x32xf32>,
    %c7_i32_404 = arith.constant 7 : i32
    %c7_i32_405 = arith.constant 7 : i32
    %865 = arith.subi %c7_i32_405, %c7_i32_404 : i32
    %c2_i32_406 = arith.constant 2 : i32
    %866 = arith.muli %c7_i32_404, %c2_i32_406 : i32
    %867 = tpu.assume_multiple %866, 2 : i32
    %c2_i32_407 = arith.constant 2 : i32
    %868 = arith.muli %865, %c2_i32_407 : i32
    %869 = tpu.assume_multiple %868, 2 : i32
    %870 = arith.index_cast %867 : i32 to index
    %c0_408 = arith.constant 0 : index
    %871 = vector.load %arg7[%870, %c0_408] : memref<16x128xf32, #tpu.memory_space<vmem>>, vector<2x128xf32>
    %c0_409 = arith.constant 0 : index
    %c0_410 = arith.constant 0 : index
    %872 = vector.load %arg9[%c0_409, %c0_410] : memref<2x32xf32, #tpu.memory_space<vmem>>, vector<2x32xf32>
    %873 = arith.truncf %872 : vector<2x32xf32> to vector<2x32xbf16>
    %c0_411 = arith.constant 0 : index
    %c0_412 = arith.constant 0 : index
    %874 = vector.load %arg2[%c0_411, %c0_412] : memref<32x128xbf16, #tpu.memory_space<vmem>>, vector<32x128xbf16>
    %cst_413 = arith.constant dense<0.000000e+00> : vector<2x128xf32>
    %875 = tpu.matmul %873, %874, %cst_413 {dimension_numbers = #tpu.dot_dimension_numbers<[1], [0], [0], [1], [0, 0, 1, 1], [], []>} : vector<2x32xbf16>, vector<32x128xbf16>, vector<2x128xf32> -> vector<2x128xf32>
    %876 = arith.addf %871, %875 : vector<2x128xf32>
    %c0_414 = arith.constant 0 : index
    %c0_415 = arith.constant 0 : index
    %877 = vector.load %arg9[%c0_414, %c0_415] : memref<2x32xf32, #tpu.memory_space<vmem>>, vector<2x32xf32>
    %c0_416 = arith.constant 0 : index
    %c0_417 = arith.constant 0 : index
    %878 = vector.load %arg10[%c0_416, %c0_417] : memref<2x32xf32, #tpu.memory_space<vmem>>, vector<2x32xf32>
    %879 = arith.index_cast %c7_i32_404 : i32 to index
    %c0_418 = arith.constant 0 : index
    %c0_419 = arith.constant 0 : index
    %880 = vector.load %arg5[%879, %c0_418, %c0_419] : memref<8x2x1xf32, #tpu.memory_space<vmem>>, vector<1x2x1xf32>
    %881 = vector.shape_cast %880 : vector<1x2x1xf32> to vector<2x1xf32>
    %882 = vector.extract_strided_slice %876 {offsets = [0, 0], sizes = [2, 32], strides = [1, 1]} : vector<2x128xf32> to vector<2x32xf32>
    %cst_420 = arith.constant 0.000000e+00 : f32
    %883 = vector.broadcast %cst_420 : f32 to vector<2x32xf32>
    %884 = arith.subf %883, %882 : vector<2x32xf32>
    %885 = math.exp %884 : vector<2x32xf32>
    %cst_421 = arith.constant 1.000000e+00 : f32
    %886 = vector.broadcast %cst_421 : f32 to vector<2x32xf32>
    %887 = arith.addf %886, %885 : vector<2x32xf32>
    %888 = tpu.reciprocal %887 {approx = true} : vector<2x32xf32> -> vector<2x32xf32>
    %889 = vector.extract_strided_slice %876 {offsets = [0, 32], sizes = [2, 32], strides = [1, 1]} : vector<2x128xf32> to vector<2x32xf32>
    %cst_422 = arith.constant 0.000000e+00 : f32
    %890 = vector.broadcast %cst_422 : f32 to vector<2x32xf32>
    %891 = arith.subf %890, %889 : vector<2x32xf32>
    %892 = math.exp %891 : vector<2x32xf32>
    %cst_423 = arith.constant 1.000000e+00 : f32
    %893 = vector.broadcast %cst_423 : f32 to vector<2x32xf32>
    %894 = arith.addf %893, %892 : vector<2x32xf32>
    %895 = tpu.reciprocal %894 {approx = true} : vector<2x32xf32> -> vector<2x32xf32>
    %896 = vector.extract_strided_slice %876 {offsets = [0, 64], sizes = [2, 32], strides = [1, 1]} : vector<2x128xf32> to vector<2x32xf32>
    %897 = math.tanh %896 : vector<2x32xf32>
    %898 = vector.extract_strided_slice %876 {offsets = [0, 96], sizes = [2, 32], strides = [1, 1]} : vector<2x128xf32> to vector<2x32xf32>
    %cst_424 = arith.constant 0.000000e+00 : f32
    %899 = vector.broadcast %cst_424 : f32 to vector<2x32xf32>
    %900 = arith.subf %899, %898 : vector<2x32xf32>
    %901 = math.exp %900 : vector<2x32xf32>
    %cst_425 = arith.constant 1.000000e+00 : f32
    %902 = vector.broadcast %cst_425 : f32 to vector<2x32xf32>
    %903 = arith.addf %902, %901 : vector<2x32xf32>
    %904 = tpu.reciprocal %903 {approx = true} : vector<2x32xf32> -> vector<2x32xf32>
    %905 = arith.mulf %895, %878 : vector<2x32xf32>
    %906 = arith.mulf %888, %897 : vector<2x32xf32>
    %907 = arith.addf %905, %906 : vector<2x32xf32>
    %908 = math.tanh %907 : vector<2x32xf32>
    %909 = arith.mulf %904, %908 : vector<2x32xf32>
    %cst_426 = arith.constant 5.000000e-01 : f32
    %910 = vector.broadcast %cst_426 : f32 to vector<2x1xf32>
    %911 = arith.cmpf ogt, %881, %910 : vector<2x1xf32>
    %912 = vector.shape_cast %911 : vector<2x1xi1> to vector<2x1xi1>
    %913 = vector.broadcast %912 : vector<2x1xi1> to vector<2x32xi1>
    %914 = arith.select %913, %909, %877 : vector<2x32xi1>, vector<2x32xf32>
    %915 = vector.shape_cast %911 : vector<2x1xi1> to vector<2x1xi1>
    %916 = vector.broadcast %915 : vector<2x1xi1> to vector<2x32xi1>
    %917 = arith.select %916, %907, %878 : vector<2x32xi1>, vector<2x32xf32>
    %cst_427 = arith.constant 0.000000e+00 : f32
    %918 = vector.shape_cast %911 : vector<2x1xi1> to vector<2x1xi1>
    %919 = vector.broadcast %918 : vector<2x1xi1> to vector<2x32xi1>
    %920 = vector.broadcast %cst_427 : f32 to vector<2x32xf32>
    %921 = arith.select %919, %909, %920 : vector<2x32xi1>, vector<2x32xf32>
    %c0_428 = arith.constant 0 : index
    %c0_429 = arith.constant 0 : index
    %922 = vector.load %arg9[%c0_428, %c0_429] : memref<2x32xf32, #tpu.memory_space<vmem>>, vector<2x32xf32>
    tpu.vector_store %arg9[%c0_428, %c0_429], %914 {strides = array<i32>} : memref<2x32xf32, #tpu.memory_space<vmem>>, vector<2x32xf32>,
    %c0_430 = arith.constant 0 : index
    %c0_431 = arith.constant 0 : index
    %923 = vector.load %arg10[%c0_430, %c0_431] : memref<2x32xf32, #tpu.memory_space<vmem>>, vector<2x32xf32>
    tpu.vector_store %arg10[%c0_430, %c0_431], %917 {strides = array<i32>} : memref<2x32xf32, #tpu.memory_space<vmem>>, vector<2x32xf32>,
    %924 = arith.index_cast %c7_i32_404 : i32 to index
    %c0_432 = arith.constant 0 : index
    %c0_433 = arith.constant 0 : index
    %925 = vector.load %arg6[%924, %c0_432, %c0_433] : memref<8x2x64xf32, #tpu.memory_space<vmem>>, vector<1x2x32xf32>
    %926 = vector.shape_cast %925 : vector<1x2x32xf32> to vector<2x32xf32>
    %927 = vector.shape_cast %921 : vector<2x32xf32> to vector<1x2x32xf32>
    tpu.vector_store %arg6[%924, %c0_432, %c0_433], %927 {strides = array<i32>} : memref<8x2x64xf32, #tpu.memory_space<vmem>>, vector<1x2x32xf32>,
    %928 = arith.index_cast %869 : i32 to index
    %c0_434 = arith.constant 0 : index
    %929 = vector.load %arg8[%928, %c0_434] : memref<16x128xf32, #tpu.memory_space<vmem>>, vector<2x128xf32>
    %c0_435 = arith.constant 0 : index
    %c0_436 = arith.constant 0 : index
    %930 = vector.load %arg11[%c0_435, %c0_436] : memref<2x32xf32, #tpu.memory_space<vmem>>, vector<2x32xf32>
    %931 = arith.truncf %930 : vector<2x32xf32> to vector<2x32xbf16>
    %c0_437 = arith.constant 0 : index
    %c0_438 = arith.constant 0 : index
    %932 = vector.load %arg3[%c0_437, %c0_438] : memref<32x128xbf16, #tpu.memory_space<vmem>>, vector<32x128xbf16>
    %cst_439 = arith.constant dense<0.000000e+00> : vector<2x128xf32>
    %933 = tpu.matmul %931, %932, %cst_439 {dimension_numbers = #tpu.dot_dimension_numbers<[1], [0], [0], [1], [0, 0, 1, 1], [], []>} : vector<2x32xbf16>, vector<32x128xbf16>, vector<2x128xf32> -> vector<2x128xf32>
    %934 = arith.addf %929, %933 : vector<2x128xf32>
    %c0_440 = arith.constant 0 : index
    %c0_441 = arith.constant 0 : index
    %935 = vector.load %arg11[%c0_440, %c0_441] : memref<2x32xf32, #tpu.memory_space<vmem>>, vector<2x32xf32>
    %c0_442 = arith.constant 0 : index
    %c0_443 = arith.constant 0 : index
    %936 = vector.load %arg12[%c0_442, %c0_443] : memref<2x32xf32, #tpu.memory_space<vmem>>, vector<2x32xf32>
    %937 = arith.index_cast %865 : i32 to index
    %c0_444 = arith.constant 0 : index
    %c0_445 = arith.constant 0 : index
    %938 = vector.load %arg5[%937, %c0_444, %c0_445] : memref<8x2x1xf32, #tpu.memory_space<vmem>>, vector<1x2x1xf32>
    %939 = vector.shape_cast %938 : vector<1x2x1xf32> to vector<2x1xf32>
    %940 = vector.extract_strided_slice %934 {offsets = [0, 0], sizes = [2, 32], strides = [1, 1]} : vector<2x128xf32> to vector<2x32xf32>
    %cst_446 = arith.constant 0.000000e+00 : f32
    %941 = vector.broadcast %cst_446 : f32 to vector<2x32xf32>
    %942 = arith.subf %941, %940 : vector<2x32xf32>
    %943 = math.exp %942 : vector<2x32xf32>
    %cst_447 = arith.constant 1.000000e+00 : f32
    %944 = vector.broadcast %cst_447 : f32 to vector<2x32xf32>
    %945 = arith.addf %944, %943 : vector<2x32xf32>
    %946 = tpu.reciprocal %945 {approx = true} : vector<2x32xf32> -> vector<2x32xf32>
    %947 = vector.extract_strided_slice %934 {offsets = [0, 32], sizes = [2, 32], strides = [1, 1]} : vector<2x128xf32> to vector<2x32xf32>
    %cst_448 = arith.constant 0.000000e+00 : f32
    %948 = vector.broadcast %cst_448 : f32 to vector<2x32xf32>
    %949 = arith.subf %948, %947 : vector<2x32xf32>
    %950 = math.exp %949 : vector<2x32xf32>
    %cst_449 = arith.constant 1.000000e+00 : f32
    %951 = vector.broadcast %cst_449 : f32 to vector<2x32xf32>
    %952 = arith.addf %951, %950 : vector<2x32xf32>
    %953 = tpu.reciprocal %952 {approx = true} : vector<2x32xf32> -> vector<2x32xf32>
    %954 = vector.extract_strided_slice %934 {offsets = [0, 64], sizes = [2, 32], strides = [1, 1]} : vector<2x128xf32> to vector<2x32xf32>
    %955 = math.tanh %954 : vector<2x32xf32>
    %956 = vector.extract_strided_slice %934 {offsets = [0, 96], sizes = [2, 32], strides = [1, 1]} : vector<2x128xf32> to vector<2x32xf32>
    %cst_450 = arith.constant 0.000000e+00 : f32
    %957 = vector.broadcast %cst_450 : f32 to vector<2x32xf32>
    %958 = arith.subf %957, %956 : vector<2x32xf32>
    %959 = math.exp %958 : vector<2x32xf32>
    %cst_451 = arith.constant 1.000000e+00 : f32
    %960 = vector.broadcast %cst_451 : f32 to vector<2x32xf32>
    %961 = arith.addf %960, %959 : vector<2x32xf32>
    %962 = tpu.reciprocal %961 {approx = true} : vector<2x32xf32> -> vector<2x32xf32>
    %963 = arith.mulf %953, %936 : vector<2x32xf32>
    %964 = arith.mulf %946, %955 : vector<2x32xf32>
    %965 = arith.addf %963, %964 : vector<2x32xf32>
    %966 = math.tanh %965 : vector<2x32xf32>
    %967 = arith.mulf %962, %966 : vector<2x32xf32>
    %cst_452 = arith.constant 5.000000e-01 : f32
    %968 = vector.broadcast %cst_452 : f32 to vector<2x1xf32>
    %969 = arith.cmpf ogt, %939, %968 : vector<2x1xf32>
    %970 = vector.shape_cast %969 : vector<2x1xi1> to vector<2x1xi1>
    %971 = vector.broadcast %970 : vector<2x1xi1> to vector<2x32xi1>
    %972 = arith.select %971, %967, %935 : vector<2x32xi1>, vector<2x32xf32>
    %973 = vector.shape_cast %969 : vector<2x1xi1> to vector<2x1xi1>
    %974 = vector.broadcast %973 : vector<2x1xi1> to vector<2x32xi1>
    %975 = arith.select %974, %965, %936 : vector<2x32xi1>, vector<2x32xf32>
    %cst_453 = arith.constant 0.000000e+00 : f32
    %976 = vector.shape_cast %969 : vector<2x1xi1> to vector<2x1xi1>
    %977 = vector.broadcast %976 : vector<2x1xi1> to vector<2x32xi1>
    %978 = vector.broadcast %cst_453 : f32 to vector<2x32xf32>
    %979 = arith.select %977, %967, %978 : vector<2x32xi1>, vector<2x32xf32>
    %c0_454 = arith.constant 0 : index
    %c0_455 = arith.constant 0 : index
    %980 = vector.load %arg11[%c0_454, %c0_455] : memref<2x32xf32, #tpu.memory_space<vmem>>, vector<2x32xf32>
    tpu.vector_store %arg11[%c0_454, %c0_455], %972 {strides = array<i32>} : memref<2x32xf32, #tpu.memory_space<vmem>>, vector<2x32xf32>,
    %c0_456 = arith.constant 0 : index
    %c0_457 = arith.constant 0 : index
    %981 = vector.load %arg12[%c0_456, %c0_457] : memref<2x32xf32, #tpu.memory_space<vmem>>, vector<2x32xf32>
    tpu.vector_store %arg12[%c0_456, %c0_457], %975 {strides = array<i32>} : memref<2x32xf32, #tpu.memory_space<vmem>>, vector<2x32xf32>,
    %982 = arith.index_cast %865 : i32 to index
    %c0_458 = arith.constant 0 : index
    %c32_459 = arith.constant 32 : index
    %983 = vector.load %arg6[%982, %c0_458, %c32_459] : memref<8x2x64xf32, #tpu.memory_space<vmem>>, vector<1x2x32xf32>
    %984 = vector.shape_cast %983 : vector<1x2x32xf32> to vector<2x32xf32>
    %985 = vector.shape_cast %979 : vector<2x32xf32> to vector<1x2x32xf32>
    tpu.vector_store %arg6[%982, %c0_458, %c32_459], %985 {strides = array<i32>} : memref<8x2x64xf32, #tpu.memory_space<vmem>>, vector<1x2x32xf32>,
    %c8_i32 = arith.constant 8 : i32
    return
  }
}

</mosaic_0001>

<bundles_post_ra>
// kernel: bilstm_net_forward.2
= control target key start
LH: loop header
LB: loop body
LE: loop exit
PB: predicated region body
PF: predicated region fallthrough
CT: control target
= control target key end

     0   :  { %v2493_v1 = vmov 0   ;;  %v2494_v2 = vmov 0.0   ;;  %vm3304_vm0 = vcmask 254976   ;;  %vm2495_vm1 = vmmov 0   ;;  %s2496_s9 = smov 32   ;;  %s2498_s16 = smov 96   ;;  %s3297_s1 = inlined_call_operand.vmem [shape: bf16[16,256], index: 1, kind: input, shape index: {}]   ;;  %s3298_s0 = inlined_call_operand.vmem [shape: bf16[16,16], index: 0, kind: input, shape index: {}]   ;;  %s3299_s2 = inlined_call_operand.vmem [shape: bf16[32,128], index: 2, kind: input, shape index: {}]   ;;  %s3300_s3 = inlined_call_operand.vmem [shape: bf16[32,128], index: 3, kind: input, shape index: {}]   ;;  %s3301_s4 = inlined_call_operand.vmem [shape: f32[1,256], index: 4, kind: input, shape index: {}]   ;;  %s3302_s5 = inlined_call_operand.vmem [shape: f32[8,2,1], index: 5, kind: input, shape index: {}]   ;;  %s3303_s6 = inlined_call_operand.vmem [shape: f32[8,2,64], index: 6, kind: output, shape index: {}]  }
   0x1   :  { %v2329_v0 = vld [vmem:[%s3297_s1 + $0x4] ss:$8 sps:$4 sm:$0xff]   ;;  %91 = vmatprep.mubr.bf16.mxu0 %v2493_v1  ;;  %2193 = vmatprep.subr.bf16.mxu1 %v2494_v2  ;;  %v2331_v3 = vld [vmem:[%s3297_s1] ss:$8 sps:$4 sm:$0xff]   ;;  %107 = vst.msk [vmem:[#allocation4] sm:$0x3] %vm3304_vm0, %v2494_v2  ;;  %v30_v15 = vlaneseq }
   0x2   :  { %2197 = vmatprep.mubr.msk.bf16.mxu1 %vm2495_vm1, %v2494_v2  ;;  %108 = vst.msk [vmem:[#allocation5] sm:$0x3] %vm3304_vm0, %v2494_v2  ;;  %109 = vst.msk [vmem:[#allocation6] sm:$0x3] %vm3304_vm0, %v2494_v2  ;;  %2327 = vset.pattern.permute.xlu0 %v2493_v1  ;;  %v2332_v4 = vld [vmem:[%s3298_s0] sm:$0xff]   ;;  %vm55_vm2 = vcmask 130048  }
   0x3   :  { %110 = vst.msk [vmem:[#allocation7] sm:$0x3] %vm3304_vm0, %v2494_v2  ;;  %59 = vmatprep.subr.bf16.mxu0 %v2329_v0  ;;  %2328 = vset.pattern.permute.xlu1 %v2493_v1  ;;  %v2333_v5 = vld [vmem:[%s3299_s2] sm:$0xff]   ;;  %v2334_v6 = vld [vmem:[%s3299_s2 + $0x8] sm:$0xff]   ;;  %vm130_vm3 = vcmask 261120   ;;  %v31_v16 = vshrl.u32 %v30_v15, 7 }
   0x4   :  { %60 = vmatpush1.bf16.msra.mxu0 %v2331_v3  ;;  %2194 = vmatpush3.bf16.msra.mxu1 %v2333_v5  ;;  %v2335_v7 = vld [vmem:[%s3300_s3] sm:$0xff]   ;;  %v2336_v8 = vld [vmem:[%s3300_s3 + $0x8] sm:$0xff]  }
   0x5   :  { %2201 = vmatprep.subr.bf16.mxu0 %v2494_v2  ;;  %2195 = vmatprep.subr.bf16.mxu1 %v2494_v2  ;;  %v32_v17 = vsub.s32 0, %v31_v16  ;;  %v28_v18 = vld [vmem:[%s3301_s4] sm:$0x3]  ;;  %v36_v19 = vsub.s32 1, %v31_v16  ;;  %s2497_s4 = smov 64   ;;  %v2340_v16 = vld [vmem:[%s3300_s3 + $0x8] sm:$0xff]  }
   0x6   :  { %v176_v52 = vld [vmem:[%s3302_s5] sm:$0x3]  ;;  %v2075_v56 = vld [vmem:[%s3302_s5 + $0xe] sm:$0x3] }
   0x7   :  { %2068 = vmatmul.mubr.msk.bf16.vlgmr.msra.gmra.mrb[0].mxu0 %vm55_vm2, %v2332_v4  ;;  %v33_v20 = vrot.slane %v28_v18, %v32_v17  ;;  %v37_v21 = vrot.slane %v28_v18, %v36_v19  ;;  %vm204_vm4 = vcmp.gt.f32.partialorder %v176_v52, 0.5  ;;  %vm326_vm5 = vcmp.gt.f32.partialorder %v2075_v56, 0.5 }
   0x8   :  { %2202 = vmatpush3.bf16.msra.mxu0 %v2335_v7  ;;  %2205 = vmatprep.mubr.msk.bf16.mxu0 %vm2495_vm1, %v2494_v2  ;;  %v2573_v9 = vld [vmem:[#allocation4] sm:$0x3]  ;;  %v205_v59 = vsel %vm204_vm4, 1, %v2493_v1  ;;  %v327_v61 = vsel %vm326_vm5, 1, %v2493_v1 }
   0x9   :  { %2203 = vmatprep.subr.bf16.mxu0 %v2494_v2  ;;  %v2576_v10 = vld [vmem:[#allocation6] sm:$0x3]  ;;  %v175_v11 = vld [vmem:[#allocation5] sm:$0x3]  ;;  %2196 = vmatpush3.bf16.msra.mxu1 %v2334_v6  ;;  %v113_v12 = vpack.c.bf16 %v2573_v9, %v2573_v9 }
   0xa   :  { %184 = vrot.lane.b32.xlu1 %v175_v11, %s2496_s9  ;;  %v296_v13 = vld [vmem:[#allocation7] sm:$0x3]  ;;  %v235_v14 = vpack.c.bf16 %v2576_v10, %v2576_v10  ;;  %2209 = vmatprep.subr.bf16.mxu1 %v2494_v2 }
   0xc   :  { %2204 = vmatpush3.bf16.msra.mxu0 %v2336_v8  ;;  %2198 = vmatmul.mubr.msk.bf16.vlgmr.msra.gmra.mrb[0].mxu1 %vm130_vm3, %v113_v12  ;;  %v2337_v12 = vld [vmem:[%s3299_s2] sm:$0xff]  }
   0xd   :  { %2217 = vmatprep.subr.bf16.mxu0 %v2494_v2  ;;  %2213 = vmatprep.mubr.msk.bf16.mxu1 %vm2495_vm1, %v2494_v2 }
   0xe   :  { %306 = vrot.lane.b32.xlu1 %v296_v13, %s2496_s9  ;;  %2210 = vmatpush3.bf16.msra.mxu1 %v2337_v12 }
   0xf   :  { %2206 = vmatmul.mubr.msk.bf16.vlgmr.msra.gmra.mrb[4].mxu0 %vm130_vm3, %v235_v14  ;;  %2211 = vmatprep.subr.bf16.mxu1 %v2494_v2  ;;  %v2338_v14 = vld [vmem:[%s3299_s2 + $0x8] sm:$0xff]  }
  0x10   :  { %2221 = vmatprep.mubr.msk.bf16.mxu0 %vm2495_vm1, %v2494_v2 }
  0x12   :  { %2212 = vmatpush3.bf16.msra.mxu1 %v2338_v14 }
  0x13   :  { %2225 = vmatprep.subr.bf16.mxu1 %v2494_v2 }
  0x7c   :  { %v185_v62 = vpop.permute.xlu1 %184 }
  0x80   :  { %v307_v0 = vpop.permute.xlu1 %306 }
  0xda   :  { %v93_v22 = vpop.f32.mrb[0].mxu0 }
  0xdb   :  { %v94_v23 = vadd.f32 %v93_v22, %v33_v20  ;;  %v95_v24 = vpop.f32.mrb[1].mxu0 }
  0xdc   :  { %v96_v25 = vadd.f32 %v95_v24, %v37_v21  ;;  %v97_v26 = vpop.f32.mrb[2].mxu0 }
  0xdd   :  { %102 = vst [vmem:[#allocation2] sm:$0xff] %v94_v23  ;;  %v98_v27 = vadd.f32 %v97_v26, %v33_v20  ;;  %v99_v28 = vpop.f32.mrb[3].mxu0 }
  0xde   :  { %104 = vst [vmem:[#allocation3] sm:$0xff] %v96_v25  ;;  %v100_v29 = vadd.f32 %v99_v28, %v37_v21 }
  0xdf   :  { %103 = vst [vmem:[#allocation2 + $0x8] sm:$0xff] %v98_v27  ;;  %v168_v30 = vpop.f32.mrb[0].mxu1 }
  0xe0   :  { %105 = vst [vmem:[#allocation3 + $0x8] sm:$0xff] %v100_v29  ;;  %v2199_v31 = vpop.f32.mrb[1].mxu1 }
  0xe1   :  { %v171_v32 = vpop.f32.mrb[2].mxu1 }
  0xe2   :  { %v289_v33 = vpop.f32.mrb[4].mxu0  ;;  %v2200_v34 = vpop.f32.mrb[3].mxu1 }
  0xe3   :  { %v2207_v35 = vpop.f32.mrb[5].mxu0 }
  0xe4   :  { %v111_v36 = vld [vmem:[#allocation2] sm:$0x3]  ;;  %v292_v37 = vpop.f32.mrb[6].mxu0  ;;  %v357_v34 = vld [vmem:[#allocation2 + $0x2] sm:$0x3] }
  0xe5   :  { %v174_v38 = vadd.f32 %v168_v30, %v111_v36  ;;  %v2208_v39 = vpop.f32.mrb[7].mxu0 }
  0xe7   :  { %2365 = vtanh.f32 %v174_v38  ;;  %v233_v40 = vld [vmem:[#allocation3 + $0xe] sm:$0x3]  ;;  %v177_v44 = vsub.f32 0.0, %v174_v38 }
  0xe8   :  { %v295_v41 = vadd.f32 %v289_v33, %v233_v40  ;;  %v480_v40 = vld [vmem:[#allocation3 + $0xc] sm:$0x3] }
  0xe9   :  { %v178_v45 = vmul.f32 1.442695, %v177_v44 }
  0xea   :  { %2367 = vtanh.f32 %v295_v41  ;;  %v299_v46 = vsub.f32 0.0, %v295_v41 }
  0xeb   :  { %2369 = vpow2.f32 %v178_v45 }
  0xec   :  { %v300_v47 = vmul.f32 1.442695, %v299_v46 }
  0xee   :  { %2371 = vpow2.f32 %v300_v47 }
  0xf1   :  { %v2366_v42 = vpop.eup %2365 }
  0xf2   :  { %189 = vrot.lane.b32.xlu0 %v2366_v42, %s2497_s4 }
  0xf4   :  { %v2368_v43 = vpop.eup %2367 }
  0xf5   :  { %v2370_v48 = vpop.eup %2369 }
  0xf6   :  { %311 = vrot.lane.b32.xlu0 %v2368_v43, %s2497_s4  ;;  %v180_v49 = vadd.f32 1.0, %v2370_v48 }
  0xf8   :  { %v2372_v50 = vpop.eup %2371  ;;  %2373 = vrcp.f32 %v180_v49 }
  0xf9   :  { %v302_v51 = vadd.f32 1.0, %v2372_v50 }
  0xfb   :  { %2375 = vrcp.f32 %v302_v51 }
 0x102   :  { %v2374_v53 = vpop.eup %2373 }
 0x103   :  { %v187_v63 = vmul.f32 %v2374_v53, %v185_v62 }
 0x105   :  { %v2376_v57 = vpop.eup %2375 }
 0x106   :  { %v309_v5 = vmul.f32 %v2376_v57, %v307_v0 }
 0x164   :  { %v190_v54 = vpop.permute.xlu0 %189 }
 0x165   :  { %v192_v55 = vmul.f32 %v2374_v53, %v190_v54 }
 0x167   :  { %194 = vrot.lane.b32.xlu0 %v192_v55, %s2496_s9 }
 0x168   :  { %v312_v58 = vpop.permute.xlu0 %311 }
 0x169   :  { %v314_v60 = vmul.f32 %v2376_v57, %v312_v58  ;;  %v2080_v58 = vld [vmem:[%s3302_s5 + $0x2] sm:$0x3] }
 0x16a   :  { %vm450_vm8 = vcmp.gt.f32.partialorder %v2080_v58, 0.5 }
 0x16b   :  { %316 = vrot.lane.b32.xlu1 %v314_v60, %s2496_s9  ;;  %207 = vperm.xlu0 %2327, %v205_v59  }
 0x16f   :  { %329 = vperm.xlu1 %2328, %v327_v61  }
 0x1d9   :  { %v195_v3 = vpop.permute.xlu0 %194 }
 0x1da   :  { %v197_v4 = vadd.f32 %v195_v3, %v187_v63  ;;  %v451_v63 = vsel %vm450_vm8, 1, %v2493_v1 }
 0x1dc   :  { %2377 = vtanh.f32 %v197_v4 }
 0x1dd   :  { %v317_v6 = vpop.permute.xlu1 %316 }
 0x1de   :  { %v319_v7 = vadd.f32 %v317_v6, %v309_v5 }
 0x1e0   :  { %2379 = vtanh.f32 %v319_v7 }
 0x1e6   :  { %v2378_v8 = vpop.eup %2377 }
 0x1e7   :  { %200 = vrot.lane.b32.xlu1 %v2378_v8, %s2497_s4 }
 0x1ea   :  { %v2380_v11 = vpop.eup %2379 }
 0x1eb   :  { %322 = vrot.lane.b32.xlu0 %v2380_v11, %s2497_s4  ;;  %211 = vrot.lane.b32.xlu1 %v2573_v9, %s2498_s16  ;;  %v2339_v9 = vld [vmem:[%s3300_s3] sm:$0xff]  }
 0x1ec   :  { %2218 = vmatpush3.bf16.msra.mxu0 %v2339_v9 }
 0x1ed   :  { %2219 = vmatprep.subr.bf16.mxu0 %v2494_v2 }
 0x1ee   :  { %v2616_v13 = vpop.permute.xlu1 %329 }
 0x1ef   :  { %333 = vrot.lane.b32.xlu0 %v2576_v10, %s2498_s16  ;;  %v2625_v10 = vpop.permute.xlu0 %207  ;;  %vm331_vm7 = vcmp.eq.s32.totalorder %v2616_v13, 1 }
 0x1f0   :  { %vm209_vm6 = vcmp.eq.s32.totalorder %v2625_v10, 1  ;;  %2220 = vmatpush3.bf16.msra.mxu0 %v2340_v16  ;;  %v337_v25 = vsel %vm331_vm7, %v319_v7, %v307_v0 }
 0x1f1   :  { %2233 = vmatprep.subr.bf16.mxu0 %v2494_v2  ;;  %v215_v24 = vsel %vm209_vm6, %v197_v4, %v185_v62  ;;  %v2085_v62 = vld [vmem:[%s3302_s5 + $0xc] sm:$0x3] }
 0x1f2   :  { %vm573_vm9 = vcmp.gt.f32.partialorder %v2085_v62, 0.5 }
 0x1f3   :  { %v574_v5 = vsel %vm573_vm9, 1, %v2493_v1 }
 0x259   :  { %v201_v15 = vpop.permute.xlu1 %200 }
 0x25a   :  { %v2632_v17 = vmul.f32 %v2374_v53, %v201_v15 }
 0x25d   :  { %v323_v18 = vpop.permute.xlu0 %322  ;;  %v212_v19 = vpop.permute.xlu1 %211 }
 0x25e   :  { %v214_v20 = vsel %vm209_vm6, %v2632_v17, %v212_v19  ;;  %v2640_v21 = vmul.f32 %v2376_v57, %v323_v18  ;;  %v2341_v19 = vld [vmem:[%s3299_s2] sm:$0xff]  }
 0x25f   :  { %218 = vrot.lane.b32.xlu1 %v214_v20, %s2496_s9 }
 0x261   :  { %v334_v22 = vpop.permute.xlu0 %333 }
 0x262   :  { %v336_v23 = vsel %vm331_vm7, %v2640_v21, %v334_v22  ;;  %v2342_v22 = vld [vmem:[%s3299_s2 + $0x8] sm:$0xff]  }
 0x263   :  { %340 = vrot.lane.b32.xlu0 %v336_v23, %s2496_s9  ;;  %223 = vrot.lane.b32.xlu1 %v215_v24, %s2498_s16  ;;  %v2343_v23 = vld [vmem:[%s3300_s3] sm:$0xff]  }
 0x267   :  { %345 = vrot.lane.b32.xlu0 %v337_v25, %s2498_s16 }
 0x2d1   :  { %v219_v26 = vpop.permute.xlu1 %218 }
 0x2d2   :  { %221 = vst.msk [vmem:[#allocation4] sm:$0x3] %vm3304_vm0, %v219_v26 }
 0x2d5   :  { %v341_v27 = vpop.permute.xlu0 %340  ;;  %v224_v28 = vpop.permute.xlu1 %223 }
 0x2d6   :  { %343 = vst.msk [vmem:[#allocation6] sm:$0x3] %vm3304_vm0, %v341_v27  ;;  %226 = vst.msk [vmem:[#allocation5] sm:$0x3] %vm3304_vm0, %v224_v28  ;;  %v2344_v27 = vld [vmem:[%s3300_s3 + $0x8] sm:$0xff]  }
 0x2d9   :  { %v346_v29 = vpop.permute.xlu0 %345  ;;  %v2656_v30 = vld [vmem:[#allocation4] sm:$0x3] }
 0x2da   :  { %348 = vst.msk [vmem:[#allocation7] sm:$0x3] %vm3304_vm0, %v346_v29  ;;  %v359_v31 = vpack.c.bf16 %v2656_v30, %v2656_v30 }
 0x2dc   :  { %2214 = vmatmul.mubr.msk.bf16.vlgmr.msra.gmra.mrb[4].mxu1 %vm130_vm3, %v359_v31 }
 0x2dd   :  { %v2662_v32 = vld [vmem:[#allocation6] sm:$0x3]  ;;  %2229 = vmatprep.mubr.msk.bf16.mxu1 %vm2495_vm1, %v2494_v2  ;;  %v420_v47 = vld [vmem:[#allocation5] sm:$0x3]  ;;  %2226 = vmatpush3.bf16.msra.mxu1 %v2341_v19 }
 0x2de   :  { %v482_v33 = vpack.c.bf16 %v2662_v32, %v2662_v32  ;;  %2227 = vmatprep.subr.bf16.mxu1 %v2494_v2 }
 0x2e0   :  { %2222 = vmatmul.mubr.msk.bf16.vlgmr.msra.gmra.mrb[8].mxu0 %vm130_vm3, %v482_v33 }
 0x2e1   :  { %2237 = vmatprep.mubr.msk.bf16.mxu0 %vm2495_vm1, %v2494_v2  ;;  %v543_v49 = vld [vmem:[#allocation7] sm:$0x3]  ;;  %2228 = vmatpush3.bf16.msra.mxu1 %v2342_v22 }
 0x2e2   :  { %2234 = vmatpush3.bf16.msra.mxu0 %v2343_v23  ;;  %2241 = vmatprep.subr.bf16.mxu1 %v2494_v2 }
 0x2e3   :  { %2235 = vmatprep.subr.bf16.mxu0 %v2494_v2 }
 0x2e6   :  { %2236 = vmatpush3.bf16.msra.mxu0 %v2344_v27 }
 0x2e7   :  { %2249 = vmatprep.subr.bf16.mxu0 %v2494_v2 }
 0x3af   :  { %v413_v35 = vpop.f32.mrb[4].mxu1 }
 0x3b0   :  { %v419_v36 = vadd.f32 %v413_v35, %v357_v34  ;;  %v2215_v37 = vpop.f32.mrb[5].mxu1 }
 0x3b1   :  { %v416_v38 = vpop.f32.mrb[6].mxu1 }
 0x3b2   :  { %2381 = vtanh.f32 %v419_v36  ;;  %v2216_v39 = vpop.f32.mrb[7].mxu1  ;;  %v423_v50 = vsub.f32 0.0, %v419_v36 }
 0x3b3   :  { %v536_v41 = vpop.f32.mrb[8].mxu0 }
 0x3b4   :  { %v542_v42 = vadd.f32 %v536_v41, %v480_v40  ;;  %v2223_v43 = vpop.f32.mrb[9].mxu0  ;;  %v424_v51 = vmul.f32 1.442695, %v423_v50  ;;  %v726_v50 = vld [vmem:[#allocation3 + $0xa] sm:$0x3] }
 0x3b5   :  { %v539_v44 = vpop.f32.mrb[10].mxu0 }
 0x3b6   :  { %v2224_v45 = vpop.f32.mrb[11].mxu0  ;;  %2383 = vtanh.f32 %v542_v42  ;;  %v546_v52 = vsub.f32 0.0, %v542_v42  ;;  %v603_v44 = vld [vmem:[#allocation2 + $0x4] sm:$0x3] }
 0x3b7   :  { %2385 = vpow2.f32 %v424_v51 }
 0x3b8   :  { %v547_v53 = vmul.f32 1.442695, %v546_v52 }
 0x3ba   :  { %2387 = vpow2.f32 %v547_v53 }
 0x3bc   :  { %v2382_v46 = vpop.eup %2381 }
 0x3bd   :  { %435 = vrot.lane.b32.xlu1 %v2382_v46, %s2497_s4 }
 0x3c0   :  { %v2384_v48 = vpop.eup %2383 }
 0x3c1   :  { %430 = vrot.lane.b32.xlu1 %v420_v47, %s2496_s9  ;;  %558 = vrot.lane.b32.xlu0 %v2384_v48, %s2497_s4  ;;  %v2386_v54 = vpop.eup %2385 }
 0x3c2   :  { %v426_v55 = vadd.f32 1.0, %v2386_v54 }
 0x3c4   :  { %v2388_v56 = vpop.eup %2387  ;;  %2389 = vrcp.f32 %v426_v55 }
 0x3c5   :  { %553 = vrot.lane.b32.xlu0 %v543_v49, %s2496_s9  ;;  %v549_v57 = vadd.f32 1.0, %v2388_v56 }
 0x3c7   :  { %2391 = vrcp.f32 %v549_v57 }
 0x3ce   :  { %v2390_v59 = vpop.eup %2389 }
 0x3d1   :  { %v2392_v0 = vpop.eup %2391 }
 0x42f   :  { %v436_v60 = vpop.permute.xlu1 %435 }
 0x430   :  { %v438_v61 = vmul.f32 %v2390_v59, %v436_v60 }
 0x432   :  { %440 = vrot.lane.b32.xlu1 %v438_v61, %s2496_s9 }
 0x433   :  { %v559_v3 = vpop.permute.xlu0 %558  ;;  %v431_v6 = vpop.permute.xlu1 %430 }
 0x434   :  { %v561_v4 = vmul.f32 %v2392_v0, %v559_v3  ;;  %v433_v7 = vmul.f32 %v2390_v59, %v431_v6 }
 0x436   :  { %453 = vperm.xlu1 %2328, %v451_v63   ;;  %563 = vrot.lane.b32.xlu0 %v561_v4, %s2496_s9 }
 0x437   :  { %v554_v11 = vpop.permute.xlu0 %553 }
 0x438   :  { %v556_v14 = vmul.f32 %v2392_v0, %v554_v11 }
 0x43a   :  { %576 = vperm.xlu0 %2327, %v574_v5  }
 0x4a4   :  { %v441_v8 = vpop.permute.xlu1 %440 }
 0x4a5   :  { %v443_v12 = vadd.f32 %v441_v8, %v433_v7 }
 0x4a7   :  { %2393 = vtanh.f32 %v443_v12 }
 0x4a8   :  { %v564_v9 = vpop.permute.xlu0 %563 }
 0x4a9   :  { %v566_v15 = vadd.f32 %v564_v9, %v556_v14 }
 0x4ab   :  { %2395 = vtanh.f32 %v566_v15 }
 0x4b1   :  { %v2394_v16 = vpop.eup %2393 }
 0x4b2   :  { %446 = vrot.lane.b32.xlu1 %v2394_v16, %s2497_s4 }
 0x4b5   :  { %v2396_v18 = vpop.eup %2395  ;;  %v2694_v20 = vpop.permute.xlu1 %453 }
 0x4b6   :  { %457 = vrot.lane.b32.xlu1 %v2656_v30, %s2498_s16  ;;  %569 = vrot.lane.b32.xlu0 %v2396_v18, %s2497_s4  ;;  %vm455_vm10 = vcmp.eq.s32.totalorder %v2694_v20, 1 }
 0x4b7   :  { %v461_v33 = vsel %vm455_vm10, %v443_v12, %v431_v6  ;;  %v2090_v6 = vld [vmem:[%s3302_s5 + $0x4] sm:$0x3]  ;;  %v2095_v12 = vld [vmem:[%s3302_s5 + $0xa] sm:$0x3] }
 0x4b8   :  { %vm696_vm12 = vcmp.gt.f32.partialorder %v2090_v6, 0.5  ;;  %vm819_vm13 = vcmp.gt.f32.partialorder %v2095_v12, 0.5 }
 0x4b9   :  { %v2703_v25 = vpop.permute.xlu0 %576  ;;  %v697_v14 = vsel %vm696_vm12, 1, %v2493_v1  ;;  %v820_v18 = vsel %vm819_vm13, 1, %v2493_v1 }
 0x4ba   :  { %580 = vrot.lane.b32.xlu0 %v2662_v32, %s2498_s16  ;;  %vm578_vm11 = vcmp.eq.s32.totalorder %v2703_v25, 1 }
 0x4bb   :  { %v584_v35 = vsel %vm578_vm11, %v566_v15, %v554_v11 }
 0x524   :  { %v447_v24 = vpop.permute.xlu1 %446 }
 0x525   :  { %v2707_v26 = vmul.f32 %v2390_v59, %v447_v24 }
 0x528   :  { %v458_v28 = vpop.permute.xlu1 %457  ;;  %v570_v29 = vpop.permute.xlu0 %569 }
 0x529   :  { %v460_v30 = vsel %vm455_vm10, %v2707_v26, %v458_v28  ;;  %v2718_v31 = vmul.f32 %v2392_v0, %v570_v29 }
 0x52a   :  { %464 = vrot.lane.b32.xlu1 %v460_v30, %s2496_s9 }
 0x52c   :  { %v581_v32 = vpop.permute.xlu0 %580 }
 0x52d   :  { %v583_v34 = vsel %vm578_vm11, %v2718_v31, %v581_v32 }
 0x52e   :  { %469 = vrot.lane.b32.xlu1 %v461_v33, %s2498_s16  ;;  %587 = vrot.lane.b32.xlu0 %v583_v34, %s2496_s9  ;;  %v2345_v34 = vld [vmem:[%s3299_s2] sm:$0xff]  }
 0x532   :  { %592 = vrot.lane.b32.xlu0 %v584_v35, %s2498_s16 }
 0x59c   :  { %v465_v36 = vpop.permute.xlu1 %464 }
 0x59d   :  { %467 = vst.msk [vmem:[#allocation4] sm:$0x3] %vm3304_vm0, %v465_v36  ;;  %v2346_v36 = vld [vmem:[%s3299_s2 + $0x8] sm:$0xff]  }
 0x5a0   :  { %v470_v37 = vpop.permute.xlu1 %469  ;;  %v588_v38 = vpop.permute.xlu0 %587 }
 0x5a1   :  { %472 = vst.msk [vmem:[#allocation5] sm:$0x3] %vm3304_vm0, %v470_v37  ;;  %590 = vst.msk [vmem:[#allocation6] sm:$0x3] %vm3304_vm0, %v588_v38  ;;  %v2347_v37 = vld [vmem:[%s3300_s3] sm:$0xff]  }
 0x5a4   :  { %v2734_v39 = vld [vmem:[#allocation4] sm:$0x3]  ;;  %v593_v40 = vpop.permute.xlu0 %592 }
 0x5a5   :  { %v605_v41 = vpack.c.bf16 %v2734_v39, %v2734_v39  ;;  %595 = vst.msk [vmem:[#allocation7] sm:$0x3] %vm3304_vm0, %v593_v40 }
 0x5a7   :  { %2230 = vmatmul.mubr.msk.bf16.vlgmr.msra.gmra.mrb[8].mxu1 %vm130_vm3, %v605_v41  ;;  %v2348_v41 = vld [vmem:[%s3300_s3 + $0x8] sm:$0xff]  }
 0x5a8   :  { %2245 = vmatprep.mubr.msk.bf16.mxu1 %vm2495_vm1, %v2494_v2  ;;  %v2742_v42 = vld [vmem:[#allocation6] sm:$0x3]  ;;  %v666_v57 = vld [vmem:[#allocation5] sm:$0x3]  ;;  %2242 = vmatpush3.bf16.msra.mxu1 %v2345_v34 }
 0x5a9   :  { %v728_v43 = vpack.c.bf16 %v2742_v42, %v2742_v42  ;;  %2243 = vmatprep.subr.bf16.mxu1 %v2494_v2 }
 0x5ab   :  { %2238 = vmatmul.mubr.msk.bf16.vlgmr.msra.gmra.mrb[12].mxu0 %vm130_vm3, %v728_v43 }
 0x5ac   :  { %2253 = vmatprep.mubr.msk.bf16.mxu0 %vm2495_vm1, %v2494_v2  ;;  %v789_v59 = vld [vmem:[#allocation7] sm:$0x3]  ;;  %2244 = vmatpush3.bf16.msra.mxu1 %v2346_v36 }
 0x5ad   :  { %2250 = vmatpush3.bf16.msra.mxu0 %v2347_v37  ;;  %2257 = vmatprep.subr.bf16.mxu1 %v2494_v2 }
 0x5ae   :  { %2251 = vmatprep.subr.bf16.mxu0 %v2494_v2 }
 0x5b1   :  { %2252 = vmatpush3.bf16.msra.mxu0 %v2348_v41 }
 0x5b2   :  { %2265 = vmatprep.subr.bf16.mxu0 %v2494_v2 }
 0x67a   :  { %v659_v45 = vpop.f32.mrb[8].mxu1 }
 0x67b   :  { %v665_v46 = vadd.f32 %v659_v45, %v603_v44  ;;  %v2231_v47 = vpop.f32.mrb[9].mxu1 }
 0x67c   :  { %v662_v48 = vpop.f32.mrb[10].mxu1 }
 0x67d   :  { %2397 = vtanh.f32 %v665_v46  ;;  %v2232_v49 = vpop.f32.mrb[11].mxu1  ;;  %v669_v60 = vsub.f32 0.0, %v665_v46 }
 0x67e   :  { %v782_v51 = vpop.f32.mrb[12].mxu0 }
 0x67f   :  { %v788_v52 = vadd.f32 %v782_v51, %v726_v50  ;;  %v2239_v53 = vpop.f32.mrb[13].mxu0  ;;  %v670_v61 = vmul.f32 1.442695, %v669_v60 }
 0x680   :  { %v785_v54 = vpop.f32.mrb[14].mxu0 }
 0x681   :  { %2399 = vtanh.f32 %v788_v52  ;;  %v2240_v55 = vpop.f32.mrb[15].mxu0  ;;  %v792_v62 = vsub.f32 0.0, %v788_v52 }
 0x682   :  { %2401 = vpow2.f32 %v670_v61 }
 0x683   :  { %v793_v63 = vmul.f32 1.442695, %v792_v62 }
 0x685   :  { %2403 = vpow2.f32 %v793_v63 }
 0x687   :  { %v2398_v56 = vpop.eup %2397 }
 0x688   :  { %681 = vrot.lane.b32.xlu1 %v2398_v56, %s2497_s4 }
 0x68b   :  { %v2400_v58 = vpop.eup %2399 }
 0x68c   :  { %676 = vrot.lane.b32.xlu1 %v666_v57, %s2496_s9  ;;  %804 = vrot.lane.b32.xlu0 %v2400_v58, %s2497_s4  ;;  %v2402_v0 = vpop.eup %2401  ;;  %v849_v58 = vld [vmem:[#allocation2 + $0x6] sm:$0x3] }
 0x68d   :  { %v672_v3 = vadd.f32 1.0, %v2402_v0  ;;  %v972_v0 = vld [vmem:[#allocation3 + $0x8] sm:$0x3] }
 0x68f   :  { %v2404_v4 = vpop.eup %2403  ;;  %2405 = vrcp.f32 %v672_v3 }
 0x690   :  { %799 = vrot.lane.b32.xlu0 %v789_v59, %s2496_s9  ;;  %v795_v5 = vadd.f32 1.0, %v2404_v4 }
 0x692   :  { %2407 = vrcp.f32 %v795_v5 }
 0x699   :  { %v2406_v7 = vpop.eup %2405 }
 0x69c   :  { %v2408_v9 = vpop.eup %2407 }
 0x6fa   :  { %v682_v8 = vpop.permute.xlu1 %681 }
 0x6fb   :  { %v684_v11 = vmul.f32 %v2406_v7, %v682_v8 }
 0x6fd   :  { %686 = vrot.lane.b32.xlu1 %v684_v11, %s2496_s9 }
 0x6fe   :  { %v805_v15 = vpop.permute.xlu0 %804  ;;  %v677_v19 = vpop.permute.xlu1 %676 }
 0x6ff   :  { %v807_v16 = vmul.f32 %v2408_v9, %v805_v15  ;;  %v679_v22 = vmul.f32 %v2406_v7, %v677_v19 }
 0x701   :  { %699 = vperm.xlu1 %2328, %v697_v14   ;;  %809 = vrot.lane.b32.xlu0 %v807_v16, %s2496_s9 }
 0x702   :  { %v800_v24 = vpop.permute.xlu0 %799 }
 0x703   :  { %v802_v28 = vmul.f32 %v2408_v9, %v800_v24 }
 0x705   :  { %822 = vperm.xlu0 %2327, %v820_v18  }
 0x76f   :  { %v687_v23 = vpop.permute.xlu1 %686 }
 0x770   :  { %v689_v27 = vadd.f32 %v687_v23, %v679_v22 }
 0x772   :  { %2409 = vtanh.f32 %v689_v27 }
 0x773   :  { %v810_v29 = vpop.permute.xlu0 %809 }
 0x774   :  { %v812_v30 = vadd.f32 %v810_v29, %v802_v28 }
 0x776   :  { %2411 = vtanh.f32 %v812_v30 }
 0x77c   :  { %v2410_v32 = vpop.eup %2409 }
 0x77d   :  { %692 = vrot.lane.b32.xlu1 %v2410_v32, %s2497_s4  ;;  %v2105_v32 = vld [vmem:[%s3302_s5 + $0x8] sm:$0x3] }
 0x77e   :  { %vm1065_vm4 = vcmp.gt.f32.partialorder %v2105_v32, 0.5 }
 0x780   :  { %v2412_v33 = vpop.eup %2411  ;;  %v2772_v35 = vpop.permute.xlu1 %699 }
 0x781   :  { %703 = vrot.lane.b32.xlu1 %v2734_v39, %s2498_s16  ;;  %815 = vrot.lane.b32.xlu0 %v2412_v33, %s2497_s4  ;;  %vm701_vm14 = vcmp.eq.s32.totalorder %v2772_v35, 1 }
 0x782   :  { %v707_v47 = vsel %vm701_vm14, %v689_v27, %v677_v19  ;;  %v2100_v27 = vld [vmem:[%s3302_s5 + $0x6] sm:$0x3] }
 0x783   :  { %vm942_vm2 = vcmp.gt.f32.partialorder %v2100_v27, 0.5  ;;  %v1216_v27 = vld [vmem:[#allocation3 + $0x6] sm:$0x3] }
 0x784   :  { %v2781_v39 = vpop.permute.xlu0 %822  ;;  %v943_v33 = vsel %vm942_vm2, 1, %v2493_v1 }
 0x785   :  { %826 = vrot.lane.b32.xlu0 %v2742_v42, %s2498_s16  ;;  %vm824_vm15 = vcmp.eq.s32.totalorder %v2781_v39, 1 }
 0x786   :  { %v830_v49 = vsel %vm824_vm15, %v812_v30, %v800_v24 }
 0x7ef   :  { %v693_v38 = vpop.permute.xlu1 %692 }
 0x7f0   :  { %v2785_v40 = vmul.f32 %v2406_v7, %v693_v38  ;;  %v1066_v38 = vsel %vm1065_vm4, 1, %v2493_v1 }
 0x7f2   :  { %v708_v10 = vsel %vm701_vm14, %v2785_v40, 0.0 }
 0x7f3   :  { %v704_v42 = vpop.permute.xlu1 %703  ;;  %v816_v43 = vpop.permute.xlu0 %815 }
 0x7f4   :  { %v706_v44 = vsel %vm701_vm14, %v2785_v40, %v704_v42  ;;  %v2796_v45 = vmul.f32 %v2408_v9, %v816_v43 }
 0x7f5   :  { %710 = vrot.lane.b32.xlu1 %v706_v44, %s2496_s9 }
 0x7f7   :  { %v827_v46 = vpop.permute.xlu0 %826 }
 0x7f8   :  { %v829_v48 = vsel %vm824_vm15, %v2796_v45, %v827_v46 }
 0x7f9   :  { %715 = vrot.lane.b32.xlu1 %v707_v47, %s2498_s16  ;;  %833 = vrot.lane.b32.xlu0 %v829_v48, %s2496_s9 }
 0x7fd   :  { %838 = vrot.lane.b32.xlu0 %v830_v49, %s2498_s16 }
 0x867   :  { %v711_v50 = vpop.permute.xlu1 %710 }
 0x868   :  { %713 = vst.msk [vmem:[#allocation4] sm:$0x3] %vm3304_vm0, %v711_v50 }
 0x86b   :  { %v716_v51 = vpop.permute.xlu1 %715  ;;  %v834_v52 = vpop.permute.xlu0 %833 }
 0x86c   :  { %718 = vst.msk [vmem:[#allocation5] sm:$0x3] %vm3304_vm0, %v716_v51  ;;  %836 = vst.msk [vmem:[#allocation6] sm:$0x3] %vm3304_vm0, %v834_v52  ;;  %v2349_v52 = vld [vmem:[%s3299_s2] sm:$0xff]  }
 0x86f   :  { %v2812_v53 = vld [vmem:[#allocation4] sm:$0x3]  ;;  %v839_v54 = vpop.permute.xlu0 %838 }
 0x870   :  { %v851_v55 = vpack.c.bf16 %v2812_v53, %v2812_v53  ;;  %841 = vst.msk [vmem:[#allocation7] sm:$0x3] %vm3304_vm0, %v839_v54 }
 0x872   :  { %2246 = vmatmul.mubr.msk.bf16.vlgmr.msra.gmra.mrb[12].mxu1 %vm130_vm3, %v851_v55  ;;  %v2350_v55 = vld [vmem:[%s3299_s2 + $0x8] sm:$0xff]  }
 0x873   :  { %2261 = vmatprep.mubr.msk.bf16.mxu1 %vm2495_vm1, %v2494_v2  ;;  %v2820_v56 = vld [vmem:[#allocation6] sm:$0x3]  ;;  %v912_v11 = vld [vmem:[#allocation5] sm:$0x3]  ;;  %2258 = vmatpush3.bf16.msra.mxu1 %v2349_v52 }
 0x874   :  { %v974_v57 = vpack.c.bf16 %v2820_v56, %v2820_v56  ;;  %2259 = vmatprep.subr.bf16.mxu1 %v2494_v2 }
 0x876   :  { %2254 = vmatmul.mubr.msk.bf16.vlgmr.msra.gmra.mrb[16].mxu0 %vm130_vm3, %v974_v57 }
 0x877   :  { %2269 = vmatprep.mubr.msk.bf16.mxu0 %vm2495_vm1, %v2494_v2  ;;  %v1035_v14 = vld [vmem:[#allocation7] sm:$0x3]  ;;  %2260 = vmatpush3.bf16.msra.mxu1 %v2350_v55 }
 0x878   :  { %2273 = vmatprep.subr.bf16.mxu1 %v2494_v2 }
 0x945   :  { %v905_v59 = vpop.f32.mrb[12].mxu1 }
 0x946   :  { %v911_v60 = vadd.f32 %v905_v59, %v849_v58  ;;  %v2247_v61 = vpop.f32.mrb[13].mxu1  ;;  %v2352_v59 = vld [vmem:[%s3300_s3 + $0x8] sm:$0xff]  }
 0x947   :  { %v908_v62 = vpop.f32.mrb[14].mxu1 }
 0x948   :  { %2413 = vtanh.f32 %v911_v60  ;;  %v2248_v63 = vpop.f32.mrb[15].mxu1  ;;  %v915_v9 = vsub.f32 0.0, %v911_v60 }
 0x949   :  { %v1028_v3 = vpop.f32.mrb[16].mxu0 }
 0x94a   :  { %v1034_v4 = vadd.f32 %v1028_v3, %v972_v0  ;;  %v2255_v5 = vpop.f32.mrb[17].mxu0  ;;  %v916_v15 = vmul.f32 1.442695, %v915_v9 }
 0x94b   :  { %v1031_v6 = vpop.f32.mrb[18].mxu0 }
 0x94c   :  { %2415 = vtanh.f32 %v1034_v4  ;;  %v2256_v7 = vpop.f32.mrb[19].mxu0  ;;  %v1038_v16 = vsub.f32 0.0, %v1034_v4 }
 0x94d   :  { %2417 = vpow2.f32 %v916_v15 }
 0x94e   :  { %v1039_v18 = vmul.f32 1.442695, %v1038_v16  ;;  %v1095_v16 = vld [vmem:[#allocation2 + $0x8] sm:$0x3] }
 0x950   :  { %2419 = vpow2.f32 %v1039_v18 }
 0x952   :  { %v2414_v8 = vpop.eup %2413 }
 0x953   :  { %927 = vrot.lane.b32.xlu1 %v2414_v8, %s2497_s4 }
 0x956   :  { %v2416_v12 = vpop.eup %2415 }
 0x957   :  { %922 = vrot.lane.b32.xlu1 %v912_v11, %s2496_s9  ;;  %1050 = vrot.lane.b32.xlu0 %v2416_v12, %s2497_s4  ;;  %v2418_v19 = vpop.eup %2417 }
 0x958   :  { %v918_v22 = vadd.f32 1.0, %v2418_v19 }
 0x95a   :  { %v2420_v23 = vpop.eup %2419  ;;  %2421 = vrcp.f32 %v918_v22 }
 0x95b   :  { %1045 = vrot.lane.b32.xlu0 %v1035_v14, %s2496_s9  ;;  %v1041_v24 = vadd.f32 1.0, %v2420_v23 }
 0x95d   :  { %2423 = vrcp.f32 %v1041_v24 }
 0x964   :  { %v2422_v28 = vpop.eup %2421 }
 0x967   :  { %v2424_v34 = vpop.eup %2423 }
 0x9c5   :  { %v928_v29 = vpop.permute.xlu1 %927 }
 0x9c6   :  { %v930_v30 = vmul.f32 %v2422_v28, %v928_v29 }
 0x9c8   :  { %932 = vrot.lane.b32.xlu1 %v930_v30, %s2496_s9 }
 0x9c9   :  { %v1051_v36 = vpop.permute.xlu0 %1050  ;;  %v923_v41 = vpop.permute.xlu1 %922 }
 0x9ca   :  { %v1053_v37 = vmul.f32 %v2424_v34, %v1051_v36  ;;  %v925_v42 = vmul.f32 %v2422_v28, %v923_v41 }
 0x9cc   :  { %945 = vperm.xlu1 %2328, %v943_v33   ;;  %1055 = vrot.lane.b32.xlu0 %v1053_v37, %s2496_s9 }
 0x9cd   :  { %v1046_v44 = vpop.permute.xlu0 %1045 }
 0x9ce   :  { %v1048_v47 = vmul.f32 %v2424_v34, %v1046_v44 }
 0x9d0   :  { %1068 = vperm.xlu0 %2327, %v1066_v38  }
 0xa3a   :  { %v933_v43 = vpop.permute.xlu1 %932 }
 0xa3b   :  { %v935_v46 = vadd.f32 %v933_v43, %v925_v42 }
 0xa3d   :  { %2425 = vtanh.f32 %v935_v46 }
 0xa3e   :  { %v1056_v48 = vpop.permute.xlu0 %1055 }
 0xa3f   :  { %v1058_v49 = vadd.f32 %v1056_v48, %v1048_v47 }
 0xa41   :  { %2427 = vtanh.f32 %v1058_v49 }
 0xa47   :  { %v2426_v50 = vpop.eup %2425 }
 0xa48   :  { %938 = vrot.lane.b32.xlu1 %v2426_v50, %s2497_s4  ;;  %v2110_v50 = vld [vmem:[%s3302_s5 + $0x8] sm:$0x3] }
 0xa49   :  { %vm1187_vm9 = vcmp.gt.f32.partialorder %v2110_v50, 0.5 }
 0xa4b   :  { %v2428_v51 = vpop.eup %2427  ;;  %v2850_v54 = vpop.permute.xlu1 %945 }
 0xa4c   :  { %949 = vrot.lane.b32.xlu1 %v2812_v53, %s2498_s16  ;;  %1061 = vrot.lane.b32.xlu0 %v2428_v51, %s2497_s4  ;;  %v2351_v53 = vld [vmem:[%s3300_s3] sm:$0xff]   ;;  %vm947_vm5 = vcmp.eq.s32.totalorder %v2850_v54, 1 }
 0xa4d   :  { %2266 = vmatpush3.bf16.msra.mxu0 %v2351_v53  ;;  %v953_v3 = vsel %vm947_vm5, %v935_v46, %v923_v41  ;;  %v2115_v53 = vld [vmem:[%s3302_s5 + $0x6] sm:$0x3] }
 0xa4e   :  { %2267 = vmatprep.subr.bf16.mxu0 %v2494_v2  ;;  %vm1308_vm12 = vcmp.gt.f32.partialorder %v2115_v53, 0.5  ;;  %v1458_v53 = vld [vmem:[#allocation3 + $0x4] sm:$0x3] }
 0xa50   :  { %1072 = vrot.lane.b32.xlu0 %v2820_v56, %s2498_s16  ;;  %v2859_v56 = vpop.permute.xlu0 %1068 }
 0xa51   :  { %2268 = vmatpush3.bf16.msra.mxu0 %v2352_v59  ;;  %vm1070_vm8 = vcmp.eq.s32.totalorder %v2859_v56, 1 }
 0xa52   :  { %2281 = vmatprep.subr.bf16.mxu0 %v2494_v2  ;;  %v1076_v5 = vsel %vm1070_vm8, %v1058_v49, %v1046_v44 }
 0xaba   :  { %v939_v57 = vpop.permute.xlu1 %938 }
 0xabb   :  { %v2863_v58 = vmul.f32 %v2422_v28, %v939_v57  ;;  %v1188_v57 = vsel %vm1187_vm9, 1, %v2493_v1 }
 0xabd   :  { %v954_v13 = vsel %vm947_vm5, %v2863_v58, 0.0 }
 0xabe   :  { %v950_v60 = vpop.permute.xlu1 %949  ;;  %v1062_v61 = vpop.permute.xlu0 %1061 }
 0xabf   :  { %v952_v62 = vsel %vm947_vm5, %v2863_v58, %v950_v60  ;;  %v2874_v63 = vmul.f32 %v2424_v34, %v1062_v61 }
 0xac0   :  { %956 = vrot.lane.b32.xlu1 %v952_v62, %s2496_s9  ;;  %v1309_v62 = vsel %vm1308_vm12, 1, %v2493_v1 }
 0xac1   :  { %v1077_v25 = vsel %vm1070_vm8, %v2874_v63, 0.0 }
 0xac2   :  { %v1073_v0 = vpop.permute.xlu0 %1072 }
 0xac3   :  { %v1075_v4 = vsel %vm1070_vm8, %v2874_v63, %v1073_v0 }
 0xac4   :  { %961 = vrot.lane.b32.xlu1 %v953_v3, %s2498_s16  ;;  %1079 = vrot.lane.b32.xlu0 %v1075_v4, %s2496_s9 }
 0xac8   :  { %1084 = vrot.lane.b32.xlu0 %v1076_v5, %s2498_s16 }
 0xb32   :  { %v957_v6 = vpop.permute.xlu1 %956 }
 0xb33   :  { %959 = vst.msk [vmem:[#allocation4] sm:$0x3] %vm3304_vm0, %v957_v6 }
 0xb36   :  { %v962_v7 = vpop.permute.xlu1 %961  ;;  %v1080_v8 = vpop.permute.xlu0 %1079 }
 0xb37   :  { %964 = vst.msk [vmem:[#allocation5] sm:$0x3] %vm3304_vm0, %v962_v7  ;;  %1082 = vst.msk [vmem:[#allocation6] sm:$0x3] %vm3304_vm0, %v1080_v8 }
 0xb3a   :  { %v2890_v11 = vld [vmem:[#allocation4] sm:$0x3]  ;;  %v1085_v12 = vpop.permute.xlu0 %1084 }
 0xb3b   :  { %v1097_v14 = vpack.c.bf16 %v2890_v11, %v2890_v11  ;;  %1087 = vst.msk [vmem:[#allocation7] sm:$0x3] %vm3304_vm0, %v1085_v12 }
 0xb3d   :  { %2262 = vmatmul.mubr.msk.bf16.vlgmr.msra.gmra.mrb[16].mxu1 %vm130_vm3, %v1097_v14 }
 0xb3e   :  { %2277 = vmatprep.mubr.msk.bf16.mxu1 %vm2495_vm1, %v2494_v2  ;;  %v2898_v9 = vld [vmem:[#allocation6] sm:$0x3]  ;;  %v1158_v36 = vld [vmem:[#allocation5] sm:$0x3] }
 0xb3f   :  { %v1218_v15 = vpack.c.bf16 %v2898_v9, %v2898_v9 }
 0xb41   :  { %2270 = vmatmul.mubr.msk.bf16.vlgmr.msra.gmra.mrb[20].mxu0 %vm130_vm3, %v1218_v15 }
 0xb42   :  { %2285 = vmatprep.mubr.msk.bf16.mxu0 %vm2495_vm1, %v2494_v2  ;;  %v1279_v38 = vld [vmem:[#allocation7] sm:$0x3] }
 0xc10   :  { %v1151_v18 = vpop.f32.mrb[16].mxu1 }
 0xc11   :  { %v1157_v19 = vadd.f32 %v1151_v18, %v1095_v16  ;;  %v2263_v22 = vpop.f32.mrb[17].mxu1  ;;  %v2353_v16 = vld [vmem:[%s3299_s2] sm:$0xff]  }
 0xc12   :  { %v1154_v23 = vpop.f32.mrb[18].mxu1  ;;  %2274 = vmatpush3.bf16.msra.mxu1 %v2353_v16 }
 0xc13   :  { %2429 = vtanh.f32 %v1157_v19  ;;  %v2264_v24 = vpop.f32.mrb[19].mxu1  ;;  %v1160_v41 = vsub.f32 0.0, %v1157_v19  ;;  %2275 = vmatprep.subr.bf16.mxu1 %v2494_v2  ;;  %v2354_v19 = vld [vmem:[%s3299_s2 + $0x8] sm:$0xff]  }
 0xc14   :  { %v1272_v28 = vpop.f32.mrb[20].mxu0  ;;  %v2356_v24 = vld [vmem:[%s3300_s3 + $0x8] sm:$0xff]  }
 0xc15   :  { %v1278_v29 = vadd.f32 %v1272_v28, %v1216_v27  ;;  %v2271_v30 = vpop.f32.mrb[21].mxu0  ;;  %v1161_v42 = vmul.f32 1.442695, %v1160_v41 }
 0xc16   :  { %v1275_v32 = vpop.f32.mrb[22].mxu0  ;;  %2276 = vmatpush3.bf16.msra.mxu1 %v2354_v19 }
 0xc17   :  { %2431 = vtanh.f32 %v1278_v29  ;;  %v2272_v33 = vpop.f32.mrb[23].mxu0  ;;  %v1281_v43 = vsub.f32 0.0, %v1278_v29  ;;  %2289 = vmatprep.subr.bf16.mxu1 %v2494_v2 }
 0xc18   :  { %2433 = vpow2.f32 %v1161_v42 }
 0xc19   :  { %v1282_v44 = vmul.f32 1.442695, %v1281_v43 }
 0xc1b   :  { %2435 = vpow2.f32 %v1282_v44 }
 0xc1d   :  { %v2430_v34 = vpop.eup %2429 }
 0xc1e   :  { %1172 = vrot.lane.b32.xlu1 %v2430_v34, %s2497_s4 }
 0xc21   :  { %v2432_v37 = vpop.eup %2431 }
 0xc22   :  { %1167 = vrot.lane.b32.xlu1 %v1158_v36, %s2496_s9  ;;  %1293 = vrot.lane.b32.xlu0 %v2432_v37, %s2497_s4  ;;  %v2434_v46 = vpop.eup %2433 }
 0xc23   :  { %v1163_v47 = vadd.f32 1.0, %v2434_v46 }
 0xc25   :  { %v2436_v48 = vpop.eup %2435  ;;  %2437 = vrcp.f32 %v1163_v47 }
 0xc26   :  { %1288 = vrot.lane.b32.xlu0 %v1279_v38, %s2496_s9  ;;  %v1284_v49 = vadd.f32 1.0, %v2436_v48  ;;  %v1337_v48 = vld [vmem:[#allocation2 + $0xa] sm:$0x3] }
 0xc28   :  { %2439 = vrcp.f32 %v1284_v49 }
 0xc2f   :  { %v2438_v51 = vpop.eup %2437 }
 0xc32   :  { %v2440_v59 = vpop.eup %2439 }
 0xc90   :  { %v1173_v52 = vpop.permute.xlu1 %1172 }
 0xc91   :  { %v1175_v55 = vmul.f32 %v2438_v51, %v1173_v52 }
 0xc93   :  { %1177 = vrot.lane.b32.xlu1 %v1175_v55, %s2496_s9 }
 0xc94   :  { %v1294_v60 = vpop.permute.xlu0 %1293  ;;  %v1168_v0 = vpop.permute.xlu1 %1167 }
 0xc95   :  { %v1296_v61 = vmul.f32 %v2440_v59, %v1294_v60  ;;  %v1170_v3 = vmul.f32 %v2438_v51, %v1168_v0 }
 0xc97   :  { %1190 = vperm.xlu1 %2328, %v1188_v57   ;;  %1298 = vrot.lane.b32.xlu0 %v1296_v61, %s2496_s9 }
 0xc98   :  { %v1289_v5 = vpop.permute.xlu0 %1288 }
 0xc99   :  { %v1291_v7 = vmul.f32 %v2440_v59, %v1289_v5 }
 0xc9b   :  { %1311 = vperm.xlu0 %2327, %v1309_v62  }
 0xd05   :  { %v1178_v4 = vpop.permute.xlu1 %1177 }
 0xd06   :  { %v1180_v6 = vadd.f32 %v1178_v4, %v1170_v3 }
 0xd08   :  { %2441 = vtanh.f32 %v1180_v6 }
 0xd09   :  { %v1299_v8 = vpop.permute.xlu0 %1298 }
 0xd0a   :  { %v1301_v12 = vadd.f32 %v1299_v8, %v1291_v7 }
 0xd0c   :  { %2443 = vtanh.f32 %v1301_v12 }
 0xd12   :  { %v2442_v14 = vpop.eup %2441 }
 0xd13   :  { %1183 = vrot.lane.b32.xlu1 %v2442_v14, %s2497_s4 }
 0xd16   :  { %v2444_v15 = vpop.eup %2443  ;;  %v2928_v18 = vpop.permute.xlu1 %1190 }
 0xd17   :  { %1194 = vrot.lane.b32.xlu1 %v2890_v11, %s2498_s16  ;;  %1304 = vrot.lane.b32.xlu0 %v2444_v15, %s2497_s4  ;;  %v2355_v11 = vld [vmem:[%s3300_s3] sm:$0xff]   ;;  %vm1192_vm13 = vcmp.eq.s32.totalorder %v2928_v18, 1 }
 0xd18   :  { %2282 = vmatpush3.bf16.msra.mxu0 %v2355_v11  ;;  %v1198_v33 = vsel %vm1192_vm13, %v1180_v6, %v1168_v0  ;;  %v2120_v11 = vld [vmem:[%s3302_s5 + $0xa] sm:$0x3] }
 0xd19   :  { %2283 = vmatprep.subr.bf16.mxu0 %v2494_v2  ;;  %vm1429_vm4 = vcmp.gt.f32.partialorder %v2120_v11, 0.5 }
 0xd1b   :  { %1315 = vrot.lane.b32.xlu0 %v2898_v9, %s2498_s16  ;;  %v2937_v9 = vpop.permute.xlu0 %1311 }
 0xd1c   :  { %2284 = vmatpush3.bf16.msra.mxu0 %v2356_v24  ;;  %vm1313_vm2 = vcmp.eq.s32.totalorder %v2937_v9, 1 }
 0xd1d   :  { %2297 = vmatprep.subr.bf16.mxu0 %v2494_v2  ;;  %v1319_v36 = vsel %vm1313_vm2, %v1301_v12, %v1289_v5 }
 0xd85   :  { %v1184_v22 = vpop.permute.xlu1 %1183 }
 0xd86   :  { %v2941_v23 = vmul.f32 %v2438_v51, %v1184_v22 }
 0xd88   :  { %v1199_v20 = vsel %vm1192_vm13, %v2941_v23, 0.0 }
 0xd89   :  { %v1195_v27 = vpop.permute.xlu1 %1194  ;;  %v1305_v28 = vpop.permute.xlu0 %1304 }
 0xd8a   :  { %v1197_v29 = vsel %vm1192_vm13, %v2941_v23, %v1195_v27  ;;  %v2952_v30 = vmul.f32 %v2440_v59, %v1305_v28  ;;  %v2125_v28 = vld [vmem:[%s3302_s5 + $0x4] sm:$0x3] }
 0xd8b   :  { %1201 = vrot.lane.b32.xlu1 %v1197_v29, %s2496_s9  ;;  %v1430_v29 = vsel %vm1429_vm4, 1, %v2493_v1  ;;  %vm1550_vm9 = vcmp.gt.f32.partialorder %v2125_v28, 0.5 }
 0xd8d   :  { %v1316_v32 = vpop.permute.xlu0 %1315 }
 0xd8e   :  { %v1318_v34 = vsel %vm1313_vm2, %v2952_v30, %v1316_v32 }
 0xd8f   :  { %1206 = vrot.lane.b32.xlu1 %v1198_v33, %s2498_s16  ;;  %1322 = vrot.lane.b32.xlu0 %v1318_v34, %s2496_s9 }
 0xd93   :  { %1327 = vrot.lane.b32.xlu0 %v1319_v36, %s2498_s16  ;;  %v1551_v36 = vsel %vm1550_vm9, 1, %v2493_v1 }
 0xdfd   :  { %v1202_v37 = vpop.permute.xlu1 %1201 }
 0xdfe   :  { %1204 = vst.msk [vmem:[#allocation4] sm:$0x3] %vm3304_vm0, %v1202_v37 }
 0xe01   :  { %v1207_v38 = vpop.permute.xlu1 %1206  ;;  %v1323_v41 = vpop.permute.xlu0 %1322 }
 0xe02   :  { %1209 = vst.msk [vmem:[#allocation5] sm:$0x3] %vm3304_vm0, %v1207_v38  ;;  %1325 = vst.msk [vmem:[#allocation6] sm:$0x3] %vm3304_vm0, %v1323_v41 }
 0xe05   :  { %v2968_v42 = vld [vmem:[#allocation4] sm:$0x3]  ;;  %v1328_v43 = vpop.permute.xlu0 %1327 }
 0xe06   :  { %v1339_v44 = vpack.c.bf16 %v2968_v42, %v2968_v42  ;;  %1330 = vst.msk [vmem:[#allocation7] sm:$0x3] %vm3304_vm0, %v1328_v43 }
 0xe08   :  { %2278 = vmatmul.mubr.msk.bf16.vlgmr.msra.gmra.mrb[20].mxu1 %vm130_vm3, %v1339_v44 }
 0xe09   :  { %2293 = vmatprep.mubr.msk.bf16.mxu1 %vm2495_vm1, %v2494_v2  ;;  %v2976_v46 = vld [vmem:[#allocation6] sm:$0x3]  ;;  %v1400_v3 = vld [vmem:[#allocation5] sm:$0x3] }
 0xe0a   :  { %v1460_v47 = vpack.c.bf16 %v2976_v46, %v2976_v46 }
 0xe0c   :  { %2286 = vmatmul.mubr.msk.bf16.vlgmr.msra.gmra.mrb[24].mxu0 %vm130_vm3, %v1460_v47 }
 0xe0d   :  { %2301 = vmatprep.mubr.msk.bf16.mxu0 %vm2495_vm1, %v2494_v2  ;;  %v1521_v5 = vld [vmem:[#allocation7] sm:$0x3] }
 0xedb   :  { %v1393_v49 = vpop.f32.mrb[20].mxu1 }
 0xedc   :  { %v1399_v50 = vadd.f32 %v1393_v49, %v1337_v48  ;;  %v2279_v51 = vpop.f32.mrb[21].mxu1 }
 0xedd   :  { %v1396_v52 = vpop.f32.mrb[22].mxu1 }
 0xede   :  { %2445 = vtanh.f32 %v1399_v50  ;;  %v2280_v55 = vpop.f32.mrb[23].mxu1  ;;  %v1402_v6 = vsub.f32 0.0, %v1399_v50  ;;  %v2357_v52 = vld [vmem:[%s3299_s2] sm:$0xff]  }
 0xedf   :  { %v1514_v57 = vpop.f32.mrb[24].mxu0  ;;  %2290 = vmatpush3.bf16.msra.mxu1 %v2357_v52 }
 0xee0   :  { %v1520_v59 = vadd.f32 %v1514_v57, %v1458_v53  ;;  %v2287_v60 = vpop.f32.mrb[25].mxu0  ;;  %v1403_v7 = vmul.f32 1.442695, %v1402_v6  ;;  %2291 = vmatprep.subr.bf16.mxu1 %v2494_v2  ;;  %v2358_v53 = vld [vmem:[%s3299_s2 + $0x8] sm:$0xff]  }
 0xee1   :  { %v1517_v61 = vpop.f32.mrb[26].mxu0  ;;  %v2360_v60 = vld [vmem:[%s3300_s3 + $0x8] sm:$0xff]  }
 0xee2   :  { %2447 = vtanh.f32 %v1520_v59  ;;  %v2288_v62 = vpop.f32.mrb[27].mxu0  ;;  %v1523_v8 = vsub.f32 0.0, %v1520_v59 }
 0xee3   :  { %2449 = vpow2.f32 %v1403_v7  ;;  %2292 = vmatpush3.bf16.msra.mxu1 %v2358_v53 }
 0xee4   :  { %v1524_v12 = vmul.f32 1.442695, %v1523_v8  ;;  %2305 = vmatprep.subr.bf16.mxu1 %v2494_v2 }
 0xee6   :  { %2451 = vpow2.f32 %v1524_v12 }
 0xee8   :  { %v2446_v0 = vpop.eup %2445 }
 0xee9   :  { %1414 = vrot.lane.b32.xlu1 %v2446_v0, %s2497_s4 }
 0xeec   :  { %v2448_v4 = vpop.eup %2447 }
 0xeed   :  { %1409 = vrot.lane.b32.xlu1 %v1400_v3, %s2496_s9  ;;  %1535 = vrot.lane.b32.xlu0 %v2448_v4, %s2497_s4  ;;  %v2450_v14 = vpop.eup %2449 }
 0xeee   :  { %v1405_v15 = vadd.f32 1.0, %v2450_v14 }
 0xef0   :  { %v2452_v16 = vpop.eup %2451  ;;  %2453 = vrcp.f32 %v1405_v15 }
 0xef1   :  { %1530 = vrot.lane.b32.xlu0 %v1521_v5, %s2496_s9  ;;  %v1526_v19 = vadd.f32 1.0, %v2452_v16 }
 0xef3   :  { %2455 = vrcp.f32 %v1526_v19 }
 0xefa   :  { %v2454_v22 = vpop.eup %2453 }
 0xefd   :  { %v2456_v32 = vpop.eup %2455 }
 0xf5b   :  { %v1415_v24 = vpop.permute.xlu1 %1414 }
 0xf5c   :  { %v1417_v27 = vmul.f32 %v2454_v22, %v1415_v24  ;;  %v1579_v24 = vld [vmem:[#allocation2 + $0xc] sm:$0x3] }
 0xf5e   :  { %1419 = vrot.lane.b32.xlu1 %v1417_v27, %s2496_s9 }
 0xf5f   :  { %v1536_v33 = vpop.permute.xlu0 %1535  ;;  %v1410_v37 = vpop.permute.xlu1 %1409 }
 0xf60   :  { %v1538_v34 = vmul.f32 %v2456_v32, %v1536_v33  ;;  %v1412_v38 = vmul.f32 %v2454_v22, %v1410_v37 }
 0xf62   :  { %1432 = vperm.xlu1 %2328, %v1430_v29   ;;  %1540 = vrot.lane.b32.xlu0 %v1538_v34, %s2496_s9  ;;  %v1700_v34 = vld [vmem:[#allocation3 + $0x2] sm:$0x3] }
 0xf63   :  { %v1531_v43 = vpop.permute.xlu0 %1530 }
 0xf64   :  { %v1533_v47 = vmul.f32 %v2456_v32, %v1531_v43 }
 0xf66   :  { %1553 = vperm.xlu0 %2327, %v1551_v36  }
 0xfd0   :  { %v1420_v41 = vpop.permute.xlu1 %1419 }
 0xfd1   :  { %v1422_v44 = vadd.f32 %v1420_v41, %v1412_v38 }
 0xfd3   :  { %2457 = vtanh.f32 %v1422_v44 }
 0xfd4   :  { %v1541_v48 = vpop.permute.xlu0 %1540 }
 0xfd5   :  { %v1543_v49 = vadd.f32 %v1541_v48, %v1533_v47 }
 0xfd7   :  { %2459 = vtanh.f32 %v1543_v49 }
 0xfdd   :  { %v2458_v50 = vpop.eup %2457 }
 0xfde   :  { %1425 = vrot.lane.b32.xlu1 %v2458_v50, %s2497_s4 }
 0xfe1   :  { %v2460_v51 = vpop.eup %2459  ;;  %v3006_v55 = vpop.permute.xlu1 %1432 }
 0xfe2   :  { %1436 = vrot.lane.b32.xlu1 %v2968_v42, %s2498_s16  ;;  %1546 = vrot.lane.b32.xlu0 %v2460_v51, %s2497_s4  ;;  %v2359_v42 = vld [vmem:[%s3300_s3] sm:$0xff]   ;;  %vm1434_vm12 = vcmp.eq.s32.totalorder %v3006_v55, 1 }
 0xfe3   :  { %2298 = vmatpush3.bf16.msra.mxu0 %v2359_v42  ;;  %v1440_v5 = vsel %vm1434_vm12, %v1422_v44, %v1410_v37 }
 0xfe4   :  { %2299 = vmatprep.subr.bf16.mxu0 %v2494_v2 }
 0xfe6   :  { %1557 = vrot.lane.b32.xlu0 %v2976_v46, %s2498_s16  ;;  %v3015_v46 = vpop.permute.xlu0 %1553 }
 0xfe7   :  { %2300 = vmatpush3.bf16.msra.mxu0 %v2360_v60  ;;  %vm1555_vm4 = vcmp.eq.s32.totalorder %v3015_v46, 1 }
 0xfe8   :  { %2313 = vmatprep.subr.bf16.mxu0 %v2494_v2  ;;  %v1561_v7 = vsel %vm1555_vm4, %v1543_v49, %v1531_v43 }
0x1050   :  { %v1426_v57 = vpop.permute.xlu1 %1425 }
0x1051   :  { %v3019_v59 = vmul.f32 %v2454_v22, %v1426_v57 }
0x1054   :  { %v1437_v61 = vpop.permute.xlu1 %1436  ;;  %v1547_v62 = vpop.permute.xlu0 %1546 }
0x1055   :  { %v1439_v0 = vsel %vm1434_vm12, %v3019_v59, %v1437_v61  ;;  %v3030_v3 = vmul.f32 %v2456_v32, %v1547_v62  ;;  %v2130_v62 = vld [vmem:[%s3302_s5 + $0xc] sm:$0x3] }
0x1056   :  { %1443 = vrot.lane.b32.xlu1 %v1439_v0, %s2496_s9 }
0x1057   :  { %v1562_v39 = vsel %vm1555_vm4, %v3030_v3, 0.0 }
0x1058   :  { %v1558_v4 = vpop.permute.xlu0 %1557 }
0x1059   :  { %v1560_v6 = vsel %vm1555_vm4, %v3030_v3, %v1558_v4 }
0x105a   :  { %1448 = vrot.lane.b32.xlu1 %v1440_v5, %s2498_s16  ;;  %1564 = vrot.lane.b32.xlu0 %v1560_v6, %s2496_s9  ;;  %v2135_v6 = vld [vmem:[%s3302_s5 + $0x2] sm:$0x3] }
0x105b   :  { %vm1792_vm9 = vcmp.gt.f32.partialorder %v2135_v6, 0.5 }
0x105e   :  { %1569 = vrot.lane.b32.xlu0 %v1561_v7, %s2498_s16 }
0x10c8   :  { %v1444_v8 = vpop.permute.xlu1 %1443 }
0x10c9   :  { %1446 = vst.msk [vmem:[#allocation4] sm:$0x3] %vm3304_vm0, %v1444_v8 }
0x10cc   :  { %v1449_v12 = vpop.permute.xlu1 %1448  ;;  %v1565_v14 = vpop.permute.xlu0 %1564 }
0x10cd   :  { %1451 = vst.msk [vmem:[#allocation5] sm:$0x3] %vm3304_vm0, %v1449_v12  ;;  %1567 = vst.msk [vmem:[#allocation6] sm:$0x3] %vm3304_vm0, %v1565_v14 }
0x10d0   :  { %v3046_v15 = vld [vmem:[#allocation4] sm:$0x3]  ;;  %v1570_v16 = vpop.permute.xlu0 %1569 }
0x10d1   :  { %v1581_v19 = vpack.c.bf16 %v3046_v15, %v3046_v15  ;;  %1572 = vst.msk [vmem:[#allocation7] sm:$0x3] %vm3304_vm0, %v1570_v16  ;;  %v1793_v16 = vsel %vm1792_vm9, 1, %v2493_v1 }
0x10d3   :  { %2294 = vmatmul.mubr.msk.bf16.vlgmr.msra.gmra.mrb[24].mxu1 %vm130_vm3, %v1581_v19 }
0x10d4   :  { %2309 = vmatprep.mubr.msk.bf16.mxu1 %vm2495_vm1, %v2494_v2  ;;  %v3054_v11 = vld [vmem:[#allocation6] sm:$0x3]  ;;  %v1642_v47 = vld [vmem:[#allocation5] sm:$0x3] }
0x10d5   :  { %v1702_v22 = vpack.c.bf16 %v3054_v11, %v3054_v11 }
0x10d7   :  { %2302 = vmatmul.mubr.msk.bf16.vlgmr.msra.gmra.mrb[28].mxu0 %vm130_vm3, %v1702_v22 }
0x10d8   :  { %2317 = vmatprep.mubr.msk.bf16.mxu0 %vm2495_vm1, %v2494_v2  ;;  %v1763_v49 = vld [vmem:[#allocation7] sm:$0x3]  ;;  %vm1671_vm1 = vcmp.gt.f32.partialorder %v2130_v62, 0.5 }
0x10d9   :  { %v1672_v7 = vsel %vm1671_vm1, 1, %v2493_v1 }
0x11a6   :  { %v1635_v27 = vpop.f32.mrb[24].mxu1 }
0x11a7   :  { %v1641_v28 = vadd.f32 %v1635_v27, %v1579_v24  ;;  %v2295_v29 = vpop.f32.mrb[25].mxu1 }
0x11a8   :  { %v1638_v32 = vpop.f32.mrb[26].mxu1 }
0x11a9   :  { %2461 = vtanh.f32 %v1641_v28  ;;  %v2296_v33 = vpop.f32.mrb[27].mxu1  ;;  %v1644_v50 = vsub.f32 0.0, %v1641_v28 }
0x11aa   :  { %v1756_v36 = vpop.f32.mrb[28].mxu0 }
0x11ab   :  { %v1762_v37 = vadd.f32 %v1756_v36, %v1700_v34  ;;  %v2303_v38 = vpop.f32.mrb[29].mxu0  ;;  %v1645_v51 = vmul.f32 1.442695, %v1644_v50 }
0x11ac   :  { %v1759_v41 = vpop.f32.mrb[30].mxu0 }
0x11ad   :  { %2463 = vtanh.f32 %v1762_v37  ;;  %v2304_v43 = vpop.f32.mrb[31].mxu0  ;;  %v1765_v52 = vsub.f32 0.0, %v1762_v37  ;;  %v2361_v37 = vld [vmem:[%s3299_s2] sm:$0xff]   ;;  %v2362_v41 = vld [vmem:[%s3299_s2 + $0x8] sm:$0xff]  }
0x11ae   :  { %2465 = vpow2.f32 %v1645_v51  ;;  %2306 = vmatpush3.bf16.msra.mxu1 %v2361_v37 }
0x11af   :  { %v1766_v53 = vmul.f32 1.442695, %v1765_v52  ;;  %2307 = vmatprep.subr.bf16.mxu1 %v2494_v2 }
0x11b1   :  { %2467 = vpow2.f32 %v1766_v53 }
0x11b2   :  { %2308 = vmatpush3.bf16.msra.mxu1 %v2362_v41 }
0x11b3   :  { %v2462_v44 = vpop.eup %2461 }
0x11b4   :  { %1656 = vrot.lane.b32.xlu1 %v2462_v44, %s2497_s4 }
0x11b7   :  { %v2464_v48 = vpop.eup %2463 }
0x11b8   :  { %1651 = vrot.lane.b32.xlu1 %v1642_v47, %s2496_s9  ;;  %1777 = vrot.lane.b32.xlu0 %v2464_v48, %s2497_s4  ;;  %v2466_v42 = vpop.eup %2465  ;;  %v2364_v47 = vld [vmem:[%s3300_s3 + $0x8] sm:$0xff]  }
0x11b9   :  { %v1647_v57 = vadd.f32 1.0, %v2466_v42 }
0x11bb   :  { %v2468_v60 = vpop.eup %2467  ;;  %2469 = vrcp.f32 %v1647_v57 }
0x11bc   :  { %1772 = vrot.lane.b32.xlu0 %v1763_v49, %s2496_s9  ;;  %v1768_v61 = vadd.f32 1.0, %v2468_v60 }
0x11be   :  { %2471 = vrcp.f32 %v1768_v61 }
0x11c5   :  { %v2470_v0 = vpop.eup %2469 }
0x11c8   :  { %v2472_v8 = vpop.eup %2471 }
0x1226   :  { %v1657_v4 = vpop.permute.xlu1 %1656 }
0x1227   :  { %v1659_v5 = vmul.f32 %v2470_v0, %v1657_v4 }
0x1229   :  { %1661 = vrot.lane.b32.xlu1 %v1659_v5, %s2496_s9 }
0x122a   :  { %v1778_v12 = vpop.permute.xlu0 %1777  ;;  %v1652_v19 = vpop.permute.xlu1 %1651 }
0x122b   :  { %v1780_v14 = vmul.f32 %v2472_v8, %v1778_v12  ;;  %v1654_v22 = vmul.f32 %v2470_v0, %v1652_v19 }
0x122d   :  { %1674 = vperm.xlu1 %2328, %v1672_v7   ;;  %1782 = vrot.lane.b32.xlu0 %v1780_v14, %s2496_s9  ;;  %v1821_v7 = vld [vmem:[#allocation2 + $0xe] sm:$0x3] }
0x122e   :  { %v1773_v27 = vpop.permute.xlu0 %1772 }
0x122f   :  { %v1775_v29 = vmul.f32 %v2472_v8, %v1773_v27 }
0x1231   :  { %1795 = vperm.xlu0 %2327, %v1793_v16  }
0x129b   :  { %v1662_v24 = vpop.permute.xlu1 %1661 }
0x129c   :  { %v1664_v28 = vadd.f32 %v1662_v24, %v1654_v22  ;;  %v1941_v22 = vld [vmem:[#allocation3] sm:$0x3] }
0x129e   :  { %2473 = vtanh.f32 %v1664_v28 }
0x129f   :  { %v1783_v32 = vpop.permute.xlu0 %1782 }
0x12a0   :  { %v1785_v33 = vadd.f32 %v1783_v32, %v1775_v29 }
0x12a2   :  { %2475 = vtanh.f32 %v1785_v33 }
0x12a8   :  { %v2474_v34 = vpop.eup %2473 }
0x12a9   :  { %1667 = vrot.lane.b32.xlu1 %v2474_v34, %s2497_s4 }
0x12ac   :  { %v2476_v36 = vpop.eup %2475  ;;  %v3084_v38 = vpop.permute.xlu1 %1674 }
0x12ad   :  { %1678 = vrot.lane.b32.xlu1 %v3046_v15, %s2498_s16  ;;  %1788 = vrot.lane.b32.xlu0 %v2476_v36, %s2497_s4  ;;  %v2363_v15 = vld [vmem:[%s3300_s3] sm:$0xff]   ;;  %vm1676_vm1 = vcmp.eq.s32.totalorder %v3084_v38, 1 }
0x12ae   :  { %2314 = vmatpush3.bf16.msra.mxu0 %v2363_v15 }
0x12af   :  { %2315 = vmatprep.subr.bf16.mxu0 %v2494_v2  ;;  %v1682_v2 = vsel %vm1676_vm1, %v1664_v28, %v1652_v19 }
0x12b1   :  { %1799 = vrot.lane.b32.xlu0 %v3054_v11, %s2498_s16  ;;  %v3093_v11 = vpop.permute.xlu0 %1795 }
0x12b2   :  { %2316 = vmatpush3.bf16.msra.mxu0 %v2364_v47  ;;  %vm1797_vm9 = vcmp.eq.s32.totalorder %v3093_v11, 1 }
0x12b3   :  { %v1803_v42 = vsel %vm1797_vm9, %v1785_v33, %v1773_v27 }
0x131b   :  { %v1668_v43 = vpop.permute.xlu1 %1667 }
0x131c   :  { %v3096_v44 = vmul.f32 %v2470_v0, %v1668_v43 }
0x131e   :  { %v1683_v35 = vsel %vm1676_vm1, %v3096_v44, 0.0 }
0x131f   :  { %v1679_v48 = vpop.permute.xlu1 %1678  ;;  %v1789_v49 = vpop.permute.xlu0 %1788 }
0x1320   :  { %v1681_v50 = vsel %vm1676_vm1, %v3096_v44, %v1679_v48  ;;  %v3106_v51 = vmul.f32 %v2472_v8, %v1789_v49 }
0x1321   :  { %1685 = vrot.lane.b32.xlu1 %v1681_v50, %s2496_s9 }
0x1323   :  { %v1800_v52 = vpop.permute.xlu0 %1799 }
0x1324   :  { %v1802_v53 = vsel %vm1797_vm9, %v3106_v51, %v1800_v52  ;;  %v2140_v52 = vld [vmem:[%s3302_s5 + $0xe] sm:$0x3] }
0x1325   :  { %1690 = vrot.lane.b32.xlu1 %v1682_v2, %s2498_s16  ;;  %1806 = vrot.lane.b32.xlu0 %v1802_v53, %s2496_s9 }
0x1329   :  { %1811 = vrot.lane.b32.xlu0 %v1803_v42, %s2498_s16 }
0x1393   :  { %v1686_v57 = vpop.permute.xlu1 %1685 }
0x1394   :  { %1688 = vst.msk [vmem:[#allocation4] sm:$0x3] %vm3304_vm0, %v1686_v57 }
0x1397   :  { %v1691_v60 = vpop.permute.xlu1 %1690  ;;  %v1807_v61 = vpop.permute.xlu0 %1806 }
0x1398   :  { %1693 = vst.msk [vmem:[#allocation5] sm:$0x3] %vm3304_vm0, %v1691_v60  ;;  %1809 = vst.msk [vmem:[#allocation6] sm:$0x3] %vm3304_vm0, %v1807_v61  ;;  %v2005_v60 = vld [vmem:[%s3302_s5] sm:$0x3] }
0x139b   :  { %v3122_v62 = vld [vmem:[#allocation4] sm:$0x3]  ;;  %v1812_v0 = vpop.permute.xlu0 %1811 }
0x139c   :  { %v1823_v4 = vpack.c.bf16 %v3122_v62, %v3122_v62  ;;  %1814 = vst.msk [vmem:[#allocation7] sm:$0x3] %vm3304_vm0, %v1812_v0  ;;  %vm2033_vm0 = vcmp.gt.f32.partialorder %v2005_v60, 0.5 }
0x139e   :  { %2310 = vmatmul.mubr.msk.bf16.vlgmr.msra.gmra.mrb[28].mxu1 %vm130_vm3, %v1823_v4 }
0x139f   :  { %v3128_v5 = vld [vmem:[#allocation6] sm:$0x3]  ;;  %v1884_v34 = vld [vmem:[#allocation5] sm:$0x3] }
0x13a0   :  { %v1943_v6 = vpack.c.bf16 %v3128_v5, %v3128_v5 }
0x13a2   :  { %2318 = vmatmul.mubr.msk.bf16.vlgmr.msra.gmra.mrb[32].mxu0 %vm130_vm3, %v1943_v6  ;;  %vm1913_vm3 = vcmp.gt.f32.partialorder %v2140_v52, 0.5 }
0x13a3   :  { %v2004_v37 = vld [vmem:[#allocation7] sm:$0x3]  ;;  %v1914_v61 = vsel %vm1913_vm3, 1, %v2493_v1 }
0x1471   :  { %v1877_v8 = vpop.f32.mrb[28].mxu1 }
0x1472   :  { %v1883_v12 = vadd.f32 %v1877_v8, %v1821_v7  ;;  %v2311_v14 = vpop.f32.mrb[29].mxu1  ;;  %v2034_v7 = vsel %vm2033_vm0, 1, %v2493_v1  ;;  %v216_v1 = vsel %vm209_vm6, %v2632_v17, 0.0  ;;  %v585_v17 = vsel %vm578_vm11, %v2718_v31, 0.0 }
0x1473   :  { %v1880_v16 = vpop.f32.mrb[30].mxu1  ;;  %v1320_v31 = vsel %vm1313_vm2, %v2952_v30, 0.0 }
0x1474   :  { %2477 = vtanh.f32 %v1883_v12  ;;  %v2312_v19 = vpop.f32.mrb[31].mxu1  ;;  %v1886_v41 = vsub.f32 0.0, %v1883_v12 }
0x1475   :  { %v1997_v24 = vpop.f32.mrb[32].mxu0 }
0x1476   :  { %v2003_v27 = vadd.f32 %v1997_v24, %v1941_v22  ;;  %v2319_v28 = vpop.f32.mrb[33].mxu0  ;;  %v1887_v15 = vmul.f32 1.442695, %v1886_v41 }
0x1477   :  { %v2000_v29 = vpop.f32.mrb[34].mxu0 }
0x1478   :  { %2479 = vtanh.f32 %v2003_v27  ;;  %v2320_v32 = vpop.f32.mrb[35].mxu0  ;;  %v2006_v43 = vsub.f32 0.0, %v2003_v27 }
0x1479   :  { %2481 = vpow2.f32 %v1887_v15  ;;  %v462_v32 = vsel %vm455_vm10, %v2707_v26, 0.0  ;;  %v1441_v26 = vsel %vm1434_vm12, %v3019_v59, 0.0  ;;  %vm354_vm10 = vcmask 517376  }
0x147a   :  { %v2007_v47 = vmul.f32 1.442695, %v2006_v43 }
0x147c   :  { %2483 = vpow2.f32 %v2007_v47 }
0x147e   :  { %v2478_v33 = vpop.eup %2477 }
0x147f   :  { %1898 = vrot.lane.b32.xlu1 %v2478_v33, %s2497_s4  ;;  %v338_v33 = vsel %vm331_vm7, %v2640_v21, 0.0  ;;  %v831_v21 = vsel %vm824_vm15, %v2796_v45, 0.0  ;;  %v1804_v45 = vsel %vm1797_vm9, %v3106_v51, 0.0  ;;  %vm3305_vm7 = vcmask 254976  }
0x1480   :  { %vm3306_vm11 = vmmov %vm3305_vm7 }
0x1481   :  { %vm3307_vm14 = vmmov %vm3305_vm7 }
0x1482   :  { %v2480_v36 = vpop.eup %2479  ;;  %vm3308_vm15 = vmmov %vm3305_vm7 }
0x1483   :  { %1893 = vrot.lane.b32.xlu1 %v1884_v34, %s2496_s9  ;;  %2018 = vrot.lane.b32.xlu0 %v2480_v36, %s2497_s4  ;;  %v2482_v48 = vpop.eup %2481  ;;  %vm3309_vm5 = vmmov %vm3305_vm7 }
0x1484   :  { %v1889_v49 = vadd.f32 1.0, %v2482_v48  ;;  %vm3310_vm8 = vmmov %vm3309_vm5 }
0x1485   :  { %vm3311_vm13 = vmmov %vm3309_vm5 }
0x1486   :  { %v2484_v50 = vpop.eup %2483  ;;  %2485 = vrcp.f32 %v1889_v49  ;;  %vm3312_vm2 = vmmov %vm3309_vm5 }
0x1487   :  { %2013 = vrot.lane.b32.xlu0 %v2004_v37, %s2496_s9  ;;  %v2009_v2 = vadd.f32 1.0, %v2484_v50  ;;  %vm3313_vm12 = vmmov %vm3312_vm2 }
0x1488   :  { %vm3314_vm4 = vmmov %vm3312_vm2 }
0x1489   :  { %2487 = vrcp.f32 %v2009_v2  ;;  %vm3315_vm1 = vmmov %vm3312_vm2 }
0x148a   :  { %vm3316_vm9 = vmmov %vm3315_vm1 }
0x1490   :  { %v3140_v53 = vpop.eup %2485 }
0x1493   :  { %v3148_v0 = vpop.eup %2487 }
0x14f1   :  { %v1899_v42 = vpop.permute.xlu1 %1898 }
0x14f2   :  { %v1901_v57 = vmul.f32 %v3140_v53, %v1899_v42 }
0x14f4   :  { %1903 = vrot.lane.b32.xlu1 %v1901_v57, %s2496_s9 }
0x14f5   :  { %v2019_v4 = vpop.permute.xlu0 %2018  ;;  %v1894_v8 = vpop.permute.xlu1 %1893 }
0x14f6   :  { %v2021_v6 = vmul.f32 %v3148_v0, %v2019_v4  ;;  %v1896_v12 = vmul.f32 %v3140_v53, %v1894_v8 }
0x14f8   :  { %1916 = vperm.xlu1 %2328, %v1914_v61   ;;  %2023 = vrot.lane.b32.xlu0 %v2021_v6, %s2496_s9 }
0x14f9   :  { %v3154_v16 = vpop.permute.xlu0 %2013 }
0x14fa   :  { %v2016_v22 = vmul.f32 %v3148_v0, %v3154_v16 }
0x14fc   :  { %2036 = vperm.xlu0 %2327, %v2034_v7  }
0x1566   :  { %v1904_v14 = vpop.permute.xlu1 %1903 }
0x1567   :  { %v1906_v19 = vadd.f32 %v1904_v14, %v1896_v12 }
0x1569   :  { %2489 = vtanh.f32 %v1906_v19 }
0x156a   :  { %v2024_v24 = vpop.permute.xlu0 %2023 }
0x156b   :  { %v2026_v27 = vadd.f32 %v2024_v24, %v2016_v22 }
0x156d   :  { %2491 = vtanh.f32 %v2026_v27 }
0x1573   :  { %v2490_v28 = vpop.eup %2489 }
0x1574   :  { %1909 = vrot.lane.b32.xlu1 %v2490_v28, %s2497_s4 }
0x1577   :  { %v2492_v29 = vpop.eup %2491  ;;  %v1917_v40 = vpop.permute.xlu1 %1916 }
0x1578   :  { %1920 = vrot.lane.b32.xlu1 %v3122_v62, %s2498_s16  ;;  %2029 = vrot.lane.b32.xlu0 %v2492_v29, %s2497_s4  ;;  %vm1918_vm0 = vcmp.eq.s32.totalorder %v1917_v40, 1 }
0x1579   :  { %v1924_v54 = vsel %vm1918_vm0, %v1906_v19, %v1894_v8 }
0x157b   :  { %v2037_v58 = vpop.permute.xlu0 %2036 }
0x157c   :  { %228 = vrot.lane.b32.xlu1 %v216_v1, %s2496_s9  ;;  %2040 = vrot.lane.b32.xlu0 %v3128_v5, %s2498_s16  ;;  %vm2038_vm6 = vcmp.eq.s32.totalorder %v2037_v58, 1 }
0x157d   :  { %v2044_v11 = vsel %vm2038_vm6, %v2026_v27, %v3154_v16 }
0x1580   :  { %474 = vrot.lane.b32.xlu1 %v462_v32, %s2496_s9  ;;  %350 = vrot.lane.b32.xlu0 %v338_v33, %s2497_s4 }
0x1584   :  { %720 = vrot.lane.b32.xlu1 %v708_v10, %s2496_s9  ;;  %597 = vrot.lane.b32.xlu0 %v585_v17, %s2497_s4 }
0x1588   :  { %966 = vrot.lane.b32.xlu1 %v954_v13, %s2496_s9  ;;  %843 = vrot.lane.b32.xlu0 %v831_v21, %s2497_s4 }
0x158c   :  { %1211 = vrot.lane.b32.xlu1 %v1199_v20, %s2496_s9  ;;  %1089 = vrot.lane.b32.xlu0 %v1077_v25, %s2497_s4 }
0x1590   :  { %1453 = vrot.lane.b32.xlu1 %v1441_v26, %s2496_s9  ;;  %1332 = vrot.lane.b32.xlu0 %v1320_v31, %s2497_s4 }
0x1594   :  { %1695 = vrot.lane.b32.xlu1 %v1683_v35, %s2496_s9  ;;  %1574 = vrot.lane.b32.xlu0 %v1562_v39, %s2497_s4 }
0x1598   :  { %1816 = vrot.lane.b32.xlu0 %v1804_v45, %s2497_s4 }
0x159c   :  { %1932 = vrot.lane.b32.xlu0 %v1924_v54, %s2498_s16 }
0x15e6   :  { %v1910_v56 = vpop.permute.xlu1 %1909 }
0x15e7   :  { %v1912_v63 = vmul.f32 %v3140_v53, %v1910_v56 }
0x15e9   :  { %v1925_v46 = vsel %vm1918_vm0, %v1912_v63, 0.0 }
0x15ea   :  { %v1921_v18 = vpop.permute.xlu1 %1920  ;;  %v2030_v9 = vpop.permute.xlu0 %2029 }
0x15eb   :  { %v1923_v23 = vsel %vm1918_vm0, %v1912_v63, %v1921_v18  ;;  %v2032_v30 = vmul.f32 %v3148_v0, %v2030_v9 }
0x15ec   :  { %1927 = vrot.lane.b32.xlu1 %v1923_v23, %s2496_s9 }
0x15ed   :  { %v2045_v51 = vsel %vm2038_vm6, %v2032_v30, 0.0 }
0x15ee   :  { %v229_v55 = vpop.permute.xlu1 %228  ;;  %v2041_v59 = vpop.permute.xlu0 %2040 }
0x15ef   :  { %231 = vst.msk [vmem:[%s3303_s6] sm:$0x3] %vm3305_vm7, %v229_v55  ;;  %v2043_v3 = vsel %vm2038_vm6, %v2032_v30, %v2041_v59 }
0x15f0   :  { %1937 = vrot.lane.b32.xlu1 %v1925_v46, %s2496_s9  ;;  %2047 = vrot.lane.b32.xlu0 %v2043_v3, %s2496_s9 }
0x15f2   :  { %v475_v38 = vpop.permute.xlu1 %474  ;;  %v351_v44 = vpop.permute.xlu0 %350 }
0x15f3   :  { %2081 = vst.msk [vmem:[%s3303_s6 + $0x2] sm:$0x3] %vm3306_vm11, %v475_v38 }
0x15f4   :  { %2076 = vst.msk [vmem:[%s3303_s6 + $0xe] sm:$0x3] %vm354_vm10, %v351_v44  ;;  %2052 = vrot.lane.b32.xlu1 %v2044_v11, %s2498_s16  ;;  %2057 = vrot.lane.b32.xlu0 %v2045_v51, %s2497_s4 }
0x15f6   :  { %v721_v62 = vpop.permute.xlu1 %720  ;;  %v598_v5 = vpop.permute.xlu0 %597 }
0x15f7   :  { %2091 = vst.msk [vmem:[%s3303_s6 + $0x4] sm:$0x3] %vm3307_vm14, %v721_v62 }
0x15f8   :  { %2086 = vst.msk [vmem:[%s3303_s6 + $0xc] sm:$0x3] %vm354_vm10, %v598_v5 }
0x15fa   :  { %v967_v34 = vpop.permute.xlu1 %966  ;;  %v844_v36 = vpop.permute.xlu0 %843 }
0x15fb   :  { %2101 = vst.msk [vmem:[%s3303_s6 + $0x6] sm:$0x3] %vm3308_vm15, %v967_v34 }
0x15fc   :  { %2096 = vst.msk [vmem:[%s3303_s6 + $0xa] sm:$0x3] %vm354_vm10, %v844_v36 }
0x15fe   :  { %v1212_v37 = vpop.permute.xlu1 %1211  ;;  %v1090_v41 = vpop.permute.xlu0 %1089 }
0x15ff   :  { %2106 = vst.msk [vmem:[%s3303_s6 + $0x8] sm:$0x3] %vm354_vm10, %v1090_v41 }
0x1600   :  { %2111 = vst.msk [vmem:[%s3303_s6 + $0x8] sm:$0x3] %vm3309_vm5, %v1212_v37 }
0x1602   :  { %v1454_v15 = vpop.permute.xlu1 %1453  ;;  %v1333_v43 = vpop.permute.xlu0 %1332 }
0x1603   :  { %2121 = vst.msk [vmem:[%s3303_s6 + $0xa] sm:$0x3] %vm3310_vm8, %v1454_v15 }
0x1604   :  { %2116 = vst.msk [vmem:[%s3303_s6 + $0x6] sm:$0x3] %vm354_vm10, %v1333_v43 }
0x1606   :  { %v1696_v47 = vpop.permute.xlu1 %1695  ;;  %v1575_v48 = vpop.permute.xlu0 %1574 }
0x1607   :  { %2131 = vst.msk [vmem:[%s3303_s6 + $0xc] sm:$0x3] %vm3311_vm13, %v1696_v47 }
0x1608   :  { %2126 = vst.msk [vmem:[%s3303_s6 + $0x4] sm:$0x3] %vm354_vm10, %v1575_v48 }
0x160a   :  { %v1817_v49 = vpop.permute.xlu0 %1816 }
0x160b   :  { %2136 = vst.msk [vmem:[%s3303_s6 + $0x2] sm:$0x3] %vm354_vm10, %v1817_v49 }
0x160e   :  { %v1933_v50 = vpop.permute.xlu0 %1932 }
0x160f   :  { %1935 = vst.msk [vmem:[#allocation5] sm:$0x3] %vm3312_vm2, %v1933_v50 }
0x165e   :  { %v1928_v2 = vpop.permute.xlu1 %1927 }
0x165f   :  { %1930 = vst.msk [vmem:[#allocation4] sm:$0x3] %vm3313_vm12, %v1928_v2 }
0x1662   :  { %v1938_v52 = vpop.permute.xlu1 %1937  ;;  %v2048_v53 = vpop.permute.xlu0 %2047 }
0x1663   :  { %2141 = vst.msk [vmem:[%s3303_s6 + $0xe] sm:$0x3] %vm3314_vm4, %v1938_v52 }
0x1664   :  { %2050 = vst.msk [vmem:[#allocation6] sm:$0x3] %vm3315_vm1, %v2048_v53 }
0x1666   :  { %v2053_v42 = vpop.permute.xlu1 %2052  ;;  %v2058_v57 = vpop.permute.xlu0 %2057 }
0x1667   :  { %2055 = vst.msk [vmem:[#allocation7] sm:$0x3] %vm3316_vm9, %v2053_v42 }
0x1668   :  { %2060 = vst.msk [vmem:[%s3303_s6] sm:$0x3] %vm354_vm10, %v2058_v57 }

// kernel: bilstm_net_forward.3
= control target key start
LH: loop header
LB: loop body
LE: loop exit
PB: predicated region body
PF: predicated region fallthrough
CT: control target
= control target key end

     0   :  { %v2544_v1 = vmov 0.0   ;;  %v2545_v2 = vmov 0   ;;  %vm3374_vm0 = vcmask 254976   ;;  %vm2546_vm1 = vmmov 0   ;;  %s2549_s28 = smov 96   ;;  %s3367_s1 = inlined_call_operand.vmem [shape: bf16[64,256], index: 1, kind: input, shape index: {}]   ;;  %s3368_s2 = inlined_call_operand.vmem [shape: bf16[32,128], index: 2, kind: input, shape index: {}]   ;;  %s3369_s0 = inlined_call_operand.vmem [shape: bf16[16,64], index: 0, kind: input, shape index: {}]   ;;  %s3370_s3 = inlined_call_operand.vmem [shape: bf16[32,128], index: 3, kind: input, shape index: {}]   ;;  %s3371_s4 = inlined_call_operand.vmem [shape: f32[1,256], index: 4, kind: input, shape index: {}]   ;;  %s3372_s5 = inlined_call_operand.vmem [shape: f32[8,2,1], index: 5, kind: input, shape index: {}]   ;;  %s3373_s6 = inlined_call_operand.vmem [shape: f32[8,2,64], index: 6, kind: output, shape index: {}]  }
   0x1   :  { %v2371_v0 = vld [vmem:[%s3367_s1 + $0x4] ss:$8 sps:$4 sm:$0xff]   ;;  %2235 = vmatprep.subr.bf16.mxu1 %v2544_v1  ;;  %127 = vmatprep.mubr.bf16.mxu0 %v2545_v2  ;;  %v2373_v3 = vld [vmem:[%s3367_s1] ss:$8 sps:$4 sm:$0xff]   ;;  %143 = vst.msk [vmem:[#allocation4] sm:$0x3] %vm3374_vm0, %v2544_v1  ;;  %v36_v21 = vlaneseq }
   0x2   :  { %2239 = vmatprep.mubr.msk.bf16.mxu1 %vm2546_vm1, %v2544_v1  ;;  %144 = vst.msk [vmem:[#allocation5] sm:$0x3] %vm3374_vm0, %v2544_v1  ;;  %145 = vst.msk [vmem:[#allocation6] sm:$0x3] %vm3374_vm0, %v2544_v1  ;;  %2369 = vset.pattern.permute.xlu0 %v2545_v2  ;;  %v2374_v4 = vld [vmem:[%s3367_s1 + $0x14] ss:$8 sps:$4 sm:$0xff]  }
   0x3   :  { %146 = vst.msk [vmem:[#allocation7] sm:$0x3] %vm3374_vm0, %v2544_v1  ;;  %95 = vmatprep.subr.bf16.mxu0 %v2371_v0  ;;  %2370 = vset.pattern.permute.xlu1 %v2545_v2  ;;  %v2376_v5 = vld [vmem:[%s3367_s1 + $0x10] ss:$8 sps:$4 sm:$0xff]   ;;  %v2377_v6 = vld [vmem:[%s3367_s1 + $0x24] ss:$8 sps:$4 sm:$0xff]  }
   0x4   :  { %96 = vmatpush1.bf16.msra.mxu0 %v2373_v3  ;;  %v2382_v7 = vld [vmem:[%s3368_s2] sm:$0xff]   ;;  %v2380_v9 = vld [vmem:[%s3367_s1 + $0x34] ss:$8 sps:$4 sm:$0xff]   ;;  %v2385_v10 = vld [vmem:[%s3368_s2 + $0x8] sm:$0xff]   ;;  %vm91_vm2 = vcmask 523264   ;;  %vm166_vm3 = vcmask 261120  }
   0x5   :  { %97 = vmatprep.subr.bf16.mxu0 %v2374_v4  ;;  %v2379_v8 = vld [vmem:[%s3367_s1 + $0x20] ss:$8 sps:$4 sm:$0xff]   ;;  %2236 = vmatpush3.bf16.msra.mxu1 %v2382_v7  ;;  %v2383_v13 = vld [vmem:[%s3367_s1 + $0x30] ss:$8 sps:$4 sm:$0xff]   ;;  %s2547_s1 = smov 32   ;;  %v37_v22 = vshrl.u32 %v36_v21, 7 }
   0x6   :  { %2237 = vmatprep.subr.bf16.mxu1 %v2544_v1  ;;  %v2386_v14 = vld [vmem:[%s3370_s3] sm:$0xff]   ;;  %v2387_v18 = vld [vmem:[%s3370_s3 + $0x8] sm:$0xff]  }
   0x7   :  { %v2384_v16 = vld [vmem:[%s3369_s0] sm:$0xff]   ;;  %v38_v23 = vsub.s32 0, %v37_v22  ;;  %v42_v25 = vsub.s32 1, %v37_v22  ;;  %v2117_v62 = vld [vmem:[%s3372_s5 + $0xe] sm:$0x3] }
   0x8   :  { %98 = vmatpush1.bf16.msra.mxu0 %v2376_v5  ;;  %v2627_v11 = vld [vmem:[#allocation4] sm:$0x3]  ;;  %vm362_vm5 = vcmp.gt.f32.partialorder %v2117_v62, 0.5  ;;  %v2391_v22 = vld [vmem:[%s3370_s3 + $0x8] sm:$0xff]  }
   0x9   :  { %99 = vmatprep.subr.bf16.mxu0 %v2377_v6  ;;  %v149_v12 = vpack.c.bf16 %v2627_v11, %v2627_v11  ;;  %2238 = vmatpush3.bf16.msra.mxu1 %v2385_v10  ;;  %v211_v15 = vld [vmem:[#allocation5] sm:$0x3]  ;;  %v2644_v19 = vld [vmem:[#allocation6] sm:$0x3]  ;;  %v34_v24 = vld [vmem:[%s3371_s4] sm:$0x3] }
   0xa   :  { %2243 = vmatprep.subr.bf16.mxu1 %v2544_v1  ;;  %v332_v17 = vld [vmem:[#allocation7] sm:$0x3]  ;;  %220 = vrot.lane.b32.xlu1 %v211_v15, %s2547_s1  ;;  %v271_v20 = vpack.c.bf16 %v2644_v19, %v2644_v19  ;;  %v39_v27 = vrot.slane %v34_v24, %v38_v23  ;;  %v43_v29 = vrot.slane %v34_v24, %v42_v25  ;;  %s2548_s4 = smov 64   ;;  %v212_v58 = vld [vmem:[%s3372_s5] sm:$0x3]  ;;  %v363_v5 = vsel %vm362_vm5, 1, %v2545_v2 }
   0xb   :  { %vm240_vm4 = vcmp.gt.f32.partialorder %v212_v58, 0.5 }
   0xc   :  { %100 = vmatpush1.bf16.msra.mxu0 %v2379_v8  ;;  %2240 = vmatmul.mubr.msk.bf16.vlgmr.msra.gmra.mrb[0].mxu1 %vm166_vm3, %v149_v12  ;;  %v241_v3 = vsel %vm240_vm4, 1, %v2545_v2 }
   0xd   :  { %101 = vmatprep.subr.bf16.mxu0 %v2380_v9  ;;  %2244 = vmatpush3.bf16.msra.mxu1 %v2386_v14 }
   0xe   :  { %2245 = vmatprep.subr.bf16.mxu1 %v2544_v1  ;;  %2247 = vmatprep.mubr.msk.bf16.mxu1 %vm2546_vm1, %v2544_v1 }
   0xf   :  { %342 = vrot.lane.b32.xlu1 %v332_v17, %s2547_s1  ;;  %v2388_v17 = vld [vmem:[%s3368_s2] sm:$0xff]  }
  0x10   :  { %102 = vmatpush1.bf16.msra.mxu0 %v2383_v13 }
  0x11   :  { %2251 = vmatprep.subr.bf16.mxu0 %v2544_v1  ;;  %2246 = vmatpush3.bf16.msra.mxu1 %v2387_v18 }
  0x12   :  { %2259 = vmatprep.subr.bf16.mxu1 %v2544_v1 }
  0x13   :  { %2110 = vmatmul.mubr.msk.bf16.vlgmr.msra.gmra.mrb[0].mxu0 %vm91_vm2, %v2384_v16 }
  0x14   :  { %2255 = vmatprep.mubr.msk.bf16.mxu0 %vm2546_vm1, %v2544_v1  ;;  %2248 = vmatmul.mubr.msk.bf16.vlgmr.msra.gmra.mrb[4].mxu1 %vm166_vm3, %v271_v20  ;;  %v2389_v20 = vld [vmem:[%s3368_s2 + $0x8] sm:$0xff]  }
  0x15   :  { %2263 = vmatprep.mubr.msk.bf16.mxu1 %vm2546_vm1, %v2544_v1  ;;  %2252 = vmatpush3.bf16.msra.mxu0 %v2388_v17 }
  0x16   :  { %2253 = vmatprep.subr.bf16.mxu0 %v2544_v1 }
  0x19   :  { %2254 = vmatpush3.bf16.msra.mxu0 %v2389_v20 }
  0x1a   :  { %2267 = vmatprep.subr.bf16.mxu0 %v2544_v1 }
  0x7c   :  { %v221_v6 = vpop.permute.xlu1 %220 }
  0x81   :  { %v343_v8 = vpop.permute.xlu1 %342 }
  0xdf   :  { %v204_v26 = vpop.f32.mrb[0].mxu1 }
  0xe0   :  { %v2241_v28 = vpop.f32.mrb[1].mxu1 }
  0xe1   :  { %v207_v30 = vpop.f32.mrb[2].mxu1 }
  0xe2   :  { %v2242_v31 = vpop.f32.mrb[3].mxu1 }
  0xe6   :  { %v129_v32 = vpop.f32.mrb[0].mxu0 }
  0xe7   :  { %v130_v33 = vadd.f32 %v129_v32, %v39_v27  ;;  %v131_v34 = vpop.f32.mrb[1].mxu0  ;;  %v325_v40 = vpop.f32.mrb[4].mxu1 }
  0xe8   :  { %v132_v35 = vadd.f32 %v131_v34, %v43_v29  ;;  %v133_v36 = vpop.f32.mrb[2].mxu0  ;;  %v2249_v41 = vpop.f32.mrb[5].mxu1 }
  0xe9   :  { %138 = vst [vmem:[#allocation2] sm:$0xff] %v130_v33  ;;  %v134_v37 = vadd.f32 %v133_v36, %v39_v27  ;;  %v135_v38 = vpop.f32.mrb[3].mxu0  ;;  %v328_v42 = vpop.f32.mrb[6].mxu1 }
  0xea   :  { %140 = vst [vmem:[#allocation3] sm:$0xff] %v132_v35  ;;  %v136_v39 = vadd.f32 %v135_v38, %v43_v29  ;;  %v2250_v43 = vpop.f32.mrb[7].mxu1 }
  0xeb   :  { %139 = vst [vmem:[#allocation2 + $0x8] sm:$0xff] %v134_v37 }
  0xec   :  { %141 = vst [vmem:[#allocation3 + $0x8] sm:$0xff] %v136_v39 }
  0xf0   :  { %v147_v44 = vld [vmem:[#allocation2] sm:$0x3] }
  0xf1   :  { %v210_v45 = vadd.f32 %v204_v26, %v147_v44 }
  0xf3   :  { %2416 = vtanh.f32 %v210_v45  ;;  %v269_v46 = vld [vmem:[#allocation3 + $0xe] sm:$0x3]  ;;  %v213_v50 = vsub.f32 0.0, %v210_v45 }
  0xf4   :  { %v331_v47 = vadd.f32 %v325_v40, %v269_v46  ;;  %v393_v40 = vld [vmem:[#allocation2 + $0x2] sm:$0x3]  ;;  %v516_v46 = vld [vmem:[#allocation3 + $0xc] sm:$0x3] }
  0xf5   :  { %v214_v51 = vmul.f32 1.442695, %v213_v50 }
  0xf6   :  { %2418 = vtanh.f32 %v331_v47  ;;  %v335_v52 = vsub.f32 0.0, %v331_v47 }
  0xf7   :  { %2420 = vpow2.f32 %v214_v51 }
  0xf8   :  { %v336_v53 = vmul.f32 1.442695, %v335_v52 }
  0xfa   :  { %2422 = vpow2.f32 %v336_v53 }
  0xfd   :  { %v2417_v48 = vpop.eup %2416 }
  0xfe   :  { %225 = vrot.lane.b32.xlu0 %v2417_v48, %s2548_s4 }
 0x100   :  { %v2419_v49 = vpop.eup %2418 }
 0x101   :  { %v2421_v54 = vpop.eup %2420 }
 0x102   :  { %347 = vrot.lane.b32.xlu0 %v2419_v49, %s2548_s4  ;;  %v216_v55 = vadd.f32 1.0, %v2421_v54 }
 0x104   :  { %v2423_v56 = vpop.eup %2422  ;;  %2424 = vrcp.f32 %v216_v55 }
 0x105   :  { %v338_v57 = vadd.f32 1.0, %v2423_v56 }
 0x107   :  { %2426 = vrcp.f32 %v338_v57 }
 0x10e   :  { %v2425_v59 = vpop.eup %2424 }
 0x10f   :  { %v223_v7 = vmul.f32 %v2425_v59, %v221_v6 }
 0x111   :  { %v2427_v63 = vpop.eup %2426 }
 0x112   :  { %v345_v12 = vmul.f32 %v2427_v63, %v343_v8 }
 0x170   :  { %v226_v60 = vpop.permute.xlu0 %225 }
 0x171   :  { %v228_v61 = vmul.f32 %v2425_v59, %v226_v60 }
 0x173   :  { %230 = vrot.lane.b32.xlu0 %v228_v61, %s2547_s1 }
 0x174   :  { %v348_v0 = vpop.permute.xlu0 %347 }
 0x175   :  { %v350_v4 = vmul.f32 %v2427_v63, %v348_v0  ;;  %v2122_v0 = vld [vmem:[%s3372_s5 + $0x2] sm:$0x3] }
 0x176   :  { %vm486_vm8 = vcmp.gt.f32.partialorder %v2122_v0, 0.5 }
 0x177   :  { %352 = vrot.lane.b32.xlu1 %v350_v4, %s2547_s1  ;;  %243 = vperm.xlu0 %2369, %v241_v3  }
 0x17b   :  { %365 = vperm.xlu1 %2370, %v363_v5  }
 0x1e5   :  { %v231_v9 = vpop.permute.xlu0 %230 }
 0x1e6   :  { %v233_v10 = vadd.f32 %v231_v9, %v223_v7  ;;  %v487_v7 = vsel %vm486_vm8, 1, %v2545_v2 }
 0x1e8   :  { %2428 = vtanh.f32 %v233_v10 }
 0x1e9   :  { %v353_v13 = vpop.permute.xlu1 %352 }
 0x1ea   :  { %v355_v14 = vadd.f32 %v353_v13, %v345_v12 }
 0x1ec   :  { %2430 = vtanh.f32 %v355_v14 }
 0x1f2   :  { %v2429_v15 = vpop.eup %2428 }
 0x1f3   :  { %236 = vrot.lane.b32.xlu1 %v2429_v15, %s2548_s4 }
 0x1f6   :  { %v2431_v16 = vpop.eup %2430 }
 0x1f7   :  { %358 = vrot.lane.b32.xlu0 %v2431_v16, %s2548_s4  ;;  %247 = vrot.lane.b32.xlu1 %v2627_v11, %s2549_s28  ;;  %v2390_v11 = vld [vmem:[%s3370_s3] sm:$0xff]  }
 0x1f8   :  { %2260 = vmatpush3.bf16.msra.mxu1 %v2390_v11 }
 0x1f9   :  { %2261 = vmatprep.subr.bf16.mxu1 %v2544_v1 }
 0x1fa   :  { %v2686_v18 = vpop.permute.xlu1 %365 }
 0x1fb   :  { %369 = vrot.lane.b32.xlu0 %v2644_v19, %s2549_s28  ;;  %v2695_v19 = vpop.permute.xlu0 %243  ;;  %vm367_vm7 = vcmp.eq.s32.totalorder %v2686_v18, 1 }
 0x1fc   :  { %vm245_vm6 = vcmp.eq.s32.totalorder %v2695_v19, 1  ;;  %2262 = vmatpush3.bf16.msra.mxu1 %v2391_v22  ;;  %v373_v31 = vsel %vm367_vm7, %v355_v14, %v343_v8 }
 0x1fd   :  { %2275 = vmatprep.subr.bf16.mxu1 %v2544_v1  ;;  %v251_v30 = vsel %vm245_vm6, %v233_v10, %v221_v6  ;;  %v2127_v6 = vld [vmem:[%s3372_s5 + $0xc] sm:$0x3] }
 0x1fe   :  { %vm609_vm9 = vcmp.gt.f32.partialorder %v2127_v6, 0.5 }
 0x1ff   :  { %v610_v12 = vsel %vm609_vm9, 1, %v2545_v2 }
 0x265   :  { %v237_v21 = vpop.permute.xlu1 %236 }
 0x266   :  { %v2702_v23 = vmul.f32 %v2425_v59, %v237_v21 }
 0x269   :  { %v359_v24 = vpop.permute.xlu0 %358  ;;  %v248_v25 = vpop.permute.xlu1 %247 }
 0x26a   :  { %v250_v26 = vsel %vm245_vm6, %v2702_v23, %v248_v25  ;;  %v2710_v27 = vmul.f32 %v2427_v63, %v359_v24  ;;  %v2392_v25 = vld [vmem:[%s3368_s2] sm:$0xff]  }
 0x26b   :  { %254 = vrot.lane.b32.xlu1 %v250_v26, %s2547_s1 }
 0x26d   :  { %v370_v28 = vpop.permute.xlu0 %369 }
 0x26e   :  { %v372_v29 = vsel %vm367_vm7, %v2710_v27, %v370_v28  ;;  %v2393_v28 = vld [vmem:[%s3368_s2 + $0x8] sm:$0xff]  }
 0x26f   :  { %376 = vrot.lane.b32.xlu0 %v372_v29, %s2547_s1  ;;  %259 = vrot.lane.b32.xlu1 %v251_v30, %s2549_s28  ;;  %v2394_v29 = vld [vmem:[%s3370_s3] sm:$0xff]  }
 0x273   :  { %381 = vrot.lane.b32.xlu0 %v373_v31, %s2549_s28 }
 0x2dd   :  { %v255_v32 = vpop.permute.xlu1 %254 }
 0x2de   :  { %257 = vst.msk [vmem:[#allocation4] sm:$0x3] %vm3374_vm0, %v255_v32 }
 0x2e1   :  { %v377_v33 = vpop.permute.xlu0 %376  ;;  %v260_v34 = vpop.permute.xlu1 %259 }
 0x2e2   :  { %379 = vst.msk [vmem:[#allocation6] sm:$0x3] %vm3374_vm0, %v377_v33  ;;  %262 = vst.msk [vmem:[#allocation5] sm:$0x3] %vm3374_vm0, %v260_v34  ;;  %v2395_v33 = vld [vmem:[%s3370_s3 + $0x8] sm:$0xff]  }
 0x2e5   :  { %v382_v35 = vpop.permute.xlu0 %381  ;;  %v2726_v36 = vld [vmem:[#allocation4] sm:$0x3] }
 0x2e6   :  { %384 = vst.msk [vmem:[#allocation7] sm:$0x3] %vm3374_vm0, %v382_v35  ;;  %v395_v37 = vpack.c.bf16 %v2726_v36, %v2726_v36 }
 0x2e8   :  { %2256 = vmatmul.mubr.msk.bf16.vlgmr.msra.gmra.mrb[4].mxu0 %vm166_vm3, %v395_v37 }
 0x2e9   :  { %v2732_v38 = vld [vmem:[#allocation6] sm:$0x3]  ;;  %2271 = vmatprep.mubr.msk.bf16.mxu0 %vm2546_vm1, %v2544_v1  ;;  %v456_v53 = vld [vmem:[#allocation5] sm:$0x3]  ;;  %2268 = vmatpush3.bf16.msra.mxu0 %v2392_v25 }
 0x2ea   :  { %v518_v39 = vpack.c.bf16 %v2732_v38, %v2732_v38  ;;  %2269 = vmatprep.subr.bf16.mxu0 %v2544_v1 }
 0x2ec   :  { %2264 = vmatmul.mubr.msk.bf16.vlgmr.msra.gmra.mrb[8].mxu1 %vm166_vm3, %v518_v39 }
 0x2ed   :  { %2279 = vmatprep.mubr.msk.bf16.mxu1 %vm2546_vm1, %v2544_v1  ;;  %v579_v55 = vld [vmem:[#allocation7] sm:$0x3]  ;;  %2270 = vmatpush3.bf16.msra.mxu0 %v2393_v28 }
 0x2ee   :  { %2276 = vmatpush3.bf16.msra.mxu1 %v2394_v29  ;;  %2283 = vmatprep.subr.bf16.mxu0 %v2544_v1 }
 0x2ef   :  { %2277 = vmatprep.subr.bf16.mxu1 %v2544_v1 }
 0x2f2   :  { %2278 = vmatpush3.bf16.msra.mxu1 %v2395_v33 }
 0x2f3   :  { %2291 = vmatprep.subr.bf16.mxu1 %v2544_v1 }
 0x3bb   :  { %v449_v41 = vpop.f32.mrb[4].mxu0 }
 0x3bc   :  { %v455_v42 = vadd.f32 %v449_v41, %v393_v40  ;;  %v2257_v43 = vpop.f32.mrb[5].mxu0 }
 0x3bd   :  { %v452_v44 = vpop.f32.mrb[6].mxu0 }
 0x3be   :  { %2432 = vtanh.f32 %v455_v42  ;;  %v2258_v45 = vpop.f32.mrb[7].mxu0  ;;  %v459_v56 = vsub.f32 0.0, %v455_v42 }
 0x3bf   :  { %v572_v47 = vpop.f32.mrb[8].mxu1 }
 0x3c0   :  { %v578_v48 = vadd.f32 %v572_v47, %v516_v46  ;;  %v2265_v49 = vpop.f32.mrb[9].mxu1  ;;  %v460_v57 = vmul.f32 1.442695, %v459_v56  ;;  %v762_v56 = vld [vmem:[#allocation3 + $0xa] sm:$0x3] }
 0x3c1   :  { %v575_v50 = vpop.f32.mrb[10].mxu1 }
 0x3c2   :  { %v2266_v51 = vpop.f32.mrb[11].mxu1  ;;  %2434 = vtanh.f32 %v578_v48  ;;  %v582_v58 = vsub.f32 0.0, %v578_v48  ;;  %v639_v50 = vld [vmem:[#allocation2 + $0x4] sm:$0x3] }
 0x3c3   :  { %2436 = vpow2.f32 %v460_v57 }
 0x3c4   :  { %v583_v59 = vmul.f32 1.442695, %v582_v58 }
 0x3c6   :  { %2438 = vpow2.f32 %v583_v59 }
 0x3c8   :  { %v2433_v52 = vpop.eup %2432 }
 0x3c9   :  { %471 = vrot.lane.b32.xlu1 %v2433_v52, %s2548_s4 }
 0x3cc   :  { %v2435_v54 = vpop.eup %2434 }
 0x3cd   :  { %466 = vrot.lane.b32.xlu1 %v456_v53, %s2547_s1  ;;  %594 = vrot.lane.b32.xlu0 %v2435_v54, %s2548_s4  ;;  %v2437_v60 = vpop.eup %2436 }
 0x3ce   :  { %v462_v61 = vadd.f32 1.0, %v2437_v60 }
 0x3d0   :  { %v2439_v62 = vpop.eup %2438  ;;  %2440 = vrcp.f32 %v462_v61 }
 0x3d1   :  { %589 = vrot.lane.b32.xlu0 %v579_v55, %s2547_s1  ;;  %v585_v63 = vadd.f32 1.0, %v2439_v62 }
 0x3d3   :  { %2442 = vrcp.f32 %v585_v63 }
 0x3da   :  { %v2441_v3 = vpop.eup %2440 }
 0x3dd   :  { %v2443_v8 = vpop.eup %2442 }
 0x43b   :  { %v472_v4 = vpop.permute.xlu1 %471 }
 0x43c   :  { %v474_v5 = vmul.f32 %v2441_v3, %v472_v4 }
 0x43e   :  { %476 = vrot.lane.b32.xlu1 %v474_v5, %s2547_s1 }
 0x43f   :  { %v595_v9 = vpop.permute.xlu0 %594  ;;  %v467_v13 = vpop.permute.xlu1 %466 }
 0x440   :  { %v597_v10 = vmul.f32 %v2443_v8, %v595_v9  ;;  %v469_v14 = vmul.f32 %v2441_v3, %v467_v13 }
 0x442   :  { %489 = vperm.xlu1 %2370, %v487_v7   ;;  %599 = vrot.lane.b32.xlu0 %v597_v10, %s2547_s1 }
 0x443   :  { %v590_v16 = vpop.permute.xlu0 %589 }
 0x444   :  { %v592_v20 = vmul.f32 %v2443_v8, %v590_v16 }
 0x446   :  { %612 = vperm.xlu0 %2369, %v610_v12  }
 0x4b0   :  { %v477_v15 = vpop.permute.xlu1 %476 }
 0x4b1   :  { %v479_v17 = vadd.f32 %v477_v15, %v469_v14 }
 0x4b3   :  { %2444 = vtanh.f32 %v479_v17 }
 0x4b4   :  { %v600_v11 = vpop.permute.xlu0 %599 }
 0x4b5   :  { %v602_v21 = vadd.f32 %v600_v11, %v592_v20 }
 0x4b7   :  { %2446 = vtanh.f32 %v602_v21 }
 0x4bd   :  { %v2445_v22 = vpop.eup %2444 }
 0x4be   :  { %482 = vrot.lane.b32.xlu1 %v2445_v22, %s2548_s4 }
 0x4c1   :  { %v2447_v24 = vpop.eup %2446  ;;  %v2764_v26 = vpop.permute.xlu1 %489 }
 0x4c2   :  { %493 = vrot.lane.b32.xlu1 %v2726_v36, %s2549_s28  ;;  %605 = vrot.lane.b32.xlu0 %v2447_v24, %s2548_s4  ;;  %vm491_vm10 = vcmp.eq.s32.totalorder %v2764_v26, 1 }
 0x4c3   :  { %v497_v39 = vsel %vm491_vm10, %v479_v17, %v467_v13  ;;  %v2132_v13 = vld [vmem:[%s3372_s5 + $0x4] sm:$0x3]  ;;  %v2137_v17 = vld [vmem:[%s3372_s5 + $0xa] sm:$0x3] }
 0x4c4   :  { %vm732_vm12 = vcmp.gt.f32.partialorder %v2132_v13, 0.5  ;;  %vm855_vm13 = vcmp.gt.f32.partialorder %v2137_v17, 0.5 }
 0x4c5   :  { %v2773_v31 = vpop.permute.xlu0 %612  ;;  %v733_v20 = vsel %vm732_vm12, 1, %v2545_v2  ;;  %v856_v24 = vsel %vm855_vm13, 1, %v2545_v2 }
 0x4c6   :  { %616 = vrot.lane.b32.xlu0 %v2732_v38, %s2549_s28  ;;  %vm614_vm11 = vcmp.eq.s32.totalorder %v2773_v31, 1 }
 0x4c7   :  { %v620_v41 = vsel %vm614_vm11, %v602_v21, %v590_v16 }
 0x530   :  { %v483_v30 = vpop.permute.xlu1 %482 }
 0x531   :  { %v2777_v32 = vmul.f32 %v2441_v3, %v483_v30 }
 0x534   :  { %v494_v34 = vpop.permute.xlu1 %493  ;;  %v606_v35 = vpop.permute.xlu0 %605 }
 0x535   :  { %v496_v36 = vsel %vm491_vm10, %v2777_v32, %v494_v34  ;;  %v2788_v37 = vmul.f32 %v2443_v8, %v606_v35 }
 0x536   :  { %500 = vrot.lane.b32.xlu1 %v496_v36, %s2547_s1 }
 0x538   :  { %v617_v38 = vpop.permute.xlu0 %616 }
 0x539   :  { %v619_v40 = vsel %vm614_vm11, %v2788_v37, %v617_v38 }
 0x53a   :  { %505 = vrot.lane.b32.xlu1 %v497_v39, %s2549_s28  ;;  %623 = vrot.lane.b32.xlu0 %v619_v40, %s2547_s1  ;;  %v2396_v40 = vld [vmem:[%s3368_s2] sm:$0xff]  }
 0x53e   :  { %628 = vrot.lane.b32.xlu0 %v620_v41, %s2549_s28 }
 0x5a8   :  { %v501_v42 = vpop.permute.xlu1 %500 }
 0x5a9   :  { %503 = vst.msk [vmem:[#allocation4] sm:$0x3] %vm3374_vm0, %v501_v42  ;;  %v2397_v42 = vld [vmem:[%s3368_s2 + $0x8] sm:$0xff]  }
 0x5ac   :  { %v506_v43 = vpop.permute.xlu1 %505  ;;  %v624_v44 = vpop.permute.xlu0 %623 }
 0x5ad   :  { %508 = vst.msk [vmem:[#allocation5] sm:$0x3] %vm3374_vm0, %v506_v43  ;;  %626 = vst.msk [vmem:[#allocation6] sm:$0x3] %vm3374_vm0, %v624_v44  ;;  %v2398_v43 = vld [vmem:[%s3370_s3] sm:$0xff]  }
 0x5b0   :  { %v2804_v45 = vld [vmem:[#allocation4] sm:$0x3]  ;;  %v629_v46 = vpop.permute.xlu0 %628 }
 0x5b1   :  { %v641_v47 = vpack.c.bf16 %v2804_v45, %v2804_v45  ;;  %631 = vst.msk [vmem:[#allocation7] sm:$0x3] %vm3374_vm0, %v629_v46 }
 0x5b3   :  { %2272 = vmatmul.mubr.msk.bf16.vlgmr.msra.gmra.mrb[8].mxu0 %vm166_vm3, %v641_v47  ;;  %v2399_v47 = vld [vmem:[%s3370_s3 + $0x8] sm:$0xff]  }
 0x5b4   :  { %2287 = vmatprep.mubr.msk.bf16.mxu0 %vm2546_vm1, %v2544_v1  ;;  %v2812_v48 = vld [vmem:[#allocation6] sm:$0x3]  ;;  %v702_v63 = vld [vmem:[#allocation5] sm:$0x3]  ;;  %2284 = vmatpush3.bf16.msra.mxu0 %v2396_v40 }
 0x5b5   :  { %v764_v49 = vpack.c.bf16 %v2812_v48, %v2812_v48  ;;  %2285 = vmatprep.subr.bf16.mxu0 %v2544_v1 }
 0x5b7   :  { %2280 = vmatmul.mubr.msk.bf16.vlgmr.msra.gmra.mrb[12].mxu1 %vm166_vm3, %v764_v49 }
 0x5b8   :  { %2295 = vmatprep.mubr.msk.bf16.mxu1 %vm2546_vm1, %v2544_v1  ;;  %v825_v3 = vld [vmem:[#allocation7] sm:$0x3]  ;;  %2286 = vmatpush3.bf16.msra.mxu0 %v2397_v42 }
 0x5b9   :  { %2292 = vmatpush3.bf16.msra.mxu1 %v2398_v43  ;;  %2299 = vmatprep.subr.bf16.mxu0 %v2544_v1 }
 0x5ba   :  { %2293 = vmatprep.subr.bf16.mxu1 %v2544_v1 }
 0x5bd   :  { %2294 = vmatpush3.bf16.msra.mxu1 %v2399_v47 }
 0x5be   :  { %2307 = vmatprep.subr.bf16.mxu1 %v2544_v1 }
 0x686   :  { %v695_v51 = vpop.f32.mrb[8].mxu0 }
 0x687   :  { %v701_v52 = vadd.f32 %v695_v51, %v639_v50  ;;  %v2273_v53 = vpop.f32.mrb[9].mxu0 }
 0x688   :  { %v698_v54 = vpop.f32.mrb[10].mxu0 }
 0x689   :  { %2448 = vtanh.f32 %v701_v52  ;;  %v2274_v55 = vpop.f32.mrb[11].mxu0  ;;  %v705_v4 = vsub.f32 0.0, %v701_v52 }
 0x68a   :  { %v818_v57 = vpop.f32.mrb[12].mxu1 }
 0x68b   :  { %v824_v58 = vadd.f32 %v818_v57, %v762_v56  ;;  %v2281_v59 = vpop.f32.mrb[13].mxu1  ;;  %v706_v5 = vmul.f32 1.442695, %v705_v4 }
 0x68c   :  { %v821_v60 = vpop.f32.mrb[14].mxu1 }
 0x68d   :  { %2450 = vtanh.f32 %v824_v58  ;;  %v2282_v61 = vpop.f32.mrb[15].mxu1  ;;  %v828_v6 = vsub.f32 0.0, %v824_v58 }
 0x68e   :  { %2452 = vpow2.f32 %v706_v5 }
 0x68f   :  { %v829_v7 = vmul.f32 1.442695, %v828_v6 }
 0x691   :  { %2454 = vpow2.f32 %v829_v7 }
 0x693   :  { %v2449_v62 = vpop.eup %2448 }
 0x694   :  { %717 = vrot.lane.b32.xlu1 %v2449_v62, %s2548_s4 }
 0x697   :  { %v2451_v0 = vpop.eup %2450 }
 0x698   :  { %712 = vrot.lane.b32.xlu1 %v702_v63, %s2547_s1  ;;  %840 = vrot.lane.b32.xlu0 %v2451_v0, %s2548_s4  ;;  %v2453_v8 = vpop.eup %2452  ;;  %v885_v0 = vld [vmem:[#allocation2 + $0x6] sm:$0x3] }
 0x699   :  { %v708_v9 = vadd.f32 1.0, %v2453_v8  ;;  %v1008_v8 = vld [vmem:[#allocation3 + $0x8] sm:$0x3] }
 0x69b   :  { %v2455_v10 = vpop.eup %2454  ;;  %2456 = vrcp.f32 %v708_v9 }
 0x69c   :  { %835 = vrot.lane.b32.xlu0 %v825_v3, %s2547_s1  ;;  %v831_v12 = vadd.f32 1.0, %v2455_v10 }
 0x69e   :  { %2458 = vrcp.f32 %v831_v12 }
 0x6a5   :  { %v2457_v14 = vpop.eup %2456 }
 0x6a8   :  { %v2459_v11 = vpop.eup %2458 }
 0x706   :  { %v718_v15 = vpop.permute.xlu1 %717 }
 0x707   :  { %v720_v16 = vmul.f32 %v2457_v14, %v718_v15 }
 0x709   :  { %722 = vrot.lane.b32.xlu1 %v720_v16, %s2547_s1 }
 0x70a   :  { %v841_v21 = vpop.permute.xlu0 %840  ;;  %v713_v25 = vpop.permute.xlu1 %712 }
 0x70b   :  { %v843_v22 = vmul.f32 %v2459_v11, %v841_v21  ;;  %v715_v28 = vmul.f32 %v2457_v14, %v713_v25 }
 0x70d   :  { %735 = vperm.xlu1 %2370, %v733_v20   ;;  %845 = vrot.lane.b32.xlu0 %v843_v22, %s2547_s1 }
 0x70e   :  { %v836_v30 = vpop.permute.xlu0 %835 }
 0x70f   :  { %v838_v34 = vmul.f32 %v2459_v11, %v836_v30 }
 0x711   :  { %858 = vperm.xlu0 %2369, %v856_v24  }
 0x77b   :  { %v723_v29 = vpop.permute.xlu1 %722 }
 0x77c   :  { %v725_v33 = vadd.f32 %v723_v29, %v715_v28 }
 0x77e   :  { %2460 = vtanh.f32 %v725_v33 }
 0x77f   :  { %v846_v35 = vpop.permute.xlu0 %845 }
 0x780   :  { %v848_v36 = vadd.f32 %v846_v35, %v838_v34 }
 0x782   :  { %2462 = vtanh.f32 %v848_v36 }
 0x788   :  { %v2461_v38 = vpop.eup %2460 }
 0x789   :  { %728 = vrot.lane.b32.xlu1 %v2461_v38, %s2548_s4  ;;  %v2147_v38 = vld [vmem:[%s3372_s5 + $0x8] sm:$0x3] }
 0x78a   :  { %vm1101_vm4 = vcmp.gt.f32.partialorder %v2147_v38, 0.5 }
 0x78c   :  { %v2463_v39 = vpop.eup %2462  ;;  %v2842_v41 = vpop.permute.xlu1 %735 }
 0x78d   :  { %739 = vrot.lane.b32.xlu1 %v2804_v45, %s2549_s28  ;;  %851 = vrot.lane.b32.xlu0 %v2463_v39, %s2548_s4  ;;  %vm737_vm14 = vcmp.eq.s32.totalorder %v2842_v41, 1 }
 0x78e   :  { %v743_v53 = vsel %vm737_vm14, %v725_v33, %v713_v25  ;;  %v2142_v33 = vld [vmem:[%s3372_s5 + $0x6] sm:$0x3] }
 0x78f   :  { %vm978_vm2 = vcmp.gt.f32.partialorder %v2142_v33, 0.5  ;;  %v1252_v33 = vld [vmem:[#allocation3 + $0x6] sm:$0x3] }
 0x790   :  { %v2851_v45 = vpop.permute.xlu0 %858  ;;  %v979_v39 = vsel %vm978_vm2, 1, %v2545_v2 }
 0x791   :  { %862 = vrot.lane.b32.xlu0 %v2812_v48, %s2549_s28  ;;  %vm860_vm15 = vcmp.eq.s32.totalorder %v2851_v45, 1 }
 0x792   :  { %v866_v55 = vsel %vm860_vm15, %v848_v36, %v836_v30 }
 0x7fb   :  { %v729_v44 = vpop.permute.xlu1 %728 }
 0x7fc   :  { %v2855_v46 = vmul.f32 %v2457_v14, %v729_v44  ;;  %v1102_v44 = vsel %vm1101_vm4, 1, %v2545_v2 }
 0x7fe   :  { %v744_v19 = vsel %vm737_vm14, %v2855_v46, 0.0 }
 0x7ff   :  { %v740_v48 = vpop.permute.xlu1 %739  ;;  %v852_v49 = vpop.permute.xlu0 %851 }
 0x800   :  { %v742_v50 = vsel %vm737_vm14, %v2855_v46, %v740_v48  ;;  %v2866_v51 = vmul.f32 %v2459_v11, %v852_v49 }
 0x801   :  { %746 = vrot.lane.b32.xlu1 %v742_v50, %s2547_s1 }
 0x803   :  { %v863_v52 = vpop.permute.xlu0 %862 }
 0x804   :  { %v865_v54 = vsel %vm860_vm15, %v2866_v51, %v863_v52 }
 0x805   :  { %751 = vrot.lane.b32.xlu1 %v743_v53, %s2549_s28  ;;  %869 = vrot.lane.b32.xlu0 %v865_v54, %s2547_s1 }
 0x809   :  { %874 = vrot.lane.b32.xlu0 %v866_v55, %s2549_s28 }
 0x873   :  { %v747_v56 = vpop.permute.xlu1 %746 }
 0x874   :  { %749 = vst.msk [vmem:[#allocation4] sm:$0x3] %vm3374_vm0, %v747_v56 }
 0x877   :  { %v752_v57 = vpop.permute.xlu1 %751  ;;  %v870_v58 = vpop.permute.xlu0 %869 }
 0x878   :  { %754 = vst.msk [vmem:[#allocation5] sm:$0x3] %vm3374_vm0, %v752_v57  ;;  %872 = vst.msk [vmem:[#allocation6] sm:$0x3] %vm3374_vm0, %v870_v58  ;;  %v2400_v58 = vld [vmem:[%s3368_s2] sm:$0xff]  }
 0x87b   :  { %v2882_v59 = vld [vmem:[#allocation4] sm:$0x3]  ;;  %v875_v60 = vpop.permute.xlu0 %874 }
 0x87c   :  { %v887_v61 = vpack.c.bf16 %v2882_v59, %v2882_v59  ;;  %877 = vst.msk [vmem:[#allocation7] sm:$0x3] %vm3374_vm0, %v875_v60 }
 0x87e   :  { %2288 = vmatmul.mubr.msk.bf16.vlgmr.msra.gmra.mrb[12].mxu0 %vm166_vm3, %v887_v61  ;;  %v2401_v61 = vld [vmem:[%s3368_s2 + $0x8] sm:$0xff]  }
 0x87f   :  { %2303 = vmatprep.mubr.msk.bf16.mxu0 %vm2546_vm1, %v2544_v1  ;;  %v2890_v62 = vld [vmem:[#allocation6] sm:$0x3]  ;;  %v948_v16 = vld [vmem:[#allocation5] sm:$0x3]  ;;  %2300 = vmatpush3.bf16.msra.mxu0 %v2400_v58 }
 0x880   :  { %v1010_v63 = vpack.c.bf16 %v2890_v62, %v2890_v62  ;;  %2301 = vmatprep.subr.bf16.mxu0 %v2544_v1 }
 0x882   :  { %2296 = vmatmul.mubr.msk.bf16.vlgmr.msra.gmra.mrb[16].mxu1 %vm166_vm3, %v1010_v63 }
 0x883   :  { %2311 = vmatprep.mubr.msk.bf16.mxu1 %vm2546_vm1, %v2544_v1  ;;  %v1071_v20 = vld [vmem:[#allocation7] sm:$0x3]  ;;  %2302 = vmatpush3.bf16.msra.mxu0 %v2401_v61 }
 0x884   :  { %2315 = vmatprep.subr.bf16.mxu0 %v2544_v1 }
 0x951   :  { %v941_v3 = vpop.f32.mrb[12].mxu0 }
 0x952   :  { %v947_v4 = vadd.f32 %v941_v3, %v885_v0  ;;  %v2289_v5 = vpop.f32.mrb[13].mxu0  ;;  %v2403_v3 = vld [vmem:[%s3370_s3 + $0x8] sm:$0xff]  }
 0x953   :  { %v944_v6 = vpop.f32.mrb[14].mxu0 }
 0x954   :  { %2464 = vtanh.f32 %v947_v4  ;;  %v2290_v7 = vpop.f32.mrb[15].mxu0  ;;  %v951_v11 = vsub.f32 0.0, %v947_v4 }
 0x955   :  { %v1064_v9 = vpop.f32.mrb[16].mxu1 }
 0x956   :  { %v1070_v10 = vadd.f32 %v1064_v9, %v1008_v8  ;;  %v2297_v12 = vpop.f32.mrb[17].mxu1  ;;  %v952_v21 = vmul.f32 1.442695, %v951_v11 }
 0x957   :  { %v1067_v13 = vpop.f32.mrb[18].mxu1 }
 0x958   :  { %2466 = vtanh.f32 %v1070_v10  ;;  %v2298_v14 = vpop.f32.mrb[19].mxu1  ;;  %v1074_v22 = vsub.f32 0.0, %v1070_v10 }
 0x959   :  { %2468 = vpow2.f32 %v952_v21 }
 0x95a   :  { %v1075_v24 = vmul.f32 1.442695, %v1074_v22  ;;  %v1131_v22 = vld [vmem:[#allocation2 + $0x8] sm:$0x3] }
 0x95c   :  { %2470 = vpow2.f32 %v1075_v24 }
 0x95e   :  { %v2465_v15 = vpop.eup %2464 }
 0x95f   :  { %963 = vrot.lane.b32.xlu1 %v2465_v15, %s2548_s4 }
 0x962   :  { %v2467_v17 = vpop.eup %2466 }
 0x963   :  { %958 = vrot.lane.b32.xlu1 %v948_v16, %s2547_s1  ;;  %1086 = vrot.lane.b32.xlu0 %v2467_v17, %s2548_s4  ;;  %v2469_v25 = vpop.eup %2468 }
 0x964   :  { %v954_v28 = vadd.f32 1.0, %v2469_v25 }
 0x966   :  { %v2471_v29 = vpop.eup %2470  ;;  %2472 = vrcp.f32 %v954_v28 }
 0x967   :  { %1081 = vrot.lane.b32.xlu0 %v1071_v20, %s2547_s1  ;;  %v1077_v30 = vadd.f32 1.0, %v2471_v29 }
 0x969   :  { %2474 = vrcp.f32 %v1077_v30 }
 0x970   :  { %v2473_v34 = vpop.eup %2472 }
 0x973   :  { %v2475_v40 = vpop.eup %2474 }
 0x9d1   :  { %v964_v35 = vpop.permute.xlu1 %963 }
 0x9d2   :  { %v966_v36 = vmul.f32 %v2473_v34, %v964_v35 }
 0x9d4   :  { %968 = vrot.lane.b32.xlu1 %v966_v36, %s2547_s1 }
 0x9d5   :  { %v1087_v42 = vpop.permute.xlu0 %1086  ;;  %v959_v47 = vpop.permute.xlu1 %958 }
 0x9d6   :  { %v1089_v43 = vmul.f32 %v2475_v40, %v1087_v42  ;;  %v961_v48 = vmul.f32 %v2473_v34, %v959_v47 }
 0x9d8   :  { %981 = vperm.xlu1 %2370, %v979_v39   ;;  %1091 = vrot.lane.b32.xlu0 %v1089_v43, %s2547_s1 }
 0x9d9   :  { %v1082_v50 = vpop.permute.xlu0 %1081 }
 0x9da   :  { %v1084_v53 = vmul.f32 %v2475_v40, %v1082_v50 }
 0x9dc   :  { %1104 = vperm.xlu0 %2369, %v1102_v44  }
 0xa46   :  { %v969_v49 = vpop.permute.xlu1 %968 }
 0xa47   :  { %v971_v52 = vadd.f32 %v969_v49, %v961_v48 }
 0xa49   :  { %2476 = vtanh.f32 %v971_v52 }
 0xa4a   :  { %v1092_v54 = vpop.permute.xlu0 %1091 }
 0xa4b   :  { %v1094_v55 = vadd.f32 %v1092_v54, %v1084_v53 }
 0xa4d   :  { %2478 = vtanh.f32 %v1094_v55 }
 0xa53   :  { %v2477_v56 = vpop.eup %2476 }
 0xa54   :  { %974 = vrot.lane.b32.xlu1 %v2477_v56, %s2548_s4  ;;  %v2152_v56 = vld [vmem:[%s3372_s5 + $0x8] sm:$0x3] }
 0xa55   :  { %vm1223_vm9 = vcmp.gt.f32.partialorder %v2152_v56, 0.5 }
 0xa57   :  { %v2479_v57 = vpop.eup %2478  ;;  %v2920_v60 = vpop.permute.xlu1 %981 }
 0xa58   :  { %985 = vrot.lane.b32.xlu1 %v2882_v59, %s2549_s28  ;;  %1097 = vrot.lane.b32.xlu0 %v2479_v57, %s2548_s4  ;;  %v2402_v59 = vld [vmem:[%s3370_s3] sm:$0xff]   ;;  %vm983_vm5 = vcmp.eq.s32.totalorder %v2920_v60, 1 }
 0xa59   :  { %2308 = vmatpush3.bf16.msra.mxu1 %v2402_v59  ;;  %v989_v9 = vsel %vm983_vm5, %v971_v52, %v959_v47  ;;  %v2157_v59 = vld [vmem:[%s3372_s5 + $0x6] sm:$0x3] }
 0xa5a   :  { %2309 = vmatprep.subr.bf16.mxu1 %v2544_v1  ;;  %vm1344_vm12 = vcmp.gt.f32.partialorder %v2157_v59, 0.5  ;;  %v1494_v59 = vld [vmem:[#allocation3 + $0x4] sm:$0x3] }
 0xa5c   :  { %1108 = vrot.lane.b32.xlu0 %v2890_v62, %s2549_s28  ;;  %v2929_v62 = vpop.permute.xlu0 %1104 }
 0xa5d   :  { %2310 = vmatpush3.bf16.msra.mxu1 %v2403_v3  ;;  %vm1106_vm8 = vcmp.eq.s32.totalorder %v2929_v62, 1 }
 0xa5e   :  { %2323 = vmatprep.subr.bf16.mxu1 %v2544_v1  ;;  %v1112_v12 = vsel %vm1106_vm8, %v1094_v55, %v1082_v50 }
 0xac6   :  { %v975_v63 = vpop.permute.xlu1 %974 }
 0xac7   :  { %v2933_v0 = vmul.f32 %v2473_v34, %v975_v63  ;;  %v1224_v63 = vsel %vm1223_vm9, 1, %v2545_v2 }
 0xac9   :  { %v990_v18 = vsel %vm983_vm5, %v2933_v0, 0.0 }
 0xaca   :  { %v986_v4 = vpop.permute.xlu1 %985  ;;  %v1098_v5 = vpop.permute.xlu0 %1097 }
 0xacb   :  { %v988_v6 = vsel %vm983_vm5, %v2933_v0, %v986_v4  ;;  %v2944_v7 = vmul.f32 %v2475_v40, %v1098_v5 }
 0xacc   :  { %992 = vrot.lane.b32.xlu1 %v988_v6, %s2547_s1  ;;  %v1345_v6 = vsel %vm1344_vm12, 1, %v2545_v2 }
 0xacd   :  { %v1113_v31 = vsel %vm1106_vm8, %v2944_v7, 0.0 }
 0xace   :  { %v1109_v8 = vpop.permute.xlu0 %1108 }
 0xacf   :  { %v1111_v10 = vsel %vm1106_vm8, %v2944_v7, %v1109_v8 }
 0xad0   :  { %997 = vrot.lane.b32.xlu1 %v989_v9, %s2549_s28  ;;  %1115 = vrot.lane.b32.xlu0 %v1111_v10, %s2547_s1 }
 0xad4   :  { %1120 = vrot.lane.b32.xlu0 %v1112_v12, %s2549_s28 }
 0xb3e   :  { %v993_v13 = vpop.permute.xlu1 %992 }
 0xb3f   :  { %995 = vst.msk [vmem:[#allocation4] sm:$0x3] %vm3374_vm0, %v993_v13 }
 0xb42   :  { %v998_v14 = vpop.permute.xlu1 %997  ;;  %v1116_v15 = vpop.permute.xlu0 %1115 }
 0xb43   :  { %1000 = vst.msk [vmem:[#allocation5] sm:$0x3] %vm3374_vm0, %v998_v14  ;;  %1118 = vst.msk [vmem:[#allocation6] sm:$0x3] %vm3374_vm0, %v1116_v15 }
 0xb46   :  { %v2960_v16 = vld [vmem:[#allocation4] sm:$0x3]  ;;  %v1121_v17 = vpop.permute.xlu0 %1120 }
 0xb47   :  { %v1133_v20 = vpack.c.bf16 %v2960_v16, %v2960_v16  ;;  %1123 = vst.msk [vmem:[#allocation7] sm:$0x3] %vm3374_vm0, %v1121_v17 }
 0xb49   :  { %2304 = vmatmul.mubr.msk.bf16.vlgmr.msra.gmra.mrb[16].mxu0 %vm166_vm3, %v1133_v20 }
 0xb4a   :  { %2319 = vmatprep.mubr.msk.bf16.mxu0 %vm2546_vm1, %v2544_v1  ;;  %v2968_v11 = vld [vmem:[#allocation6] sm:$0x3]  ;;  %v1194_v42 = vld [vmem:[#allocation5] sm:$0x3] }
 0xb4b   :  { %v1254_v21 = vpack.c.bf16 %v2968_v11, %v2968_v11 }
 0xb4d   :  { %2312 = vmatmul.mubr.msk.bf16.vlgmr.msra.gmra.mrb[20].mxu1 %vm166_vm3, %v1254_v21 }
 0xb4e   :  { %2327 = vmatprep.mubr.msk.bf16.mxu1 %vm2546_vm1, %v2544_v1  ;;  %v1315_v44 = vld [vmem:[#allocation7] sm:$0x3] }
 0xc1c   :  { %v1187_v24 = vpop.f32.mrb[16].mxu0 }
 0xc1d   :  { %v1193_v25 = vadd.f32 %v1187_v24, %v1131_v22  ;;  %v2305_v28 = vpop.f32.mrb[17].mxu0  ;;  %v2404_v22 = vld [vmem:[%s3368_s2] sm:$0xff]  }
 0xc1e   :  { %v1190_v29 = vpop.f32.mrb[18].mxu0  ;;  %2316 = vmatpush3.bf16.msra.mxu0 %v2404_v22 }
 0xc1f   :  { %2480 = vtanh.f32 %v1193_v25  ;;  %v2306_v30 = vpop.f32.mrb[19].mxu0  ;;  %v1196_v47 = vsub.f32 0.0, %v1193_v25  ;;  %2317 = vmatprep.subr.bf16.mxu0 %v2544_v1  ;;  %v2405_v25 = vld [vmem:[%s3368_s2 + $0x8] sm:$0xff]  }
 0xc20   :  { %v1308_v34 = vpop.f32.mrb[20].mxu1  ;;  %v2407_v30 = vld [vmem:[%s3370_s3 + $0x8] sm:$0xff]  }
 0xc21   :  { %v1314_v35 = vadd.f32 %v1308_v34, %v1252_v33  ;;  %v2313_v36 = vpop.f32.mrb[21].mxu1  ;;  %v1197_v48 = vmul.f32 1.442695, %v1196_v47 }
 0xc22   :  { %v1311_v38 = vpop.f32.mrb[22].mxu1  ;;  %2318 = vmatpush3.bf16.msra.mxu0 %v2405_v25 }
 0xc23   :  { %2482 = vtanh.f32 %v1314_v35  ;;  %v2314_v39 = vpop.f32.mrb[23].mxu1  ;;  %v1317_v49 = vsub.f32 0.0, %v1314_v35  ;;  %2331 = vmatprep.subr.bf16.mxu0 %v2544_v1 }
 0xc24   :  { %2484 = vpow2.f32 %v1197_v48 }
 0xc25   :  { %v1318_v50 = vmul.f32 1.442695, %v1317_v49 }
 0xc27   :  { %2486 = vpow2.f32 %v1318_v50 }
 0xc29   :  { %v2481_v40 = vpop.eup %2480 }
 0xc2a   :  { %1208 = vrot.lane.b32.xlu1 %v2481_v40, %s2548_s4 }
 0xc2d   :  { %v2483_v43 = vpop.eup %2482 }
 0xc2e   :  { %1203 = vrot.lane.b32.xlu1 %v1194_v42, %s2547_s1  ;;  %1329 = vrot.lane.b32.xlu0 %v2483_v43, %s2548_s4  ;;  %v2485_v52 = vpop.eup %2484 }
 0xc2f   :  { %v1199_v53 = vadd.f32 1.0, %v2485_v52 }
 0xc31   :  { %v2487_v54 = vpop.eup %2486  ;;  %2488 = vrcp.f32 %v1199_v53 }
 0xc32   :  { %1324 = vrot.lane.b32.xlu0 %v1315_v44, %s2547_s1  ;;  %v1320_v55 = vadd.f32 1.0, %v2487_v54  ;;  %v1373_v54 = vld [vmem:[#allocation2 + $0xa] sm:$0x3] }
 0xc34   :  { %2490 = vrcp.f32 %v1320_v55 }
 0xc3b   :  { %v2489_v57 = vpop.eup %2488 }
 0xc3e   :  { %v2491_v3 = vpop.eup %2490 }
 0xc9c   :  { %v1209_v58 = vpop.permute.xlu1 %1208 }
 0xc9d   :  { %v1211_v61 = vmul.f32 %v2489_v57, %v1209_v58 }
 0xc9f   :  { %1213 = vrot.lane.b32.xlu1 %v1211_v61, %s2547_s1 }
 0xca0   :  { %v1330_v4 = vpop.permute.xlu0 %1329  ;;  %v1204_v8 = vpop.permute.xlu1 %1203 }
 0xca1   :  { %v1332_v5 = vmul.f32 %v2491_v3, %v1330_v4  ;;  %v1206_v9 = vmul.f32 %v2489_v57, %v1204_v8 }
 0xca3   :  { %1226 = vperm.xlu1 %2370, %v1224_v63   ;;  %1334 = vrot.lane.b32.xlu0 %v1332_v5, %s2547_s1 }
 0xca4   :  { %v1325_v12 = vpop.permute.xlu0 %1324 }
 0xca5   :  { %v1327_v14 = vmul.f32 %v2491_v3, %v1325_v12 }
 0xca7   :  { %1347 = vperm.xlu0 %2369, %v1345_v6  }
 0xd11   :  { %v1214_v10 = vpop.permute.xlu1 %1213 }
 0xd12   :  { %v1216_v13 = vadd.f32 %v1214_v10, %v1206_v9 }
 0xd14   :  { %2492 = vtanh.f32 %v1216_v13 }
 0xd15   :  { %v1335_v15 = vpop.permute.xlu0 %1334 }
 0xd16   :  { %v1337_v17 = vadd.f32 %v1335_v15, %v1327_v14 }
 0xd18   :  { %2494 = vtanh.f32 %v1337_v17 }
 0xd1e   :  { %v2493_v20 = vpop.eup %2492 }
 0xd1f   :  { %1219 = vrot.lane.b32.xlu1 %v2493_v20, %s2548_s4 }
 0xd22   :  { %v2495_v21 = vpop.eup %2494  ;;  %v2998_v24 = vpop.permute.xlu1 %1226 }
 0xd23   :  { %1230 = vrot.lane.b32.xlu1 %v2960_v16, %s2549_s28  ;;  %1340 = vrot.lane.b32.xlu0 %v2495_v21, %s2548_s4  ;;  %v2406_v16 = vld [vmem:[%s3370_s3] sm:$0xff]   ;;  %vm1228_vm13 = vcmp.eq.s32.totalorder %v2998_v24, 1 }
 0xd24   :  { %2324 = vmatpush3.bf16.msra.mxu1 %v2406_v16  ;;  %v1234_v39 = vsel %vm1228_vm13, %v1216_v13, %v1204_v8  ;;  %v2162_v16 = vld [vmem:[%s3372_s5 + $0xa] sm:$0x3] }
 0xd25   :  { %2325 = vmatprep.subr.bf16.mxu1 %v2544_v1  ;;  %vm1465_vm4 = vcmp.gt.f32.partialorder %v2162_v16, 0.5 }
 0xd27   :  { %1351 = vrot.lane.b32.xlu0 %v2968_v11, %s2549_s28  ;;  %v3007_v11 = vpop.permute.xlu0 %1347 }
 0xd28   :  { %2326 = vmatpush3.bf16.msra.mxu1 %v2407_v30  ;;  %vm1349_vm2 = vcmp.eq.s32.totalorder %v3007_v11, 1 }
 0xd29   :  { %2339 = vmatprep.subr.bf16.mxu1 %v2544_v1  ;;  %v1355_v42 = vsel %vm1349_vm2, %v1337_v17, %v1325_v12 }
 0xd91   :  { %v1220_v28 = vpop.permute.xlu1 %1219 }
 0xd92   :  { %v3011_v29 = vmul.f32 %v2489_v57, %v1220_v28 }
 0xd94   :  { %v1235_v26 = vsel %vm1228_vm13, %v3011_v29, 0.0 }
 0xd95   :  { %v1231_v33 = vpop.permute.xlu1 %1230  ;;  %v1341_v34 = vpop.permute.xlu0 %1340 }
 0xd96   :  { %v1233_v35 = vsel %vm1228_vm13, %v3011_v29, %v1231_v33  ;;  %v3022_v36 = vmul.f32 %v2491_v3, %v1341_v34  ;;  %v2167_v34 = vld [vmem:[%s3372_s5 + $0x4] sm:$0x3] }
 0xd97   :  { %1237 = vrot.lane.b32.xlu1 %v1233_v35, %s2547_s1  ;;  %v1466_v35 = vsel %vm1465_vm4, 1, %v2545_v2  ;;  %vm1586_vm9 = vcmp.gt.f32.partialorder %v2167_v34, 0.5 }
 0xd99   :  { %v1352_v38 = vpop.permute.xlu0 %1351 }
 0xd9a   :  { %v1354_v40 = vsel %vm1349_vm2, %v3022_v36, %v1352_v38 }
 0xd9b   :  { %1242 = vrot.lane.b32.xlu1 %v1234_v39, %s2549_s28  ;;  %1358 = vrot.lane.b32.xlu0 %v1354_v40, %s2547_s1 }
 0xd9f   :  { %1363 = vrot.lane.b32.xlu0 %v1355_v42, %s2549_s28  ;;  %v1587_v42 = vsel %vm1586_vm9, 1, %v2545_v2 }
 0xe09   :  { %v1238_v43 = vpop.permute.xlu1 %1237 }
 0xe0a   :  { %1240 = vst.msk [vmem:[#allocation4] sm:$0x3] %vm3374_vm0, %v1238_v43 }
 0xe0d   :  { %v1243_v44 = vpop.permute.xlu1 %1242  ;;  %v1359_v47 = vpop.permute.xlu0 %1358 }
 0xe0e   :  { %1245 = vst.msk [vmem:[#allocation5] sm:$0x3] %vm3374_vm0, %v1243_v44  ;;  %1361 = vst.msk [vmem:[#allocation6] sm:$0x3] %vm3374_vm0, %v1359_v47 }
 0xe11   :  { %v3038_v48 = vld [vmem:[#allocation4] sm:$0x3]  ;;  %v1364_v49 = vpop.permute.xlu0 %1363 }
 0xe12   :  { %v1375_v50 = vpack.c.bf16 %v3038_v48, %v3038_v48  ;;  %1366 = vst.msk [vmem:[#allocation7] sm:$0x3] %vm3374_vm0, %v1364_v49 }
 0xe14   :  { %2320 = vmatmul.mubr.msk.bf16.vlgmr.msra.gmra.mrb[20].mxu0 %vm166_vm3, %v1375_v50 }
 0xe15   :  { %2335 = vmatprep.mubr.msk.bf16.mxu0 %vm2546_vm1, %v2544_v1  ;;  %v3046_v52 = vld [vmem:[#allocation6] sm:$0x3]  ;;  %v1436_v9 = vld [vmem:[#allocation5] sm:$0x3] }
 0xe16   :  { %v1496_v53 = vpack.c.bf16 %v3046_v52, %v3046_v52 }
 0xe18   :  { %2328 = vmatmul.mubr.msk.bf16.vlgmr.msra.gmra.mrb[24].mxu1 %vm166_vm3, %v1496_v53 }
 0xe19   :  { %2343 = vmatprep.mubr.msk.bf16.mxu1 %vm2546_vm1, %v2544_v1  ;;  %v1557_v12 = vld [vmem:[#allocation7] sm:$0x3] }
 0xee7   :  { %v1429_v55 = vpop.f32.mrb[20].mxu0 }
 0xee8   :  { %v1435_v56 = vadd.f32 %v1429_v55, %v1373_v54  ;;  %v2321_v57 = vpop.f32.mrb[21].mxu0 }
 0xee9   :  { %v1432_v58 = vpop.f32.mrb[22].mxu0 }
 0xeea   :  { %2496 = vtanh.f32 %v1435_v56  ;;  %v2322_v61 = vpop.f32.mrb[23].mxu0  ;;  %v1438_v13 = vsub.f32 0.0, %v1435_v56  ;;  %v2408_v58 = vld [vmem:[%s3368_s2] sm:$0xff]  }
 0xeeb   :  { %v1550_v63 = vpop.f32.mrb[24].mxu1  ;;  %2332 = vmatpush3.bf16.msra.mxu0 %v2408_v58 }
 0xeec   :  { %v1556_v3 = vadd.f32 %v1550_v63, %v1494_v59  ;;  %v2329_v4 = vpop.f32.mrb[25].mxu1  ;;  %v1439_v14 = vmul.f32 1.442695, %v1438_v13  ;;  %2333 = vmatprep.subr.bf16.mxu0 %v2544_v1  ;;  %v2409_v59 = vld [vmem:[%s3368_s2 + $0x8] sm:$0xff]  }
 0xeed   :  { %v1553_v5 = vpop.f32.mrb[26].mxu1  ;;  %v2411_v4 = vld [vmem:[%s3370_s3 + $0x8] sm:$0xff]  }
 0xeee   :  { %2498 = vtanh.f32 %v1556_v3  ;;  %v2330_v6 = vpop.f32.mrb[27].mxu1  ;;  %v1559_v15 = vsub.f32 0.0, %v1556_v3 }
 0xeef   :  { %2500 = vpow2.f32 %v1439_v14  ;;  %2334 = vmatpush3.bf16.msra.mxu0 %v2409_v59 }
 0xef0   :  { %v1560_v17 = vmul.f32 1.442695, %v1559_v15  ;;  %2347 = vmatprep.subr.bf16.mxu0 %v2544_v1 }
 0xef2   :  { %2502 = vpow2.f32 %v1560_v17 }
 0xef4   :  { %v2497_v8 = vpop.eup %2496 }
 0xef5   :  { %1450 = vrot.lane.b32.xlu1 %v2497_v8, %s2548_s4 }
 0xef8   :  { %v2499_v10 = vpop.eup %2498 }
 0xef9   :  { %1445 = vrot.lane.b32.xlu1 %v1436_v9, %s2547_s1  ;;  %1571 = vrot.lane.b32.xlu0 %v2499_v10, %s2548_s4  ;;  %v2501_v20 = vpop.eup %2500 }
 0xefa   :  { %v1441_v21 = vadd.f32 1.0, %v2501_v20 }
 0xefc   :  { %v2503_v22 = vpop.eup %2502  ;;  %2504 = vrcp.f32 %v1441_v21 }
 0xefd   :  { %1566 = vrot.lane.b32.xlu0 %v1557_v12, %s2547_s1  ;;  %v1562_v25 = vadd.f32 1.0, %v2503_v22 }
 0xeff   :  { %2506 = vrcp.f32 %v1562_v25 }
 0xf06   :  { %v2505_v28 = vpop.eup %2504 }
 0xf09   :  { %v2507_v38 = vpop.eup %2506 }
 0xf67   :  { %v1451_v30 = vpop.permute.xlu1 %1450 }
 0xf68   :  { %v1453_v33 = vmul.f32 %v2505_v28, %v1451_v30  ;;  %v1615_v30 = vld [vmem:[#allocation2 + $0xc] sm:$0x3] }
 0xf6a   :  { %1455 = vrot.lane.b32.xlu1 %v1453_v33, %s2547_s1 }
 0xf6b   :  { %v1572_v39 = vpop.permute.xlu0 %1571  ;;  %v1446_v43 = vpop.permute.xlu1 %1445 }
 0xf6c   :  { %v1574_v40 = vmul.f32 %v2507_v38, %v1572_v39  ;;  %v1448_v44 = vmul.f32 %v2505_v28, %v1446_v43 }
 0xf6e   :  { %1468 = vperm.xlu1 %2370, %v1466_v35   ;;  %1576 = vrot.lane.b32.xlu0 %v1574_v40, %s2547_s1  ;;  %v1736_v40 = vld [vmem:[#allocation3 + $0x2] sm:$0x3] }
 0xf6f   :  { %v1567_v49 = vpop.permute.xlu0 %1566 }
 0xf70   :  { %v1569_v53 = vmul.f32 %v2507_v38, %v1567_v49 }
 0xf72   :  { %1589 = vperm.xlu0 %2369, %v1587_v42  }
 0xfdc   :  { %v1456_v47 = vpop.permute.xlu1 %1455 }
 0xfdd   :  { %v1458_v50 = vadd.f32 %v1456_v47, %v1448_v44 }
 0xfdf   :  { %2508 = vtanh.f32 %v1458_v50 }
 0xfe0   :  { %v1577_v54 = vpop.permute.xlu0 %1576 }
 0xfe1   :  { %v1579_v55 = vadd.f32 %v1577_v54, %v1569_v53 }
 0xfe3   :  { %2510 = vtanh.f32 %v1579_v55 }
 0xfe9   :  { %v2509_v56 = vpop.eup %2508 }
 0xfea   :  { %1461 = vrot.lane.b32.xlu1 %v2509_v56, %s2548_s4 }
 0xfed   :  { %v2511_v57 = vpop.eup %2510  ;;  %v3076_v61 = vpop.permute.xlu1 %1468 }
 0xfee   :  { %1472 = vrot.lane.b32.xlu1 %v3038_v48, %s2549_s28  ;;  %1582 = vrot.lane.b32.xlu0 %v2511_v57, %s2548_s4  ;;  %v2410_v48 = vld [vmem:[%s3370_s3] sm:$0xff]   ;;  %vm1470_vm12 = vcmp.eq.s32.totalorder %v3076_v61, 1 }
 0xfef   :  { %2340 = vmatpush3.bf16.msra.mxu1 %v2410_v48  ;;  %v1476_v12 = vsel %vm1470_vm12, %v1458_v50, %v1446_v43 }
 0xff0   :  { %2341 = vmatprep.subr.bf16.mxu1 %v2544_v1 }
 0xff2   :  { %1593 = vrot.lane.b32.xlu0 %v3046_v52, %s2549_s28  ;;  %v3085_v52 = vpop.permute.xlu0 %1589 }
 0xff3   :  { %2342 = vmatpush3.bf16.msra.mxu1 %v2411_v4  ;;  %vm1591_vm4 = vcmp.eq.s32.totalorder %v3085_v52, 1 }
 0xff4   :  { %2355 = vmatprep.subr.bf16.mxu1 %v2544_v1  ;;  %v1597_v14 = vsel %vm1591_vm4, %v1579_v55, %v1567_v49 }
0x105c   :  { %v1462_v63 = vpop.permute.xlu1 %1461 }
0x105d   :  { %v3089_v3 = vmul.f32 %v2505_v28, %v1462_v63 }
0x1060   :  { %v1473_v5 = vpop.permute.xlu1 %1472  ;;  %v1583_v6 = vpop.permute.xlu0 %1582 }
0x1061   :  { %v1475_v8 = vsel %vm1470_vm12, %v3089_v3, %v1473_v5  ;;  %v3100_v9 = vmul.f32 %v2507_v38, %v1583_v6  ;;  %v2172_v6 = vld [vmem:[%s3372_s5 + $0xc] sm:$0x3] }
0x1062   :  { %1479 = vrot.lane.b32.xlu1 %v1475_v8, %s2547_s1 }
0x1063   :  { %v1598_v45 = vsel %vm1591_vm4, %v3100_v9, 0.0 }
0x1064   :  { %v1594_v10 = vpop.permute.xlu0 %1593 }
0x1065   :  { %v1596_v13 = vsel %vm1591_vm4, %v3100_v9, %v1594_v10 }
0x1066   :  { %1484 = vrot.lane.b32.xlu1 %v1476_v12, %s2549_s28  ;;  %1600 = vrot.lane.b32.xlu0 %v1596_v13, %s2547_s1  ;;  %v2177_v13 = vld [vmem:[%s3372_s5 + $0x2] sm:$0x3] }
0x1067   :  { %vm1828_vm9 = vcmp.gt.f32.partialorder %v2177_v13, 0.5 }
0x106a   :  { %1605 = vrot.lane.b32.xlu0 %v1597_v14, %s2549_s28 }
0x10d4   :  { %v1480_v15 = vpop.permute.xlu1 %1479 }
0x10d5   :  { %1482 = vst.msk [vmem:[#allocation4] sm:$0x3] %vm3374_vm0, %v1480_v15 }
0x10d8   :  { %v1485_v17 = vpop.permute.xlu1 %1484  ;;  %v1601_v20 = vpop.permute.xlu0 %1600 }
0x10d9   :  { %1487 = vst.msk [vmem:[#allocation5] sm:$0x3] %vm3374_vm0, %v1485_v17  ;;  %1603 = vst.msk [vmem:[#allocation6] sm:$0x3] %vm3374_vm0, %v1601_v20 }
0x10dc   :  { %v3116_v21 = vld [vmem:[#allocation4] sm:$0x3]  ;;  %v1606_v22 = vpop.permute.xlu0 %1605 }
0x10dd   :  { %v1617_v25 = vpack.c.bf16 %v3116_v21, %v3116_v21  ;;  %1608 = vst.msk [vmem:[#allocation7] sm:$0x3] %vm3374_vm0, %v1606_v22  ;;  %v1829_v22 = vsel %vm1828_vm9, 1, %v2545_v2 }
0x10df   :  { %2336 = vmatmul.mubr.msk.bf16.vlgmr.msra.gmra.mrb[24].mxu0 %vm166_vm3, %v1617_v25 }
0x10e0   :  { %2351 = vmatprep.mubr.msk.bf16.mxu0 %vm2546_vm1, %v2544_v1  ;;  %v3124_v16 = vld [vmem:[#allocation6] sm:$0x3]  ;;  %v1678_v53 = vld [vmem:[#allocation5] sm:$0x3] }
0x10e1   :  { %v1738_v28 = vpack.c.bf16 %v3124_v16, %v3124_v16 }
0x10e3   :  { %2344 = vmatmul.mubr.msk.bf16.vlgmr.msra.gmra.mrb[28].mxu1 %vm166_vm3, %v1738_v28 }
0x10e4   :  { %2359 = vmatprep.mubr.msk.bf16.mxu1 %vm2546_vm1, %v2544_v1  ;;  %v1799_v55 = vld [vmem:[#allocation7] sm:$0x3]  ;;  %vm1707_vm1 = vcmp.gt.f32.partialorder %v2172_v6, 0.5 }
0x10e5   :  { %v1708_v14 = vsel %vm1707_vm1, 1, %v2545_v2 }
0x11b2   :  { %v1671_v33 = vpop.f32.mrb[24].mxu0 }
0x11b3   :  { %v1677_v34 = vadd.f32 %v1671_v33, %v1615_v30  ;;  %v2337_v35 = vpop.f32.mrb[25].mxu0 }
0x11b4   :  { %v1674_v38 = vpop.f32.mrb[26].mxu0 }
0x11b5   :  { %2512 = vtanh.f32 %v1677_v34  ;;  %v2338_v39 = vpop.f32.mrb[27].mxu0  ;;  %v1680_v56 = vsub.f32 0.0, %v1677_v34 }
0x11b6   :  { %v1792_v42 = vpop.f32.mrb[28].mxu1 }
0x11b7   :  { %v1798_v43 = vadd.f32 %v1792_v42, %v1736_v40  ;;  %v2345_v44 = vpop.f32.mrb[29].mxu1  ;;  %v1681_v57 = vmul.f32 1.442695, %v1680_v56 }
0x11b8   :  { %v1795_v47 = vpop.f32.mrb[30].mxu1 }
0x11b9   :  { %2514 = vtanh.f32 %v1798_v43  ;;  %v2346_v49 = vpop.f32.mrb[31].mxu1  ;;  %v1801_v58 = vsub.f32 0.0, %v1798_v43  ;;  %v2412_v43 = vld [vmem:[%s3368_s2] sm:$0xff]   ;;  %v2413_v47 = vld [vmem:[%s3368_s2 + $0x8] sm:$0xff]  }
0x11ba   :  { %2516 = vpow2.f32 %v1681_v57  ;;  %2348 = vmatpush3.bf16.msra.mxu0 %v2412_v43 }
0x11bb   :  { %v1802_v59 = vmul.f32 1.442695, %v1801_v58  ;;  %2349 = vmatprep.subr.bf16.mxu0 %v2544_v1 }
0x11bd   :  { %2518 = vpow2.f32 %v1802_v59 }
0x11be   :  { %2350 = vmatpush3.bf16.msra.mxu0 %v2413_v47 }
0x11bf   :  { %v2513_v50 = vpop.eup %2512 }
0x11c0   :  { %1692 = vrot.lane.b32.xlu1 %v2513_v50, %s2548_s4 }
0x11c3   :  { %v2515_v54 = vpop.eup %2514 }
0x11c4   :  { %1687 = vrot.lane.b32.xlu1 %v1678_v53, %s2547_s1  ;;  %1813 = vrot.lane.b32.xlu0 %v2515_v54, %s2548_s4  ;;  %v2517_v48 = vpop.eup %2516  ;;  %v2415_v53 = vld [vmem:[%s3370_s3 + $0x8] sm:$0xff]  }
0x11c5   :  { %v1683_v63 = vadd.f32 1.0, %v2517_v48 }
0x11c7   :  { %v2519_v4 = vpop.eup %2518  ;;  %2520 = vrcp.f32 %v1683_v63 }
0x11c8   :  { %1808 = vrot.lane.b32.xlu0 %v1799_v55, %s2547_s1  ;;  %v1804_v5 = vadd.f32 1.0, %v2519_v4 }
0x11ca   :  { %2522 = vrcp.f32 %v1804_v5 }
0x11d1   :  { %v2521_v8 = vpop.eup %2520 }
0x11d4   :  { %v2523_v15 = vpop.eup %2522 }
0x1232   :  { %v1693_v10 = vpop.permute.xlu1 %1692 }
0x1233   :  { %v1695_v12 = vmul.f32 %v2521_v8, %v1693_v10 }
0x1235   :  { %1697 = vrot.lane.b32.xlu1 %v1695_v12, %s2547_s1 }
0x1236   :  { %v1814_v17 = vpop.permute.xlu0 %1813  ;;  %v1688_v25 = vpop.permute.xlu1 %1687 }
0x1237   :  { %v1816_v20 = vmul.f32 %v2523_v15, %v1814_v17  ;;  %v1690_v28 = vmul.f32 %v2521_v8, %v1688_v25 }
0x1239   :  { %1710 = vperm.xlu1 %2370, %v1708_v14   ;;  %1818 = vrot.lane.b32.xlu0 %v1816_v20, %s2547_s1  ;;  %v1857_v14 = vld [vmem:[#allocation2 + $0xe] sm:$0x3] }
0x123a   :  { %v1809_v33 = vpop.permute.xlu0 %1808 }
0x123b   :  { %v1811_v35 = vmul.f32 %v2523_v15, %v1809_v33 }
0x123d   :  { %1831 = vperm.xlu0 %2369, %v1829_v22  }
0x12a7   :  { %v1698_v30 = vpop.permute.xlu1 %1697 }
0x12a8   :  { %v1700_v34 = vadd.f32 %v1698_v30, %v1690_v28  ;;  %v1977_v28 = vld [vmem:[#allocation3] sm:$0x3] }
0x12aa   :  { %2524 = vtanh.f32 %v1700_v34 }
0x12ab   :  { %v1819_v38 = vpop.permute.xlu0 %1818 }
0x12ac   :  { %v1821_v39 = vadd.f32 %v1819_v38, %v1811_v35 }
0x12ae   :  { %2526 = vtanh.f32 %v1821_v39 }
0x12b4   :  { %v2525_v40 = vpop.eup %2524 }
0x12b5   :  { %1703 = vrot.lane.b32.xlu1 %v2525_v40, %s2548_s4 }
0x12b8   :  { %v2527_v42 = vpop.eup %2526  ;;  %v3154_v44 = vpop.permute.xlu1 %1710 }
0x12b9   :  { %1714 = vrot.lane.b32.xlu1 %v3116_v21, %s2549_s28  ;;  %1824 = vrot.lane.b32.xlu0 %v2527_v42, %s2548_s4  ;;  %v2414_v21 = vld [vmem:[%s3370_s3] sm:$0xff]   ;;  %vm1712_vm1 = vcmp.eq.s32.totalorder %v3154_v44, 1 }
0x12ba   :  { %2356 = vmatpush3.bf16.msra.mxu1 %v2414_v21 }
0x12bb   :  { %2357 = vmatprep.subr.bf16.mxu1 %v2544_v1  ;;  %v1718_v1 = vsel %vm1712_vm1, %v1700_v34, %v1688_v25 }
0x12bd   :  { %1835 = vrot.lane.b32.xlu0 %v3124_v16, %s2549_s28  ;;  %v3163_v16 = vpop.permute.xlu0 %1831 }
0x12be   :  { %2358 = vmatpush3.bf16.msra.mxu1 %v2415_v53  ;;  %vm1833_vm9 = vcmp.eq.s32.totalorder %v3163_v16, 1 }
0x12bf   :  { %v1839_v48 = vsel %vm1833_vm9, %v1821_v39, %v1809_v33 }
0x1327   :  { %v1704_v49 = vpop.permute.xlu1 %1703 }
0x1328   :  { %v3166_v50 = vmul.f32 %v2521_v8, %v1704_v49 }
0x132a   :  { %v1719_v41 = vsel %vm1712_vm1, %v3166_v50, 0.0 }
0x132b   :  { %v1715_v54 = vpop.permute.xlu1 %1714  ;;  %v1825_v55 = vpop.permute.xlu0 %1824 }
0x132c   :  { %v1717_v56 = vsel %vm1712_vm1, %v3166_v50, %v1715_v54  ;;  %v3176_v57 = vmul.f32 %v2523_v15, %v1825_v55 }
0x132d   :  { %1721 = vrot.lane.b32.xlu1 %v1717_v56, %s2547_s1 }
0x132f   :  { %v1836_v58 = vpop.permute.xlu0 %1835 }
0x1330   :  { %v1838_v59 = vsel %vm1833_vm9, %v3176_v57, %v1836_v58  ;;  %v2182_v58 = vld [vmem:[%s3372_s5 + $0xe] sm:$0x3] }
0x1331   :  { %1726 = vrot.lane.b32.xlu1 %v1718_v1, %s2549_s28  ;;  %1842 = vrot.lane.b32.xlu0 %v1838_v59, %s2547_s1 }
0x1335   :  { %1847 = vrot.lane.b32.xlu0 %v1839_v48, %s2549_s28 }
0x139f   :  { %v1722_v63 = vpop.permute.xlu1 %1721 }
0x13a0   :  { %1724 = vst.msk [vmem:[#allocation4] sm:$0x3] %vm3374_vm0, %v1722_v63 }
0x13a3   :  { %v1727_v4 = vpop.permute.xlu1 %1726  ;;  %v1843_v5 = vpop.permute.xlu0 %1842 }
0x13a4   :  { %1729 = vst.msk [vmem:[#allocation5] sm:$0x3] %vm3374_vm0, %v1727_v4  ;;  %1845 = vst.msk [vmem:[#allocation6] sm:$0x3] %vm3374_vm0, %v1843_v5  ;;  %v2041_v4 = vld [vmem:[%s3372_s5] sm:$0x3] }
0x13a7   :  { %v3192_v6 = vld [vmem:[#allocation4] sm:$0x3]  ;;  %v1848_v8 = vpop.permute.xlu0 %1847 }
0x13a8   :  { %v1859_v10 = vpack.c.bf16 %v3192_v6, %v3192_v6  ;;  %1850 = vst.msk [vmem:[#allocation7] sm:$0x3] %vm3374_vm0, %v1848_v8  ;;  %vm2069_vm0 = vcmp.gt.f32.partialorder %v2041_v4, 0.5 }
0x13aa   :  { %2352 = vmatmul.mubr.msk.bf16.vlgmr.msra.gmra.mrb[28].mxu0 %vm166_vm3, %v1859_v10 }
0x13ab   :  { %v3198_v12 = vld [vmem:[#allocation6] sm:$0x3]  ;;  %v1920_v40 = vld [vmem:[#allocation5] sm:$0x3] }
0x13ac   :  { %v1979_v13 = vpack.c.bf16 %v3198_v12, %v3198_v12 }
0x13ae   :  { %2360 = vmatmul.mubr.msk.bf16.vlgmr.msra.gmra.mrb[32].mxu1 %vm166_vm3, %v1979_v13  ;;  %vm1949_vm3 = vcmp.gt.f32.partialorder %v2182_v58, 0.5 }
0x13af   :  { %v2040_v43 = vld [vmem:[#allocation7] sm:$0x3]  ;;  %v1950_v5 = vsel %vm1949_vm3, 1, %v2545_v2 }
0x147d   :  { %v1913_v15 = vpop.f32.mrb[28].mxu0 }
0x147e   :  { %v1919_v17 = vadd.f32 %v1913_v15, %v1857_v14  ;;  %v2353_v20 = vpop.f32.mrb[29].mxu0  ;;  %v2070_v14 = vsel %vm2069_vm0, 1, %v2545_v2  ;;  %v252_v2 = vsel %vm245_vm6, %v2702_v23, 0.0  ;;  %v621_v23 = vsel %vm614_vm11, %v2788_v37, 0.0 }
0x147f   :  { %v1916_v22 = vpop.f32.mrb[30].mxu0  ;;  %v1356_v37 = vsel %vm1349_vm2, %v3022_v36, 0.0 }
0x1480   :  { %2528 = vtanh.f32 %v1919_v17  ;;  %v2354_v25 = vpop.f32.mrb[31].mxu0  ;;  %v1922_v47 = vsub.f32 0.0, %v1919_v17 }
0x1481   :  { %v2033_v30 = vpop.f32.mrb[32].mxu1 }
0x1482   :  { %v2039_v33 = vadd.f32 %v2033_v30, %v1977_v28  ;;  %v2361_v34 = vpop.f32.mrb[33].mxu1  ;;  %v1923_v21 = vmul.f32 1.442695, %v1922_v47 }
0x1483   :  { %v2036_v35 = vpop.f32.mrb[34].mxu1 }
0x1484   :  { %2530 = vtanh.f32 %v2039_v33  ;;  %v2362_v38 = vpop.f32.mrb[35].mxu1  ;;  %v2042_v49 = vsub.f32 0.0, %v2039_v33 }
0x1485   :  { %2532 = vpow2.f32 %v1923_v21  ;;  %v498_v38 = vsel %vm491_vm10, %v2777_v32, 0.0  ;;  %v1477_v32 = vsel %vm1470_vm12, %v3089_v3, 0.0  ;;  %vm390_vm10 = vcmask 517376  }
0x1486   :  { %v2043_v53 = vmul.f32 1.442695, %v2042_v49 }
0x1488   :  { %2534 = vpow2.f32 %v2043_v53 }
0x148a   :  { %v2529_v39 = vpop.eup %2528 }
0x148b   :  { %1934 = vrot.lane.b32.xlu1 %v2529_v39, %s2548_s4  ;;  %v374_v39 = vsel %vm367_vm7, %v2710_v27, 0.0  ;;  %v867_v27 = vsel %vm860_vm15, %v2866_v51, 0.0  ;;  %v1840_v51 = vsel %vm1833_vm9, %v3176_v57, 0.0  ;;  %vm3375_vm7 = vcmask 254976  }
0x148c   :  { %vm3376_vm11 = vmmov %vm3375_vm7 }
0x148d   :  { %vm3377_vm14 = vmmov %vm3375_vm7 }
0x148e   :  { %v2531_v42 = vpop.eup %2530  ;;  %vm3378_vm15 = vmmov %vm3375_vm7 }
0x148f   :  { %1929 = vrot.lane.b32.xlu1 %v1920_v40, %s2547_s1  ;;  %2054 = vrot.lane.b32.xlu0 %v2531_v42, %s2548_s4  ;;  %v2533_v54 = vpop.eup %2532  ;;  %vm3379_vm5 = vmmov %vm3375_vm7 }
0x1490   :  { %v1925_v55 = vadd.f32 1.0, %v2533_v54  ;;  %vm3380_vm8 = vmmov %vm3379_vm5 }
0x1491   :  { %vm3381_vm13 = vmmov %vm3379_vm5 }
0x1492   :  { %v2535_v56 = vpop.eup %2534  ;;  %2536 = vrcp.f32 %v1925_v55  ;;  %vm3382_vm2 = vmmov %vm3379_vm5 }
0x1493   :  { %2049 = vrot.lane.b32.xlu0 %v2040_v43, %s2547_s1  ;;  %v2045_v1 = vadd.f32 1.0, %v2535_v56  ;;  %vm3383_vm12 = vmmov %vm3382_vm2 }
0x1494   :  { %vm3384_vm4 = vmmov %vm3382_vm2 }
0x1495   :  { %2538 = vrcp.f32 %v2045_v1  ;;  %vm3385_vm1 = vmmov %vm3382_vm2 }
0x1496   :  { %vm3386_vm9 = vmmov %vm3385_vm1 }
0x149c   :  { %v3210_v59 = vpop.eup %2536 }
0x149f   :  { %v3218_v8 = vpop.eup %2538 }
0x14fd   :  { %v1935_v48 = vpop.permute.xlu1 %1934 }
0x14fe   :  { %v1937_v63 = vmul.f32 %v3210_v59, %v1935_v48 }
0x1500   :  { %1939 = vrot.lane.b32.xlu1 %v1937_v63, %s2547_s1 }
0x1501   :  { %v2055_v10 = vpop.permute.xlu0 %2054  ;;  %v1930_v15 = vpop.permute.xlu1 %1929 }
0x1502   :  { %v2057_v13 = vmul.f32 %v3218_v8, %v2055_v10  ;;  %v1932_v17 = vmul.f32 %v3210_v59, %v1930_v15 }
0x1504   :  { %1952 = vperm.xlu1 %2370, %v1950_v5   ;;  %2059 = vrot.lane.b32.xlu0 %v2057_v13, %s2547_s1 }
0x1505   :  { %v3224_v22 = vpop.permute.xlu0 %2049 }
0x1506   :  { %v2052_v28 = vmul.f32 %v3218_v8, %v3224_v22 }
0x1508   :  { %2072 = vperm.xlu0 %2369, %v2070_v14  }
0x1572   :  { %v1940_v20 = vpop.permute.xlu1 %1939 }
0x1573   :  { %v1942_v25 = vadd.f32 %v1940_v20, %v1932_v17 }
0x1575   :  { %2540 = vtanh.f32 %v1942_v25 }
0x1576   :  { %v2060_v30 = vpop.permute.xlu0 %2059 }
0x1577   :  { %v2062_v33 = vadd.f32 %v2060_v30, %v2052_v28 }
0x1579   :  { %2542 = vtanh.f32 %v2062_v33 }
0x157f   :  { %v2541_v34 = vpop.eup %2540 }
0x1580   :  { %1945 = vrot.lane.b32.xlu1 %v2541_v34, %s2548_s4 }
0x1583   :  { %v2543_v35 = vpop.eup %2542  ;;  %v1953_v46 = vpop.permute.xlu1 %1952 }
0x1584   :  { %1956 = vrot.lane.b32.xlu1 %v3192_v6, %s2549_s28  ;;  %2065 = vrot.lane.b32.xlu0 %v2543_v35, %s2548_s4  ;;  %vm1954_vm0 = vcmp.eq.s32.totalorder %v1953_v46, 1 }
0x1585   :  { %v1960_v60 = vsel %vm1954_vm0, %v1942_v25, %v1930_v15 }
0x1587   :  { %v2073_v0 = vpop.permute.xlu0 %2072 }
0x1588   :  { %264 = vrot.lane.b32.xlu1 %v252_v2, %s2547_s1  ;;  %2076 = vrot.lane.b32.xlu0 %v3198_v12, %s2549_s28  ;;  %vm2074_vm6 = vcmp.eq.s32.totalorder %v2073_v0, 1 }
0x1589   :  { %v2080_v16 = vsel %vm2074_vm6, %v2062_v33, %v3224_v22 }
0x158c   :  { %510 = vrot.lane.b32.xlu1 %v498_v38, %s2547_s1  ;;  %386 = vrot.lane.b32.xlu0 %v374_v39, %s2548_s4 }
0x1590   :  { %756 = vrot.lane.b32.xlu1 %v744_v19, %s2547_s1  ;;  %633 = vrot.lane.b32.xlu0 %v621_v23, %s2548_s4 }
0x1594   :  { %1002 = vrot.lane.b32.xlu1 %v990_v18, %s2547_s1  ;;  %879 = vrot.lane.b32.xlu0 %v867_v27, %s2548_s4 }
0x1598   :  { %1247 = vrot.lane.b32.xlu1 %v1235_v26, %s2547_s1  ;;  %1125 = vrot.lane.b32.xlu0 %v1113_v31, %s2548_s4 }
0x159c   :  { %1489 = vrot.lane.b32.xlu1 %v1477_v32, %s2547_s1  ;;  %1368 = vrot.lane.b32.xlu0 %v1356_v37, %s2548_s4 }
0x15a0   :  { %1731 = vrot.lane.b32.xlu1 %v1719_v41, %s2547_s1  ;;  %1610 = vrot.lane.b32.xlu0 %v1598_v45, %s2548_s4 }
0x15a4   :  { %1852 = vrot.lane.b32.xlu0 %v1840_v51, %s2548_s4 }
0x15a8   :  { %1968 = vrot.lane.b32.xlu0 %v1960_v60, %s2549_s28 }
0x15f2   :  { %v1946_v62 = vpop.permute.xlu1 %1945 }
0x15f3   :  { %v1948_v7 = vmul.f32 %v3210_v59, %v1946_v62 }
0x15f5   :  { %v1961_v52 = vsel %vm1954_vm0, %v1948_v7, 0.0 }
0x15f6   :  { %v1957_v24 = vpop.permute.xlu1 %1956  ;;  %v2066_v11 = vpop.permute.xlu0 %2065 }
0x15f7   :  { %v1959_v29 = vsel %vm1954_vm0, %v1948_v7, %v1957_v24  ;;  %v2068_v36 = vmul.f32 %v3218_v8, %v2066_v11 }
0x15f8   :  { %1963 = vrot.lane.b32.xlu1 %v1959_v29, %s2547_s1 }
0x15f9   :  { %v2081_v57 = vsel %vm2074_vm6, %v2068_v36, 0.0 }
0x15fa   :  { %v265_v61 = vpop.permute.xlu1 %264  ;;  %v2077_v3 = vpop.permute.xlu0 %2076 }
0x15fb   :  { %267 = vst.msk [vmem:[%s3373_s6] sm:$0x3] %vm3375_vm7, %v265_v61  ;;  %v2079_v9 = vsel %vm2074_vm6, %v2068_v36, %v2077_v3 }
0x15fc   :  { %1973 = vrot.lane.b32.xlu1 %v1961_v52, %s2547_s1  ;;  %2083 = vrot.lane.b32.xlu0 %v2079_v9, %s2547_s1 }
0x15fe   :  { %v511_v44 = vpop.permute.xlu1 %510  ;;  %v387_v50 = vpop.permute.xlu0 %386 }
0x15ff   :  { %2123 = vst.msk [vmem:[%s3373_s6 + $0x2] sm:$0x3] %vm3376_vm11, %v511_v44 }
0x1600   :  { %2118 = vst.msk [vmem:[%s3373_s6 + $0xe] sm:$0x3] %vm390_vm10, %v387_v50  ;;  %2088 = vrot.lane.b32.xlu1 %v2080_v16, %s2549_s28  ;;  %2093 = vrot.lane.b32.xlu0 %v2081_v57, %s2548_s4 }
0x1602   :  { %v757_v6 = vpop.permute.xlu1 %756  ;;  %v634_v12 = vpop.permute.xlu0 %633 }
0x1603   :  { %2133 = vst.msk [vmem:[%s3373_s6 + $0x4] sm:$0x3] %vm3377_vm14, %v757_v6 }
0x1604   :  { %2128 = vst.msk [vmem:[%s3373_s6 + $0xc] sm:$0x3] %vm390_vm10, %v634_v12 }
0x1606   :  { %v1003_v40 = vpop.permute.xlu1 %1002  ;;  %v880_v42 = vpop.permute.xlu0 %879 }
0x1607   :  { %2143 = vst.msk [vmem:[%s3373_s6 + $0x6] sm:$0x3] %vm3378_vm15, %v1003_v40 }
0x1608   :  { %2138 = vst.msk [vmem:[%s3373_s6 + $0xa] sm:$0x3] %vm390_vm10, %v880_v42 }
0x160a   :  { %v1248_v43 = vpop.permute.xlu1 %1247  ;;  %v1126_v47 = vpop.permute.xlu0 %1125 }
0x160b   :  { %2148 = vst.msk [vmem:[%s3373_s6 + $0x8] sm:$0x3] %vm390_vm10, %v1126_v47 }
0x160c   :  { %2153 = vst.msk [vmem:[%s3373_s6 + $0x8] sm:$0x3] %vm3379_vm5, %v1248_v43 }
0x160e   :  { %v1490_v21 = vpop.permute.xlu1 %1489  ;;  %v1369_v49 = vpop.permute.xlu0 %1368 }
0x160f   :  { %2163 = vst.msk [vmem:[%s3373_s6 + $0xa] sm:$0x3] %vm3380_vm8, %v1490_v21 }
0x1610   :  { %2158 = vst.msk [vmem:[%s3373_s6 + $0x6] sm:$0x3] %vm390_vm10, %v1369_v49 }
0x1612   :  { %v1732_v53 = vpop.permute.xlu1 %1731  ;;  %v1611_v54 = vpop.permute.xlu0 %1610 }
0x1613   :  { %2173 = vst.msk [vmem:[%s3373_s6 + $0xc] sm:$0x3] %vm3381_vm13, %v1732_v53 }
0x1614   :  { %2168 = vst.msk [vmem:[%s3373_s6 + $0x4] sm:$0x3] %vm390_vm10, %v1611_v54 }
0x1616   :  { %v1853_v55 = vpop.permute.xlu0 %1852 }
0x1617   :  { %2178 = vst.msk [vmem:[%s3373_s6 + $0x2] sm:$0x3] %vm390_vm10, %v1853_v55 }
0x161a   :  { %v1969_v56 = vpop.permute.xlu0 %1968 }
0x161b   :  { %1971 = vst.msk [vmem:[#allocation5] sm:$0x3] %vm3382_vm2, %v1969_v56 }
0x166a   :  { %v1964_v1 = vpop.permute.xlu1 %1963 }
0x166b   :  { %1966 = vst.msk [vmem:[#allocation4] sm:$0x3] %vm3383_vm12, %v1964_v1 }
0x166e   :  { %v1974_v58 = vpop.permute.xlu1 %1973  ;;  %v2084_v59 = vpop.permute.xlu0 %2083 }
0x166f   :  { %2183 = vst.msk [vmem:[%s3373_s6 + $0xe] sm:$0x3] %vm3384_vm4, %v1974_v58 }
0x1670   :  { %2086 = vst.msk [vmem:[#allocation6] sm:$0x3] %vm3385_vm1, %v2084_v59 }
0x1672   :  { %v2089_v48 = vpop.permute.xlu1 %2088  ;;  %v2094_v63 = vpop.permute.xlu0 %2093 }
0x1673   :  { %2091 = vst.msk [vmem:[#allocation7] sm:$0x3] %vm3386_vm9, %v2089_v48 }
0x1674   :  { %2096 = vst.msk [vmem:[%s3373_s6] sm:$0x3] %vm390_vm10, %v2094_v63 }

</bundles_post_ra>
